<compile_context>
chip_gen: v7x
topology: tpu7x:2x2x1
jax: 0.10.0
libtpu: 0.0.40
codegen_flags: <defaults>
</compile_context>

<pallas_src>
import math
from functools import partial

import jax
import jax.numpy as jnp
import numpy as np
from jax import lax
from jax.experimental import pallas as pl
from jax.experimental.pallas import tpu as pltpu


# -----------------------------------------------------------------------------
# Pallas kernel: one grid step == (batch block, time chunk); recurrence inside.
# -----------------------------------------------------------------------------
def rits_kernel(
    x_ref, m_ref, d_ref,                              # (tt, bb, Xp) sequence chunks
    wdh_ref, bdh_ref,                                 # temp_decay_h: (Xp, Rp), (1, Rp)
    wdx_ref, bdx_ref,                                 # temp_decay_x diag: (1, Xp), (1, Xp)
    wcombg_ref, wcombm_wihm_ref, bcomb_ref,           # combine split / fused m-weights
    whist_whh_ref, bhist_ref,                         # fused [W_hist | W_hh]: (Rp, Xp+4Rp)
    wfeat_ref, bfeat_ref,                             # feat_reg (off-diag masked, transposed)
    wihc_ref, blstm_ref,                              # LSTM x-part: (Xp, 4Rp), (1, 4Rp)
    out_ref,                                          # (tt, bb, 4*Xp) packed [c_c|x_h|z_h|c_h]
    gh_scr, beta_scr, mih_scr,                        # per-chunk precompute scratch
    h_scr, c_scr,                                     # (bb, Rp) recurrent state
    *, compute_dtype=jnp.float32,
):
    tt, bb, Xp = x_ref.shape
    Rp = h_scr.shape[1]
    cdt = compute_dtype

    # Fresh recurrent state only at the first time chunk of this batch block.
    @pl.when(pl.program_id(1) == 0)
    def _():
        h_scr[...] = jnp.zeros_like(h_scr)
        c_scr[...] = jnp.zeros_like(c_scr)

    # ---- Hoisted state-independent projections: big (tt*bb)-row matmuls once per
    # chunk instead of tt tiny bb-row matmuls on the serial h/c critical path. ----
    d2 = d_ref[...].reshape(tt * bb, Xp)              # layout-preserving (bb % 8 == 0)
    m2 = m_ref[...].reshape(tt * bb, Xp)

    gh = jnp.exp(-jnp.maximum(
        jnp.dot(d2.astype(cdt), wdh_ref[...], preferred_element_type=jnp.float32)
        + bdh_ref[...], 0.0))                                           # (tt*bb, Rp)
    gx = jnp.exp(-jnp.maximum(d2 * wdx_ref[...] + bdx_ref[...], 0.0))   # (tt*bb, Xp)
    mproj = jnp.dot(m2.astype(cdt), wcombm_wihm_ref[...],
                    preferred_element_type=jnp.float32)                 # (tt*bb, Xp+4Rp)
    beta = (jnp.dot(gx.astype(cdt), wcombg_ref[...],
                    preferred_element_type=jnp.float32)
            + mproj[:, :Xp] + bcomb_ref[...])                           # (tt*bb, Xp)

    gh_scr[...] = gh.reshape(tt, bb, Rp)
    beta_scr[...] = beta.reshape(tt, bb, Xp)
    mih_scr[...] = (mproj[:, Xp:] + blstm_ref[...]).reshape(tt, bb, 4 * Rp)

    # Loop-invariant bias broadcasts (hoisted out of the time loop).
    bhist_b = jnp.broadcast_to(bhist_ref[...], (bb, Xp))
    bfeat_b = jnp.broadcast_to(bfeat_ref[...], (bb, Xp))

    def step(t, carry):
        x_t = x_ref[t]                       # (bb, Xp)
        m_t = m_ref[t]
        one_minus_m = 1.0 - m_t

        h = h_scr[...] * gh_scr[t]           # temporally decayed hidden state
        # Fused shared-LHS dot: h @ [W_hist | W_hh] -> x_h part + gates-h part.
        hx = jnp.dot(h.astype(cdt), whist_whh_ref[...],
                     preferred_element_type=jnp.float32)                # (bb, Xp+4Rp)
        x_h = hx[:, :Xp] + bhist_b
        h_gates = hx[:, Xp:]

        x_c = m_t * x_t + one_minus_m * x_h
        z_h = jnp.dot(x_c.astype(cdt), wfeat_ref[...],
                      preferred_element_type=jnp.float32) + bfeat_b
        beta_t = beta_scr[t]                 # precomputed (no sigmoid: matches module)
        c_h = beta_t * z_h + (1.0 - beta_t) * x_h
        c_c = m_t * x_t + one_minus_m * c_h

        # LSTM gates (PyTorch order i, f, g, o); m-part and biases precomputed.
        gates = (jnp.dot(c_c.astype(cdt), wihc_ref[...],
                         preferred_element_type=jnp.float32)
                 + h_gates + mih_scr[t])                                 # (bb, 4Rp)
        i_g = jax.nn.sigmoid(gates[:, 0 * Rp:1 * Rp])
        f_g = jax.nn.sigmoid(gates[:, 1 * Rp:2 * Rp])
        g_g = jnp.tanh(gates[:, 2 * Rp:3 * Rp])
        o_g = jax.nn.sigmoid(gates[:, 3 * Rp:4 * Rp])
        c_new = f_g * c_scr[...] + i_g * g_g
        h_new = o_g * jnp.tanh(c_new)
        h_scr[...] = h_new
        c_scr[...] = c_new

        # Single lane-dense packed store (Xp is a multiple of 128).
        out_ref[t] = jnp.concatenate([c_c, x_h, z_h, c_h], axis=-1)
        return carry

    # Partial unroll so the next step's off-critical-path work can fill VLIW slots.
    lax.fori_loop(0, tt, step, 0, unroll=(tt if tt <= 8 else 8))


# -----------------------------------------------------------------------------
# Wrapper helpers: padding / weight fusion.
# -----------------------------------------------------------------------------
def _round_up(n, m):
    return ((n + m - 1) // m) * m


def _pad2(w, rows, cols):
    return jnp.pad(w, ((0, rows - w.shape[0]), (0, cols - w.shape[1])))


def _prepare_weights(params, X, R, Xp, Rp, compute_dtype):
    """Zero-pad to (8,128)-aligned shapes, pre-split concats, fuse shared-LHS dots."""
    wdh = _pad2(params["wdh"], Xp, Rp)
    bdh = _pad2(params["bdh"], 1, Rp)
    wdx = _pad2(params["wdx"], 1, Xp)
    bdx = _pad2(params["bdx"], 1, Xp)
    whist = _pad2(params["whist"], Rp, Xp)
    bhist = _pad2(params["bhist"], 1, Xp)
    wfeat = _pad2(params["wfeat"], Xp, Xp)
    bfeat = _pad2(params["bfeat"], 1, Xp)
    wcomb = params["wcomb"]                      # (2X, X)
    wcombg = _pad2(wcomb[:X], Xp, Xp)
    wcombm = _pad2(wcomb[X:], Xp, Xp)
    bcomb = _pad2(params["bcomb"], 1, Xp)

    # LSTM weights: pad each [i|f|g|o] gate block R -> Rp so gate slices stay
    # 128-lane aligned inside the kernel.  Zero padding keeps padded h/c dims at 0.
    def pad_gates(w, rows_p):
        w4 = w.reshape(w.shape[0], 4, R)
        w4 = jnp.pad(w4, ((0, rows_p - w.shape[0]), (0, 0), (0, Rp - R)))
        return w4.reshape(rows_p, 4 * Rp)

    wih = params["wih"]                          # (2X, 4R)
    wihc = pad_gates(wih[:X], Xp)
    wihm = pad_gates(wih[X:], Xp)
    whh = pad_gates(params["whh"], Rp)
    blstm = jnp.pad(params["blstm"].reshape(1, 4, R),
                    ((0, 0), (0, 0), (0, Rp - R))).reshape(1, 4 * Rp)

    # Fused shared-LHS weights (halves MXU round-trips per step / per chunk).
    whist_whh = jnp.concatenate([whist, whh], axis=1)        # (Rp, Xp+4Rp)
    wcombm_wihm = jnp.concatenate([wcombm, wihm], axis=1)    # (Xp, Xp+4Rp)

    if compute_dtype != jnp.float32:
        wdh, wcombg, wcombm_wihm, whist_whh, wfeat, wihc = (
            w.astype(compute_dtype)
            for w in (wdh, wcombg, wcombm_wihm, whist_whh, wfeat, wihc))

    return (wdh, bdh, wdx, bdx, wcombg, wcombm_wihm, bcomb,
            whist_whh, bhist, wfeat, bfeat, wihc, blstm)


# -----------------------------------------------------------------------------
# Wrapper: builds grid / BlockSpecs and calls the kernel.
# -----------------------------------------------------------------------------
def rits_pallas(x_tbx, m_tbx, d_tbx, params, *, batch_block=None, time_block=None,
                compute_dtype=jnp.float32,
                vmem_budget_bytes=40 * 1024 * 1024):
    """x_tbx, m_tbx, d_tbx: (T, B, X) float32; returns (pred, x_h, z_h, c_h)."""
    T, B, X = x_tbx.shape
    R = params["wdh"].shape[1]
    Xp = _round_up(X, 128)       # lane-dense matmul N / output stores
    Rp = _round_up(R, 128)       # lane-aligned gate slices
    Bp = _round_up(B, 8)         # sublane-aligned batch

    def pad_seq(a):
        return jnp.pad(a, ((0, 0), (0, Bp - B), (0, Xp - X)))

    xp, mp, dp = pad_seq(x_tbx), pad_seq(m_tbx), pad_seq(d_tbx)
    weights = _prepare_weights(params, X, R, Xp, Rp, compute_dtype)

    # Batch blocking: >= 2 blocks when B is large enough so both v7x TCs get work.
    if batch_block is None:
        bb = Bp // 2 if (Bp >= 16 and (Bp // 2) % 8 == 0) else Bp
    else:
        bb = batch_block
    assert Bp % bb == 0 and bb % 8 == 0, "batch block must tile padded B and be a multiple of 8"
    nb = Bp // bb

    # Time blocking: biggest divisor of T whose resident VMEM stays in budget
    # (double-buffered seq in/out + precompute scratch + temporaries + weights).
    wbytes = sum(int(np.prod(w.shape)) * w.dtype.itemsize for w in weights)

    def vmem_bytes(tt):
        seq_io = 2 * (3 * Xp + 4 * Xp) * tt * bb * 4            # x/m/d in + packed out, x2 buffers
        scratch = (tt * bb * (Rp + Xp + 4 * Rp) + 2 * bb * Rp) * 4
        temps = tt * bb * (2 * Xp + (Xp + 4 * Rp)) * 4          # gx / beta / mproj live ranges
        return seq_io + scratch + temps + 2 * wbytes

    if time_block is None:
        tt = 1
        for cand in range(T, 0, -1):
            if T % cand == 0 and vmem_bytes(cand) <= vmem_budget_bytes:
                tt = cand
                break
    else:
        tt = time_block
    assert T % tt == 0, "time block must divide T"
    nt = T // tt

    # Explicit VMEM limit: raise v5e's 16 MiB default scoped limit, stay well under
    # v7x's 64 MiB physical VMEM.
    vmem_limit = int(min(max(vmem_bytes(tt) + (8 << 20), 32 << 20), 48 << 20))

    seq_spec = pl.BlockSpec((tt, bb, Xp), lambda b, t: (t, b, 0))
    out_spec = pl.BlockSpec((tt, bb, 4 * Xp), lambda b, t: (t, b, 0))
    w_specs = [pl.BlockSpec(w.shape, lambda b, t: (0, 0)) for w in weights]

    out = pl.pallas_call(
        partial(rits_kernel, compute_dtype=compute_dtype),
        out_shape=jax.ShapeDtypeStruct((T, Bp, 4 * Xp), jnp.float32),
        grid=(nb, nt),
        in_specs=[seq_spec, seq_spec, seq_spec] + w_specs,
        out_specs=out_spec,
        scratch_shapes=[
            pltpu.VMEM((tt, bb, Rp), jnp.float32),       # gamma_h precompute
            pltpu.VMEM((tt, bb, Xp), jnp.float32),       # beta precompute
            pltpu.VMEM((tt, bb, 4 * Rp), jnp.float32),   # m @ W_ih_m + b_lstm precompute
            pltpu.VMEM((bb, Rp), jnp.float32),           # h
            pltpu.VMEM((bb, Rp), jnp.float32),           # c
        ],
        compiler_params=pltpu.CompilerParams(
            dimension_semantics=("parallel", "arbitrary"),
            vmem_limit_bytes=vmem_limit,
        ),
    )(xp, mp, dp, *weights)

    pred = out[:, :B, 0 * Xp:0 * Xp + X]
    x_h = out[:, :B, 1 * Xp:1 * Xp + X]
    z_h = out[:, :B, 2 * Xp:2 * Xp + X]
    c_h = out[:, :B, 3 * Xp:3 * Xp + X]
    return pred, x_h, z_h, c_h


# -----------------------------------------------------------------------------
# Pure-JAX reference (lax.scan) used for a correctness check.
# -----------------------------------------------------------------------------
def rits_ref(x_tbx, m_tbx, d_tbx, params):
    T, B, X = x_tbx.shape
    R = params["wdh"].shape[1]

    def step(carry, inp):
        h, c = carry
        x_t, m_t, d_t = inp
        gamma_h = jnp.exp(-jax.nn.relu(d_t @ params["wdh"] + params["bdh"]))
        gamma_x = jnp.exp(-jax.nn.relu(d_t * params["wdx"] + params["bdx"]))
        h = h * gamma_h
        x_h = h @ params["whist"] + params["bhist"]
        x_c = m_t * x_t + (1.0 - m_t) * x_h
        z_h = x_c @ params["wfeat"] + params["bfeat"]
        beta = jnp.concatenate([gamma_x, m_t], 1) @ params["wcomb"] + params["bcomb"]
        c_h = beta * z_h + (1.0 - beta) * x_h
        c_c = m_t * x_t + (1.0 - m_t) * c_h
        gates = (jnp.concatenate([c_c, m_t], 1) @ params["wih"]
                 + h @ params["whh"] + params["blstm"])
        i_g = jax.nn.sigmoid(gates[:, 0 * R:1 * R])
        f_g = jax.nn.sigmoid(gates[:, 1 * R:2 * R])
        g_g = jnp.tanh(gates[:, 2 * R:3 * R])
        o_g = jax.nn.sigmoid(gates[:, 3 * R:4 * R])
        c_new = f_g * c + i_g * g_g
        h_new = o_g * jnp.tanh(c_new)
        return (h_new, c_new), (c_c, x_h, z_h, c_h)

    h0 = jnp.zeros((B, R), jnp.float32)
    c0 = jnp.zeros((B, R), jnp.float32)
    _, outs = lax.scan(step, (h0, c0), (x_tbx, m_tbx, d_tbx))
    return outs  # each (T, B, X)


# -----------------------------------------------------------------------------
# Deterministic parameter init (shapes follow the PyTorch module's __init__).
# -----------------------------------------------------------------------------
def init_params(key, X, R):
    ks = jax.random.split(key, 16)
    u = lambda k, shape, s: jax.random.uniform(k, shape, jnp.float32, -s, s)

    W_dh = u(ks[0], (R, X), 1.0 / math.sqrt(R))       # TemporalDecay h
    b_dh = u(ks[1], (R,), 1.0 / math.sqrt(R))
    W_dx = u(ks[2], (X, X), 1.0 / math.sqrt(X))       # TemporalDecay x (diag)
    b_dx = u(ks[3], (X,), 1.0 / math.sqrt(X))
    W_hist = u(ks[4], (X, R), 1.0 / math.sqrt(R))     # hist_reg: Linear(R -> X)
    b_hist = u(ks[5], (X,), 1.0 / math.sqrt(R))
    W_feat = u(ks[6], (X, X), 1.0 / math.sqrt(X))     # feat_reg (off-diag mask)
    b_feat = u(ks[7], (X,), 1.0 / math.sqrt(X))
    W_comb = u(ks[8], (X, 2 * X), 1.0 / math.sqrt(2 * X))
    b_comb = u(ks[9], (X,), 1.0 / math.sqrt(2 * X))
    W_ih = u(ks[10], (4 * R, 2 * X), 1.0 / math.sqrt(R))   # LSTMCell(2X -> R)
    W_hh = u(ks[11], (4 * R, R), 1.0 / math.sqrt(R))
    b_ih = u(ks[12], (4 * R,), 1.0 / math.sqrt(R))
    b_hh = u(ks[13], (4 * R,), 1.0 / math.sqrt(R))

    off_diag = 1.0 - jnp.eye(X, dtype=jnp.float32)
    return {
        "wdh": W_dh.T,                         # (X, R)
        "bdh": b_dh[None, :],                  # (1, R)
        "wdx": jnp.diag(W_dx)[None, :],        # (1, X)  diagonal of W * I
        "bdx": b_dx[None, :],                  # (1, X)
        "whist": W_hist.T,                     # (R, X)
        "bhist": b_hist[None, :],              # (1, X)
        "wfeat": (W_feat * off_diag).T,        # (X, X)
        "bfeat": b_feat[None, :],              # (1, X)
        "wcomb": W_comb.T,                     # (2X, X)
        "bcomb": b_comb[None, :],              # (1, X)
        "wih": W_ih.T,                         # (2X, 4R)
        "whh": W_hh.T,                         # (R, 4R)
        "blstm": (b_ih + b_hh)[None, :],       # (1, 4R)
    }


# -----------------------------------------------------------------------------
# Full forward (glue: feature slicing / flatten / transpose + loss).
# -----------------------------------------------------------------------------
def rits_forward(ret, params, *, n_players, n_features):
    def prep(a):
        bs, seq_len = a.shape[:2]
        a = a.reshape(bs, seq_len, n_players, -1)[..., :n_features]
        a = a.reshape(bs, seq_len, n_players * n_features)
        return jnp.transpose(a, (1, 0, 2)).astype(jnp.float32)  # (T, B, X)

    x_tbx = prep(ret["input"])
    tgt_tbx = prep(ret["target"])
    m_tbx = prep(ret["mask"])
    d_tbx = prep(ret["delta"])

    pred, x_h_, z_h_, c_h_ = rits_pallas(x_tbx, m_tbx, d_tbx, params)

    # TODO(synk): `reshape_tensor(..., sports, single_team)` is not defined in the
    # reference source; the L1 masked loss below is computed over the full
    # flattened feature axis instead of the sport-specific xy reshape.
    one_minus_m = 1.0 - m_tbx
    denom = jnp.sum(one_minus_m)
    total_loss = 0.0
    for out in (x_h_, z_h_, c_h_):
        total_loss = total_loss + jnp.sum(jnp.abs(out - tgt_tbx) * one_minus_m) / denom

    back = lambda a: jnp.transpose(a, (1, 0, 2))  # back to (B, T, X)
    ret = dict(ret)
    ret.update({
        "loss": total_loss,
        "pred": back(pred),
        "target": back(tgt_tbx),
        "input": back(x_tbx),
        "mask": back(m_tbx),
        "_x_h": back(x_h_), "_z_h": back(z_h_), "_c_h": back(c_h_),
    })
    return ret


if __name__ == "__main__":
    # Small config: team_size=2 -> n_players=4, n_features=2 -> x_dim=8, rnn_dim=32
    team_size, n_features, rnn_dim = 2, 2, 32
    n_players = team_size * 2
    X = n_players * n_features
    B, T = 2, 8
    feat_total = 4  # raw per-player feature dim before [..., :n_features] slicing

    key = jax.random.PRNGKey(0)
    k_par, k_in, k_tg, k_mk, k_dl = jax.random.split(key, 5)
    params = init_params(k_par, X, rnn_dim)

    raw_shape = (B, T, n_players * feat_total)
    ret = {
        "input": jax.random.normal(k_in, raw_shape, jnp.float32),
        "target": jax.random.normal(k_tg, raw_shape, jnp.float32),
        "mask": (jax.random.uniform(k_mk, raw_shape) > 0.3).astype(jnp.float32),
        "delta": jax.random.uniform(k_dl, raw_shape, jnp.float32, 0.0, 5.0),
    }

    out = rits_forward(ret, params, n_players=n_players, n_features=n_features)
    jax.block_until_ready(out["loss"])

    # Correctness check against a pure-JAX lax.scan reference.
    def prep(a):
        a = a.reshape(B, T, n_players, -1)[..., :n_features].reshape(B, T, X)
        return jnp.transpose(a, (1, 0, 2)).astype(jnp.float32)

    ref_pred, ref_xh, ref_zh, ref_ch = rits_ref(
        prep(ret["input"]), prep(ret["mask"]), prep(ret["delta"]), params
    )
    np.testing.assert_allclose(np.asarray(out["pred"]),
                               np.asarray(jnp.transpose(ref_pred, (1, 0, 2))),
                               rtol=1e-4, atol=1e-4)
    np.testing.assert_allclose(np.asarray(out["_x_h"]),
                               np.asarray(jnp.transpose(ref_xh, (1, 0, 2))),
                               rtol=1e-4, atol=1e-4)
    np.testing.assert_allclose(np.asarray(out["_z_h"]),
                               np.asarray(jnp.transpose(ref_zh, (1, 0, 2))),
                               rtol=1e-4, atol=1e-4)
    np.testing.assert_allclose(np.asarray(out["_c_h"]),
                               np.asarray(jnp.transpose(ref_ch, (1, 0, 2))),
                               rtol=1e-4, atol=1e-4)

    print("KERNEL_OK")
</pallas_src>

<mosaic_0001>
module attributes {stable_mosaic.version = 11 : i64} {
  func.func @rits_kernel(%arg0: i32, %arg1: i32, %arg2: memref<8x8x128xf32, #tpu.memory_space<vmem>>, %arg3: memref<8x8x128xf32, #tpu.memory_space<vmem>>, %arg4: memref<8x8x128xf32, #tpu.memory_space<vmem>>, %arg5: memref<128x128xf32, #tpu.memory_space<vmem>>, %arg6: memref<1x128xf32, #tpu.memory_space<vmem>>, %arg7: memref<1x128xf32, #tpu.memory_space<vmem>>, %arg8: memref<1x128xf32, #tpu.memory_space<vmem>>, %arg9: memref<128x128xf32, #tpu.memory_space<vmem>>, %arg10: memref<128x640xf32, #tpu.memory_space<vmem>>, %arg11: memref<1x128xf32, #tpu.memory_space<vmem>>, %arg12: memref<128x640xf32, #tpu.memory_space<vmem>>, %arg13: memref<1x128xf32, #tpu.memory_space<vmem>>, %arg14: memref<128x128xf32, #tpu.memory_space<vmem>>, %arg15: memref<1x128xf32, #tpu.memory_space<vmem>>, %arg16: memref<128x512xf32, #tpu.memory_space<vmem>>, %arg17: memref<1x512xf32, #tpu.memory_space<vmem>>, %arg18: memref<8x8x512xf32, #tpu.memory_space<vmem>>, %arg19: memref<8x8x128xf32, #tpu.memory_space<vmem>>, %arg20: memref<8x8x128xf32, #tpu.memory_space<vmem>>, %arg21: memref<8x8x512xf32, #tpu.memory_space<vmem>>, %arg22: memref<8x128xf32, #tpu.memory_space<vmem>>, %arg23: memref<8x128xf32, #tpu.memory_space<vmem>>) attributes {dimension_semantics = [#tpu.dimension_semantics<parallel>, #tpu.dimension_semantics<arbitrary>], iteration_bounds = array<i64: 1, 1>, scalar_prefetch = 0 : i64, scratch_operands = 5 : i64, tpu.core_type = #tpu.core_type<tc>, window_params = [{transform_indices = @transform_0, window_bounds = array<i64: 8, 8, 128>}, {transform_indices = @transform_1, window_bounds = array<i64: 8, 8, 128>}, {transform_indices = @transform_2, window_bounds = array<i64: 8, 8, 128>}, {pipeline_mode = #tpu.pipeline_mode<synchronous>, transform_indices = @transform_3, window_bounds = array<i64: 128, 128>}, {pipeline_mode = #tpu.pipeline_mode<synchronous>, transform_indices = @transform_4, window_bounds = array<i64: 1, 128>}, {pipeline_mode = #tpu.pipeline_mode<synchronous>, transform_indices = @transform_5, window_bounds = array<i64: 1, 128>}, {pipeline_mode = #tpu.pipeline_mode<synchronous>, transform_indices = @transform_6, window_bounds = array<i64: 1, 128>}, {pipeline_mode = #tpu.pipeline_mode<synchronous>, transform_indices = @transform_7, window_bounds = array<i64: 128, 128>}, {pipeline_mode = #tpu.pipeline_mode<synchronous>, transform_indices = @transform_8, window_bounds = array<i64: 128, 640>}, {pipeline_mode = #tpu.pipeline_mode<synchronous>, transform_indices = @transform_9, window_bounds = array<i64: 1, 128>}, {pipeline_mode = #tpu.pipeline_mode<synchronous>, transform_indices = @transform_10, window_bounds = array<i64: 128, 640>}, {pipeline_mode = #tpu.pipeline_mode<synchronous>, transform_indices = @transform_11, window_bounds = array<i64: 1, 128>}, {pipeline_mode = #tpu.pipeline_mode<synchronous>, transform_indices = @transform_12, window_bounds = array<i64: 128, 128>}, {pipeline_mode = #tpu.pipeline_mode<synchronous>, transform_indices = @transform_13, window_bounds = array<i64: 1, 128>}, {pipeline_mode = #tpu.pipeline_mode<synchronous>, transform_indices = @transform_14, window_bounds = array<i64: 128, 512>}, {pipeline_mode = #tpu.pipeline_mode<synchronous>, transform_indices = @transform_15, window_bounds = array<i64: 1, 512>}, {transform_indices = @transform_16, window_bounds = array<i64: 8, 8, 512>}]} {
    %c0_i32 = arith.constant 0 : i32
    %0 = arith.cmpi eq, %arg1, %c0_i32 : i32
    %1 = arith.extui %0 : i1 to i32
    %c0_i32_0 = arith.constant 0 : i32
    %2 = arith.cmpi ne, %1, %c0_i32_0 : i32
    scf.if %2 {
      %cst_314 = arith.constant 0.000000e+00 : f32
      %653 = vector.broadcast %cst_314 : f32 to vector<8x128xf32>
      %c0_315 = arith.constant 0 : index
      %c0_316 = arith.constant 0 : index
      %654 = vector.load %arg22[%c0_315, %c0_316] : memref<8x128xf32, #tpu.memory_space<vmem>>, vector<8x128xf32>
      tpu.vector_store %arg22[%c0_315, %c0_316], %653 {strides = array<i32>} : memref<8x128xf32, #tpu.memory_space<vmem>>, vector<8x128xf32>,
      %cst_317 = arith.constant 0.000000e+00 : f32
      %655 = vector.broadcast %cst_317 : f32 to vector<8x128xf32>
      %c0_318 = arith.constant 0 : index
      %c0_319 = arith.constant 0 : index
      %656 = vector.load %arg23[%c0_318, %c0_319] : memref<8x128xf32, #tpu.memory_space<vmem>>, vector<8x128xf32>
      tpu.vector_store %arg23[%c0_318, %c0_319], %655 {strides = array<i32>} : memref<8x128xf32, #tpu.memory_space<vmem>>, vector<8x128xf32>,
    } else {
    }
    %c0 = arith.constant 0 : index
    %c0_1 = arith.constant 0 : index
    %c0_2 = arith.constant 0 : index
    %3 = vector.load %arg4[%c0, %c0_1, %c0_2] : memref<8x8x128xf32, #tpu.memory_space<vmem>>, vector<8x8x128xf32>
    %4 = vector.shape_cast %3 : vector<8x8x128xf32> to vector<64x128xf32>
    %c0_3 = arith.constant 0 : index
    %c0_4 = arith.constant 0 : index
    %c0_5 = arith.constant 0 : index
    %5 = vector.load %arg3[%c0_3, %c0_4, %c0_5] : memref<8x8x128xf32, #tpu.memory_space<vmem>>, vector<8x8x128xf32>
    %6 = vector.shape_cast %5 : vector<8x8x128xf32> to vector<64x128xf32>
    %c0_6 = arith.constant 0 : index
    %c0_7 = arith.constant 0 : index
    %7 = vector.load %arg5[%c0_6, %c0_7] : memref<128x128xf32, #tpu.memory_space<vmem>>, vector<128x128xf32>
    %cst = arith.constant dense<0.000000e+00> : vector<64x128xf32>
    %8 = tpu.matmul %4, %7, %cst {dimension_numbers = #tpu.dot_dimension_numbers<[1], [0], [0], [1], [0, 0, 1, 1], [], []>} : vector<64x128xf32>, vector<128x128xf32>, vector<64x128xf32> -> vector<64x128xf32>
    %c0_8 = arith.constant 0 : index
    %c0_9 = arith.constant 0 : index
    %9 = vector.load %arg6[%c0_8, %c0_9] : memref<1x128xf32, #tpu.memory_space<vmem>>, vector<1x128xf32>
    %10 = vector.broadcast %9 : vector<1x128xf32> to vector<64x128xf32>
    %11 = arith.addf %8, %10 : vector<64x128xf32>
    %cst_10 = arith.constant 0.000000e+00 : f32
    %12 = vector.broadcast %cst_10 : f32 to vector<64x128xf32>
    %13 = arith.maximumf %11, %12 : vector<64x128xf32>
    %cst_11 = arith.constant 0.000000e+00 : f32
    %14 = vector.broadcast %cst_11 : f32 to vector<64x128xf32>
    %15 = arith.subf %14, %13 : vector<64x128xf32>
    %16 = math.exp %15 : vector<64x128xf32>
    %c0_12 = arith.constant 0 : index
    %c0_13 = arith.constant 0 : index
    %17 = vector.load %arg7[%c0_12, %c0_13] : memref<1x128xf32, #tpu.memory_space<vmem>>, vector<1x128xf32>
    %18 = vector.broadcast %17 : vector<1x128xf32> to vector<64x128xf32>
    %19 = arith.mulf %4, %18 : vector<64x128xf32>
    %c0_14 = arith.constant 0 : index
    %c0_15 = arith.constant 0 : index
    %20 = vector.load %arg8[%c0_14, %c0_15] : memref<1x128xf32, #tpu.memory_space<vmem>>, vector<1x128xf32>
    %21 = vector.broadcast %20 : vector<1x128xf32> to vector<64x128xf32>
    %22 = arith.addf %19, %21 : vector<64x128xf32>
    %cst_16 = arith.constant 0.000000e+00 : f32
    %23 = vector.broadcast %cst_16 : f32 to vector<64x128xf32>
    %24 = arith.maximumf %22, %23 : vector<64x128xf32>
    %cst_17 = arith.constant 0.000000e+00 : f32
    %25 = vector.broadcast %cst_17 : f32 to vector<64x128xf32>
    %26 = arith.subf %25, %24 : vector<64x128xf32>
    %27 = math.exp %26 : vector<64x128xf32>
    %c0_18 = arith.constant 0 : index
    %c0_19 = arith.constant 0 : index
    %28 = vector.load %arg10[%c0_18, %c0_19] : memref<128x640xf32, #tpu.memory_space<vmem>>, vector<128x640xf32>
    %cst_20 = arith.constant dense<0.000000e+00> : vector<64x640xf32>
    %29 = tpu.matmul %6, %28, %cst_20 {dimension_numbers = #tpu.dot_dimension_numbers<[1], [0], [0], [1], [0, 0, 1, 1], [], []>} : vector<64x128xf32>, vector<128x640xf32>, vector<64x640xf32> -> vector<64x640xf32>
    %c0_21 = arith.constant 0 : index
    %c0_22 = arith.constant 0 : index
    %30 = vector.load %arg9[%c0_21, %c0_22] : memref<128x128xf32, #tpu.memory_space<vmem>>, vector<128x128xf32>
    %cst_23 = arith.constant dense<0.000000e+00> : vector<64x128xf32>
    %31 = tpu.matmul %27, %30, %cst_23 {dimension_numbers = #tpu.dot_dimension_numbers<[1], [0], [0], [1], [0, 0, 1, 1], [], []>} : vector<64x128xf32>, vector<128x128xf32>, vector<64x128xf32> -> vector<64x128xf32>
    %32 = vector.extract_strided_slice %29 {offsets = [0, 0], sizes = [64, 128], strides = [1, 1]} : vector<64x640xf32> to vector<64x128xf32>
    %33 = arith.addf %31, %32 : vector<64x128xf32>
    %c0_24 = arith.constant 0 : index
    %c0_25 = arith.constant 0 : index
    %34 = vector.load %arg11[%c0_24, %c0_25] : memref<1x128xf32, #tpu.memory_space<vmem>>, vector<1x128xf32>
    %35 = vector.broadcast %34 : vector<1x128xf32> to vector<64x128xf32>
    %36 = arith.addf %33, %35 : vector<64x128xf32>
    %37 = vector.shape_cast %16 : vector<64x128xf32> to vector<8x8x128xf32>
    %c0_26 = arith.constant 0 : index
    %c0_27 = arith.constant 0 : index
    %c0_28 = arith.constant 0 : index
    %38 = vector.load %arg19[%c0_26, %c0_27, %c0_28] : memref<8x8x128xf32, #tpu.memory_space<vmem>>, vector<8x8x128xf32>
    tpu.vector_store %arg19[%c0_26, %c0_27, %c0_28], %37 {strides = array<i32>} : memref<8x8x128xf32, #tpu.memory_space<vmem>>, vector<8x8x128xf32>,
    %39 = vector.shape_cast %36 : vector<64x128xf32> to vector<8x8x128xf32>
    %c0_29 = arith.constant 0 : index
    %c0_30 = arith.constant 0 : index
    %c0_31 = arith.constant 0 : index
    %40 = vector.load %arg20[%c0_29, %c0_30, %c0_31] : memref<8x8x128xf32, #tpu.memory_space<vmem>>, vector<8x8x128xf32>
    tpu.vector_store %arg20[%c0_29, %c0_30, %c0_31], %39 {strides = array<i32>} : memref<8x8x128xf32, #tpu.memory_space<vmem>>, vector<8x8x128xf32>,
    %41 = vector.extract_strided_slice %29 {offsets = [0, 128], sizes = [64, 512], strides = [1, 1]} : vector<64x640xf32> to vector<64x512xf32>
    %c0_32 = arith.constant 0 : index
    %c0_33 = arith.constant 0 : index
    %42 = vector.load %arg17[%c0_32, %c0_33] : memref<1x512xf32, #tpu.memory_space<vmem>>, vector<1x512xf32>
    %43 = vector.broadcast %42 : vector<1x512xf32> to vector<64x512xf32>
    %44 = arith.addf %41, %43 : vector<64x512xf32>
    %45 = vector.shape_cast %44 : vector<64x512xf32> to vector<8x8x512xf32>
    %c0_34 = arith.constant 0 : index
    %c0_35 = arith.constant 0 : index
    %c0_36 = arith.constant 0 : index
    %46 = vector.load %arg21[%c0_34, %c0_35, %c0_36] : memref<8x8x512xf32, #tpu.memory_space<vmem>>, vector<8x8x512xf32>
    tpu.vector_store %arg21[%c0_34, %c0_35, %c0_36], %45 {strides = array<i32>} : memref<8x8x512xf32, #tpu.memory_space<vmem>>, vector<8x8x512xf32>,
    %c0_37 = arith.constant 0 : index
    %c0_38 = arith.constant 0 : index
    %47 = vector.load %arg13[%c0_37, %c0_38] : memref<1x128xf32, #tpu.memory_space<vmem>>, vector<1x128xf32>
    %48 = vector.shape_cast %47 : vector<1x128xf32> to vector<1x128xf32>
    %49 = vector.broadcast %48 : vector<1x128xf32> to vector<8x128xf32>
    %c0_39 = arith.constant 0 : index
    %c0_40 = arith.constant 0 : index
    %50 = vector.load %arg15[%c0_39, %c0_40] : memref<1x128xf32, #tpu.memory_space<vmem>>, vector<1x128xf32>
    %51 = vector.shape_cast %50 : vector<1x128xf32> to vector<1x128xf32>
    %52 = vector.broadcast %51 : vector<1x128xf32> to vector<8x128xf32>
    %c0_i32_41 = arith.constant 0 : i32
    %53 = arith.index_cast %c0_i32_41 : i32 to index
    %c0_42 = arith.constant 0 : index
    %c0_43 = arith.constant 0 : index
    %54 = vector.load %arg2[%53, %c0_42, %c0_43] : memref<8x8x128xf32, #tpu.memory_space<vmem>>, vector<1x8x128xf32>
    %55 = vector.shape_cast %54 : vector<1x8x128xf32> to vector<8x128xf32>
    %56 = arith.index_cast %c0_i32_41 : i32 to index
    %c0_44 = arith.constant 0 : index
    %c0_45 = arith.constant 0 : index
    %57 = vector.load %arg3[%56, %c0_44, %c0_45] : memref<8x8x128xf32, #tpu.memory_space<vmem>>, vector<1x8x128xf32>
    %58 = vector.shape_cast %57 : vector<1x8x128xf32> to vector<8x128xf32>
    %cst_46 = arith.constant 1.000000e+00 : f32
    %59 = vector.broadcast %cst_46 : f32 to vector<8x128xf32>
    %60 = arith.subf %59, %58 : vector<8x128xf32>
    %c0_47 = arith.constant 0 : index
    %c0_48 = arith.constant 0 : index
    %61 = vector.load %arg22[%c0_47, %c0_48] : memref<8x128xf32, #tpu.memory_space<vmem>>, vector<8x128xf32>
    %62 = arith.index_cast %c0_i32_41 : i32 to index
    %c0_49 = arith.constant 0 : index
    %c0_50 = arith.constant 0 : index
    %63 = vector.load %arg19[%62, %c0_49, %c0_50] : memref<8x8x128xf32, #tpu.memory_space<vmem>>, vector<1x8x128xf32>
    %64 = vector.shape_cast %63 : vector<1x8x128xf32> to vector<8x128xf32>
    %65 = arith.mulf %61, %64 : vector<8x128xf32>
    %c0_51 = arith.constant 0 : index
    %c0_52 = arith.constant 0 : index
    %66 = vector.load %arg12[%c0_51, %c0_52] : memref<128x640xf32, #tpu.memory_space<vmem>>, vector<128x640xf32>
    %cst_53 = arith.constant dense<0.000000e+00> : vector<8x640xf32>
    %67 = tpu.matmul %65, %66, %cst_53 {dimension_numbers = #tpu.dot_dimension_numbers<[1], [0], [0], [1], [0, 0, 1, 1], [], []>} : vector<8x128xf32>, vector<128x640xf32>, vector<8x640xf32> -> vector<8x640xf32>
    %68 = vector.extract_strided_slice %67 {offsets = [0, 0], sizes = [8, 128], strides = [1, 1]} : vector<8x640xf32> to vector<8x128xf32>
    %69 = arith.addf %68, %49 : vector<8x128xf32>
    %70 = vector.extract_strided_slice %67 {offsets = [0, 128], sizes = [8, 512], strides = [1, 1]} : vector<8x640xf32> to vector<8x512xf32>
    %71 = arith.mulf %58, %55 : vector<8x128xf32>
    %72 = arith.mulf %60, %69 : vector<8x128xf32>
    %73 = arith.addf %71, %72 : vector<8x128xf32>
    %c0_54 = arith.constant 0 : index
    %c0_55 = arith.constant 0 : index
    %74 = vector.load %arg14[%c0_54, %c0_55] : memref<128x128xf32, #tpu.memory_space<vmem>>, vector<128x128xf32>
    %cst_56 = arith.constant dense<0.000000e+00> : vector<8x128xf32>
    %75 = tpu.matmul %73, %74, %cst_56 {dimension_numbers = #tpu.dot_dimension_numbers<[1], [0], [0], [1], [0, 0, 1, 1], [], []>} : vector<8x128xf32>, vector<128x128xf32>, vector<8x128xf32> -> vector<8x128xf32>
    %76 = arith.addf %75, %52 : vector<8x128xf32>
    %77 = arith.index_cast %c0_i32_41 : i32 to index
    %c0_57 = arith.constant 0 : index
    %c0_58 = arith.constant 0 : index
    %78 = vector.load %arg20[%77, %c0_57, %c0_58] : memref<8x8x128xf32, #tpu.memory_space<vmem>>, vector<1x8x128xf32>
    %79 = vector.shape_cast %78 : vector<1x8x128xf32> to vector<8x128xf32>
    %80 = arith.mulf %79, %76 : vector<8x128xf32>
    %cst_59 = arith.constant 1.000000e+00 : f32
    %81 = vector.broadcast %cst_59 : f32 to vector<8x128xf32>
    %82 = arith.subf %81, %79 : vector<8x128xf32>
    %83 = arith.mulf %82, %69 : vector<8x128xf32>
    %84 = arith.addf %80, %83 : vector<8x128xf32>
    %85 = arith.mulf %58, %55 : vector<8x128xf32>
    %86 = arith.mulf %60, %84 : vector<8x128xf32>
    %87 = arith.addf %85, %86 : vector<8x128xf32>
    %c0_60 = arith.constant 0 : index
    %c0_61 = arith.constant 0 : index
    %88 = vector.load %arg16[%c0_60, %c0_61] : memref<128x512xf32, #tpu.memory_space<vmem>>, vector<128x512xf32>
    %cst_62 = arith.constant dense<0.000000e+00> : vector<8x512xf32>
    %89 = tpu.matmul %87, %88, %cst_62 {dimension_numbers = #tpu.dot_dimension_numbers<[1], [0], [0], [1], [0, 0, 1, 1], [], []>} : vector<8x128xf32>, vector<128x512xf32>, vector<8x512xf32> -> vector<8x512xf32>
    %90 = arith.addf %89, %70 : vector<8x512xf32>
    %91 = arith.index_cast %c0_i32_41 : i32 to index
    %c0_63 = arith.constant 0 : index
    %c0_64 = arith.constant 0 : index
    %92 = vector.load %arg21[%91, %c0_63, %c0_64] : memref<8x8x512xf32, #tpu.memory_space<vmem>>, vector<1x8x512xf32>
    %93 = vector.shape_cast %92 : vector<1x8x512xf32> to vector<8x512xf32>
    %94 = arith.addf %90, %93 : vector<8x512xf32>
    %95 = vector.extract_strided_slice %94 {offsets = [0, 0], sizes = [8, 128], strides = [1, 1]} : vector<8x512xf32> to vector<8x128xf32>
    %96 = arith.negf %95 : vector<8x128xf32>
    %97 = math.exp %96 : vector<8x128xf32>
    %cst_65 = arith.constant 1.000000e+00 : f32
    %98 = vector.broadcast %cst_65 : f32 to vector<8x128xf32>
    %99 = arith.addf %98, %97 : vector<8x128xf32>
    %100 = arith.divf %98, %99 : vector<8x128xf32>
    %101 = vector.extract_strided_slice %94 {offsets = [0, 128], sizes = [8, 128], strides = [1, 1]} : vector<8x512xf32> to vector<8x128xf32>
    %102 = arith.negf %101 : vector<8x128xf32>
    %103 = math.exp %102 : vector<8x128xf32>
    %cst_66 = arith.constant 1.000000e+00 : f32
    %104 = vector.broadcast %cst_66 : f32 to vector<8x128xf32>
    %105 = arith.addf %104, %103 : vector<8x128xf32>
    %106 = arith.divf %104, %105 : vector<8x128xf32>
    %107 = vector.extract_strided_slice %94 {offsets = [0, 256], sizes = [8, 128], strides = [1, 1]} : vector<8x512xf32> to vector<8x128xf32>
    %108 = math.tanh %107 : vector<8x128xf32>
    %109 = vector.extract_strided_slice %94 {offsets = [0, 384], sizes = [8, 128], strides = [1, 1]} : vector<8x512xf32> to vector<8x128xf32>
    %110 = arith.negf %109 : vector<8x128xf32>
    %111 = math.exp %110 : vector<8x128xf32>
    %cst_67 = arith.constant 1.000000e+00 : f32
    %112 = vector.broadcast %cst_67 : f32 to vector<8x128xf32>
    %113 = arith.addf %112, %111 : vector<8x128xf32>
    %114 = arith.divf %112, %113 : vector<8x128xf32>
    %c0_68 = arith.constant 0 : index
    %c0_69 = arith.constant 0 : index
    %115 = vector.load %arg23[%c0_68, %c0_69] : memref<8x128xf32, #tpu.memory_space<vmem>>, vector<8x128xf32>
    %116 = arith.mulf %106, %115 : vector<8x128xf32>
    %117 = arith.mulf %100, %108 : vector<8x128xf32>
    %118 = arith.addf %116, %117 : vector<8x128xf32>
    %119 = math.tanh %118 : vector<8x128xf32>
    %120 = arith.mulf %114, %119 : vector<8x128xf32>
    %c0_70 = arith.constant 0 : index
    %c0_71 = arith.constant 0 : index
    %121 = vector.load %arg22[%c0_70, %c0_71] : memref<8x128xf32, #tpu.memory_space<vmem>>, vector<8x128xf32>
    tpu.vector_store %arg22[%c0_70, %c0_71], %120 {strides = array<i32>} : memref<8x128xf32, #tpu.memory_space<vmem>>, vector<8x128xf32>,
    %c0_72 = arith.constant 0 : index
    %c0_73 = arith.constant 0 : index
    %122 = vector.load %arg23[%c0_72, %c0_73] : memref<8x128xf32, #tpu.memory_space<vmem>>, vector<8x128xf32>
    tpu.vector_store %arg23[%c0_72, %c0_73], %118 {strides = array<i32>} : memref<8x128xf32, #tpu.memory_space<vmem>>, vector<8x128xf32>,
    %123 = tpu.concatenate %87, %69, %76, %84 in 1 : vector<8x128xf32>, vector<8x128xf32>, vector<8x128xf32>, vector<8x128xf32> -> vector<8x512xf32>
    %124 = arith.index_cast %c0_i32_41 : i32 to index
    %c0_74 = arith.constant 0 : index
    %c0_75 = arith.constant 0 : index
    %125 = vector.load %arg18[%124, %c0_74, %c0_75] : memref<8x8x512xf32, #tpu.memory_space<vmem>>, vector<1x8x512xf32>
    %126 = vector.shape_cast %125 : vector<1x8x512xf32> to vector<8x512xf32>
    %127 = vector.shape_cast %123 : vector<8x512xf32> to vector<1x8x512xf32>
    tpu.vector_store %arg18[%124, %c0_74, %c0_75], %127 {strides = array<i32>} : memref<8x8x512xf32, #tpu.memory_space<vmem>>, vector<1x8x512xf32>,
    %c1_i32 = arith.constant 1 : i32
    %128 = arith.index_cast %c1_i32 : i32 to index
    %c0_76 = arith.constant 0 : index
    %c0_77 = arith.constant 0 : index
    %129 = vector.load %arg2[%128, %c0_76, %c0_77] : memref<8x8x128xf32, #tpu.memory_space<vmem>>, vector<1x8x128xf32>
    %130 = vector.shape_cast %129 : vector<1x8x128xf32> to vector<8x128xf32>
    %131 = arith.index_cast %c1_i32 : i32 to index
    %c0_78 = arith.constant 0 : index
    %c0_79 = arith.constant 0 : index
    %132 = vector.load %arg3[%131, %c0_78, %c0_79] : memref<8x8x128xf32, #tpu.memory_space<vmem>>, vector<1x8x128xf32>
    %133 = vector.shape_cast %132 : vector<1x8x128xf32> to vector<8x128xf32>
    %cst_80 = arith.constant 1.000000e+00 : f32
    %134 = vector.broadcast %cst_80 : f32 to vector<8x128xf32>
    %135 = arith.subf %134, %133 : vector<8x128xf32>
    %c0_81 = arith.constant 0 : index
    %c0_82 = arith.constant 0 : index
    %136 = vector.load %arg22[%c0_81, %c0_82] : memref<8x128xf32, #tpu.memory_space<vmem>>, vector<8x128xf32>
    %137 = arith.index_cast %c1_i32 : i32 to index
    %c0_83 = arith.constant 0 : index
    %c0_84 = arith.constant 0 : index
    %138 = vector.load %arg19[%137, %c0_83, %c0_84] : memref<8x8x128xf32, #tpu.memory_space<vmem>>, vector<1x8x128xf32>
    %139 = vector.shape_cast %138 : vector<1x8x128xf32> to vector<8x128xf32>
    %140 = arith.mulf %136, %139 : vector<8x128xf32>
    %c0_85 = arith.constant 0 : index
    %c0_86 = arith.constant 0 : index
    %141 = vector.load %arg12[%c0_85, %c0_86] : memref<128x640xf32, #tpu.memory_space<vmem>>, vector<128x640xf32>
    %cst_87 = arith.constant dense<0.000000e+00> : vector<8x640xf32>
    %142 = tpu.matmul %140, %141, %cst_87 {dimension_numbers = #tpu.dot_dimension_numbers<[1], [0], [0], [1], [0, 0, 1, 1], [], []>} : vector<8x128xf32>, vector<128x640xf32>, vector<8x640xf32> -> vector<8x640xf32>
    %143 = vector.extract_strided_slice %142 {offsets = [0, 0], sizes = [8, 128], strides = [1, 1]} : vector<8x640xf32> to vector<8x128xf32>
    %144 = arith.addf %143, %49 : vector<8x128xf32>
    %145 = vector.extract_strided_slice %142 {offsets = [0, 128], sizes = [8, 512], strides = [1, 1]} : vector<8x640xf32> to vector<8x512xf32>
    %146 = arith.mulf %133, %130 : vector<8x128xf32>
    %147 = arith.mulf %135, %144 : vector<8x128xf32>
    %148 = arith.addf %146, %147 : vector<8x128xf32>
    %c0_88 = arith.constant 0 : index
    %c0_89 = arith.constant 0 : index
    %149 = vector.load %arg14[%c0_88, %c0_89] : memref<128x128xf32, #tpu.memory_space<vmem>>, vector<128x128xf32>
    %cst_90 = arith.constant dense<0.000000e+00> : vector<8x128xf32>
    %150 = tpu.matmul %148, %149, %cst_90 {dimension_numbers = #tpu.dot_dimension_numbers<[1], [0], [0], [1], [0, 0, 1, 1], [], []>} : vector<8x128xf32>, vector<128x128xf32>, vector<8x128xf32> -> vector<8x128xf32>
    %151 = arith.addf %150, %52 : vector<8x128xf32>
    %152 = arith.index_cast %c1_i32 : i32 to index
    %c0_91 = arith.constant 0 : index
    %c0_92 = arith.constant 0 : index
    %153 = vector.load %arg20[%152, %c0_91, %c0_92] : memref<8x8x128xf32, #tpu.memory_space<vmem>>, vector<1x8x128xf32>
    %154 = vector.shape_cast %153 : vector<1x8x128xf32> to vector<8x128xf32>
    %155 = arith.mulf %154, %151 : vector<8x128xf32>
    %cst_93 = arith.constant 1.000000e+00 : f32
    %156 = vector.broadcast %cst_93 : f32 to vector<8x128xf32>
    %157 = arith.subf %156, %154 : vector<8x128xf32>
    %158 = arith.mulf %157, %144 : vector<8x128xf32>
    %159 = arith.addf %155, %158 : vector<8x128xf32>
    %160 = arith.mulf %133, %130 : vector<8x128xf32>
    %161 = arith.mulf %135, %159 : vector<8x128xf32>
    %162 = arith.addf %160, %161 : vector<8x128xf32>
    %c0_94 = arith.constant 0 : index
    %c0_95 = arith.constant 0 : index
    %163 = vector.load %arg16[%c0_94, %c0_95] : memref<128x512xf32, #tpu.memory_space<vmem>>, vector<128x512xf32>
    %cst_96 = arith.constant dense<0.000000e+00> : vector<8x512xf32>
    %164 = tpu.matmul %162, %163, %cst_96 {dimension_numbers = #tpu.dot_dimension_numbers<[1], [0], [0], [1], [0, 0, 1, 1], [], []>} : vector<8x128xf32>, vector<128x512xf32>, vector<8x512xf32> -> vector<8x512xf32>
    %165 = arith.addf %164, %145 : vector<8x512xf32>
    %166 = arith.index_cast %c1_i32 : i32 to index
    %c0_97 = arith.constant 0 : index
    %c0_98 = arith.constant 0 : index
    %167 = vector.load %arg21[%166, %c0_97, %c0_98] : memref<8x8x512xf32, #tpu.memory_space<vmem>>, vector<1x8x512xf32>
    %168 = vector.shape_cast %167 : vector<1x8x512xf32> to vector<8x512xf32>
    %169 = arith.addf %165, %168 : vector<8x512xf32>
    %170 = vector.extract_strided_slice %169 {offsets = [0, 0], sizes = [8, 128], strides = [1, 1]} : vector<8x512xf32> to vector<8x128xf32>
    %171 = arith.negf %170 : vector<8x128xf32>
    %172 = math.exp %171 : vector<8x128xf32>
    %cst_99 = arith.constant 1.000000e+00 : f32
    %173 = vector.broadcast %cst_99 : f32 to vector<8x128xf32>
    %174 = arith.addf %173, %172 : vector<8x128xf32>
    %175 = arith.divf %173, %174 : vector<8x128xf32>
    %176 = vector.extract_strided_slice %169 {offsets = [0, 128], sizes = [8, 128], strides = [1, 1]} : vector<8x512xf32> to vector<8x128xf32>
    %177 = arith.negf %176 : vector<8x128xf32>
    %178 = math.exp %177 : vector<8x128xf32>
    %cst_100 = arith.constant 1.000000e+00 : f32
    %179 = vector.broadcast %cst_100 : f32 to vector<8x128xf32>
    %180 = arith.addf %179, %178 : vector<8x128xf32>
    %181 = arith.divf %179, %180 : vector<8x128xf32>
    %182 = vector.extract_strided_slice %169 {offsets = [0, 256], sizes = [8, 128], strides = [1, 1]} : vector<8x512xf32> to vector<8x128xf32>
    %183 = math.tanh %182 : vector<8x128xf32>
    %184 = vector.extract_strided_slice %169 {offsets = [0, 384], sizes = [8, 128], strides = [1, 1]} : vector<8x512xf32> to vector<8x128xf32>
    %185 = arith.negf %184 : vector<8x128xf32>
    %186 = math.exp %185 : vector<8x128xf32>
    %cst_101 = arith.constant 1.000000e+00 : f32
    %187 = vector.broadcast %cst_101 : f32 to vector<8x128xf32>
    %188 = arith.addf %187, %186 : vector<8x128xf32>
    %189 = arith.divf %187, %188 : vector<8x128xf32>
    %c0_102 = arith.constant 0 : index
    %c0_103 = arith.constant 0 : index
    %190 = vector.load %arg23[%c0_102, %c0_103] : memref<8x128xf32, #tpu.memory_space<vmem>>, vector<8x128xf32>
    %191 = arith.mulf %181, %190 : vector<8x128xf32>
    %192 = arith.mulf %175, %183 : vector<8x128xf32>
    %193 = arith.addf %191, %192 : vector<8x128xf32>
    %194 = math.tanh %193 : vector<8x128xf32>
    %195 = arith.mulf %189, %194 : vector<8x128xf32>
    %c0_104 = arith.constant 0 : index
    %c0_105 = arith.constant 0 : index
    %196 = vector.load %arg22[%c0_104, %c0_105] : memref<8x128xf32, #tpu.memory_space<vmem>>, vector<8x128xf32>
    tpu.vector_store %arg22[%c0_104, %c0_105], %195 {strides = array<i32>} : memref<8x128xf32, #tpu.memory_space<vmem>>, vector<8x128xf32>,
    %c0_106 = arith.constant 0 : index
    %c0_107 = arith.constant 0 : index
    %197 = vector.load %arg23[%c0_106, %c0_107] : memref<8x128xf32, #tpu.memory_space<vmem>>, vector<8x128xf32>
    tpu.vector_store %arg23[%c0_106, %c0_107], %193 {strides = array<i32>} : memref<8x128xf32, #tpu.memory_space<vmem>>, vector<8x128xf32>,
    %198 = tpu.concatenate %162, %144, %151, %159 in 1 : vector<8x128xf32>, vector<8x128xf32>, vector<8x128xf32>, vector<8x128xf32> -> vector<8x512xf32>
    %199 = arith.index_cast %c1_i32 : i32 to index
    %c0_108 = arith.constant 0 : index
    %c0_109 = arith.constant 0 : index
    %200 = vector.load %arg18[%199, %c0_108, %c0_109] : memref<8x8x512xf32, #tpu.memory_space<vmem>>, vector<1x8x512xf32>
    %201 = vector.shape_cast %200 : vector<1x8x512xf32> to vector<8x512xf32>
    %202 = vector.shape_cast %198 : vector<8x512xf32> to vector<1x8x512xf32>
    tpu.vector_store %arg18[%199, %c0_108, %c0_109], %202 {strides = array<i32>} : memref<8x8x512xf32, #tpu.memory_space<vmem>>, vector<1x8x512xf32>,
    %c2_i32 = arith.constant 2 : i32
    %203 = arith.index_cast %c2_i32 : i32 to index
    %c0_110 = arith.constant 0 : index
    %c0_111 = arith.constant 0 : index
    %204 = vector.load %arg2[%203, %c0_110, %c0_111] : memref<8x8x128xf32, #tpu.memory_space<vmem>>, vector<1x8x128xf32>
    %205 = vector.shape_cast %204 : vector<1x8x128xf32> to vector<8x128xf32>
    %206 = arith.index_cast %c2_i32 : i32 to index
    %c0_112 = arith.constant 0 : index
    %c0_113 = arith.constant 0 : index
    %207 = vector.load %arg3[%206, %c0_112, %c0_113] : memref<8x8x128xf32, #tpu.memory_space<vmem>>, vector<1x8x128xf32>
    %208 = vector.shape_cast %207 : vector<1x8x128xf32> to vector<8x128xf32>
    %cst_114 = arith.constant 1.000000e+00 : f32
    %209 = vector.broadcast %cst_114 : f32 to vector<8x128xf32>
    %210 = arith.subf %209, %208 : vector<8x128xf32>
    %c0_115 = arith.constant 0 : index
    %c0_116 = arith.constant 0 : index
    %211 = vector.load %arg22[%c0_115, %c0_116] : memref<8x128xf32, #tpu.memory_space<vmem>>, vector<8x128xf32>
    %212 = arith.index_cast %c2_i32 : i32 to index
    %c0_117 = arith.constant 0 : index
    %c0_118 = arith.constant 0 : index
    %213 = vector.load %arg19[%212, %c0_117, %c0_118] : memref<8x8x128xf32, #tpu.memory_space<vmem>>, vector<1x8x128xf32>
    %214 = vector.shape_cast %213 : vector<1x8x128xf32> to vector<8x128xf32>
    %215 = arith.mulf %211, %214 : vector<8x128xf32>
    %c0_119 = arith.constant 0 : index
    %c0_120 = arith.constant 0 : index
    %216 = vector.load %arg12[%c0_119, %c0_120] : memref<128x640xf32, #tpu.memory_space<vmem>>, vector<128x640xf32>
    %cst_121 = arith.constant dense<0.000000e+00> : vector<8x640xf32>
    %217 = tpu.matmul %215, %216, %cst_121 {dimension_numbers = #tpu.dot_dimension_numbers<[1], [0], [0], [1], [0, 0, 1, 1], [], []>} : vector<8x128xf32>, vector<128x640xf32>, vector<8x640xf32> -> vector<8x640xf32>
    %218 = vector.extract_strided_slice %217 {offsets = [0, 0], sizes = [8, 128], strides = [1, 1]} : vector<8x640xf32> to vector<8x128xf32>
    %219 = arith.addf %218, %49 : vector<8x128xf32>
    %220 = vector.extract_strided_slice %217 {offsets = [0, 128], sizes = [8, 512], strides = [1, 1]} : vector<8x640xf32> to vector<8x512xf32>
    %221 = arith.mulf %208, %205 : vector<8x128xf32>
    %222 = arith.mulf %210, %219 : vector<8x128xf32>
    %223 = arith.addf %221, %222 : vector<8x128xf32>
    %c0_122 = arith.constant 0 : index
    %c0_123 = arith.constant 0 : index
    %224 = vector.load %arg14[%c0_122, %c0_123] : memref<128x128xf32, #tpu.memory_space<vmem>>, vector<128x128xf32>
    %cst_124 = arith.constant dense<0.000000e+00> : vector<8x128xf32>
    %225 = tpu.matmul %223, %224, %cst_124 {dimension_numbers = #tpu.dot_dimension_numbers<[1], [0], [0], [1], [0, 0, 1, 1], [], []>} : vector<8x128xf32>, vector<128x128xf32>, vector<8x128xf32> -> vector<8x128xf32>
    %226 = arith.addf %225, %52 : vector<8x128xf32>
    %227 = arith.index_cast %c2_i32 : i32 to index
    %c0_125 = arith.constant 0 : index
    %c0_126 = arith.constant 0 : index
    %228 = vector.load %arg20[%227, %c0_125, %c0_126] : memref<8x8x128xf32, #tpu.memory_space<vmem>>, vector<1x8x128xf32>
    %229 = vector.shape_cast %228 : vector<1x8x128xf32> to vector<8x128xf32>
    %230 = arith.mulf %229, %226 : vector<8x128xf32>
    %cst_127 = arith.constant 1.000000e+00 : f32
    %231 = vector.broadcast %cst_127 : f32 to vector<8x128xf32>
    %232 = arith.subf %231, %229 : vector<8x128xf32>
    %233 = arith.mulf %232, %219 : vector<8x128xf32>
    %234 = arith.addf %230, %233 : vector<8x128xf32>
    %235 = arith.mulf %208, %205 : vector<8x128xf32>
    %236 = arith.mulf %210, %234 : vector<8x128xf32>
    %237 = arith.addf %235, %236 : vector<8x128xf32>
    %c0_128 = arith.constant 0 : index
    %c0_129 = arith.constant 0 : index
    %238 = vector.load %arg16[%c0_128, %c0_129] : memref<128x512xf32, #tpu.memory_space<vmem>>, vector<128x512xf32>
    %cst_130 = arith.constant dense<0.000000e+00> : vector<8x512xf32>
    %239 = tpu.matmul %237, %238, %cst_130 {dimension_numbers = #tpu.dot_dimension_numbers<[1], [0], [0], [1], [0, 0, 1, 1], [], []>} : vector<8x128xf32>, vector<128x512xf32>, vector<8x512xf32> -> vector<8x512xf32>
    %240 = arith.addf %239, %220 : vector<8x512xf32>
    %241 = arith.index_cast %c2_i32 : i32 to index
    %c0_131 = arith.constant 0 : index
    %c0_132 = arith.constant 0 : index
    %242 = vector.load %arg21[%241, %c0_131, %c0_132] : memref<8x8x512xf32, #tpu.memory_space<vmem>>, vector<1x8x512xf32>
    %243 = vector.shape_cast %242 : vector<1x8x512xf32> to vector<8x512xf32>
    %244 = arith.addf %240, %243 : vector<8x512xf32>
    %245 = vector.extract_strided_slice %244 {offsets = [0, 0], sizes = [8, 128], strides = [1, 1]} : vector<8x512xf32> to vector<8x128xf32>
    %246 = arith.negf %245 : vector<8x128xf32>
    %247 = math.exp %246 : vector<8x128xf32>
    %cst_133 = arith.constant 1.000000e+00 : f32
    %248 = vector.broadcast %cst_133 : f32 to vector<8x128xf32>
    %249 = arith.addf %248, %247 : vector<8x128xf32>
    %250 = arith.divf %248, %249 : vector<8x128xf32>
    %251 = vector.extract_strided_slice %244 {offsets = [0, 128], sizes = [8, 128], strides = [1, 1]} : vector<8x512xf32> to vector<8x128xf32>
    %252 = arith.negf %251 : vector<8x128xf32>
    %253 = math.exp %252 : vector<8x128xf32>
    %cst_134 = arith.constant 1.000000e+00 : f32
    %254 = vector.broadcast %cst_134 : f32 to vector<8x128xf32>
    %255 = arith.addf %254, %253 : vector<8x128xf32>
    %256 = arith.divf %254, %255 : vector<8x128xf32>
    %257 = vector.extract_strided_slice %244 {offsets = [0, 256], sizes = [8, 128], strides = [1, 1]} : vector<8x512xf32> to vector<8x128xf32>
    %258 = math.tanh %257 : vector<8x128xf32>
    %259 = vector.extract_strided_slice %244 {offsets = [0, 384], sizes = [8, 128], strides = [1, 1]} : vector<8x512xf32> to vector<8x128xf32>
    %260 = arith.negf %259 : vector<8x128xf32>
    %261 = math.exp %260 : vector<8x128xf32>
    %cst_135 = arith.constant 1.000000e+00 : f32
    %262 = vector.broadcast %cst_135 : f32 to vector<8x128xf32>
    %263 = arith.addf %262, %261 : vector<8x128xf32>
    %264 = arith.divf %262, %263 : vector<8x128xf32>
    %c0_136 = arith.constant 0 : index
    %c0_137 = arith.constant 0 : index
    %265 = vector.load %arg23[%c0_136, %c0_137] : memref<8x128xf32, #tpu.memory_space<vmem>>, vector<8x128xf32>
    %266 = arith.mulf %256, %265 : vector<8x128xf32>
    %267 = arith.mulf %250, %258 : vector<8x128xf32>
    %268 = arith.addf %266, %267 : vector<8x128xf32>
    %269 = math.tanh %268 : vector<8x128xf32>
    %270 = arith.mulf %264, %269 : vector<8x128xf32>
    %c0_138 = arith.constant 0 : index
    %c0_139 = arith.constant 0 : index
    %271 = vector.load %arg22[%c0_138, %c0_139] : memref<8x128xf32, #tpu.memory_space<vmem>>, vector<8x128xf32>
    tpu.vector_store %arg22[%c0_138, %c0_139], %270 {strides = array<i32>} : memref<8x128xf32, #tpu.memory_space<vmem>>, vector<8x128xf32>,
    %c0_140 = arith.constant 0 : index
    %c0_141 = arith.constant 0 : index
    %272 = vector.load %arg23[%c0_140, %c0_141] : memref<8x128xf32, #tpu.memory_space<vmem>>, vector<8x128xf32>
    tpu.vector_store %arg23[%c0_140, %c0_141], %268 {strides = array<i32>} : memref<8x128xf32, #tpu.memory_space<vmem>>, vector<8x128xf32>,
    %273 = tpu.concatenate %237, %219, %226, %234 in 1 : vector<8x128xf32>, vector<8x128xf32>, vector<8x128xf32>, vector<8x128xf32> -> vector<8x512xf32>
    %274 = arith.index_cast %c2_i32 : i32 to index
    %c0_142 = arith.constant 0 : index
    %c0_143 = arith.constant 0 : index
    %275 = vector.load %arg18[%274, %c0_142, %c0_143] : memref<8x8x512xf32, #tpu.memory_space<vmem>>, vector<1x8x512xf32>
    %276 = vector.shape_cast %275 : vector<1x8x512xf32> to vector<8x512xf32>
    %277 = vector.shape_cast %273 : vector<8x512xf32> to vector<1x8x512xf32>
    tpu.vector_store %arg18[%274, %c0_142, %c0_143], %277 {strides = array<i32>} : memref<8x8x512xf32, #tpu.memory_space<vmem>>, vector<1x8x512xf32>,
    %c3_i32 = arith.constant 3 : i32
    %278 = arith.index_cast %c3_i32 : i32 to index
    %c0_144 = arith.constant 0 : index
    %c0_145 = arith.constant 0 : index
    %279 = vector.load %arg2[%278, %c0_144, %c0_145] : memref<8x8x128xf32, #tpu.memory_space<vmem>>, vector<1x8x128xf32>
    %280 = vector.shape_cast %279 : vector<1x8x128xf32> to vector<8x128xf32>
    %281 = arith.index_cast %c3_i32 : i32 to index
    %c0_146 = arith.constant 0 : index
    %c0_147 = arith.constant 0 : index
    %282 = vector.load %arg3[%281, %c0_146, %c0_147] : memref<8x8x128xf32, #tpu.memory_space<vmem>>, vector<1x8x128xf32>
    %283 = vector.shape_cast %282 : vector<1x8x128xf32> to vector<8x128xf32>
    %cst_148 = arith.constant 1.000000e+00 : f32
    %284 = vector.broadcast %cst_148 : f32 to vector<8x128xf32>
    %285 = arith.subf %284, %283 : vector<8x128xf32>
    %c0_149 = arith.constant 0 : index
    %c0_150 = arith.constant 0 : index
    %286 = vector.load %arg22[%c0_149, %c0_150] : memref<8x128xf32, #tpu.memory_space<vmem>>, vector<8x128xf32>
    %287 = arith.index_cast %c3_i32 : i32 to index
    %c0_151 = arith.constant 0 : index
    %c0_152 = arith.constant 0 : index
    %288 = vector.load %arg19[%287, %c0_151, %c0_152] : memref<8x8x128xf32, #tpu.memory_space<vmem>>, vector<1x8x128xf32>
    %289 = vector.shape_cast %288 : vector<1x8x128xf32> to vector<8x128xf32>
    %290 = arith.mulf %286, %289 : vector<8x128xf32>
    %c0_153 = arith.constant 0 : index
    %c0_154 = arith.constant 0 : index
    %291 = vector.load %arg12[%c0_153, %c0_154] : memref<128x640xf32, #tpu.memory_space<vmem>>, vector<128x640xf32>
    %cst_155 = arith.constant dense<0.000000e+00> : vector<8x640xf32>
    %292 = tpu.matmul %290, %291, %cst_155 {dimension_numbers = #tpu.dot_dimension_numbers<[1], [0], [0], [1], [0, 0, 1, 1], [], []>} : vector<8x128xf32>, vector<128x640xf32>, vector<8x640xf32> -> vector<8x640xf32>
    %293 = vector.extract_strided_slice %292 {offsets = [0, 0], sizes = [8, 128], strides = [1, 1]} : vector<8x640xf32> to vector<8x128xf32>
    %294 = arith.addf %293, %49 : vector<8x128xf32>
    %295 = vector.extract_strided_slice %292 {offsets = [0, 128], sizes = [8, 512], strides = [1, 1]} : vector<8x640xf32> to vector<8x512xf32>
    %296 = arith.mulf %283, %280 : vector<8x128xf32>
    %297 = arith.mulf %285, %294 : vector<8x128xf32>
    %298 = arith.addf %296, %297 : vector<8x128xf32>
    %c0_156 = arith.constant 0 : index
    %c0_157 = arith.constant 0 : index
    %299 = vector.load %arg14[%c0_156, %c0_157] : memref<128x128xf32, #tpu.memory_space<vmem>>, vector<128x128xf32>
    %cst_158 = arith.constant dense<0.000000e+00> : vector<8x128xf32>
    %300 = tpu.matmul %298, %299, %cst_158 {dimension_numbers = #tpu.dot_dimension_numbers<[1], [0], [0], [1], [0, 0, 1, 1], [], []>} : vector<8x128xf32>, vector<128x128xf32>, vector<8x128xf32> -> vector<8x128xf32>
    %301 = arith.addf %300, %52 : vector<8x128xf32>
    %302 = arith.index_cast %c3_i32 : i32 to index
    %c0_159 = arith.constant 0 : index
    %c0_160 = arith.constant 0 : index
    %303 = vector.load %arg20[%302, %c0_159, %c0_160] : memref<8x8x128xf32, #tpu.memory_space<vmem>>, vector<1x8x128xf32>
    %304 = vector.shape_cast %303 : vector<1x8x128xf32> to vector<8x128xf32>
    %305 = arith.mulf %304, %301 : vector<8x128xf32>
    %cst_161 = arith.constant 1.000000e+00 : f32
    %306 = vector.broadcast %cst_161 : f32 to vector<8x128xf32>
    %307 = arith.subf %306, %304 : vector<8x128xf32>
    %308 = arith.mulf %307, %294 : vector<8x128xf32>
    %309 = arith.addf %305, %308 : vector<8x128xf32>
    %310 = arith.mulf %283, %280 : vector<8x128xf32>
    %311 = arith.mulf %285, %309 : vector<8x128xf32>
    %312 = arith.addf %310, %311 : vector<8x128xf32>
    %c0_162 = arith.constant 0 : index
    %c0_163 = arith.constant 0 : index
    %313 = vector.load %arg16[%c0_162, %c0_163] : memref<128x512xf32, #tpu.memory_space<vmem>>, vector<128x512xf32>
    %cst_164 = arith.constant dense<0.000000e+00> : vector<8x512xf32>
    %314 = tpu.matmul %312, %313, %cst_164 {dimension_numbers = #tpu.dot_dimension_numbers<[1], [0], [0], [1], [0, 0, 1, 1], [], []>} : vector<8x128xf32>, vector<128x512xf32>, vector<8x512xf32> -> vector<8x512xf32>
    %315 = arith.addf %314, %295 : vector<8x512xf32>
    %316 = arith.index_cast %c3_i32 : i32 to index
    %c0_165 = arith.constant 0 : index
    %c0_166 = arith.constant 0 : index
    %317 = vector.load %arg21[%316, %c0_165, %c0_166] : memref<8x8x512xf32, #tpu.memory_space<vmem>>, vector<1x8x512xf32>
    %318 = vector.shape_cast %317 : vector<1x8x512xf32> to vector<8x512xf32>
    %319 = arith.addf %315, %318 : vector<8x512xf32>
    %320 = vector.extract_strided_slice %319 {offsets = [0, 0], sizes = [8, 128], strides = [1, 1]} : vector<8x512xf32> to vector<8x128xf32>
    %321 = arith.negf %320 : vector<8x128xf32>
    %322 = math.exp %321 : vector<8x128xf32>
    %cst_167 = arith.constant 1.000000e+00 : f32
    %323 = vector.broadcast %cst_167 : f32 to vector<8x128xf32>
    %324 = arith.addf %323, %322 : vector<8x128xf32>
    %325 = arith.divf %323, %324 : vector<8x128xf32>
    %326 = vector.extract_strided_slice %319 {offsets = [0, 128], sizes = [8, 128], strides = [1, 1]} : vector<8x512xf32> to vector<8x128xf32>
    %327 = arith.negf %326 : vector<8x128xf32>
    %328 = math.exp %327 : vector<8x128xf32>
    %cst_168 = arith.constant 1.000000e+00 : f32
    %329 = vector.broadcast %cst_168 : f32 to vector<8x128xf32>
    %330 = arith.addf %329, %328 : vector<8x128xf32>
    %331 = arith.divf %329, %330 : vector<8x128xf32>
    %332 = vector.extract_strided_slice %319 {offsets = [0, 256], sizes = [8, 128], strides = [1, 1]} : vector<8x512xf32> to vector<8x128xf32>
    %333 = math.tanh %332 : vector<8x128xf32>
    %334 = vector.extract_strided_slice %319 {offsets = [0, 384], sizes = [8, 128], strides = [1, 1]} : vector<8x512xf32> to vector<8x128xf32>
    %335 = arith.negf %334 : vector<8x128xf32>
    %336 = math.exp %335 : vector<8x128xf32>
    %cst_169 = arith.constant 1.000000e+00 : f32
    %337 = vector.broadcast %cst_169 : f32 to vector<8x128xf32>
    %338 = arith.addf %337, %336 : vector<8x128xf32>
    %339 = arith.divf %337, %338 : vector<8x128xf32>
    %c0_170 = arith.constant 0 : index
    %c0_171 = arith.constant 0 : index
    %340 = vector.load %arg23[%c0_170, %c0_171] : memref<8x128xf32, #tpu.memory_space<vmem>>, vector<8x128xf32>
    %341 = arith.mulf %331, %340 : vector<8x128xf32>
    %342 = arith.mulf %325, %333 : vector<8x128xf32>
    %343 = arith.addf %341, %342 : vector<8x128xf32>
    %344 = math.tanh %343 : vector<8x128xf32>
    %345 = arith.mulf %339, %344 : vector<8x128xf32>
    %c0_172 = arith.constant 0 : index
    %c0_173 = arith.constant 0 : index
    %346 = vector.load %arg22[%c0_172, %c0_173] : memref<8x128xf32, #tpu.memory_space<vmem>>, vector<8x128xf32>
    tpu.vector_store %arg22[%c0_172, %c0_173], %345 {strides = array<i32>} : memref<8x128xf32, #tpu.memory_space<vmem>>, vector<8x128xf32>,
    %c0_174 = arith.constant 0 : index
    %c0_175 = arith.constant 0 : index
    %347 = vector.load %arg23[%c0_174, %c0_175] : memref<8x128xf32, #tpu.memory_space<vmem>>, vector<8x128xf32>
    tpu.vector_store %arg23[%c0_174, %c0_175], %343 {strides = array<i32>} : memref<8x128xf32, #tpu.memory_space<vmem>>, vector<8x128xf32>,
    %348 = tpu.concatenate %312, %294, %301, %309 in 1 : vector<8x128xf32>, vector<8x128xf32>, vector<8x128xf32>, vector<8x128xf32> -> vector<8x512xf32>
    %349 = arith.index_cast %c3_i32 : i32 to index
    %c0_176 = arith.constant 0 : index
    %c0_177 = arith.constant 0 : index
    %350 = vector.load %arg18[%349, %c0_176, %c0_177] : memref<8x8x512xf32, #tpu.memory_space<vmem>>, vector<1x8x512xf32>
    %351 = vector.shape_cast %350 : vector<1x8x512xf32> to vector<8x512xf32>
    %352 = vector.shape_cast %348 : vector<8x512xf32> to vector<1x8x512xf32>
    tpu.vector_store %arg18[%349, %c0_176, %c0_177], %352 {strides = array<i32>} : memref<8x8x512xf32, #tpu.memory_space<vmem>>, vector<1x8x512xf32>,
    %c4_i32 = arith.constant 4 : i32
    %353 = arith.index_cast %c4_i32 : i32 to index
    %c0_178 = arith.constant 0 : index
    %c0_179 = arith.constant 0 : index
    %354 = vector.load %arg2[%353, %c0_178, %c0_179] : memref<8x8x128xf32, #tpu.memory_space<vmem>>, vector<1x8x128xf32>
    %355 = vector.shape_cast %354 : vector<1x8x128xf32> to vector<8x128xf32>
    %356 = arith.index_cast %c4_i32 : i32 to index
    %c0_180 = arith.constant 0 : index
    %c0_181 = arith.constant 0 : index
    %357 = vector.load %arg3[%356, %c0_180, %c0_181] : memref<8x8x128xf32, #tpu.memory_space<vmem>>, vector<1x8x128xf32>
    %358 = vector.shape_cast %357 : vector<1x8x128xf32> to vector<8x128xf32>
    %cst_182 = arith.constant 1.000000e+00 : f32
    %359 = vector.broadcast %cst_182 : f32 to vector<8x128xf32>
    %360 = arith.subf %359, %358 : vector<8x128xf32>
    %c0_183 = arith.constant 0 : index
    %c0_184 = arith.constant 0 : index
    %361 = vector.load %arg22[%c0_183, %c0_184] : memref<8x128xf32, #tpu.memory_space<vmem>>, vector<8x128xf32>
    %362 = arith.index_cast %c4_i32 : i32 to index
    %c0_185 = arith.constant 0 : index
    %c0_186 = arith.constant 0 : index
    %363 = vector.load %arg19[%362, %c0_185, %c0_186] : memref<8x8x128xf32, #tpu.memory_space<vmem>>, vector<1x8x128xf32>
    %364 = vector.shape_cast %363 : vector<1x8x128xf32> to vector<8x128xf32>
    %365 = arith.mulf %361, %364 : vector<8x128xf32>
    %c0_187 = arith.constant 0 : index
    %c0_188 = arith.constant 0 : index
    %366 = vector.load %arg12[%c0_187, %c0_188] : memref<128x640xf32, #tpu.memory_space<vmem>>, vector<128x640xf32>
    %cst_189 = arith.constant dense<0.000000e+00> : vector<8x640xf32>
    %367 = tpu.matmul %365, %366, %cst_189 {dimension_numbers = #tpu.dot_dimension_numbers<[1], [0], [0], [1], [0, 0, 1, 1], [], []>} : vector<8x128xf32>, vector<128x640xf32>, vector<8x640xf32> -> vector<8x640xf32>
    %368 = vector.extract_strided_slice %367 {offsets = [0, 0], sizes = [8, 128], strides = [1, 1]} : vector<8x640xf32> to vector<8x128xf32>
    %369 = arith.addf %368, %49 : vector<8x128xf32>
    %370 = vector.extract_strided_slice %367 {offsets = [0, 128], sizes = [8, 512], strides = [1, 1]} : vector<8x640xf32> to vector<8x512xf32>
    %371 = arith.mulf %358, %355 : vector<8x128xf32>
    %372 = arith.mulf %360, %369 : vector<8x128xf32>
    %373 = arith.addf %371, %372 : vector<8x128xf32>
    %c0_190 = arith.constant 0 : index
    %c0_191 = arith.constant 0 : index
    %374 = vector.load %arg14[%c0_190, %c0_191] : memref<128x128xf32, #tpu.memory_space<vmem>>, vector<128x128xf32>
    %cst_192 = arith.constant dense<0.000000e+00> : vector<8x128xf32>
    %375 = tpu.matmul %373, %374, %cst_192 {dimension_numbers = #tpu.dot_dimension_numbers<[1], [0], [0], [1], [0, 0, 1, 1], [], []>} : vector<8x128xf32>, vector<128x128xf32>, vector<8x128xf32> -> vector<8x128xf32>
    %376 = arith.addf %375, %52 : vector<8x128xf32>
    %377 = arith.index_cast %c4_i32 : i32 to index
    %c0_193 = arith.constant 0 : index
    %c0_194 = arith.constant 0 : index
    %378 = vector.load %arg20[%377, %c0_193, %c0_194] : memref<8x8x128xf32, #tpu.memory_space<vmem>>, vector<1x8x128xf32>
    %379 = vector.shape_cast %378 : vector<1x8x128xf32> to vector<8x128xf32>
    %380 = arith.mulf %379, %376 : vector<8x128xf32>
    %cst_195 = arith.constant 1.000000e+00 : f32
    %381 = vector.broadcast %cst_195 : f32 to vector<8x128xf32>
    %382 = arith.subf %381, %379 : vector<8x128xf32>
    %383 = arith.mulf %382, %369 : vector<8x128xf32>
    %384 = arith.addf %380, %383 : vector<8x128xf32>
    %385 = arith.mulf %358, %355 : vector<8x128xf32>
    %386 = arith.mulf %360, %384 : vector<8x128xf32>
    %387 = arith.addf %385, %386 : vector<8x128xf32>
    %c0_196 = arith.constant 0 : index
    %c0_197 = arith.constant 0 : index
    %388 = vector.load %arg16[%c0_196, %c0_197] : memref<128x512xf32, #tpu.memory_space<vmem>>, vector<128x512xf32>
    %cst_198 = arith.constant dense<0.000000e+00> : vector<8x512xf32>
    %389 = tpu.matmul %387, %388, %cst_198 {dimension_numbers = #tpu.dot_dimension_numbers<[1], [0], [0], [1], [0, 0, 1, 1], [], []>} : vector<8x128xf32>, vector<128x512xf32>, vector<8x512xf32> -> vector<8x512xf32>
    %390 = arith.addf %389, %370 : vector<8x512xf32>
    %391 = arith.index_cast %c4_i32 : i32 to index
    %c0_199 = arith.constant 0 : index
    %c0_200 = arith.constant 0 : index
    %392 = vector.load %arg21[%391, %c0_199, %c0_200] : memref<8x8x512xf32, #tpu.memory_space<vmem>>, vector<1x8x512xf32>
    %393 = vector.shape_cast %392 : vector<1x8x512xf32> to vector<8x512xf32>
    %394 = arith.addf %390, %393 : vector<8x512xf32>
    %395 = vector.extract_strided_slice %394 {offsets = [0, 0], sizes = [8, 128], strides = [1, 1]} : vector<8x512xf32> to vector<8x128xf32>
    %396 = arith.negf %395 : vector<8x128xf32>
    %397 = math.exp %396 : vector<8x128xf32>
    %cst_201 = arith.constant 1.000000e+00 : f32
    %398 = vector.broadcast %cst_201 : f32 to vector<8x128xf32>
    %399 = arith.addf %398, %397 : vector<8x128xf32>
    %400 = arith.divf %398, %399 : vector<8x128xf32>
    %401 = vector.extract_strided_slice %394 {offsets = [0, 128], sizes = [8, 128], strides = [1, 1]} : vector<8x512xf32> to vector<8x128xf32>
    %402 = arith.negf %401 : vector<8x128xf32>
    %403 = math.exp %402 : vector<8x128xf32>
    %cst_202 = arith.constant 1.000000e+00 : f32
    %404 = vector.broadcast %cst_202 : f32 to vector<8x128xf32>
    %405 = arith.addf %404, %403 : vector<8x128xf32>
    %406 = arith.divf %404, %405 : vector<8x128xf32>
    %407 = vector.extract_strided_slice %394 {offsets = [0, 256], sizes = [8, 128], strides = [1, 1]} : vector<8x512xf32> to vector<8x128xf32>
    %408 = math.tanh %407 : vector<8x128xf32>
    %409 = vector.extract_strided_slice %394 {offsets = [0, 384], sizes = [8, 128], strides = [1, 1]} : vector<8x512xf32> to vector<8x128xf32>
    %410 = arith.negf %409 : vector<8x128xf32>
    %411 = math.exp %410 : vector<8x128xf32>
    %cst_203 = arith.constant 1.000000e+00 : f32
    %412 = vector.broadcast %cst_203 : f32 to vector<8x128xf32>
    %413 = arith.addf %412, %411 : vector<8x128xf32>
    %414 = arith.divf %412, %413 : vector<8x128xf32>
    %c0_204 = arith.constant 0 : index
    %c0_205 = arith.constant 0 : index
    %415 = vector.load %arg23[%c0_204, %c0_205] : memref<8x128xf32, #tpu.memory_space<vmem>>, vector<8x128xf32>
    %416 = arith.mulf %406, %415 : vector<8x128xf32>
    %417 = arith.mulf %400, %408 : vector<8x128xf32>
    %418 = arith.addf %416, %417 : vector<8x128xf32>
    %419 = math.tanh %418 : vector<8x128xf32>
    %420 = arith.mulf %414, %419 : vector<8x128xf32>
    %c0_206 = arith.constant 0 : index
    %c0_207 = arith.constant 0 : index
    %421 = vector.load %arg22[%c0_206, %c0_207] : memref<8x128xf32, #tpu.memory_space<vmem>>, vector<8x128xf32>
    tpu.vector_store %arg22[%c0_206, %c0_207], %420 {strides = array<i32>} : memref<8x128xf32, #tpu.memory_space<vmem>>, vector<8x128xf32>,
    %c0_208 = arith.constant 0 : index
    %c0_209 = arith.constant 0 : index
    %422 = vector.load %arg23[%c0_208, %c0_209] : memref<8x128xf32, #tpu.memory_space<vmem>>, vector<8x128xf32>
    tpu.vector_store %arg23[%c0_208, %c0_209], %418 {strides = array<i32>} : memref<8x128xf32, #tpu.memory_space<vmem>>, vector<8x128xf32>,
    %423 = tpu.concatenate %387, %369, %376, %384 in 1 : vector<8x128xf32>, vector<8x128xf32>, vector<8x128xf32>, vector<8x128xf32> -> vector<8x512xf32>
    %424 = arith.index_cast %c4_i32 : i32 to index
    %c0_210 = arith.constant 0 : index
    %c0_211 = arith.constant 0 : index
    %425 = vector.load %arg18[%424, %c0_210, %c0_211] : memref<8x8x512xf32, #tpu.memory_space<vmem>>, vector<1x8x512xf32>
    %426 = vector.shape_cast %425 : vector<1x8x512xf32> to vector<8x512xf32>
    %427 = vector.shape_cast %423 : vector<8x512xf32> to vector<1x8x512xf32>
    tpu.vector_store %arg18[%424, %c0_210, %c0_211], %427 {strides = array<i32>} : memref<8x8x512xf32, #tpu.memory_space<vmem>>, vector<1x8x512xf32>,
    %c5_i32 = arith.constant 5 : i32
    %428 = arith.index_cast %c5_i32 : i32 to index
    %c0_212 = arith.constant 0 : index
    %c0_213 = arith.constant 0 : index
    %429 = vector.load %arg2[%428, %c0_212, %c0_213] : memref<8x8x128xf32, #tpu.memory_space<vmem>>, vector<1x8x128xf32>
    %430 = vector.shape_cast %429 : vector<1x8x128xf32> to vector<8x128xf32>
    %431 = arith.index_cast %c5_i32 : i32 to index
    %c0_214 = arith.constant 0 : index
    %c0_215 = arith.constant 0 : index
    %432 = vector.load %arg3[%431, %c0_214, %c0_215] : memref<8x8x128xf32, #tpu.memory_space<vmem>>, vector<1x8x128xf32>
    %433 = vector.shape_cast %432 : vector<1x8x128xf32> to vector<8x128xf32>
    %cst_216 = arith.constant 1.000000e+00 : f32
    %434 = vector.broadcast %cst_216 : f32 to vector<8x128xf32>
    %435 = arith.subf %434, %433 : vector<8x128xf32>
    %c0_217 = arith.constant 0 : index
    %c0_218 = arith.constant 0 : index
    %436 = vector.load %arg22[%c0_217, %c0_218] : memref<8x128xf32, #tpu.memory_space<vmem>>, vector<8x128xf32>
    %437 = arith.index_cast %c5_i32 : i32 to index
    %c0_219 = arith.constant 0 : index
    %c0_220 = arith.constant 0 : index
    %438 = vector.load %arg19[%437, %c0_219, %c0_220] : memref<8x8x128xf32, #tpu.memory_space<vmem>>, vector<1x8x128xf32>
    %439 = vector.shape_cast %438 : vector<1x8x128xf32> to vector<8x128xf32>
    %440 = arith.mulf %436, %439 : vector<8x128xf32>
    %c0_221 = arith.constant 0 : index
    %c0_222 = arith.constant 0 : index
    %441 = vector.load %arg12[%c0_221, %c0_222] : memref<128x640xf32, #tpu.memory_space<vmem>>, vector<128x640xf32>
    %cst_223 = arith.constant dense<0.000000e+00> : vector<8x640xf32>
    %442 = tpu.matmul %440, %441, %cst_223 {dimension_numbers = #tpu.dot_dimension_numbers<[1], [0], [0], [1], [0, 0, 1, 1], [], []>} : vector<8x128xf32>, vector<128x640xf32>, vector<8x640xf32> -> vector<8x640xf32>
    %443 = vector.extract_strided_slice %442 {offsets = [0, 0], sizes = [8, 128], strides = [1, 1]} : vector<8x640xf32> to vector<8x128xf32>
    %444 = arith.addf %443, %49 : vector<8x128xf32>
    %445 = vector.extract_strided_slice %442 {offsets = [0, 128], sizes = [8, 512], strides = [1, 1]} : vector<8x640xf32> to vector<8x512xf32>
    %446 = arith.mulf %433, %430 : vector<8x128xf32>
    %447 = arith.mulf %435, %444 : vector<8x128xf32>
    %448 = arith.addf %446, %447 : vector<8x128xf32>
    %c0_224 = arith.constant 0 : index
    %c0_225 = arith.constant 0 : index
    %449 = vector.load %arg14[%c0_224, %c0_225] : memref<128x128xf32, #tpu.memory_space<vmem>>, vector<128x128xf32>
    %cst_226 = arith.constant dense<0.000000e+00> : vector<8x128xf32>
    %450 = tpu.matmul %448, %449, %cst_226 {dimension_numbers = #tpu.dot_dimension_numbers<[1], [0], [0], [1], [0, 0, 1, 1], [], []>} : vector<8x128xf32>, vector<128x128xf32>, vector<8x128xf32> -> vector<8x128xf32>
    %451 = arith.addf %450, %52 : vector<8x128xf32>
    %452 = arith.index_cast %c5_i32 : i32 to index
    %c0_227 = arith.constant 0 : index
    %c0_228 = arith.constant 0 : index
    %453 = vector.load %arg20[%452, %c0_227, %c0_228] : memref<8x8x128xf32, #tpu.memory_space<vmem>>, vector<1x8x128xf32>
    %454 = vector.shape_cast %453 : vector<1x8x128xf32> to vector<8x128xf32>
    %455 = arith.mulf %454, %451 : vector<8x128xf32>
    %cst_229 = arith.constant 1.000000e+00 : f32
    %456 = vector.broadcast %cst_229 : f32 to vector<8x128xf32>
    %457 = arith.subf %456, %454 : vector<8x128xf32>
    %458 = arith.mulf %457, %444 : vector<8x128xf32>
    %459 = arith.addf %455, %458 : vector<8x128xf32>
    %460 = arith.mulf %433, %430 : vector<8x128xf32>
    %461 = arith.mulf %435, %459 : vector<8x128xf32>
    %462 = arith.addf %460, %461 : vector<8x128xf32>
    %c0_230 = arith.constant 0 : index
    %c0_231 = arith.constant 0 : index
    %463 = vector.load %arg16[%c0_230, %c0_231] : memref<128x512xf32, #tpu.memory_space<vmem>>, vector<128x512xf32>
    %cst_232 = arith.constant dense<0.000000e+00> : vector<8x512xf32>
    %464 = tpu.matmul %462, %463, %cst_232 {dimension_numbers = #tpu.dot_dimension_numbers<[1], [0], [0], [1], [0, 0, 1, 1], [], []>} : vector<8x128xf32>, vector<128x512xf32>, vector<8x512xf32> -> vector<8x512xf32>
    %465 = arith.addf %464, %445 : vector<8x512xf32>
    %466 = arith.index_cast %c5_i32 : i32 to index
    %c0_233 = arith.constant 0 : index
    %c0_234 = arith.constant 0 : index
    %467 = vector.load %arg21[%466, %c0_233, %c0_234] : memref<8x8x512xf32, #tpu.memory_space<vmem>>, vector<1x8x512xf32>
    %468 = vector.shape_cast %467 : vector<1x8x512xf32> to vector<8x512xf32>
    %469 = arith.addf %465, %468 : vector<8x512xf32>
    %470 = vector.extract_strided_slice %469 {offsets = [0, 0], sizes = [8, 128], strides = [1, 1]} : vector<8x512xf32> to vector<8x128xf32>
    %471 = arith.negf %470 : vector<8x128xf32>
    %472 = math.exp %471 : vector<8x128xf32>
    %cst_235 = arith.constant 1.000000e+00 : f32
    %473 = vector.broadcast %cst_235 : f32 to vector<8x128xf32>
    %474 = arith.addf %473, %472 : vector<8x128xf32>
    %475 = arith.divf %473, %474 : vector<8x128xf32>
    %476 = vector.extract_strided_slice %469 {offsets = [0, 128], sizes = [8, 128], strides = [1, 1]} : vector<8x512xf32> to vector<8x128xf32>
    %477 = arith.negf %476 : vector<8x128xf32>
    %478 = math.exp %477 : vector<8x128xf32>
    %cst_236 = arith.constant 1.000000e+00 : f32
    %479 = vector.broadcast %cst_236 : f32 to vector<8x128xf32>
    %480 = arith.addf %479, %478 : vector<8x128xf32>
    %481 = arith.divf %479, %480 : vector<8x128xf32>
    %482 = vector.extract_strided_slice %469 {offsets = [0, 256], sizes = [8, 128], strides = [1, 1]} : vector<8x512xf32> to vector<8x128xf32>
    %483 = math.tanh %482 : vector<8x128xf32>
    %484 = vector.extract_strided_slice %469 {offsets = [0, 384], sizes = [8, 128], strides = [1, 1]} : vector<8x512xf32> to vector<8x128xf32>
    %485 = arith.negf %484 : vector<8x128xf32>
    %486 = math.exp %485 : vector<8x128xf32>
    %cst_237 = arith.constant 1.000000e+00 : f32
    %487 = vector.broadcast %cst_237 : f32 to vector<8x128xf32>
    %488 = arith.addf %487, %486 : vector<8x128xf32>
    %489 = arith.divf %487, %488 : vector<8x128xf32>
    %c0_238 = arith.constant 0 : index
    %c0_239 = arith.constant 0 : index
    %490 = vector.load %arg23[%c0_238, %c0_239] : memref<8x128xf32, #tpu.memory_space<vmem>>, vector<8x128xf32>
    %491 = arith.mulf %481, %490 : vector<8x128xf32>
    %492 = arith.mulf %475, %483 : vector<8x128xf32>
    %493 = arith.addf %491, %492 : vector<8x128xf32>
    %494 = math.tanh %493 : vector<8x128xf32>
    %495 = arith.mulf %489, %494 : vector<8x128xf32>
    %c0_240 = arith.constant 0 : index
    %c0_241 = arith.constant 0 : index
    %496 = vector.load %arg22[%c0_240, %c0_241] : memref<8x128xf32, #tpu.memory_space<vmem>>, vector<8x128xf32>
    tpu.vector_store %arg22[%c0_240, %c0_241], %495 {strides = array<i32>} : memref<8x128xf32, #tpu.memory_space<vmem>>, vector<8x128xf32>,
    %c0_242 = arith.constant 0 : index
    %c0_243 = arith.constant 0 : index
    %497 = vector.load %arg23[%c0_242, %c0_243] : memref<8x128xf32, #tpu.memory_space<vmem>>, vector<8x128xf32>
    tpu.vector_store %arg23[%c0_242, %c0_243], %493 {strides = array<i32>} : memref<8x128xf32, #tpu.memory_space<vmem>>, vector<8x128xf32>,
    %498 = tpu.concatenate %462, %444, %451, %459 in 1 : vector<8x128xf32>, vector<8x128xf32>, vector<8x128xf32>, vector<8x128xf32> -> vector<8x512xf32>
    %499 = arith.index_cast %c5_i32 : i32 to index
    %c0_244 = arith.constant 0 : index
    %c0_245 = arith.constant 0 : index
    %500 = vector.load %arg18[%499, %c0_244, %c0_245] : memref<8x8x512xf32, #tpu.memory_space<vmem>>, vector<1x8x512xf32>
    %501 = vector.shape_cast %500 : vector<1x8x512xf32> to vector<8x512xf32>
    %502 = vector.shape_cast %498 : vector<8x512xf32> to vector<1x8x512xf32>
    tpu.vector_store %arg18[%499, %c0_244, %c0_245], %502 {strides = array<i32>} : memref<8x8x512xf32, #tpu.memory_space<vmem>>, vector<1x8x512xf32>,
    %c6_i32 = arith.constant 6 : i32
    %503 = arith.index_cast %c6_i32 : i32 to index
    %c0_246 = arith.constant 0 : index
    %c0_247 = arith.constant 0 : index
    %504 = vector.load %arg2[%503, %c0_246, %c0_247] : memref<8x8x128xf32, #tpu.memory_space<vmem>>, vector<1x8x128xf32>
    %505 = vector.shape_cast %504 : vector<1x8x128xf32> to vector<8x128xf32>
    %506 = arith.index_cast %c6_i32 : i32 to index
    %c0_248 = arith.constant 0 : index
    %c0_249 = arith.constant 0 : index
    %507 = vector.load %arg3[%506, %c0_248, %c0_249] : memref<8x8x128xf32, #tpu.memory_space<vmem>>, vector<1x8x128xf32>
    %508 = vector.shape_cast %507 : vector<1x8x128xf32> to vector<8x128xf32>
    %cst_250 = arith.constant 1.000000e+00 : f32
    %509 = vector.broadcast %cst_250 : f32 to vector<8x128xf32>
    %510 = arith.subf %509, %508 : vector<8x128xf32>
    %c0_251 = arith.constant 0 : index
    %c0_252 = arith.constant 0 : index
    %511 = vector.load %arg22[%c0_251, %c0_252] : memref<8x128xf32, #tpu.memory_space<vmem>>, vector<8x128xf32>
    %512 = arith.index_cast %c6_i32 : i32 to index
    %c0_253 = arith.constant 0 : index
    %c0_254 = arith.constant 0 : index
    %513 = vector.load %arg19[%512, %c0_253, %c0_254] : memref<8x8x128xf32, #tpu.memory_space<vmem>>, vector<1x8x128xf32>
    %514 = vector.shape_cast %513 : vector<1x8x128xf32> to vector<8x128xf32>
    %515 = arith.mulf %511, %514 : vector<8x128xf32>
    %c0_255 = arith.constant 0 : index
    %c0_256 = arith.constant 0 : index
    %516 = vector.load %arg12[%c0_255, %c0_256] : memref<128x640xf32, #tpu.memory_space<vmem>>, vector<128x640xf32>
    %cst_257 = arith.constant dense<0.000000e+00> : vector<8x640xf32>
    %517 = tpu.matmul %515, %516, %cst_257 {dimension_numbers = #tpu.dot_dimension_numbers<[1], [0], [0], [1], [0, 0, 1, 1], [], []>} : vector<8x128xf32>, vector<128x640xf32>, vector<8x640xf32> -> vector<8x640xf32>
    %518 = vector.extract_strided_slice %517 {offsets = [0, 0], sizes = [8, 128], strides = [1, 1]} : vector<8x640xf32> to vector<8x128xf32>
    %519 = arith.addf %518, %49 : vector<8x128xf32>
    %520 = vector.extract_strided_slice %517 {offsets = [0, 128], sizes = [8, 512], strides = [1, 1]} : vector<8x640xf32> to vector<8x512xf32>
    %521 = arith.mulf %508, %505 : vector<8x128xf32>
    %522 = arith.mulf %510, %519 : vector<8x128xf32>
    %523 = arith.addf %521, %522 : vector<8x128xf32>
    %c0_258 = arith.constant 0 : index
    %c0_259 = arith.constant 0 : index
    %524 = vector.load %arg14[%c0_258, %c0_259] : memref<128x128xf32, #tpu.memory_space<vmem>>, vector<128x128xf32>
    %cst_260 = arith.constant dense<0.000000e+00> : vector<8x128xf32>
    %525 = tpu.matmul %523, %524, %cst_260 {dimension_numbers = #tpu.dot_dimension_numbers<[1], [0], [0], [1], [0, 0, 1, 1], [], []>} : vector<8x128xf32>, vector<128x128xf32>, vector<8x128xf32> -> vector<8x128xf32>
    %526 = arith.addf %525, %52 : vector<8x128xf32>
    %527 = arith.index_cast %c6_i32 : i32 to index
    %c0_261 = arith.constant 0 : index
    %c0_262 = arith.constant 0 : index
    %528 = vector.load %arg20[%527, %c0_261, %c0_262] : memref<8x8x128xf32, #tpu.memory_space<vmem>>, vector<1x8x128xf32>
    %529 = vector.shape_cast %528 : vector<1x8x128xf32> to vector<8x128xf32>
    %530 = arith.mulf %529, %526 : vector<8x128xf32>
    %cst_263 = arith.constant 1.000000e+00 : f32
    %531 = vector.broadcast %cst_263 : f32 to vector<8x128xf32>
    %532 = arith.subf %531, %529 : vector<8x128xf32>
    %533 = arith.mulf %532, %519 : vector<8x128xf32>
    %534 = arith.addf %530, %533 : vector<8x128xf32>
    %535 = arith.mulf %508, %505 : vector<8x128xf32>
    %536 = arith.mulf %510, %534 : vector<8x128xf32>
    %537 = arith.addf %535, %536 : vector<8x128xf32>
    %c0_264 = arith.constant 0 : index
    %c0_265 = arith.constant 0 : index
    %538 = vector.load %arg16[%c0_264, %c0_265] : memref<128x512xf32, #tpu.memory_space<vmem>>, vector<128x512xf32>
    %cst_266 = arith.constant dense<0.000000e+00> : vector<8x512xf32>
    %539 = tpu.matmul %537, %538, %cst_266 {dimension_numbers = #tpu.dot_dimension_numbers<[1], [0], [0], [1], [0, 0, 1, 1], [], []>} : vector<8x128xf32>, vector<128x512xf32>, vector<8x512xf32> -> vector<8x512xf32>
    %540 = arith.addf %539, %520 : vector<8x512xf32>
    %541 = arith.index_cast %c6_i32 : i32 to index
    %c0_267 = arith.constant 0 : index
    %c0_268 = arith.constant 0 : index
    %542 = vector.load %arg21[%541, %c0_267, %c0_268] : memref<8x8x512xf32, #tpu.memory_space<vmem>>, vector<1x8x512xf32>
    %543 = vector.shape_cast %542 : vector<1x8x512xf32> to vector<8x512xf32>
    %544 = arith.addf %540, %543 : vector<8x512xf32>
    %545 = vector.extract_strided_slice %544 {offsets = [0, 0], sizes = [8, 128], strides = [1, 1]} : vector<8x512xf32> to vector<8x128xf32>
    %546 = arith.negf %545 : vector<8x128xf32>
    %547 = math.exp %546 : vector<8x128xf32>
    %cst_269 = arith.constant 1.000000e+00 : f32
    %548 = vector.broadcast %cst_269 : f32 to vector<8x128xf32>
    %549 = arith.addf %548, %547 : vector<8x128xf32>
    %550 = arith.divf %548, %549 : vector<8x128xf32>
    %551 = vector.extract_strided_slice %544 {offsets = [0, 128], sizes = [8, 128], strides = [1, 1]} : vector<8x512xf32> to vector<8x128xf32>
    %552 = arith.negf %551 : vector<8x128xf32>
    %553 = math.exp %552 : vector<8x128xf32>
    %cst_270 = arith.constant 1.000000e+00 : f32
    %554 = vector.broadcast %cst_270 : f32 to vector<8x128xf32>
    %555 = arith.addf %554, %553 : vector<8x128xf32>
    %556 = arith.divf %554, %555 : vector<8x128xf32>
    %557 = vector.extract_strided_slice %544 {offsets = [0, 256], sizes = [8, 128], strides = [1, 1]} : vector<8x512xf32> to vector<8x128xf32>
    %558 = math.tanh %557 : vector<8x128xf32>
    %559 = vector.extract_strided_slice %544 {offsets = [0, 384], sizes = [8, 128], strides = [1, 1]} : vector<8x512xf32> to vector<8x128xf32>
    %560 = arith.negf %559 : vector<8x128xf32>
    %561 = math.exp %560 : vector<8x128xf32>
    %cst_271 = arith.constant 1.000000e+00 : f32
    %562 = vector.broadcast %cst_271 : f32 to vector<8x128xf32>
    %563 = arith.addf %562, %561 : vector<8x128xf32>
    %564 = arith.divf %562, %563 : vector<8x128xf32>
    %c0_272 = arith.constant 0 : index
    %c0_273 = arith.constant 0 : index
    %565 = vector.load %arg23[%c0_272, %c0_273] : memref<8x128xf32, #tpu.memory_space<vmem>>, vector<8x128xf32>
    %566 = arith.mulf %556, %565 : vector<8x128xf32>
    %567 = arith.mulf %550, %558 : vector<8x128xf32>
    %568 = arith.addf %566, %567 : vector<8x128xf32>
    %569 = math.tanh %568 : vector<8x128xf32>
    %570 = arith.mulf %564, %569 : vector<8x128xf32>
    %c0_274 = arith.constant 0 : index
    %c0_275 = arith.constant 0 : index
    %571 = vector.load %arg22[%c0_274, %c0_275] : memref<8x128xf32, #tpu.memory_space<vmem>>, vector<8x128xf32>
    tpu.vector_store %arg22[%c0_274, %c0_275], %570 {strides = array<i32>} : memref<8x128xf32, #tpu.memory_space<vmem>>, vector<8x128xf32>,
    %c0_276 = arith.constant 0 : index
    %c0_277 = arith.constant 0 : index
    %572 = vector.load %arg23[%c0_276, %c0_277] : memref<8x128xf32, #tpu.memory_space<vmem>>, vector<8x128xf32>
    tpu.vector_store %arg23[%c0_276, %c0_277], %568 {strides = array<i32>} : memref<8x128xf32, #tpu.memory_space<vmem>>, vector<8x128xf32>,
    %573 = tpu.concatenate %537, %519, %526, %534 in 1 : vector<8x128xf32>, vector<8x128xf32>, vector<8x128xf32>, vector<8x128xf32> -> vector<8x512xf32>
    %574 = arith.index_cast %c6_i32 : i32 to index
    %c0_278 = arith.constant 0 : index
    %c0_279 = arith.constant 0 : index
    %575 = vector.load %arg18[%574, %c0_278, %c0_279] : memref<8x8x512xf32, #tpu.memory_space<vmem>>, vector<1x8x512xf32>
    %576 = vector.shape_cast %575 : vector<1x8x512xf32> to vector<8x512xf32>
    %577 = vector.shape_cast %573 : vector<8x512xf32> to vector<1x8x512xf32>
    tpu.vector_store %arg18[%574, %c0_278, %c0_279], %577 {strides = array<i32>} : memref<8x8x512xf32, #tpu.memory_space<vmem>>, vector<1x8x512xf32>,
    %c7_i32 = arith.constant 7 : i32
    %578 = arith.index_cast %c7_i32 : i32 to index
    %c0_280 = arith.constant 0 : index
    %c0_281 = arith.constant 0 : index
    %579 = vector.load %arg2[%578, %c0_280, %c0_281] : memref<8x8x128xf32, #tpu.memory_space<vmem>>, vector<1x8x128xf32>
    %580 = vector.shape_cast %579 : vector<1x8x128xf32> to vector<8x128xf32>
    %581 = arith.index_cast %c7_i32 : i32 to index
    %c0_282 = arith.constant 0 : index
    %c0_283 = arith.constant 0 : index
    %582 = vector.load %arg3[%581, %c0_282, %c0_283] : memref<8x8x128xf32, #tpu.memory_space<vmem>>, vector<1x8x128xf32>
    %583 = vector.shape_cast %582 : vector<1x8x128xf32> to vector<8x128xf32>
    %cst_284 = arith.constant 1.000000e+00 : f32
    %584 = vector.broadcast %cst_284 : f32 to vector<8x128xf32>
    %585 = arith.subf %584, %583 : vector<8x128xf32>
    %c0_285 = arith.constant 0 : index
    %c0_286 = arith.constant 0 : index
    %586 = vector.load %arg22[%c0_285, %c0_286] : memref<8x128xf32, #tpu.memory_space<vmem>>, vector<8x128xf32>
    %587 = arith.index_cast %c7_i32 : i32 to index
    %c0_287 = arith.constant 0 : index
    %c0_288 = arith.constant 0 : index
    %588 = vector.load %arg19[%587, %c0_287, %c0_288] : memref<8x8x128xf32, #tpu.memory_space<vmem>>, vector<1x8x128xf32>
    %589 = vector.shape_cast %588 : vector<1x8x128xf32> to vector<8x128xf32>
    %590 = arith.mulf %586, %589 : vector<8x128xf32>
    %c0_289 = arith.constant 0 : index
    %c0_290 = arith.constant 0 : index
    %591 = vector.load %arg12[%c0_289, %c0_290] : memref<128x640xf32, #tpu.memory_space<vmem>>, vector<128x640xf32>
    %cst_291 = arith.constant dense<0.000000e+00> : vector<8x640xf32>
    %592 = tpu.matmul %590, %591, %cst_291 {dimension_numbers = #tpu.dot_dimension_numbers<[1], [0], [0], [1], [0, 0, 1, 1], [], []>} : vector<8x128xf32>, vector<128x640xf32>, vector<8x640xf32> -> vector<8x640xf32>
    %593 = vector.extract_strided_slice %592 {offsets = [0, 0], sizes = [8, 128], strides = [1, 1]} : vector<8x640xf32> to vector<8x128xf32>
    %594 = arith.addf %593, %49 : vector<8x128xf32>
    %595 = vector.extract_strided_slice %592 {offsets = [0, 128], sizes = [8, 512], strides = [1, 1]} : vector<8x640xf32> to vector<8x512xf32>
    %596 = arith.mulf %583, %580 : vector<8x128xf32>
    %597 = arith.mulf %585, %594 : vector<8x128xf32>
    %598 = arith.addf %596, %597 : vector<8x128xf32>
    %c0_292 = arith.constant 0 : index
    %c0_293 = arith.constant 0 : index
    %599 = vector.load %arg14[%c0_292, %c0_293] : memref<128x128xf32, #tpu.memory_space<vmem>>, vector<128x128xf32>
    %cst_294 = arith.constant dense<0.000000e+00> : vector<8x128xf32>
    %600 = tpu.matmul %598, %599, %cst_294 {dimension_numbers = #tpu.dot_dimension_numbers<[1], [0], [0], [1], [0, 0, 1, 1], [], []>} : vector<8x128xf32>, vector<128x128xf32>, vector<8x128xf32> -> vector<8x128xf32>
    %601 = arith.addf %600, %52 : vector<8x128xf32>
    %602 = arith.index_cast %c7_i32 : i32 to index
    %c0_295 = arith.constant 0 : index
    %c0_296 = arith.constant 0 : index
    %603 = vector.load %arg20[%602, %c0_295, %c0_296] : memref<8x8x128xf32, #tpu.memory_space<vmem>>, vector<1x8x128xf32>
    %604 = vector.shape_cast %603 : vector<1x8x128xf32> to vector<8x128xf32>
    %605 = arith.mulf %604, %601 : vector<8x128xf32>
    %cst_297 = arith.constant 1.000000e+00 : f32
    %606 = vector.broadcast %cst_297 : f32 to vector<8x128xf32>
    %607 = arith.subf %606, %604 : vector<8x128xf32>
    %608 = arith.mulf %607, %594 : vector<8x128xf32>
    %609 = arith.addf %605, %608 : vector<8x128xf32>
    %610 = arith.mulf %583, %580 : vector<8x128xf32>
    %611 = arith.mulf %585, %609 : vector<8x128xf32>
    %612 = arith.addf %610, %611 : vector<8x128xf32>
    %c0_298 = arith.constant 0 : index
    %c0_299 = arith.constant 0 : index
    %613 = vector.load %arg16[%c0_298, %c0_299] : memref<128x512xf32, #tpu.memory_space<vmem>>, vector<128x512xf32>
    %cst_300 = arith.constant dense<0.000000e+00> : vector<8x512xf32>
    %614 = tpu.matmul %612, %613, %cst_300 {dimension_numbers = #tpu.dot_dimension_numbers<[1], [0], [0], [1], [0, 0, 1, 1], [], []>} : vector<8x128xf32>, vector<128x512xf32>, vector<8x512xf32> -> vector<8x512xf32>
    %615 = arith.addf %614, %595 : vector<8x512xf32>
    %616 = arith.index_cast %c7_i32 : i32 to index
    %c0_301 = arith.constant 0 : index
    %c0_302 = arith.constant 0 : index
    %617 = vector.load %arg21[%616, %c0_301, %c0_302] : memref<8x8x512xf32, #tpu.memory_space<vmem>>, vector<1x8x512xf32>
    %618 = vector.shape_cast %617 : vector<1x8x512xf32> to vector<8x512xf32>
    %619 = arith.addf %615, %618 : vector<8x512xf32>
    %620 = vector.extract_strided_slice %619 {offsets = [0, 0], sizes = [8, 128], strides = [1, 1]} : vector<8x512xf32> to vector<8x128xf32>
    %621 = arith.negf %620 : vector<8x128xf32>
    %622 = math.exp %621 : vector<8x128xf32>
    %cst_303 = arith.constant 1.000000e+00 : f32
    %623 = vector.broadcast %cst_303 : f32 to vector<8x128xf32>
    %624 = arith.addf %623, %622 : vector<8x128xf32>
    %625 = arith.divf %623, %624 : vector<8x128xf32>
    %626 = vector.extract_strided_slice %619 {offsets = [0, 128], sizes = [8, 128], strides = [1, 1]} : vector<8x512xf32> to vector<8x128xf32>
    %627 = arith.negf %626 : vector<8x128xf32>
    %628 = math.exp %627 : vector<8x128xf32>
    %cst_304 = arith.constant 1.000000e+00 : f32
    %629 = vector.broadcast %cst_304 : f32 to vector<8x128xf32>
    %630 = arith.addf %629, %628 : vector<8x128xf32>
    %631 = arith.divf %629, %630 : vector<8x128xf32>
    %632 = vector.extract_strided_slice %619 {offsets = [0, 256], sizes = [8, 128], strides = [1, 1]} : vector<8x512xf32> to vector<8x128xf32>
    %633 = math.tanh %632 : vector<8x128xf32>
    %634 = vector.extract_strided_slice %619 {offsets = [0, 384], sizes = [8, 128], strides = [1, 1]} : vector<8x512xf32> to vector<8x128xf32>
    %635 = arith.negf %634 : vector<8x128xf32>
    %636 = math.exp %635 : vector<8x128xf32>
    %cst_305 = arith.constant 1.000000e+00 : f32
    %637 = vector.broadcast %cst_305 : f32 to vector<8x128xf32>
    %638 = arith.addf %637, %636 : vector<8x128xf32>
    %639 = arith.divf %637, %638 : vector<8x128xf32>
    %c0_306 = arith.constant 0 : index
    %c0_307 = arith.constant 0 : index
    %640 = vector.load %arg23[%c0_306, %c0_307] : memref<8x128xf32, #tpu.memory_space<vmem>>, vector<8x128xf32>
    %641 = arith.mulf %631, %640 : vector<8x128xf32>
    %642 = arith.mulf %625, %633 : vector<8x128xf32>
    %643 = arith.addf %641, %642 : vector<8x128xf32>
    %644 = math.tanh %643 : vector<8x128xf32>
    %645 = arith.mulf %639, %644 : vector<8x128xf32>
    %c0_308 = arith.constant 0 : index
    %c0_309 = arith.constant 0 : index
    %646 = vector.load %arg22[%c0_308, %c0_309] : memref<8x128xf32, #tpu.memory_space<vmem>>, vector<8x128xf32>
    tpu.vector_store %arg22[%c0_308, %c0_309], %645 {strides = array<i32>} : memref<8x128xf32, #tpu.memory_space<vmem>>, vector<8x128xf32>,
    %c0_310 = arith.constant 0 : index
    %c0_311 = arith.constant 0 : index
    %647 = vector.load %arg23[%c0_310, %c0_311] : memref<8x128xf32, #tpu.memory_space<vmem>>, vector<8x128xf32>
    tpu.vector_store %arg23[%c0_310, %c0_311], %643 {strides = array<i32>} : memref<8x128xf32, #tpu.memory_space<vmem>>, vector<8x128xf32>,
    %648 = tpu.concatenate %612, %594, %601, %609 in 1 : vector<8x128xf32>, vector<8x128xf32>, vector<8x128xf32>, vector<8x128xf32> -> vector<8x512xf32>
    %649 = arith.index_cast %c7_i32 : i32 to index
    %c0_312 = arith.constant 0 : index
    %c0_313 = arith.constant 0 : index
    %650 = vector.load %arg18[%649, %c0_312, %c0_313] : memref<8x8x512xf32, #tpu.memory_space<vmem>>, vector<1x8x512xf32>
    %651 = vector.shape_cast %650 : vector<1x8x512xf32> to vector<8x512xf32>
    %652 = vector.shape_cast %648 : vector<8x512xf32> to vector<1x8x512xf32>
    tpu.vector_store %arg18[%649, %c0_312, %c0_313], %652 {strides = array<i32>} : memref<8x8x512xf32, #tpu.memory_space<vmem>>, vector<1x8x512xf32>,
    %c8_i32 = arith.constant 8 : i32
    return
  }
  func.func @transform_0(%arg0: i32, %arg1: i32) -> (i32, i32, i32) {
    %c0_i32 = arith.constant 0 : i32
    %c0_i32_0 = arith.constant 0 : i32
    return %arg1, %arg0, %c0_i32 : i32, i32, i32
  }
  func.func @transform_1(%arg0: i32, %arg1: i32) -> (i32, i32, i32) {
    %c0_i32 = arith.constant 0 : i32
    %c0_i32_0 = arith.constant 0 : i32
    return %arg1, %arg0, %c0_i32 : i32, i32, i32
  }
  func.func @transform_2(%arg0: i32, %arg1: i32) -> (i32, i32, i32) {
    %c0_i32 = arith.constant 0 : i32
    %c0_i32_0 = arith.constant 0 : i32
    return %arg1, %arg0, %c0_i32 : i32, i32, i32
  }
  func.func @transform_3(%arg0: i32, %arg1: i32) -> (i32, i32) {
    %c0_i32 = arith.constant 0 : i32
    %c0_i32_0 = arith.constant 0 : i32
    %c0_i32_1 = arith.constant 0 : i32
    return %c0_i32, %c0_i32_0 : i32, i32
  }
  func.func @transform_4(%arg0: i32, %arg1: i32) -> (i32, i32) {
    %c0_i32 = arith.constant 0 : i32
    %c0_i32_0 = arith.constant 0 : i32
    %c0_i32_1 = arith.constant 0 : i32
    return %c0_i32, %c0_i32_0 : i32, i32
  }
  func.func @transform_5(%arg0: i32, %arg1: i32) -> (i32, i32) {
    %c0_i32 = arith.constant 0 : i32
    %c0_i32_0 = arith.constant 0 : i32
    %c0_i32_1 = arith.constant 0 : i32
    return %c0_i32, %c0_i32_0 : i32, i32
  }
  func.func @transform_6(%arg0: i32, %arg1: i32) -> (i32, i32) {
    %c0_i32 = arith.constant 0 : i32
    %c0_i32_0 = arith.constant 0 : i32
    %c0_i32_1 = arith.constant 0 : i32
    return %c0_i32, %c0_i32_0 : i32, i32
  }
  func.func @transform_7(%arg0: i32, %arg1: i32) -> (i32, i32) {
    %c0_i32 = arith.constant 0 : i32
    %c0_i32_0 = arith.constant 0 : i32
    %c0_i32_1 = arith.constant 0 : i32
    return %c0_i32, %c0_i32_0 : i32, i32
  }
  func.func @transform_8(%arg0: i32, %arg1: i32) -> (i32, i32) {
    %c0_i32 = arith.constant 0 : i32
    %c0_i32_0 = arith.constant 0 : i32
    %c0_i32_1 = arith.constant 0 : i32
    return %c0_i32, %c0_i32_0 : i32, i32
  }
  func.func @transform_9(%arg0: i32, %arg1: i32) -> (i32, i32) {
    %c0_i32 = arith.constant 0 : i32
    %c0_i32_0 = arith.constant 0 : i32
    %c0_i32_1 = arith.constant 0 : i32
    return %c0_i32, %c0_i32_0 : i32, i32
  }
  func.func @transform_10(%arg0: i32, %arg1: i32) -> (i32, i32) {
    %c0_i32 = arith.constant 0 : i32
    %c0_i32_0 = arith.constant 0 : i32
    %c0_i32_1 = arith.constant 0 : i32
    return %c0_i32, %c0_i32_0 : i32, i32
  }
  func.func @transform_11(%arg0: i32, %arg1: i32) -> (i32, i32) {
    %c0_i32 = arith.constant 0 : i32
    %c0_i32_0 = arith.constant 0 : i32
    %c0_i32_1 = arith.constant 0 : i32
    return %c0_i32, %c0_i32_0 : i32, i32
  }
  func.func @transform_12(%arg0: i32, %arg1: i32) -> (i32, i32) {
    %c0_i32 = arith.constant 0 : i32
    %c0_i32_0 = arith.constant 0 : i32
    %c0_i32_1 = arith.constant 0 : i32
    return %c0_i32, %c0_i32_0 : i32, i32
  }
  func.func @transform_13(%arg0: i32, %arg1: i32) -> (i32, i32) {
    %c0_i32 = arith.constant 0 : i32
    %c0_i32_0 = arith.constant 0 : i32
    %c0_i32_1 = arith.constant 0 : i32
    return %c0_i32, %c0_i32_0 : i32, i32
  }
  func.func @transform_14(%arg0: i32, %arg1: i32) -> (i32, i32) {
    %c0_i32 = arith.constant 0 : i32
    %c0_i32_0 = arith.constant 0 : i32
    %c0_i32_1 = arith.constant 0 : i32
    return %c0_i32, %c0_i32_0 : i32, i32
  }
  func.func @transform_15(%arg0: i32, %arg1: i32) -> (i32, i32) {
    %c0_i32 = arith.constant 0 : i32
    %c0_i32_0 = arith.constant 0 : i32
    %c0_i32_1 = arith.constant 0 : i32
    return %c0_i32, %c0_i32_0 : i32, i32
  }
  func.func @transform_16(%arg0: i32, %arg1: i32) -> (i32, i32, i32) {
    %c0_i32 = arith.constant 0 : i32
    %c0_i32_0 = arith.constant 0 : i32
    return %arg1, %arg0, %c0_i32 : i32, i32, i32
  }
}

</mosaic_0001>

<bundles_post_ra>
// kernel: tpu_custom_call.1
= control target key start
LH: loop header
LB: loop body
LE: loop exit
PB: predicated region body
PF: predicated region fallthrough
CT: control target
= control target key end

     0   :  { %s11436_s0 = inlined_call_operand.hbm [shape: f32[8,8,128], index: 0, kind: input, shape index: {}]   ;;  %s11437_s1 = inlined_call_operand.hbm [shape: f32[8,8,128], index: 1, kind: input, shape index: {}]   ;;  %s11438_s2 = inlined_call_operand.hbm [shape: f32[8,8,128], index: 2, kind: input, shape index: {}]   ;;  %s11439_s3 = inlined_call_operand.hbm [shape: f32[128,128], index: 3, kind: input, shape index: {}]   ;;  %s11440_s4 = inlined_call_operand.vmem [shape: f32[1,128], index: 4, kind: input, shape index: {}]   ;;  %s11441_s5 = inlined_call_operand.vmem [shape: f32[1,128], index: 5, kind: input, shape index: {}]   ;;  %s11442_s6 = inlined_call_operand.vmem [shape: f32[1,128], index: 6, kind: input, shape index: {}]   ;;  %s11443_s7 = inlined_call_operand.hbm [shape: f32[128,128], index: 7, kind: input, shape index: {}]   ;;  %s11444_s8 = inlined_call_operand.hbm [shape: f32[128,640], index: 8, kind: input, shape index: {}]   ;;  %s11445_s9 = inlined_call_operand.vmem [shape: f32[1,128], index: 9, kind: input, shape index: {}]   ;;  %s11446_s10 = inlined_call_operand.hbm [shape: f32[128,640], index: 10, kind: input, shape index: {}]   ;;  %s11447_s11 = inlined_call_operand.vmem [shape: f32[1,128], index: 11, kind: input, shape index: {}]   ;;  %s11448_s12 = inlined_call_operand.hbm [shape: f32[128,128], index: 12, kind: input, shape index: {}]   ;;  %s11449_s13 = inlined_call_operand.vmem [shape: f32[1,128], index: 13, kind: input, shape index: {}]   ;;  %s11450_s14 = inlined_call_operand.hbm [shape: f32[128,512], index: 14, kind: input, shape index: {}]   ;;  %s11451_s15 = inlined_call_operand.vmem [shape: f32[1,512], index: 15, kind: input, shape index: {}]   ;;  %s11452_s16 = inlined_call_operand.hbm [shape: f32[8,8,512], index: 16, kind: output, shape index: {}]  }
   0x1   :  { %11584 = sst [smem:[#allocation105_spill]] %s11436_s0 }
   0x2   :  { %21 = vsyncpa [#allocation8], 0 }
   0x3   :  { %22 = vsyncpa [#allocation11], 0 }
   0x4   :  { %23 = vsyncpa [#allocation14], 0 }
   0x5   :  { %24 = vsyncpa [#allocation17], 0 }
   0x6   :  { %25 = vsyncpa [#allocation20], 0 }
   0x7   :  { %26 = vsyncpa [#allocation9], 0  ;;  %s9301_s21 = smov [#allocation10]   ;;  %s9302_s23 = smov [#allocation13]  }
   0x8   :  { %s44_s22 = sshll.u32 %s9301_s21, 4  ;;  %s68_s24 = sshll.u32 %s9302_s23, 4  ;;  %s45_s22 = int_to_ptr.vmem [resolvable:$true] %s44_s22  ;;  %s9405_s24 = int_to_ptr.vmem [resolvable:$true] %s68_s24 }
   0x9   :  { %s9069_s27 = scalar_lea.hbm %s11437_s1, 1024 }
   0xa   :  { %p9070_p0 = scmp.ne.s32.totalorder %s11437_s1, %s9069_s27  ;;  %p9073_p1 = scmp.lt.u32.totalorder %s9069_s27, %s11437_s1 }
   0xc   :  { %p9075_p2 = pnand %p9073_p1, %p9070_p0 }
   0xe   :  { %9078 = shalt.err (!%p9075_p2)
}
   0xf   :  { %s9079_s17 = scalar_lea.vmem %s45_s22, 1024  ;;  %p9084_p4 = scmp.lt.s32.totalorder %s45_s22, %s45_s22 }
  0x10   :  { %p9080_p3 = scmp.ne.s32.totalorder %s45_s22, %s9079_s17  ;;  %p9085_p5 = scmp.lt.s32.totalorder %s9079_s17, %s9079_s17 }
  0x12   :  { %p9086_p6 = por %p9085_p5, %p9084_p4 }
  0x14   :  { %p9087_p7 = pnand %p9086_p6, %p9080_p3 }
  0x16   :  { %9090 = shalt.err (!%p9087_p7)
}
  0x17   :  { %s11454_s18 = smov 128   ;;  %s9304_s19 = smov 8  }
  0x18   :  { %50 = dma.hbm_to_vmem [thread:$0]  %s11437_s1, 1024, %s45_s22, [#allocation11], %s11454_s18, %s11454_s18, %s9304_s19  }
  0x19   :  { %s9091_s26 = scalar_lea.hbm %s11439_s3, 2048 }
  0x1a   :  { %p9092_p8 = scmp.ne.s32.totalorder %s11439_s3, %s9091_s26  ;;  %p9095_p9 = scmp.lt.u32.totalorder %s9091_s26, %s11439_s3 }
  0x1c   :  { %p9097_p10 = pnand %p9095_p9, %p9092_p8 }
  0x1e   :  { %9100 = shalt.err (!%p9097_p10)
}
  0x1f   :  { %s9101_s0 = scalar_lea.vmem %s9405_s24, 2048  ;;  %p9106_p12 = scmp.lt.s32.totalorder %s9405_s24, %s9405_s24 }
  0x20   :  { %p9102_p11 = scmp.ne.s32.totalorder %s9405_s24, %s9101_s0  ;;  %p9107_p13 = scmp.lt.s32.totalorder %s9101_s0, %s9101_s0 }
  0x22   :  { %p9108_p0 = por %p9107_p13, %p9106_p12 }
  0x24   :  { %p9109_p1 = pnand %p9108_p0, %p9102_p11 }
  0x26   :  { %9112 = shalt.err (!%p9109_p1)
}
  0x27   :  { %74 = dma.hbm_to_vmem [thread:$0]  %s11439_s3, 2048, %s9405_s24, [#allocation14], %s11454_s18, %s11454_s18, %s9304_s19  }
  0x28   :  { %s9305_s17 = smov [#allocation16]   ;;  %s9113_s25 = scalar_lea.hbm %s11444_s8, 10240 }
  0x29   :  { %s98_s20 = sshll.u32 %s9305_s17, 4  ;;  %p9114_p2 = scmp.ne.s32.totalorder %s11444_s8, %s9113_s25  ;;  %s99_s20 = int_to_ptr.vmem [resolvable:$true] %s98_s20 }
  0x2a   :  { %p9117_p3 = scmp.lt.u32.totalorder %s9113_s25, %s11444_s8 }
  0x2c   :  { %p9119_p4 = pnand %p9117_p3, %p9114_p2 }
  0x2e   :  { %9122 = shalt.err (!%p9119_p4)
}
  0x2f   :  { %s9123_s30 = scalar_lea.vmem %s99_s20, 10240  ;;  %p9128_p6 = scmp.lt.s32.totalorder %s99_s20, %s99_s20 }
  0x30   :  { %p9124_p5 = scmp.ne.s32.totalorder %s99_s20, %s9123_s30  ;;  %p9129_p7 = scmp.lt.s32.totalorder %s9123_s30, %s9123_s30 }
  0x32   :  { %p9130_p8 = por %p9129_p7, %p9128_p6 }
  0x34   :  { %p9131_p9 = pnand %p9130_p8, %p9124_p5 }
  0x36   :  { %9134 = shalt.err (!%p9131_p9)
}
  0x37   :  { %s9306_s3 = smov 640   ;;  %s9307_s24 = smov 40  }
  0x38   :  { %104 = dma.hbm_to_vmem [thread:$0]  %s11444_s8, 10240, %s99_s20, [#allocation17], %s9306_s3, %s9306_s3, %s9307_s24  }
  0x39   :  { %s9308_s22 = smov [#allocation19]   ;;  %s9309_s21 = smov [#allocation7]  }
  0x3a   :  { %s126_s17 = sshll.u32 %s9308_s22, 4  ;;  %s32_s23 = sshll.u32 %s9309_s21, 4  ;;  %s127_s17 = int_to_ptr.vmem [resolvable:$true] %s126_s17  ;;  %s33_s23 = int_to_ptr.vmem [resolvable:$true] %s32_s23 }
  0x3b   :  { %s9135_s27 = scalar_lea.hbm %s11448_s12, 2048 }
  0x3c   :  { %p9136_p10 = scmp.ne.s32.totalorder %s11448_s12, %s9135_s27  ;;  %p9139_p11 = scmp.lt.u32.totalorder %s9135_s27, %s11448_s12 }
  0x3e   :  { %p9141_p12 = pnand %p9139_p11, %p9136_p10 }
  0x40   :  { %9144 = shalt.err (!%p9141_p12)
}
  0x41   :  { %s9145_s8 = scalar_lea.vmem %s127_s17, 2048  ;;  %p9150_p0 = scmp.lt.s32.totalorder %s127_s17, %s127_s17 }
  0x42   :  { %p9146_p13 = scmp.ne.s32.totalorder %s127_s17, %s9145_s8  ;;  %p9151_p1 = scmp.lt.s32.totalorder %s9145_s8, %s9145_s8 }
  0x44   :  { %p9152_p2 = por %p9151_p1, %p9150_p0 }
  0x46   :  { %p9153_p3 = pnand %p9152_p2, %p9146_p13 }
  0x48   :  { %9156 = shalt.err (!%p9153_p3)
}
  0x49   :  { %s11585_s20 = smov 128   ;;  %s11586_s21 = sld [smem:[#allocation105_spill]] }
  0x4a   :  { %132 = dma.hbm_to_vmem [thread:$0]  %s11448_s12, 2048, %s127_s17, [#allocation20], %s11585_s20, %s11585_s20, %s9304_s19  }
  0x4f   :  { %s9157_s25 = scalar_lea.hbm %s11586_s21, 1024 }
  0x50   :  { %p9158_p4 = scmp.ne.s32.totalorder %s11586_s21, %s9157_s25  ;;  %p9161_p5 = scmp.lt.u32.totalorder %s9157_s25, %s11586_s21 }
  0x52   :  { %p9163_p6 = pnand %p9161_p5, %p9158_p4 }
  0x54   :  { %9166 = shalt.err (!%p9163_p6)
}
  0x55   :  { %s9167_s30 = scalar_lea.vmem %s33_s23, 1024  ;;  %p9172_p8 = scmp.lt.s32.totalorder %s33_s23, %s33_s23 }
  0x56   :  { %p9168_p7 = scmp.ne.s32.totalorder %s33_s23, %s9167_s30  ;;  %p9173_p9 = scmp.lt.s32.totalorder %s9167_s30, %s9167_s30 }
  0x58   :  { %p9174_p10 = por %p9173_p9, %p9172_p8 }
  0x5a   :  { %p9175_p11 = pnand %p9174_p10, %p9168_p7 }
  0x5c   :  { %9178 = shalt.err (!%p9175_p11)
}
  0x5d   :  { %38 = dma.hbm_to_vmem [thread:$0]  %s11586_s21, 1024, %s33_s23, [#allocation8], %s11585_s20, %s11585_s20, %s9304_s19  }
  0x5e   :  { %s9310_s8 = smov [#allocation12]   ;;  %s9311_s1 = smov [#allocation15]  }
  0x5f   :  { %s56_s0 = sshll.u32 %s9310_s8, 4  ;;  %s86_s22 = sshll.u32 %s9311_s1, 4  ;;  %s57_s0 = int_to_ptr.vmem [resolvable:$true] %s56_s0  ;;  %s87_s22 = int_to_ptr.vmem [resolvable:$true] %s86_s22 }
  0x60   :  { %s9179_s26 = scalar_lea.hbm %s11438_s2, 1024 }
  0x61   :  { %p9180_p12 = scmp.ne.s32.totalorder %s11438_s2, %s9179_s26  ;;  %p9183_p13 = scmp.lt.u32.totalorder %s9179_s26, %s11438_s2 }
  0x63   :  { %p9185_p0 = pnand %p9183_p13, %p9180_p12 }
  0x65   :  { %9188 = shalt.err (!%p9185_p0)
}
  0x66   :  { %s9189_s23 = scalar_lea.vmem %s57_s0, 1024  ;;  %p9194_p2 = scmp.lt.s32.totalorder %s57_s0, %s57_s0 }
  0x67   :  { %p9190_p1 = scmp.ne.s32.totalorder %s57_s0, %s9189_s23  ;;  %p9195_p3 = scmp.lt.s32.totalorder %s9189_s23, %s9189_s23 }
  0x69   :  { %p9196_p4 = por %p9195_p3, %p9194_p2 }
  0x6b   :  { %p9197_p5 = pnand %p9196_p4, %p9190_p1 }
  0x6d   :  { %9200 = shalt.err (!%p9197_p5)
}
  0x6e   :  { %62 = dma.hbm_to_vmem [thread:$0]  %s11438_s2, 1024, %s57_s0, [#allocation11], %s11585_s20, %s11585_s20, %s9304_s19  }
  0x6f   :  { %s9201_s1 = scalar_lea.hbm %s11443_s7, 2048 }
  0x70   :  { %p9202_p6 = scmp.ne.s32.totalorder %s11443_s7, %s9201_s1  ;;  %p9205_p7 = scmp.lt.u32.totalorder %s9201_s1, %s11443_s7 }
  0x72   :  { %p9207_p8 = pnand %p9205_p7, %p9202_p6 }
  0x74   :  { %9210 = shalt.err (!%p9207_p8)
}
  0x75   :  { %s9211_s28 = scalar_lea.vmem %s87_s22, 2048  ;;  %p9216_p10 = scmp.lt.s32.totalorder %s87_s22, %s87_s22 }
  0x76   :  { %p9212_p9 = scmp.ne.s32.totalorder %s87_s22, %s9211_s28  ;;  %p9217_p11 = scmp.lt.s32.totalorder %s9211_s28, %s9211_s28 }
  0x78   :  { %p9218_p12 = por %p9217_p11, %p9216_p10 }
  0x7a   :  { %p9219_p13 = pnand %p9218_p12, %p9212_p9 }
  0x7c   :  { %9222 = shalt.err (!%p9219_p13)
}
  0x7d   :  { %92 = dma.hbm_to_vmem [thread:$0]  %s11443_s7, 2048, %s87_s22, [#allocation14], %s11585_s20, %s11585_s20, %s9304_s19  }
  0x7e   :  { %s9312_s29 = smov [#allocation18]   ;;  %s9313_s23 = smov [#allocation21]  }
  0x7f   :  { %s112_s30 = sshll.u32 %s9312_s29, 4  ;;  %s140_s21 = sshll.u32 %s9313_s23, 4  ;;  %s113_s30 = int_to_ptr.vmem [resolvable:$true] %s112_s30  ;;  %s141_s21 = int_to_ptr.vmem [resolvable:$true] %s140_s21 }
  0x80   :  { %s9223_s8 = scalar_lea.hbm %s11446_s10, 10240 }
  0x81   :  { %p9224_p0 = scmp.ne.s32.totalorder %s11446_s10, %s9223_s8  ;;  %p9227_p1 = scmp.lt.u32.totalorder %s9223_s8, %s11446_s10 }
  0x83   :  { %p9229_p2 = pnand %p9227_p1, %p9224_p0 }
  0x85   :  { %9232 = shalt.err (!%p9229_p2)
}
  0x86   :  { %s9233_s7 = scalar_lea.vmem %s113_s30, 10240  ;;  %p9238_p4 = scmp.lt.s32.totalorder %s113_s30, %s113_s30 }
  0x87   :  { %p9234_p3 = scmp.ne.s32.totalorder %s113_s30, %s9233_s7  ;;  %p9239_p5 = scmp.lt.s32.totalorder %s9233_s7, %s9233_s7 }
  0x89   :  { %p9240_p6 = por %p9239_p5, %p9238_p4 }
  0x8b   :  { %p9241_p7 = pnand %p9240_p6, %p9234_p3 }
  0x8d   :  { %9244 = shalt.err (!%p9241_p7)
}
  0x8e   :  { %118 = dma.hbm_to_vmem [thread:$0]  %s11446_s10, 10240, %s113_s30, [#allocation17], %s9306_s3, %s9306_s3, %s9307_s24  }
  0x8f   :  { %s9245_s28 = scalar_lea.hbm %s11450_s14, 8192 }
  0x90   :  { %p9246_p8 = scmp.ne.s32.totalorder %s11450_s14, %s9245_s28  ;;  %p9249_p9 = scmp.lt.u32.totalorder %s9245_s28, %s11450_s14 }
  0x92   :  { %p9251_p10 = pnand %p9249_p9, %p9246_p8 }
  0x94   :  { %9254 = shalt.err (!%p9251_p10)
}
  0x95   :  { %s9255_s12 = scalar_lea.vmem %s141_s21, 8192  ;;  %p9260_p12 = scmp.lt.s32.totalorder %s141_s21, %s141_s21 }
  0x96   :  { %p9256_p11 = scmp.ne.s32.totalorder %s141_s21, %s9255_s12  ;;  %p9261_p13 = scmp.lt.s32.totalorder %s9255_s12, %s9255_s12 }
  0x98   :  { %p9262_p0 = por %p9261_p13, %p9260_p12 }
  0x9a   :  { %p9263_p1 = pnand %p9262_p0, %p9256_p11 }
  0x9c   :  { %9266 = shalt.err (!%p9263_p1)
}
  0x9d   :  { %s9314_s10 = smov 512   ;;  %s9315_s3 = smov 32  }
  0x9e   :  { %146 = dma.hbm_to_vmem [thread:$0]  %s11450_s14, 8192, %s141_s21, [#allocation20], %s9314_s10, %s9314_s10, %s9315_s3  }
  0x9f   :  { %9289 = dma.done.wait [#allocation8], 1024  }
  0xa0   :  { %9290 = vsyncadd [#allocation8], 4294966272 }
  0xa1   :  { %9291 = dma.done.wait [#allocation11], 2048  }
  0xa2   :  { %9292 = vsyncadd [#allocation11], 4294965248 }
  0xa3   :  { %9293 = dma.done.wait [#allocation14], 4096  }
  0xa4   :  { %9294 = vsyncadd [#allocation14], 4294963200 }
  0xa5   :  { %9295 = dma.done.wait [#allocation17], 20480  }
  0xa6   :  { %9296 = vsyncadd [#allocation17], 4294946816 }
  0xa7   :  { %9297 = dma.done.wait [#allocation20], 10240  }
  0xa8   :  { %9298 = vsyncadd [#allocation20], 4294957056  ;;  %v11456_v0 = vmov 0.0   ;;  %v198_v1 = vld [vmem:[#allocation13] sm:$0xff]  ;;  %v199_v2 = vld [vmem:[#allocation13 + $0x8] sm:$0xff]  ;;  %vm9318_vm0 = vmmov 0  }
  0xa9   :  { %564 = vmatprep.mubr.f32.mxu1 %v11456_v0  ;;  %v200_v3 = vld [vmem:[#allocation13 + $0x10] sm:$0xff]  ;;  %v7332_v4 = vpack.c.bf16 %v199_v2, %v198_v1  ;;  %v201_v5 = vld [vmem:[#allocation13 + $0x18] sm:$0xff]  ;;  %v202_v7 = vld [vmem:[#allocation13 + $0x20] sm:$0xff] }
  0xaa   :  { %v7336_v6 = vpack.c.bf16 %v201_v5, %v200_v3  ;;  %v203_v8 = vld [vmem:[#allocation13 + $0x28] sm:$0xff]  ;;  %v9548_v10 = vld [vmem:[#allocation12] sm:$0xff]  ;;  %v204_v11 = vld [vmem:[#allocation13 + $0x30] sm:$0xff] }
  0xab   :  { %7333 = vmatprep.subr.bf16.mxu0 %v7332_v4  ;;  %v7340_v9 = vpack.c.bf16 %v203_v8, %v202_v7  ;;  %v205_v12 = vld [vmem:[#allocation13 + $0x38] sm:$0xff]  ;;  %6672 = vmatprep.mubr.f32.mxu0 %v9548_v10  ;;  %v206_v14 = vld [vmem:[#allocation13 + $0x40] sm:$0xff]  ;;  %v207_v15 = vld [vmem:[#allocation13 + $0x48] sm:$0xff] }
  0xac   :  { %7335 = vmatpush3.bf16.msra.mxu0 %v7332_v4  ;;  %v7344_v13 = vpack.c.bf16 %v205_v12, %v204_v11  ;;  %v7348_v16 = vpack.c.bf16 %v207_v15, %v206_v14  ;;  %v208_v17 = vld [vmem:[#allocation13 + $0x50] sm:$0xff]  ;;  %v209_v18 = vld [vmem:[#allocation13 + $0x58] sm:$0xff]  ;;  %v210_v20 = vld [vmem:[#allocation13 + $0x60] sm:$0xff] }
  0xad   :  { %7337 = vmatprep.subr.bf16.mxu0 %v7336_v6  ;;  %v7352_v19 = vpack.c.bf16 %v209_v18, %v208_v17  ;;  %v211_v21 = vld [vmem:[#allocation13 + $0x68] sm:$0xff]  ;;  %v426_v23 = vld [vmem:[#allocation16 + $0x30] sm:$0xff]  ;;  %v420_v24 = vld [vmem:[#allocation16] sm:$0xff] }
  0xae   :  { %v421_v22 = vld [vmem:[#allocation16 + $0x8] sm:$0xff]  ;;  %v7356_v26 = vpack.c.bf16 %v211_v21, %v210_v20  ;;  %v431_v28 = vld [vmem:[#allocation16 + $0x58] sm:$0xff]  ;;  %v212_v29 = vld [vmem:[#allocation13 + $0x70] sm:$0xff] }
  0xaf   :  { %v425_v25 = vld [vmem:[#allocation16 + $0x28] sm:$0xff]  ;;  %v7364_v27 = vpack.c.bf16 %v426_v23, %v421_v22  ;;  %v213_v30 = vld [vmem:[#allocation13 + $0x78] sm:$0xff]  ;;  %v436_v32 = vld [vmem:[#allocation16 + $0x80] sm:$0xff] }
  0xb0   :  { %7339 = vmatpush3.bf16.msra.mxu0 %v7336_v6  ;;  %v7366_v31 = vpack.c.bf16 %v425_v25, %v420_v24  ;;  %v430_v33 = vld [vmem:[#allocation16 + $0x50] sm:$0xff]  ;;  %v435_v34 = vld [vmem:[#allocation16 + $0x78] sm:$0xff]  ;;  %v7368_v35 = vpack.c.bf16 %v436_v32, %v431_v28  ;;  %v441_v37 = vld [vmem:[#allocation16 + $0xa8] sm:$0xff]  ;;  %v7360_v38 = vpack.c.bf16 %v213_v30, %v212_v29 }
  0xb1   :  { %7341 = vmatprep.subr.bf16.mxu0 %v7340_v9  ;;  %7365 = vmatprep.subr.bf16.mxu1 %v7364_v27  ;;  %v7370_v36 = vpack.c.bf16 %v435_v34, %v430_v33  ;;  %v423_v39 = vld [vmem:[#allocation16 + $0x18] sm:$0xff]  ;;  %v446_v40 = vld [vmem:[#allocation16 + $0xd0] sm:$0xff]  ;;  %v428_v41 = vld [vmem:[#allocation16 + $0x40] sm:$0xff] }
  0xb2   :  { %7367 = vmatpush1.bf16.msra.mxu1 %v7366_v31  ;;  %v7372_v42 = vpack.c.bf16 %v446_v40, %v441_v37  ;;  %v440_v43 = vld [vmem:[#allocation16 + $0xa0] sm:$0xff]  ;;  %v445_v44 = vld [vmem:[#allocation16 + $0xc8] sm:$0xff]  ;;  %v451_v45 = vld [vmem:[#allocation16 + $0xf8] sm:$0xff]  ;;  %v7396_v48 = vpack.c.bf16 %v428_v41, %v423_v39 }
  0xb3   :  { %7369 = vmatprep.subr.bf16.mxu1 %v7368_v35  ;;  %v7374_v46 = vpack.c.bf16 %v445_v44, %v440_v43  ;;  %v456_v47 = vld [vmem:[#allocation16 + $0x120] sm:$0xff]  ;;  %v422_v49 = vld [vmem:[#allocation16 + $0x10] sm:$0xff]  ;;  %v427_v50 = vld [vmem:[#allocation16 + $0x38] sm:$0xff] }
  0xb4   :  { %7343 = vmatpush3.bf16.msra.mxu0 %v7340_v9  ;;  %v433_v51 = vld [vmem:[#allocation16 + $0x68] sm:$0xff]  ;;  %v7376_v52 = vpack.c.bf16 %v456_v47, %v451_v45  ;;  %v438_v53 = vld [vmem:[#allocation16 + $0x90] sm:$0xff]  ;;  %v455_v55 = vld [vmem:[#allocation16 + $0x118] sm:$0xff]  ;;  %v7398_v59 = vpack.c.bf16 %v427_v50, %v422_v49 }
  0xb5   :  { %7345 = vmatprep.subr.bf16.mxu0 %v7344_v13  ;;  %v450_v54 = vld [vmem:[#allocation16 + $0xf0] sm:$0xff]  ;;  %v461_v56 = vld [vmem:[#allocation16 + $0x148] sm:$0xff]  ;;  %v432_v60 = vld [vmem:[#allocation16 + $0x60] sm:$0xff]  ;;  %v7400_v61 = vpack.c.bf16 %v438_v53, %v433_v51 }
  0xb6   :  { %7371 = vmatpush1.bf16.msra.mxu1 %v7370_v36  ;;  %v466_v57 = vld [vmem:[#allocation16 + $0x170] sm:$0xff]  ;;  %v9551_v58 = vld [vmem:[#allocation12 + $0x8] sm:$0xff]  ;;  %v443_v63 = vld [vmem:[#allocation16 + $0xb8] sm:$0xff]  ;;  %v7378_v2 = vpack.c.bf16 %v455_v55, %v450_v54 }
  0xb7   :  { %7373 = vmatprep.subr.bf16.mxu1 %v7372_v42  ;;  %v437_v62 = vld [vmem:[#allocation16 + $0x88] sm:$0xff]  ;;  %v9553_v1 = vld [vmem:[#allocation12 + $0x10] sm:$0xff]  ;;  %v448_v3 = vld [vmem:[#allocation16 + $0xe0] sm:$0xff]  ;;  %v7380_v4 = vpack.c.bf16 %v466_v57, %v461_v56 }
  0xb8   :  { %7347 = vmatpush3.bf16.msra.mxu0 %v7344_v13  ;;  %v460_v5 = vld [vmem:[#allocation16 + $0x140] sm:$0xff]  ;;  %v465_v6 = vld [vmem:[#allocation16 + $0x168] sm:$0xff]  ;;  %v471_v7 = vld [vmem:[#allocation16 + $0x198] sm:$0xff]  ;;  %v7402_v9 = vpack.c.bf16 %v437_v62, %v432_v60  ;;  %v7404_v13 = vpack.c.bf16 %v448_v3, %v443_v63 }
  0xb9   :  { %7349 = vmatprep.subr.bf16.mxu0 %v7348_v16  ;;  %v476_v8 = vld [vmem:[#allocation16 + $0x1c0] sm:$0xff]  ;;  %v442_v11 = vld [vmem:[#allocation16 + $0xb0] sm:$0xff]  ;;  %v9557_v12 = vld [vmem:[#allocation12 + $0x18] sm:$0xff]  ;;  %v7382_v17 = vpack.c.bf16 %v465_v6, %v460_v5 }
  0xba   :  { %7375 = vmatpush1.bf16.msra.mxu1 %v7374_v46  ;;  %v447_v14 = vld [vmem:[#allocation16 + $0xd8] sm:$0xff]  ;;  %v453_v15 = vld [vmem:[#allocation16 + $0x108] sm:$0xff]  ;;  %v458_v18 = vld [vmem:[#allocation16 + $0x130] sm:$0xff] }
  0xbb   :  { %7377 = vmatprep.subr.bf16.mxu1 %v7376_v52  ;;  %v470_v20 = vld [vmem:[#allocation16 + $0x190] sm:$0xff]  ;;  %v475_v21 = vld [vmem:[#allocation16 + $0x1b8] sm:$0xff]  ;;  %v481_v22 = vld [vmem:[#allocation16 + $0x1e8] sm:$0xff]  ;;  %v7406_v24 = vpack.c.bf16 %v447_v14, %v442_v11  ;;  %v7408_v27 = vpack.c.bf16 %v458_v18, %v453_v15 }
  0xbc   :  { %7351 = vmatpush3.bf16.msra.mxu0 %v7348_v16  ;;  %v9559_v16 = vld [vmem:[#allocation12 + $0x20] sm:$0xff]  ;;  %v486_v23 = vld [vmem:[#allocation16 + $0x210] sm:$0xff]  ;;  %v457_v28 = vld [vmem:[#allocation16 + $0x128] sm:$0xff]  ;;  %v7386_v31 = vpack.c.bf16 %v475_v21, %v470_v20 }
  0xbd   :  { %7353 = vmatprep.subr.bf16.mxu0 %v7352_v19  ;;  %v452_v25 = vld [vmem:[#allocation16 + $0x100] sm:$0xff]  ;;  %v463_v29 = vld [vmem:[#allocation16 + $0x158] sm:$0xff]  ;;  %v9565_v30 = vld [vmem:[#allocation12 + $0x30] sm:$0xff]  ;;  %v7388_v33 = vpack.c.bf16 %v486_v23, %v481_v22 }
  0xbe   :  { %7379 = vmatpush1.bf16.msra.mxu1 %v7378_v2  ;;  %v468_v32 = vld [vmem:[#allocation16 + $0x180] sm:$0xff]  ;;  %v485_v35 = vld [vmem:[#allocation16 + $0x208] sm:$0xff]  ;;  %v491_v36 = vld [vmem:[#allocation16 + $0x238] sm:$0xff] }
  0xbf   :  { %7381 = vmatprep.subr.bf16.mxu1 %v7380_v4  ;;  %v480_v34 = vld [vmem:[#allocation16 + $0x1e0] sm:$0xff]  ;;  %v9569_v39 = vld [vmem:[#allocation12 + $0x38] sm:$0xff]  ;;  %v7412_v40 = vpack.c.bf16 %v468_v32, %v463_v29  ;;  %v462_v41 = vld [vmem:[#allocation16 + $0x150] sm:$0xff] }
  0xc0   :  { %7355 = vmatpush3.bf16.msra.mxu0 %v7352_v19  ;;  %v7384_v19 = vpack.c.bf16 %v476_v8, %v471_v7  ;;  %v496_v37 = vld [vmem:[#allocation16 + $0x260] sm:$0xff]  ;;  %v467_v42 = vld [vmem:[#allocation16 + $0x178] sm:$0xff]  ;;  %v473_v43 = vld [vmem:[#allocation16 + $0x1a8] sm:$0xff]  ;;  %v7390_v44 = vpack.c.bf16 %v485_v35, %v480_v34 }
  0xc1   :  { %7357 = vmatprep.subr.bf16.mxu0 %v7356_v26  ;;  %v478_v45 = vld [vmem:[#allocation16 + $0x1d0] sm:$0xff]  ;;  %v7392_v46 = vpack.c.bf16 %v496_v37, %v491_v36  ;;  %v424_v49 = vld [vmem:[#allocation16 + $0x20] sm:$0xff]  ;;  %v429_v50 = vld [vmem:[#allocation16 + $0x48] sm:$0xff]  ;;  %v7414_v51 = vpack.c.bf16 %v467_v42, %v462_v41 }
  0xc2   :  { %7383 = vmatpush1.bf16.msra.mxu1 %v7382_v17  ;;  %v490_v47 = vld [vmem:[#allocation16 + $0x230] sm:$0xff]  ;;  %v7416_v52 = vpack.c.bf16 %v478_v45, %v473_v43  ;;  %v472_v53 = vld [vmem:[#allocation16 + $0x1a0] sm:$0xff]  ;;  %v477_v54 = vld [vmem:[#allocation16 + $0x1c8] sm:$0xff] }
  0xc3   :  { %7385 = vmatprep.subr.bf16.mxu1 %v7384_v19  ;;  %v483_v56 = vld [vmem:[#allocation16 + $0x1f8] sm:$0xff]  ;;  %v488_v57 = vld [vmem:[#allocation16 + $0x220] sm:$0xff]  ;;  %v434_v60 = vld [vmem:[#allocation16 + $0x70] sm:$0xff]  ;;  %v7418_v62 = vpack.c.bf16 %v477_v54, %v472_v53 }
  0xc4   :  { %7359 = vmatpush3.bf16.msra.mxu0 %v7356_v26  ;;  %v9563_v26 = vld [vmem:[#allocation12 + $0x28] sm:$0xff]  ;;  %v7420_v63 = vpack.c.bf16 %v488_v57, %v483_v56  ;;  %v482_v2 = vld [vmem:[#allocation16 + $0x1f0] sm:$0xff]  ;;  %v487_v3 = vld [vmem:[#allocation16 + $0x218] sm:$0xff] }
  0xc5   :  { %7361 = vmatprep.subr.bf16.mxu0 %v7360_v38  ;;  %v493_v4 = vld [vmem:[#allocation16 + $0x248] sm:$0xff]  ;;  %v498_v5 = vld [vmem:[#allocation16 + $0x270] sm:$0xff]  ;;  %v9573_v7 = vld [vmem:[#allocation10] sm:$0xff]  ;;  %v7422_v11 = vpack.c.bf16 %v487_v3, %v482_v2 }
  0xc6   :  { %7387 = vmatpush1.bf16.msra.mxu1 %v7386_v31  ;;  %v444_v8 = vld [vmem:[#allocation16 + $0xc0] sm:$0xff]  ;;  %v497_v15 = vld [vmem:[#allocation16 + $0x268] sm:$0xff]  ;;  %v454_v22 = vld [vmem:[#allocation16 + $0x110] sm:$0xff] }
  0xc7   :  { %7389 = vmatprep.subr.bf16.mxu1 %v7388_v33  ;;  %v492_v14 = vld [vmem:[#allocation16 + $0x240] sm:$0xff]  ;;  %v832_v19 = vld [vmem:[#allocation15 + $0x8] sm:$0xff]  ;;  %v459_v23 = vld [vmem:[#allocation16 + $0x138] sm:$0xff] }
  0xc8   :  { %7363 = vmatpush3.bf16.msra.mxu0 %v7360_v38  ;;  %v7410_v38 = vpack.c.bf16 %v457_v28, %v452_v25  ;;  %v9579_v17 = vld [vmem:[%s11441_s5] ss:$0 sm:$0xff]  ;;  %v9582_v21 = vld [vmem:[#allocation10 + $0x8] sm:$0xff]  ;;  %v833_v28 = vld [vmem:[#allocation15 + $0x10] sm:$0xff]  ;;  %v7440_v31 = vpack.c.bf16 %v459_v23, %v454_v22 }
  0xc9   :  { %7397 = vmatprep.subr.bf16.mxu0 %v7396_v48  ;;  %v495_v48 = vld [vmem:[#allocation16 + $0x258] sm:$0xff]  ;;  %v831_v18 = vld [vmem:[#allocation15] sm:$0xff]  ;;  %v9593_v33 = vld [vmem:[#allocation10 + $0x10] sm:$0xff]  ;;  %v367_v41 = vmul.f32 %v9579_v17, %v9553_v1  ;;  %v371_v2 = vmul.f32 %v9579_v17, %v9565_v30 }
  0xca   :  { %7391 = vmatpush1.bf16.msra.mxu1 %v7390_v44  ;;  %v7394_v55 = vpack.c.bf16 %v495_v48, %v490_v47  ;;  %v7460_v25 = vpack.c.bf16 %v832_v19, %v831_v18  ;;  %v834_v29 = vld [vmem:[#allocation15 + $0x18] sm:$0xff]  ;;  %v9591_v32 = vld [vmem:[%s11442_s6] ss:$0 sm:$0xff]  ;;  %v469_v35 = vld [vmem:[#allocation16 + $0x188] sm:$0xff] }
  0xcb   :  { %6673 = vmatmul.mubr.f32.vlgmr.msra.gmra.mrb[0].mxu0 %v9551_v58  ;;  %7393 = vmatprep.subr.bf16.mxu1 %v7392_v46  ;;  %v464_v34 = vld [vmem:[#allocation16 + $0x160] sm:$0xff]  ;;  %v7464_v36 = vpack.c.bf16 %v834_v29, %v833_v28  ;;  %v474_v43 = vld [vmem:[#allocation16 + $0x1b0] sm:$0xff]  ;;  %v479_v44 = vld [vmem:[#allocation16 + $0x1d8] sm:$0xff] }
  0xcc   :  { %7399 = vmatpush1.bf16.msra.mxu0 %v7398_v59  ;;  %6675 = vmatprep.mubr.f32.mxu0 %v9553_v1  ;;  %v7428_v59 = vpack.c.bf16 %v429_v50, %v424_v49  ;;  %v7444_v42 = vpack.c.bf16 %v469_v35, %v464_v34  ;;  %v368_v1 = vmul.f32 %v9579_v17, %v9557_v12  ;;  %v837_v48 = vld [vmem:[#allocation15 + $0x30] sm:$0xff]  ;;  %v838_v49 = vld [vmem:[#allocation15 + $0x38] sm:$0xff]  ;;  %v9616_v53 = vld [vmem:[#allocation10 + $0x20] sm:$0xff] }
  0xcd   :  { %7401 = vmatprep.subr.bf16.mxu0 %v7400_v61  ;;  %v439_v61 = vld [vmem:[#allocation16 + $0x98] sm:$0xff]  ;;  %v382_v50 = vadd.f32 %v9591_v32, %v367_v41  ;;  %v489_v54 = vld [vmem:[#allocation16 + $0x228] sm:$0xff]  ;;  %v7472_v56 = vpack.c.bf16 %v838_v49, %v837_v48  ;;  %v9638_v23 = vld [vmem:[#allocation10 + $0x30] sm:$0xff] }
  0xce   :  { %7395 = vmatpush1.bf16.msra.mxu1 %v7394_v55  ;;  %v7432_v6 = vpack.c.bf16 %v439_v61, %v434_v60  ;;  %v839_v60 = vld [vmem:[#allocation15 + $0x40] sm:$0xff]  ;;  %v840_v61 = vld [vmem:[#allocation15 + $0x48] sm:$0xff]  ;;  %v9645_v41 = vld [vmem:[#allocation10 + $0x38] sm:$0xff] }
  0xcf   :  { %6676 = vmatmul.mubr.f32.gmra.mrb[2].mxu0 %v9557_v12  ;;  %7429 = vmatprep.subr.bf16.mxu1 %v7428_v59  ;;  %v484_v12 = vld [vmem:[#allocation16 + $0x200] sm:$0xff]  ;;  %v844_v34 = vld [vmem:[#allocation15 + $0x68] sm:$0xff] }
  0xd0   :  { %7403 = vmatpush1.bf16.msra.mxu0 %v7402_v9  ;;  %6678 = vmatprep.mubr.f32.mxu0 %v9559_v16  ;;  %v449_v9 = vld [vmem:[#allocation16 + $0xe8] sm:$0xff]  ;;  %v7452_v3 = vpack.c.bf16 %v489_v54, %v484_v12  ;;  %v1104_v12 = vld [vmem:[#allocation18 + $0x78] sm:$0xff] }
  0xd1   :  { %7405 = vmatprep.subr.bf16.mxu0 %v7404_v13  ;;  %565 = vmatmul.mubr.f32.vlgmr.msra.gmra.mrb[0].mxu1 %v9573_v7  ;;  %v7424_v13 = vpack.c.bf16 %v498_v5, %v493_v4  ;;  %v7436_v20 = vpack.c.bf16 %v449_v9, %v444_v8  ;;  %v9628_v4 = vld [vmem:[#allocation10 + $0x28] sm:$0xff]  ;;  %v499_v5 = vld [vmem:[#allocation16 + $0x278] sm:$0xff]  ;;  %v7476_v8 = vpack.c.bf16 %v840_v61, %v839_v60 }
  0xd2   :  { %7431 = vmatpush3.bf16.msra.mxu1 %v7428_v59  ;;  %570 = vmatprep.mubr.f32.mxu1 %v11456_v0  ;;  %v383_v59 = vadd.f32 %v9591_v32, %v368_v1  ;;  %v846_v1 = vld [vmem:[#allocation15 + $0x78] sm:$0xff]  ;;  %v1110_v54 = vld [vmem:[#allocation18 + $0xa8] sm:$0xff] }
  0xd3   :  { %6679 = vmatmul.mubr.f32.gmra.mrb[4].mxu0 %v9563_v26  ;;  %7433 = vmatprep.subr.bf16.mxu1 %v7432_v6 }
  0xd4   :  { %7407 = vmatpush1.bf16.msra.mxu0 %v7406_v24  ;;  %6681 = vmatprep.mubr.f32.mxu0 %v9565_v30  ;;  %v7426_v24 = vpack.c.bf16 %v497_v15, %v492_v14  ;;  %v841_v14 = vld [vmem:[#allocation15 + $0x50] sm:$0xff]  ;;  %v842_v15 = vld [vmem:[#allocation15 + $0x58] sm:$0xff] }
  0xd5   :  { %7409 = vmatprep.subr.bf16.mxu0 %v7408_v27  ;;  %571 = vmatmul.mubr.f32.gmra.mrb[2].mxu1 %v9582_v21  ;;  %v365_v27 = vmul.f32 %v9579_v17, %v9548_v10  ;;  %v366_v10 = vmul.f32 %v9579_v17, %v9551_v58  ;;  %v9604_v58 = vld [vmem:[#allocation10 + $0x18] sm:$0xff] }
  0xd6   :  { %7435 = vmatpush3.bf16.msra.mxu1 %v7432_v6  ;;  %576 = vmatprep.mubr.f32.mxu1 %v11456_v0 }
  0xd7   :  { %6682 = vmatmul.mubr.f32.gmra.mrb[6].mxu0 %v9569_v39  ;;  %7437 = vmatprep.subr.bf16.mxu1 %v7436_v20  ;;  %v380_v37 = vadd.f32 %v9591_v32, %v365_v27  ;;  %v381_v45 = vadd.f32 %v9591_v32, %v366_v10 }
  0xd8   :  { %7411 = vmatpush1.bf16.msra.mxu0 %v7410_v38  ;;  %677 = vmatprep.mubr.f32.mxu0 %v11456_v0  ;;  %v835_v38 = vld [vmem:[#allocation15 + $0x20] sm:$0xff] }
  0xd9   :  { %7413 = vmatprep.subr.bf16.mxu0 %v7412_v40  ;;  %577 = vmatmul.mubr.f32.gmra.mrb[4].mxu1 %v9593_v33  ;;  %v836_v40 = vld [vmem:[#allocation15 + $0x28] sm:$0xff]  ;;  %v388_v47 = vmax.f32 %v380_v37, 0.0  ;;  %v389_v55 = vmax.f32 %v381_v45, 0.0 }
  0xda   :  { %7439 = vmatpush3.bf16.msra.mxu1 %v7436_v20  ;;  %582 = vmatprep.mubr.f32.mxu1 %v11456_v0  ;;  %v7468_v46 = vpack.c.bf16 %v836_v40, %v835_v38  ;;  %v386_v20 = vadd.f32 %v9591_v32, %v371_v2  ;;  %v1089_v38 = vld [vmem:[#allocation18] sm:$0xff]  ;;  %v1094_v40 = vld [vmem:[#allocation18 + $0x28] sm:$0xff] }
  0xdb   :  { %7441 = vmatprep.subr.bf16.mxu1 %v7440_v31  ;;  %v396_v57 = vsub.f32 0.0, %v388_v47  ;;  %v397_v6 = vsub.f32 0.0, %v389_v55  ;;  %v845_v47 = vld [vmem:[#allocation15 + $0x70] sm:$0xff]  ;;  %v7494_v48 = vpack.c.bf16 %v1094_v40, %v1089_v38  ;;  %v1114_v2 = vld [vmem:[#allocation18 + $0xc8] sm:$0xff]  ;;  %v1121_v38 = vld [vmem:[#allocation18 + $0x100] sm:$0xff] }
  0xdc   :  { %7415 = vmatpush1.bf16.msra.mxu0 %v7414_v51  ;;  %v369_v51 = vmul.f32 %v9579_v17, %v9559_v16  ;;  %v370_v16 = vmul.f32 %v9579_v17, %v9563_v26  ;;  %v494_v26 = vld [vmem:[#allocation16 + $0x250] sm:$0xff] }
  0xdd   :  { %7417 = vmatprep.subr.bf16.mxu0 %v7416_v52  ;;  %583 = vmatmul.mubr.f32.gmra.mrb[6].mxu1 %v9604_v58  ;;  %v7448_v52 = vpack.c.bf16 %v479_v44, %v474_v43  ;;  %v404_v9 = vmul.f32 1.442695, %v396_v57  ;;  %v7456_v22 = vpack.c.bf16 %v499_v5, %v494_v26  ;;  %v1115_v55 = vld [vmem:[#allocation18 + $0xd0] sm:$0xff]  ;;  %v1096_v5 = vld [vmem:[#allocation18 + $0x38] sm:$0xff] }
  0xde   :  { %7443 = vmatpush3.bf16.msra.mxu1 %v7440_v31  ;;  %588 = vmatprep.mubr.f32.mxu1 %v11456_v0  ;;  %v385_v30 = vadd.f32 %v9591_v32, %v370_v16  ;;  %v843_v31 = vld [vmem:[#allocation15 + $0x60] sm:$0xff]  ;;  %v1091_v26 = vld [vmem:[#allocation18 + $0x10] sm:$0xff] }
  0xdf   :  { %7445 = vmatprep.subr.bf16.mxu1 %v7444_v42  ;;  %8919 = vpow2.f32 %v404_v9  ;;  %v7484_v43 = vpack.c.bf16 %v844_v34, %v843_v31  ;;  %v1097_v16 = vld [vmem:[#allocation18 + $0x40] sm:$0xff]  ;;  %v1119_v34 = vld [vmem:[#allocation18 + $0xf0] sm:$0xff] }
  0xe0   :  { %7419 = vmatpush1.bf16.msra.mxu0 %v7418_v62  ;;  %v390_v62 = vmax.f32 %v382_v50, 0.0  ;;  %v393_v28 = vmax.f32 %v385_v30, 0.0  ;;  %v7526_v30 = vpack.c.bf16 %v1096_v5, %v1091_v26  ;;  %v1149_v26 = vld [vmem:[#allocation18 + $0x1e0] sm:$0xff]  ;;  %v1154_v5 = vld [vmem:[#allocation18 + $0x208] sm:$0xff] }
  0xe1   :  { %7421 = vmatprep.subr.bf16.mxu0 %v7420_v63  ;;  %589 = vmatmul.mubr.f32.gmra.mrb[8].mxu1 %v9616_v53  ;;  %v384_v63 = vadd.f32 %v9591_v32, %v369_v51 }
  0xe2   :  { %7447 = vmatpush3.bf16.msra.mxu1 %v7444_v42  ;;  %594 = vmatprep.mubr.f32.mxu1 %v11456_v0  ;;  %v398_v18 = vsub.f32 0.0, %v390_v62  ;;  %v1105_v42 = vld [vmem:[#allocation18 + $0x80] sm:$0xff]  ;;  %v401_v45 = vsub.f32 0.0, %v393_v28  ;;  %v7500_v62 = vpack.c.bf16 %v1115_v55, %v1110_v54  ;;  %v1120_v28 = vld [vmem:[#allocation18 + $0xf8] sm:$0xff] }
  0xe3   :  { %7449 = vmatprep.subr.bf16.mxu1 %v7448_v52  ;;  %v392_v19 = vmax.f32 %v384_v63, 0.0  ;;  %v1109_v63 = vld [vmem:[#allocation18 + $0xa0] sm:$0xff] }
  0xe4   :  { %7423 = vmatpush1.bf16.msra.mxu0 %v7422_v11  ;;  %v391_v11 = vmax.f32 %v383_v59, 0.0  ;;  %v408_v35 = vmul.f32 1.442695, %v398_v18  ;;  %v1092_v59 = vld [vmem:[#allocation18 + $0x18] sm:$0xff]  ;;  %v7502_v9 = vpack.c.bf16 %v1114_v2, %v1109_v63  ;;  %v1145_v54 = vld [vmem:[#allocation18 + $0x1c0] sm:$0xff]  ;;  %v1150_v2 = vld [vmem:[#allocation18 + $0x1e8] sm:$0xff] }
  0xe5   :  { %7425 = vmatprep.subr.bf16.mxu0 %v7424_v13  ;;  %595 = vmatmul.mubr.f32.gmra.mrb[10].mxu1 %v9628_v4  ;;  %v372_v13 = vmul.f32 %v9579_v17, %v9569_v39  ;;  %v1095_v39 = vld [vmem:[#allocation18 + $0x30] sm:$0xff]  ;;  %v406_v17 = vmul.f32 1.442695, %v397_v6  ;;  %v400_v10 = vsub.f32 0.0, %v392_v19  ;;  %v1102_v6 = vld [vmem:[#allocation18 + $0x68] sm:$0xff]  ;;  %v1112_v18 = vld [vmem:[#allocation18 + $0xb8] sm:$0xff] }
  0xe6   :  { %7451 = vmatpush3.bf16.msra.mxu1 %v7448_v52  ;;  %600 = vmatprep.mubr.f32.mxu1 %v11456_v0  ;;  %v399_v27 = vsub.f32 0.0, %v391_v11  ;;  %v1099_v52 = vld [vmem:[#allocation18 + $0x50] sm:$0xff]  ;;  %v1117_v19 = vld [vmem:[#allocation18 + $0xe0] sm:$0xff] }
  0xe7   :  { %7453 = vmatprep.subr.bf16.mxu1 %v7452_v3  ;;  %v387_v29 = vadd.f32 %v9591_v32, %v372_v13  ;;  %v1100_v32 = vld [vmem:[#allocation18 + $0x58] sm:$0xff]  ;;  %8921 = vpow2.f32 %v406_v17  ;;  %v412_v49 = vmul.f32 1.442695, %v400_v10  ;;  %v7498_v60 = vpack.c.bf16 %v1104_v12, %v1099_v52  ;;  %v1111_v17 = vld [vmem:[#allocation18 + $0xb0] sm:$0xff] }
  0xe8   :  { %7427 = vmatpush1.bf16.msra.mxu0 %v7426_v24  ;;  %v1090_v24 = vld [vmem:[#allocation18 + $0x8] sm:$0xff]  ;;  %v410_v44 = vmul.f32 1.442695, %v399_v27  ;;  %8923 = vpow2.f32 %v408_v35  ;;  %v7496_v51 = vpack.c.bf16 %v1105_v42, %v1100_v32  ;;  %v1124_v35 = vld [vmem:[#allocation18 + $0x118] sm:$0xff] }
  0xe9   :  { %7461 = vmatprep.subr.bf16.mxu0 %v7460_v25  ;;  %601 = vmatmul.mubr.f32.gmra.mrb[12].mxu1 %v9638_v23  ;;  %v7492_v37 = vpack.c.bf16 %v1095_v39, %v1090_v24  ;;  %v7532_v24 = vpack.c.bf16 %v1117_v19, %v1112_v18  ;;  %v7506_v10 = vpack.c.bf16 %v1124_v35, %v1119_v34  ;;  %v1130_v42 = vld [vmem:[#allocation18 + $0x148] sm:$0xff]  ;;  %v1140_v12 = vld [vmem:[#allocation18 + $0x198] sm:$0xff]  ;;  %v1159_v18 = vld [vmem:[#allocation18 + $0x230] sm:$0xff] }
  0xea   :  { %7455 = vmatpush3.bf16.msra.mxu1 %v7452_v3  ;;  %606 = vmatprep.mubr.f32.mxu1 %v11456_v0  ;;  %8925 = vpow2.f32 %v410_v44  ;;  %v8920_v3 = vpop.eup %8919  ;;  %v7512_v55 = vpack.c.bf16 %v1145_v54, %v1140_v12  ;;  %v1164_v19 = vld [vmem:[#allocation18 + $0x258] sm:$0xff] }
  0xeb   :  { %678 = vmatmul.mubr.f32.vlgmr.msra.gmra.mrb[8].mxu0 %v9573_v7  ;;  %7457 = vmatprep.subr.bf16.mxu1 %v7456_v22  ;;  %8927 = vpow2.f32 %v412_v49  ;;  %v1131_v49 = vld [vmem:[#allocation18 + $0x150] sm:$0xff] }
  0xec   :  { %7463 = vmatpush3.bf16.msra.mxu0 %v7460_v25  ;;  %683 = vmatprep.mubr.f32.mxu0 %v11456_v0  ;;  %v7480_v25 = vpack.c.bf16 %v842_v15, %v841_v14  ;;  %v1106_v15 = vld [vmem:[#allocation18 + $0x88] sm:$0xff] }
  0xed   :  { %7465 = vmatprep.subr.bf16.mxu0 %v7464_v36  ;;  %607 = vmatmul.mubr.f32.gmra.mrb[14].mxu1 %v9645_v41 }
  0xee   :  { %7459 = vmatpush3.bf16.msra.mxu1 %v7456_v22  ;;  %6716 = vmatprep.mubr.f32.mxu1 %v9573_v7  ;;  %v414_v7 = vmul.f32 1.442695, %v401_v45  ;;  %v1129_v45 = vld [vmem:[#allocation18 + $0x140] sm:$0xff] }
  0xef   :  { %684 = vmatmul.mubr.f32.gmra.mrb[10].mxu0 %v9582_v21  ;;  %7493 = vmatprep.subr.bf16.mxu1 %v7492_v37  ;;  %v1127_v37 = vld [vmem:[#allocation18 + $0x130] sm:$0xff] }
  0xf0   :  { %7467 = vmatpush3.bf16.msra.mxu0 %v7464_v36  ;;  %689 = vmatprep.mubr.f32.mxu0 %v11456_v0  ;;  %v394_v36 = vmax.f32 %v386_v20, 0.0  ;;  %8929 = vpow2.f32 %v414_v7  ;;  %v1144_v7 = vld [vmem:[#allocation18 + $0x1b8] sm:$0xff] }
  0xf1   :  { %7469 = vmatprep.subr.bf16.mxu0 %v7468_v46  ;;  %6717 = vmatmul.mubr.f32.vlgmr.msra.gmra.mrb[16].mxu1 %v9582_v21  ;;  %v7524_v21 = vpack.c.bf16 %v1097_v16, %v1092_v59  ;;  %v8922_v11 = vpop.eup %8921  ;;  %v1147_v16 = vld [vmem:[#allocation18 + $0x1d0] sm:$0xff] }
  0xf2   :  { %v402_v50 = vsub.f32 0.0, %v394_v36  ;;  %7495 = vmatpush1.bf16.msra.mxu1 %v7494_v48  ;;  %6719 = vmatprep.mubr.f32.mxu1 %v9593_v33  ;;  %v8924_v13 = vpop.eup %8923  ;;  %v1122_v36 = vld [vmem:[#allocation18 + $0x108] sm:$0xff]  ;;  %v1137_v48 = vld [vmem:[#allocation18 + $0x180] sm:$0xff] }
  0xf3   :  { %690 = vmatmul.mubr.f32.gmra.mrb[12].mxu0 %v9593_v33  ;;  %7497 = vmatprep.subr.bf16.mxu1 %v7496_v51  ;;  %v7536_v40 = vpack.c.bf16 %v1127_v37, %v1122_v36 }
  0xf4   :  { %7471 = vmatpush3.bf16.msra.mxu0 %v7468_v46  ;;  %695 = vmatprep.mubr.f32.mxu0 %v11456_v0  ;;  %v395_v46 = vmax.f32 %v387_v29, 0.0  ;;  %v416_v61 = vmul.f32 1.442695, %v402_v50  ;;  %v1125_v29 = vld [vmem:[#allocation18 + $0x120] sm:$0xff]  ;;  %v1136_v50 = vld [vmem:[#allocation18 + $0x178] sm:$0xff] }
  0xf5   :  { %7473 = vmatprep.subr.bf16.mxu0 %v7472_v56  ;;  %6720 = vmatmul.mubr.f32.gmra.mrb[18].mxu1 %v9604_v58  ;;  %v7504_v31 = vpack.c.bf16 %v1125_v29, %v1120_v28  ;;  %v7542_v52 = vpack.c.bf16 %v1136_v50, %v1131_v49  ;;  %v1098_v49 = vld [vmem:[#allocation18 + $0x48] sm:$0xff] }
  0xf6   :  { %v403_v57 = vsub.f32 0.0, %v395_v46  ;;  %7499 = vmatpush1.bf16.msra.mxu1 %v7498_v60  ;;  %6722 = vmatprep.mubr.f32.mxu1 %v9616_v53  ;;  %8931 = vpow2.f32 %v416_v61  ;;  %v1134_v46 = vld [vmem:[#allocation18 + $0x168] sm:$0xff]  ;;  %v1141_v60 = vld [vmem:[#allocation18 + $0x1a0] sm:$0xff] }
  0xf7   :  { %696 = vmatmul.mubr.f32.gmra.mrb[14].mxu0 %v9604_v58  ;;  %7501 = vmatprep.subr.bf16.mxu1 %v7500_v62  ;;  %v1101_v58 = vld [vmem:[#allocation18 + $0x60] sm:$0xff]  ;;  %v1146_v61 = vld [vmem:[#allocation18 + $0x1c8] sm:$0xff] }
  0xf8   :  { %7475 = vmatpush3.bf16.msra.mxu0 %v7472_v56  ;;  %701 = vmatprep.mubr.f32.mxu0 %v11456_v0  ;;  %v7488_v56 = vpack.c.bf16 %v846_v1, %v845_v47  ;;  %v418_v33 = vmul.f32 1.442695, %v403_v57  ;;  %v7530_v20 = vpack.c.bf16 %v1106_v15, %v1101_v58  ;;  %v1132_v47 = vld [vmem:[#allocation18 + $0x158] sm:$0xff]  ;;  %v7510_v1 = vpack.c.bf16 %v1134_v46, %v1129_v45  ;;  %v1142_v57 = vld [vmem:[#allocation18 + $0x1a8] sm:$0xff]  ;;  %v1165_v58 = vld [vmem:[#allocation18 + $0x260] sm:$0xff] }
  0xf9   :  { %7477 = vmatprep.subr.bf16.mxu0 %v7476_v8  ;;  %6723 = vmatmul.mubr.f32.gmra.mrb[20].mxu1 %v9628_v4  ;;  %v7540_v51 = vpack.c.bf16 %v1137_v48, %v1132_v47  ;;  %v7544_v62 = vpack.c.bf16 %v1147_v16, %v1142_v57  ;;  %v7546_v63 = vpack.c.bf16 %v1146_v61, %v1141_v60  ;;  %v985_v47 = vlaneseq  ;;  %v1093_v48 = vld [vmem:[#allocation18 + $0x20] sm:$0xff] }
  0xfa   :  { %8933 = vpow2.f32 %v418_v33  ;;  %7503 = vmatpush1.bf16.msra.mxu1 %v7502_v9  ;;  %6725 = vmatprep.mubr.f32.mxu1 %v9638_v23  ;;  %v1152_v33 = vld [vmem:[#allocation18 + $0x1f8] sm:$0xff]  ;;  %v1151_v9 = vld [vmem:[#allocation18 + $0x1f0] sm:$0xff]  ;;  %v7557_v54 = vpack.c.bf16 %v1098_v49, %v1093_v48  ;;  %v9694_v60 = vld [vmem:[%s11451_s15] sm:$0xf] }
  0xfb   :  { %702 = vmatmul.mubr.f32.gmra.mrb[16].mxu0 %v9616_v53  ;;  %v8926_v53 = vpop.eup %8925  ;;  %7505 = vmatprep.subr.bf16.mxu1 %v7504_v31  ;;  %v9682_v50 = vshrl.u32 %v985_v47, 7  ;;  %v1148_v47 = vld [vmem:[#allocation18 + $0x1d8] sm:$0xff] }
  0xfc   :  { %7479 = vmatpush3.bf16.msra.mxu0 %v7476_v8  ;;  %707 = vmatprep.mubr.f32.mxu0 %v11456_v0  ;;  %v1107_v8 = vld [vmem:[#allocation18 + $0x90] sm:$0xff]  ;;  %v8928_v22 = vpop.eup %8927 }
  0xfd   :  { %7481 = vmatprep.subr.bf16.mxu0 %v7480_v25  ;;  %v7528_v14 = vpack.c.bf16 %v1107_v8, %v1102_v6  ;;  %6726 = vmatmul.mubr.f32.gmra.mrb[22].mxu1 %v9645_v41  ;;  %v7518_v6 = vpack.c.bf16 %v1154_v5, %v1149_v26  ;;  %v1157_v8 = vld [vmem:[#allocation18 + $0x220] sm:$0xff] }
  0xfe   :  { %1233 = vmatprep.mubr.f32.mxu1 %v11456_v0  ;;  %7507 = vmatpush1.bf16.msra.mxu1 %v7506_v10 }
  0xff   :  { %708 = vmatmul.mubr.f32.gmra.mrb[18].mxu0 %v9628_v4  ;;  %v8930_v4 = vpop.eup %8929 }
 0x100   :  { %7483 = vmatpush3.bf16.msra.mxu0 %v7480_v25  ;;  %713 = vmatprep.mubr.f32.mxu0 %v11456_v0  ;;  %v8932_v39 = vpop.eup %8931  ;;  %v1116_v25 = vld [vmem:[#allocation18 + $0xd8] sm:$0xff] }
 0x101   :  { %7485 = vmatprep.subr.bf16.mxu0 %v7484_v43  ;;  %v7534_v27 = vpack.c.bf16 %v1116_v25, %v1111_v17  ;;  %v11458_v17 = vmov 0.0|0.0   ;;  %v6266_v25 = vld [vmem:[%s11440_s4] ss:$0 sm:$0xff] }
 0x103   :  { %714 = vmatmul.mubr.f32.gmra.mrb[20].mxu0 %v9638_v23 }
 0x104   :  { %7487 = vmatpush3.bf16.msra.mxu0 %v7484_v43  ;;  %719 = vmatprep.mubr.f32.mxu0 %v11456_v0  ;;  %v8934_v23 = vpop.eup %8933  ;;  %v1135_v43 = vld [vmem:[#allocation18 + $0x170] sm:$0xff] }
 0x105   :  { %7489 = vmatprep.subr.bf16.mxu0 %v7488_v56  ;;  %v7508_v44 = vpack.c.bf16 %v1135_v43, %v1130_v42 }
 0x107   :  { %720 = vmatmul.mubr.f32.gmra.mrb[22].mxu0 %v9645_v41  ;;  %v1126_v41 = vld [vmem:[#allocation18 + $0x128] sm:$0xff]  ;;  %7509 = vmatprep.subr.bf16.mxu1 %v7508_v44 }
 0x108   :  { %7491 = vmatpush3.bf16.msra.mxu0 %v7488_v56  ;;  %6760 = vmatprep.mubr.f32.mxu0 %v8920_v3  ;;  %v7538_v32 = vpack.c.bf16 %v1126_v41, %v1121_v38  ;;  %v1139_v56 = vld [vmem:[#allocation18 + $0x190] sm:$0xff] }
 0x109   :  { %7525 = vmatprep.subr.bf16.mxu0 %v7524_v21  ;;  %7511 = vmatpush1.bf16.msra.mxu1 %v7510_v1  ;;  %v7514_v59 = vpack.c.bf16 %v1144_v7, %v1139_v56  ;;  %v1155_v3 = vld [vmem:[#allocation18 + $0x210] sm:$0xff]  ;;  %v1108_v7 = vld [vmem:[#allocation18 + $0x98] sm:$0xff] }
 0x10a   :  { %7513 = vmatprep.subr.bf16.mxu1 %v7512_v55  ;;  %v7516_v21 = vpack.c.bf16 %v1155_v3, %v1150_v2  ;;  %v1103_v56 = vld [vmem:[#allocation18 + $0x70] sm:$0xff]  ;;  %v1113_v3 = vld [vmem:[#allocation18 + $0xc0] sm:$0xff] }
 0x10b   :  { %6761 = vmatmul.mubr.f32.vlgmr.msra.gmra.mrb[24].mxu0 %v8922_v11  ;;  %v1156_v11 = vld [vmem:[#allocation18 + $0x218] sm:$0xff]  ;;  %v7560_v2 = vpack.c.bf16 %v1108_v7, %v1103_v56 }
 0x10c   :  { %6763 = vmatprep.mubr.f32.mxu0 %v8924_v13  ;;  %7527 = vmatpush1.bf16.msra.mxu0 %v7526_v30  ;;  %v7548_v30 = vpack.c.bf16 %v1157_v8, %v1152_v33  ;;  %v7550_v13 = vpack.c.bf16 %v1156_v11, %v1151_v9  ;;  %v1389_v8 = vld [vmem:[#allocation19 + $0x20] sm:$0xff]  ;;  %v1390_v9 = vld [vmem:[#allocation19 + $0x28] sm:$0xff]  ;;  %v1396_v56 = vld [vmem:[#allocation19 + $0x58] sm:$0xff] }
 0x10d   :  { %7529 = vmatprep.subr.bf16.mxu0 %v7528_v14  ;;  %7515 = vmatpush1.bf16.msra.mxu1 %v7514_v59  ;;  %v1160_v14 = vld [vmem:[#allocation18 + $0x238] sm:$0xff]  ;;  %v987_v59 = vsub.s32 0, %v9682_v50 }
 0x10e   :  { %7517 = vmatprep.subr.bf16.mxu1 %v7516_v21  ;;  %v7520_v15 = vpack.c.bf16 %v1165_v58, %v1160_v14  ;;  %v1118_v21 = vld [vmem:[#allocation18 + $0xe8] sm:$0xff]  ;;  %v1128_v14 = vld [vmem:[#allocation18 + $0x138] sm:$0xff] }
 0x10f   :  { %6764 = vmatmul.mubr.f32.gmra.mrb[26].mxu0 %v8926_v53  ;;  %v1162_v53 = vld [vmem:[#allocation18 + $0x248] sm:$0xff]  ;;  %v9704_v26 = vrot.slane %v9694_v60, %v987_v59 }
 0x110   :  { %6766 = vmatprep.mubr.f32.mxu0 %v8928_v22  ;;  %7531 = vmatpush1.bf16.msra.mxu0 %v7530_v20  ;;  %v7522_v20 = vpack.c.bf16 %v1164_v19, %v1159_v18  ;;  %v1167_v22 = vld [vmem:[#allocation18 + $0x270] sm:$0xff] }
 0x111   :  { %7533 = vmatprep.subr.bf16.mxu0 %v7532_v24  ;;  %7519 = vmatpush1.bf16.msra.mxu1 %v7518_v6  ;;  %v1161_v24 = vld [vmem:[#allocation18 + $0x240] sm:$0xff]  ;;  %v1391_v19 = vld [vmem:[#allocation19 + $0x30] sm:$0xff] }
 0x112   :  { %7521 = vmatprep.subr.bf16.mxu1 %v7520_v15  ;;  %v9721_v15 = vpack.c.bf16 %v1390_v9, %v1389_v8 }
 0x113   :  { %6767 = vmatmul.mubr.f32.gmra.mrb[28].mxu0 %v8930_v4  ;;  %v1166_v4 = vld [vmem:[#allocation18 + $0x268] sm:$0xff] }
 0x114   :  { %6769 = vmatprep.mubr.f32.mxu0 %v8932_v39  ;;  %7535 = vmatpush1.bf16.msra.mxu0 %v7534_v27  ;;  %v7552_v39 = vpack.c.bf16 %v1167_v22, %v1162_v53  ;;  %v1392_v53 = vld [vmem:[#allocation19 + $0x38] sm:$0xff] }
 0x115   :  { %7537 = vmatprep.subr.bf16.mxu0 %v7536_v40  ;;  %7523 = vmatpush1.bf16.msra.mxu1 %v7522_v20  ;;  %v991_v20 = vsub.s32 1, %v9682_v50 }
 0x116   :  { %7556 = vmatprep.subr.bf16.mxu1 %v11458_v17 }
 0x117   :  { %6770 = vmatmul.mubr.f32.gmra.mrb[30].mxu0 %v8934_v23  ;;  %v7554_v23 = vpack.c.bf16 %v1166_v4, %v1161_v24 }
 0x118   :  { %1304 = vmatprep.mubr.f32.mxu0 %v11456_v0  ;;  %7539 = vmatpush1.bf16.msra.mxu0 %v7538_v32 }
 0x119   :  { %7541 = vmatprep.subr.bf16.mxu0 %v7540_v51  ;;  %v1385_v51 = vld [vmem:[#allocation19] sm:$0xff] }
 0x11c   :  { %7543 = vmatpush1.bf16.msra.mxu0 %v7542_v52  ;;  %v1386_v52 = vld [vmem:[#allocation19 + $0x8] sm:$0xff] }
 0x11d   :  { %7545 = vmatprep.subr.bf16.mxu0 %v7544_v62  ;;  %v9689_v16 = vpack.c.bf16 %v1386_v52, %v1385_v51  ;;  %v1387_v62 = vld [vmem:[#allocation19 + $0x10] sm:$0xff] }
 0x120   :  { %7547 = vmatpush1.bf16.msra.mxu0 %v7546_v63  ;;  %v1388_v63 = vld [vmem:[#allocation19 + $0x18] sm:$0xff] }
 0x121   :  { %7549 = vmatprep.subr.bf16.mxu0 %v7548_v30  ;;  %v9709_v33 = vpack.c.bf16 %v1388_v63, %v1387_v62  ;;  %v7563_v30 = vpack.c.bf16 %v1118_v21, %v1113_v3  ;;  %v1158_v3 = vld [vmem:[#allocation18 + $0x228] sm:$0xff] }
 0x124   :  { %7551 = vmatpush1.bf16.msra.mxu0 %v7550_v13  ;;  %v1123_v13 = vld [vmem:[#allocation18 + $0x110] sm:$0xff] }
 0x125   :  { %7553 = vmatprep.subr.bf16.mxu0 %v7552_v39  ;;  %v7566_v24 = vpack.c.bf16 %v1128_v14, %v1123_v13  ;;  %v995_v39 = vsub.s32 2, %v9682_v50 }
 0x128   :  { %7555 = vmatpush1.bf16.msra.mxu0 %v7554_v23  ;;  %v1133_v23 = vld [vmem:[#allocation18 + $0x160] sm:$0xff] }
 0x129   :  { %7580 = vmatprep.subr.bf16.mxu0 %v11458_v17 }
 0x19e   :  { %v6674_v27 = vpop.f32.mrb[0].mxu0 }
 0x19f   :  { %v9668_v28 = vadd.f32 %v6674_v27, %v6266_v25  ;;  %v287_v29 = vpop.f32.mrb[1].mxu0 }
 0x1a0   :  { %v288_v31 = vadd.f32 %v6266_v25, %v287_v29  ;;  %v9735_v29 = vpack.c.bf16 %v1392_v53, %v1391_v19  ;;  %v1163_v53 = vld [vmem:[#allocation18 + $0x250] sm:$0xff] }
 0x1a2   :  { %v326_v34 = vmax.f32 %v288_v31, 0.0  ;;  %v6677_v35 = vpop.f32.mrb[2].mxu0 }
 0x1a3   :  { %v9670_v10 = vadd.f32 %v6677_v35, %v6266_v25  ;;  %v297_v36 = vpop.f32.mrb[3].mxu0  ;;  %v1394_v35 = vld [vmem:[#allocation19 + $0x48] sm:$0xff] }
 0x1a4   :  { %v334_v37 = vsub.f32 0.0, %v326_v34  ;;  %v9672_v38 = vadd.f32 %v6266_v25, %v297_v36  ;;  %v9686_v57 = vpop.f32.mrb[0].mxu1  ;;  %v1393_v34 = vld [vmem:[#allocation19 + $0x40] sm:$0xff]  ;;  %v9741_v36 = vrot.slane %v9694_v60, %v991_v20  ;;  %v1168_v20 = vld [vmem:[#allocation18 + $0x278] sm:$0xff] }
 0x1a5   :  { %11587 = vst [vmem:[#allocation29_spill] sm:$0xff] %v9670_v10  ;;  %v9696_v61 = vpop.f32.mrb[1].mxu1  ;;  %v9754_v51 = vpack.c.bf16 %v1394_v35, %v1393_v34  ;;  %v999_v35 = vsub.s32 3, %v9682_v50  ;;  %v1501_v10 = vld [vmem:[#allocation21 + $0xb8] sm:$0xff] }
 0x1a6   :  { %11588 = vst [vmem:[#allocation30_spill] sm:$0xff] %v9672_v38  ;;  %v342_v40 = vmul.f32 1.442695, %v334_v37  ;;  %v6680_v41 = vpop.f32.mrb[4].mxu0 }
 0x1a7   :  { %v9674_v32 = vadd.f32 %v6680_v41, %v6266_v25  ;;  %v307_v42 = vpop.f32.mrb[5].mxu0  ;;  %v9744_v41 = vrot.slane %v9694_v60, %v995_v39 }
 0x1a8   :  { %8935 = vpow2.f32 %v342_v40  ;;  %v9676_v43 = vadd.f32 %v6266_v25, %v307_v42  ;;  %v9706_v5 = vpop.f32.mrb[2].mxu1 }
 0x1a9   :  { %11589 = vst [vmem:[#allocation31_spill] sm:$0xff] %v9674_v32  ;;  %v574_v6 = vpop.f32.mrb[3].mxu1 }
 0x1aa   :  { %11590 = vst [vmem:[#allocation32_spill] sm:$0xff] %v9676_v43  ;;  %v6683_v44 = vpop.f32.mrb[6].mxu0  ;;  %v9715_v11 = vadd.f32 %v9704_v26, %v574_v6 }
 0x1ab   :  { %v9678_v45 = vadd.f32 %v6683_v44, %v6266_v25  ;;  %v317_v46 = vpop.f32.mrb[7].mxu0 }
 0x1ac   :  { %v9680_v1 = vadd.f32 %v6266_v25, %v317_v46  ;;  %11593 = vst [vmem:[#allocation35_spill] sm:$0xff] %v9715_v11  ;;  %v9718_v58 = vpop.f32.mrb[4].mxu1  ;;  %v1138_v25 = vld [vmem:[#allocation18 + $0x188] sm:$0xff]  ;;  %v1143_v46 = vld [vmem:[#allocation18 + $0x1b0] sm:$0xff]  ;;  %v1526_v11 = vld [vmem:[#allocation21 + $0x180] sm:$0xff] }
 0x1ad   :  { %11591 = vst [vmem:[#allocation33_spill] sm:$0xff] %v9678_v45  ;;  %v580_v18 = vpop.f32.mrb[5].mxu1  ;;  %v7569_v40 = vpack.c.bf16 %v1138_v25, %v1133_v23  ;;  %v7572_v59 = vpack.c.bf16 %v1148_v47, %v1143_v46 }
 0x1ae   :  { %11592 = vst [vmem:[#allocation34_spill] sm:$0xff] %v9680_v1  ;;  %v9726_v22 = vadd.f32 %v9704_v26, %v580_v18  ;;  %v1499_v1 = vld [vmem:[#allocation21 + $0xa8] sm:$0xff] }
 0x1b0   :  { %11594 = vst [vmem:[#allocation36_spill] sm:$0xff] %v9726_v22  ;;  %v9737_v31 = vpop.f32.mrb[6].mxu1  ;;  %v1516_v22 = vld [vmem:[#allocation21 + $0x130] sm:$0xff] }
 0x1b1   :  { %v586_v37 = vpop.f32.mrb[7].mxu1 }
 0x1b2   :  { %v8936_v12 = vpop.eup %8935  ;;  %v9747_v44 = vadd.f32 %v9704_v26, %v586_v37  ;;  %v7578_v37 = vpack.c.bf16 %v1168_v20, %v1163_v53 }
 0x1b3   :  { %v9684_v55 = vmul.f32 0.0, %v8936_v12 }
 0x1b4   :  { %11595 = vst [vmem:[#allocation37_spill] sm:$0xff] %v9747_v44  ;;  %v9759_v12 = vpop.f32.mrb[8].mxu1  ;;  %v1492_v44 = vld [vmem:[#allocation21 + $0x70] sm:$0xff] }
 0x1b5   :  { %1234 = vmatmul.mubr.f32.vlgmr.msra.gmra.mrb[24].mxu1 %v9684_v55  ;;  %1305 = vmatmul.mubr.f32.vlgmr.msra.gmra.mrb[32].mxu0 %v9684_v55  ;;  %v592_v7 = vpop.f32.mrb[9].mxu1 }
 0x1b6   :  { %7558 = vmatpush3.bf16.msra.mxu1 %v7557_v54  ;;  %6804 = vmatprep.mubr.msk.f32.mxu1 %vm9318_vm0, %v11456_v0  ;;  %v1395_v54 = vld [vmem:[#allocation19 + $0x50] sm:$0xff]  ;;  %v9763_v63 = vadd.f32 %v9704_v26, %v592_v7  ;;  %v9804_v7 = vrot.slane %v9694_v60, %v999_v35 }
 0x1b7   :  { %7559 = vmatprep.subr.bf16.mxu1 %v11458_v17  ;;  %7582 = vmatpush3.bf16.msra.mxu0 %v9689_v16  ;;  %v9770_v8 = vpack.c.bf16 %v1396_v56, %v1395_v54 }
 0x1b8   :  { %7583 = vmatprep.subr.bf16.mxu0 %v11458_v17  ;;  %6839 = vmatprep.mubr.msk.f32.mxu0 %vm9318_vm0, %v11456_v0  ;;  %11598 = vst [vmem:[#allocation40_spill] sm:$0xff] %v9763_v63  ;;  %v1489_v63 = vld [vmem:[#allocation21 + $0x58] sm:$0xff] }
 0x1ba   :  { %7561 = vmatpush3.bf16.msra.mxu1 %v7560_v2  ;;  %v1153_v2 = vld [vmem:[#allocation18 + $0x200] sm:$0xff] }
 0x1bb   :  { %7562 = vmatprep.subr.bf16.mxu1 %v11458_v17  ;;  %7585 = vmatpush3.bf16.msra.mxu0 %v9709_v33  ;;  %v7575_v14 = vpack.c.bf16 %v1158_v3, %v1153_v2 }
 0x1bc   :  { %7586 = vmatprep.subr.bf16.mxu0 %v11458_v17 }
 0x1be   :  { %7564 = vmatpush3.bf16.msra.mxu1 %v7563_v30  ;;  %v9728_v4 = vpop.f32.mrb[8].mxu0  ;;  %v9775_v30 = vpop.f32.mrb[10].mxu1 }
 0x1bf   :  { %7565 = vmatprep.subr.bf16.mxu1 %v11458_v17  ;;  %v9732_v27 = vpop.f32.mrb[9].mxu0  ;;  %7588 = vmatpush3.bf16.msra.mxu0 %v9721_v15  ;;  %v598_v13 = vpop.f32.mrb[11].mxu1 }
 0x1c0   :  { %7589 = vmatprep.subr.bf16.mxu0 %v11458_v17  ;;  %v9779_v19 = vadd.f32 %v9704_v26, %v598_v13  ;;  %v9789_v25 = vpop.f32.mrb[12].mxu1 }
 0x1c1   :  { %v604_v34 = vpop.f32.mrb[13].mxu1 }
 0x1c2   :  { %7567 = vmatpush3.bf16.msra.mxu1 %v7566_v24  ;;  %v685_v42 = vpop.f32.mrb[10].mxu0  ;;  %11601 = vst [vmem:[#allocation43_spill] sm:$0xff] %v9779_v19  ;;  %v608_v54 = vpop.f32.mrb[14].mxu1  ;;  %v1519_v19 = vld [vmem:[#allocation21 + $0x148] sm:$0xff] }
 0x1c3   :  { %7568 = vmatprep.subr.bf16.mxu1 %v11458_v17  ;;  %v9751_v48 = vadd.f32 %v9741_v36, %v685_v42  ;;  %v687_v49 = vpop.f32.mrb[11].mxu0  ;;  %7591 = vmatpush3.bf16.msra.mxu0 %v9735_v29  ;;  %v9794_v42 = vadd.f32 %v9704_v26, %v604_v34  ;;  %v610_v56 = vpop.f32.mrb[15].mxu1 }
 0x1c4   :  { %v9757_v52 = vadd.f32 %v9744_v41, %v687_v49  ;;  %7592 = vmatprep.subr.bf16.mxu0 %v11458_v17  ;;  %v6718_v3 = vpop.f32.mrb[16].mxu1 }
 0x1c5   :  { %11596 = vst [vmem:[#allocation38_spill] sm:$0xff] %v9751_v48  ;;  %11604 = vst [vmem:[#allocation46_spill] sm:$0xff] %v9794_v42  ;;  %v9816_v13 = vpop.f32.mrb[17].mxu1  ;;  %v1491_v42 = vld [vmem:[#allocation21 + $0x68] sm:$0xff] }
 0x1c6   :  { %11597 = vst [vmem:[#allocation39_spill] sm:$0xff] %v9757_v52  ;;  %7570 = vmatpush3.bf16.msra.mxu1 %v7569_v40  ;;  %v691_v62 = vpop.f32.mrb[12].mxu0  ;;  %v1533_v52 = vld [vmem:[#allocation21 + $0x1b8] sm:$0xff] }
 0x1c7   :  { %7571 = vmatprep.subr.bf16.mxu1 %v11458_v17  ;;  %v9767_v21 = vadd.f32 %v9741_v36, %v691_v62  ;;  %v693_v6 = vpop.f32.mrb[13].mxu0  ;;  %7594 = vmatpush3.bf16.msra.mxu0 %v9754_v51 }
 0x1c8   :  { %v9773_v9 = vadd.f32 %v9744_v41, %v693_v6  ;;  %7595 = vmatprep.subr.bf16.mxu0 %v11458_v17  ;;  %v9814_v6 = vadd.f32 %v6718_v3, %v9804_v7  ;;  %v6721_v20 = vpop.f32.mrb[18].mxu1 }
 0x1c9   :  { %11599 = vst [vmem:[#allocation41_spill] sm:$0xff] %v9767_v21  ;;  %v11624_v21 = vmov 0.0  }
 0x1ca   :  { %11600 = vst [vmem:[#allocation42_spill] sm:$0xff] %v9773_v9  ;;  %7573 = vmatpush3.bf16.msra.mxu1 %v7572_v59  ;;  %v697_v18 = vpop.f32.mrb[14].mxu0  ;;  %11609 = vst [vmem:[#allocation51_spill] sm:$0xff] %v9814_v6  ;;  %v1512_v9 = vld [vmem:[#allocation21 + $0x110] sm:$0xff] }
 0x1cb   :  { %7574 = vmatprep.subr.bf16.mxu1 %v11458_v17  ;;  %v9783_v24 = vadd.f32 %v9741_v36, %v697_v18  ;;  %v699_v39 = vpop.f32.mrb[15].mxu0  ;;  %7597 = vmatpush3.bf16.msra.mxu0 %v9770_v8  ;;  %v1524_v6 = vld [vmem:[#allocation21 + $0x170] sm:$0xff] }
 0x1cc   :  { %v9787_v23 = vadd.f32 %v9744_v41, %v699_v39  ;;  %7598 = vmatprep.subr.bf16.mxu0 %v11458_v17  ;;  %v9826_v39 = vadd.f32 %v6721_v20, %v9804_v7  ;;  %v9844_v20 = vld [vmem:[%s11445_s9] ss:$0 sm:$0xff] }
 0x1cd   :  { %11602 = vst [vmem:[#allocation44_spill] sm:$0xff] %v9783_v24 }
 0x1ce   :  { %11603 = vst [vmem:[#allocation45_spill] sm:$0xff] %v9787_v23  ;;  %7576 = vmatpush3.bf16.msra.mxu1 %v7575_v14  ;;  %v703_v40 = vpop.f32.mrb[16].mxu0  ;;  %11612 = vst [vmem:[#allocation54_spill] sm:$0xff] %v9826_v39  ;;  %v1488_v23 = vld [vmem:[#allocation21 + $0x50] sm:$0xff] }
 0x1cf   :  { %7577 = vmatprep.subr.bf16.mxu1 %v11458_v17  ;;  %v9798_v46 = vadd.f32 %v9741_v36, %v703_v40  ;;  %v705_v47 = vpop.f32.mrb[17].mxu0 }
 0x1d0   :  { %v9801_v49 = vadd.f32 %v9744_v41, %v705_v47 }
 0x1d1   :  { %11605 = vst [vmem:[#allocation47_spill] sm:$0xff] %v9798_v46  ;;  %v1480_v46 = vld [vmem:[#allocation21 + $0x10] sm:$0xff] }
 0x1d2   :  { %11606 = vst [vmem:[#allocation48_spill] sm:$0xff] %v9801_v49  ;;  %7579 = vmatpush3.bf16.msra.mxu1 %v7578_v37  ;;  %v709_v50 = vpop.f32.mrb[18].mxu0  ;;  %v1484_v49 = vld [vmem:[#allocation21 + $0x30] sm:$0xff] }
 0x1d3   :  { %v9807_v59 = vadd.f32 %v9741_v36, %v709_v50  ;;  %v711_v62 = vpop.f32.mrb[19].mxu0  ;;  %v9945_v24 = vpack.c.bf16 %v1484_v49, %v1480_v46  ;;  %v1496_v46 = vld [vmem:[#allocation21 + $0x90] sm:$0xff] }
 0x1d4   :  { %v9810_v2 = vadd.f32 %v9744_v41, %v711_v62  ;;  %v1500_v49 = vld [vmem:[#allocation21 + $0xb0] sm:$0xff] }
 0x1d5   :  { %11607 = vst [vmem:[#allocation49_spill] sm:$0xff] %v9807_v59  ;;  %6805 = vmatmul.mubr.f32.vlgmr.msra.gmra.mrb[26].mxu1 %v9684_v55  ;;  %v802_v55 = vpop.f32.mrb[19].mxu1  ;;  %v1507_v59 = vld [vmem:[#allocation21 + $0xe8] sm:$0xff] }
 0x1d6   :  { %11608 = vst [vmem:[#allocation50_spill] sm:$0xff] %v9810_v2  ;;  %v715_v14 = vpop.f32.mrb[20].mxu0  ;;  %1606 = vmatprep.mubr.f32.mxu1 %v11456_v0  ;;  %v9829_v35 = vadd.f32 %v9804_v7, %v802_v55  ;;  %v6724_v40 = vpop.f32.mrb[20].mxu1  ;;  %v1515_v2 = vld [vmem:[#allocation21 + $0x128] sm:$0xff] }
 0x1d7   :  { %v9820_v60 = vadd.f32 %v9741_v36, %v715_v14  ;;  %v717_v18 = vpop.f32.mrb[21].mxu0  ;;  %v9832_v47 = vadd.f32 %v6724_v40, %v9804_v7  ;;  %v812_v56 = vpop.f32.mrb[21].mxu1 }
 0x1d8   :  { %v9823_v53 = vadd.f32 %v9744_v41, %v717_v18  ;;  %11613 = vst [vmem:[#allocation55_spill] sm:$0xff] %v9829_v35  ;;  %v9835_v62 = vadd.f32 %v9804_v7, %v812_v56  ;;  %v6727_v55 = vpop.f32.mrb[22].mxu1  ;;  %v9951_v35 = vpack.c.bf16 %v1492_v44, %v1488_v23  ;;  %v1504_v44 = vld [vmem:[#allocation21 + $0xd0] sm:$0xff] }
 0x1d9   :  { %11610 = vst [vmem:[#allocation52_spill] sm:$0xff] %v9820_v60  ;;  %11614 = vst [vmem:[#allocation56_spill] sm:$0xff] %v9832_v47  ;;  %v1503_v47 = vld [vmem:[#allocation21 + $0xc8] sm:$0xff]  ;;  %v1508_v23 = vld [vmem:[#allocation21 + $0xf0] sm:$0xff] }
 0x1da   :  { %11611 = vst [vmem:[#allocation53_spill] sm:$0xff] %v9823_v53  ;;  %v721_v34 = vpop.f32.mrb[22].mxu0  ;;  %11615 = vst [vmem:[#allocation57_spill] sm:$0xff] %v9835_v62  ;;  %v1487_v53 = vld [vmem:[#allocation21 + $0x48] sm:$0xff] }
 0x1db   :  { %v723_v37 = vpop.f32.mrb[23].mxu0 }
 0x1dc   :  { %v822_v37 = vpop.f32.mrb[23].mxu1 }
 0x1dd   :  { %v9850_v56 = vadd.f32 %v9804_v7, %v822_v37 }
 0x1de   :  { %v6762_v50 = vpop.f32.mrb[24].mxu0 }
 0x1df   :  { %v913_v3 = vpop.f32.mrb[25].mxu0  ;;  %v919_v14 = vadd.f32 %v6762_v50, %v9706_v5  ;;  %11616 = vst [vmem:[#allocation58_spill] sm:$0xff] %v9850_v56 }
 0x1e0   :  { %v9839_v18 = vadd.f32 %v913_v3, %v9686_v57 }
 0x1e1   :  { %v9847_v34 = vadd.f32 %v9844_v20, %v919_v14 }
 0x1e2   :  { %v6765_v40 = vpop.f32.mrb[26].mxu0 }
 0x1e3   :  { %v923_v0 = vpop.f32.mrb[27].mxu0  ;;  %v929_v5 = vadd.f32 %v6765_v40, %v9737_v31 }
 0x1e4   :  { %v924_v57 = vadd.f32 %v923_v0, %v9718_v58 }
 0x1e5   :  { %v9855_v50 = vadd.f32 %v9844_v20, %v929_v5 }
 0x1e6   :  { %v9858_v3 = vadd.f32 %v9844_v20, %v924_v57  ;;  %v6768_v55 = vpop.f32.mrb[28].mxu0 }
 0x1e7   :  { %11617 = vst [vmem:[#allocation59_spill] sm:$0xff] %v9855_v50  ;;  %v933_v17 = vpop.f32.mrb[29].mxu0  ;;  %v939_v14 = vadd.f32 %v6768_v55, %v9775_v30  ;;  %v1397_v30 = vld [vmem:[#allocation19 + $0x60] sm:$0xff]  ;;  %v1398_v55 = vld [vmem:[#allocation19 + $0x68] sm:$0xff]  ;;  %v1497_v50 = vld [vmem:[#allocation21 + $0x98] sm:$0xff] }
 0x1e8   :  { %11618 = vst [vmem:[#allocation60_spill] sm:$0xff] %v9858_v3  ;;  %v934_v45 = vadd.f32 %v933_v17, %v9759_v12  ;;  %v9875_v17 = vpack.c.bf16 %v1398_v55, %v1397_v30  ;;  %v11623_v12 = vmov 0.0|0.0   ;;  %v1520_v3 = vld [vmem:[#allocation21 + $0x150] sm:$0xff] }
 0x1e9   :  { %v9863_v37 = vadd.f32 %v9844_v20, %v939_v14  ;;  %v1400_v14 = vld [vmem:[#allocation19 + $0x78] sm:$0xff]  ;;  %v9981_v48 = vpack.c.bf16 %v1524_v6, %v1520_v3  ;;  %v1535_v3 = vld [vmem:[#allocation21 + $0x1c8] sm:$0xff] }
 0x1ea   :  { %v9866_v56 = vadd.f32 %v9844_v20, %v934_v45  ;;  %v6771_v31 = vpop.f32.mrb[30].mxu0  ;;  %7600 = vmatpush3.bf16.msra.mxu0 %v9875_v17  ;;  %v1399_v45 = vld [vmem:[#allocation19 + $0x70] sm:$0xff] }
 0x1eb   :  { %11619 = vst [vmem:[#allocation61_spill] sm:$0xff] %v9863_v37  ;;  %v943_v0 = vpop.f32.mrb[31].mxu0  ;;  %v949_v58 = vadd.f32 %v6771_v31, %v608_v54  ;;  %7601 = vmatprep.subr.bf16.mxu0 %v11623_v12  ;;  %v9879_v60 = vpack.c.bf16 %v1400_v14, %v1399_v45  ;;  %v1483_v54 = vld [vmem:[#allocation21 + $0x28] sm:$0xff]  ;;  %v1481_v31 = vld [vmem:[#allocation21 + $0x18] sm:$0xff]  ;;  %v9891_v45 = vpack.c.bf16 %v1491_v42, %v1487_v53  ;;  %v1486_v14 = vld [vmem:[#allocation21 + $0x40] sm:$0xff] }
 0x1ec   :  { %11620 = vst [vmem:[#allocation62_spill] sm:$0xff] %v9866_v56  ;;  %v944_v40 = vadd.f32 %v943_v0, %v9789_v25  ;;  %v1479_v25 = vld [vmem:[#allocation21 + $0x8] sm:$0xff]  ;;  %v9902_v42 = vpack.c.bf16 %v1507_v59, %v1503_v47  ;;  %v1502_v53 = vld [vmem:[#allocation21 + $0xc0] sm:$0xff]  ;;  %v1493_v56 = vld [vmem:[#allocation21 + $0x78] sm:$0xff] }
 0x1ed   :  { %v9870_v5 = vadd.f32 %v9844_v20, %v949_v58  ;;  %v9882_v0 = vpack.c.bf16 %v1483_v54, %v1479_v25  ;;  %v1485_v58 = vld [vmem:[#allocation21 + $0x38] sm:$0xff]  ;;  %v1490_v25 = vld [vmem:[#allocation21 + $0x60] sm:$0xff]  ;;  %v1523_v37 = vld [vmem:[#allocation21 + $0x168] sm:$0xff]  ;;  %11632 = vst [vmem:[#allocation72_spill] sm:$0xff] %v9981_v48 }
 0x1ee   :  { %v9873_v57 = vadd.f32 %v9844_v20, %v944_v40  ;;  %7603 = vmatpush3.bf16.msra.mxu0 %v9879_v60  ;;  %v1478_v40 = vld [vmem:[#allocation21] sm:$0xff]  ;;  %v9884_v30 = vpack.c.bf16 %v1485_v58, %v1481_v31  ;;  %v9893_v54 = vpack.c.bf16 %v1490_v25, %v1486_v14  ;;  %v1511_v25 = vld [vmem:[#allocation21 + $0x108] sm:$0xff]  ;;  %v9914_v47 = vpack.c.bf16 %v1523_v37, %v1519_v19 }
 0x1ef   :  { %11621 = vst [vmem:[#allocation63_spill] sm:$0xff] %v9870_v5  ;;  %v1482_v5 = vld [vmem:[#allocation21 + $0x20] sm:$0xff]  ;;  %7605 = vmatprep.subr.bf16.mxu1 %v9882_v0 }
 0x1f0   :  { %11622 = vst [vmem:[#allocation64_spill] sm:$0xff] %v9873_v57  ;;  %v9886_v55 = vpack.c.bf16 %v1482_v5, %v1478_v40  ;;  %7637 = vmatprep.subr.bf16.mxu0 %v9884_v30  ;;  %v1495_v57 = vld [vmem:[#allocation21 + $0x88] sm:$0xff]  ;;  %v1494_v31 = vld [vmem:[#allocation21 + $0x80] sm:$0xff] }
 0x1f1   :  { %v9896_v5 = vpack.c.bf16 %v1499_v1, %v1495_v57  ;;  %v1498_v58 = vld [vmem:[#allocation21 + $0xa0] sm:$0xff]  ;;  %v9908_v57 = vpack.c.bf16 %v1515_v2, %v1511_v25  ;;  %v9922_v2 = vadd.f32 %v9844_v20, %v9839_v18 }
 0x1f2   :  { %7607 = vmatpush1.bf16.msra.mxu1 %v9886_v55  ;;  %v9899_v40 = vpack.c.bf16 %v1498_v58, %v1494_v31  ;;  %v1506_v14 = vld [vmem:[#allocation21 + $0xe0] sm:$0xff] }
 0x1f3   :  { %7609 = vmatprep.subr.bf16.mxu1 %v9891_v45  ;;  %v9905_v1 = vpack.c.bf16 %v1506_v14, %v1502_v53  ;;  %v1510_v31 = vld [vmem:[#allocation21 + $0x100] sm:$0xff] }
 0x1f4   :  { %v1514_v58 = vld [vmem:[#allocation21 + $0x120] sm:$0xff] }
 0x1f5   :  { %v9911_v59 = vpack.c.bf16 %v1514_v58, %v1510_v31  ;;  %v9918_v53 = vld [vmem:[#allocation10] sm:$0xff]  ;;  %v1473_v58 = vsub.f32 1.0, %v9922_v2 }
 0x1f6   :  { %7611 = vmatpush1.bf16.msra.mxu1 %v9893_v54  ;;  %v9927_v14 = vld [vmem:[%s11447_s11] ss:$0 sm:$0xff]  ;;  %v11465_v31 = vsub.f32 1.0, %v9918_v53 }
 0x1f7   :  { %7613 = vmatprep.subr.bf16.mxu1 %v9896_v5  ;;  %v1083_v25 = vld [vmem:[#allocation7] sm:$0xff] }
 0x1f8   :  { %v9935_v62 = vmul.f32 %v9918_v53, %v1083_v25  ;;  %v9948_v25 = vpack.c.bf16 %v1493_v56, %v1489_v63  ;;  %v1509_v63 = vld [vmem:[#allocation21 + $0xf8] sm:$0xff]  ;;  %v9958_v56 = vpack.c.bf16 %v1500_v49, %v1496_v46 }
 0x1f9   :  { %v1521_v46 = vld [vmem:[#allocation21 + $0x158] sm:$0xff] }
 0x1fa   :  { %7615 = vmatpush1.bf16.msra.mxu1 %v9899_v40  ;;  %11626 = vst [vmem:[#allocation66_spill] sm:$0xff] %v9958_v56  ;;  %v1525_v49 = vld [vmem:[#allocation21 + $0x178] sm:$0xff] }
 0x1fb   :  { %7617 = vmatprep.subr.bf16.mxu1 %v9902_v42 }
 0x1fe   :  { %7619 = vmatpush1.bf16.msra.mxu1 %v9905_v1 }
 0x1ff   :  { %7621 = vmatprep.subr.bf16.mxu1 %v9908_v57 }
 0x202   :  { %7623 = vmatpush1.bf16.msra.mxu1 %v9911_v59 }
 0x203   :  { %7625 = vmatprep.subr.bf16.mxu1 %v9914_v47 }
 0x288   :  { %v1235_v19 = vpop.f32.mrb[24].mxu1  ;;  %v9930_v37 = vpop.f32.mrb[32].mxu0 }
 0x289   :  { %v1381_v32 = vadd.f32 %v9927_v14, %v1235_v19  ;;  %v9937_v18 = vpop.f32.mrb[25].mxu1  ;;  %v9939_v20 = vpop.f32.mrb[33].mxu0 }
 0x28b   :  { %v1383_v43 = vmul.f32 %v1381_v32, %v11465_v31  ;;  %v9943_v39 = vmul.f32 %v1473_v58, %v1381_v32  ;;  %1720 = vst [vmem:[#allocation22 + $0x8] sm:$0xff] %v1381_v32  ;;  %v9955_v32 = vpack.c.bf16 %v1501_v10, %v1497_v50  ;;  %v1517_v31 = vld [vmem:[#allocation21 + $0x138] sm:$0xff]  ;;  %v9964_v10 = vpack.c.bf16 %v1508_v23, %v1504_v44  ;;  %v1518_v23 = vld [vmem:[#allocation21 + $0x140] sm:$0xff] }
 0x28d   :  { %v1384_v19 = vadd.f32 %v1383_v43, %v9935_v62  ;;  %11625 = vst [vmem:[#allocation65_spill] sm:$0xff] %v9955_v32  ;;  %v1505_v43 = vld [vmem:[#allocation21 + $0xd8] sm:$0xff]  ;;  %11628 = vst [vmem:[#allocation68_spill] sm:$0xff] %v9964_v10 }
 0x28e   :  { %v9961_v58 = vpack.c.bf16 %v1509_v63, %v1505_v43  ;;  %v9970_v43 = vpack.c.bf16 %v1516_v22, %v1512_v9  ;;  %v9973_v63 = vpack.c.bf16 %v1525_v49, %v1521_v46  ;;  %v1527_v22 = vld [vmem:[#allocation21 + $0x188] sm:$0xff]  ;;  %v1529_v46 = vld [vmem:[#allocation21 + $0x198] sm:$0xff] }
 0x28f   :  { %6840 = vmatmul.mubr.f32.vlgmr.msra.gmra.mrb[34].mxu0 %v1384_v19  ;;  %v1513_v19 = vld [vmem:[#allocation21 + $0x118] sm:$0xff]  ;;  %v1531_v9 = vld [vmem:[#allocation21 + $0x1a8] sm:$0xff] }
 0x290   :  { %7639 = vmatpush1.bf16.msra.mxu0 %v9945_v24  ;;  %1677 = vmatprep.mubr.f32.mxu0 %v11624_v21  ;;  %11627 = vst [vmem:[#allocation67_spill] sm:$0xff] %v9961_v58  ;;  %v9967_v50 = vpack.c.bf16 %v1517_v31, %v1513_v19  ;;  %11630 = vst [vmem:[#allocation70_spill] sm:$0xff] %v9970_v43  ;;  %v1522_v19 = vld [vmem:[#allocation21 + $0x160] sm:$0xff]  ;;  %v9985_v49 = vpack.c.bf16 %v1531_v9, %v1527_v22  ;;  %v1539_v22 = vld [vmem:[#allocation21 + $0x1e8] sm:$0xff] }
 0x291   :  { %7641 = vmatprep.subr.bf16.mxu0 %v9948_v25  ;;  %11631 = vst [vmem:[#allocation71_spill] sm:$0xff] %v9973_v63  ;;  %v9979_v38 = vpack.c.bf16 %v1522_v19, %v1518_v23  ;;  %v1528_v23 = vld [vmem:[#allocation21 + $0x190] sm:$0xff]  ;;  %v1537_v9 = vld [vmem:[#allocation21 + $0x1d8] sm:$0xff] }
 0x292   :  { %11629 = vst [vmem:[#allocation69_spill] sm:$0xff] %v9967_v50  ;;  %v1532_v19 = vld [vmem:[#allocation21 + $0x1b0] sm:$0xff] }
 0x293   :  { %7627 = vmatpush1.bf16.msra.mxu1 %v9979_v38  ;;  %v9992_v6 = vpack.c.bf16 %v1532_v19, %v1528_v23  ;;  %v1536_v23 = vld [vmem:[#allocation21 + $0x1d0] sm:$0xff] }
 0x294   :  { %7643 = vmatpush1.bf16.msra.mxu0 %v9951_v35  ;;  %7629 = vmatprep.subr.bf16.mxu1 %v9985_v49  ;;  %v1540_v19 = vld [vmem:[#allocation21 + $0x1f0] sm:$0xff] }
 0x295   :  { %7645 = vmatprep.subr.bf16.mxu0 %v9955_v32  ;;  %11634 = vst [vmem:[#allocation74_spill] sm:$0xff] %v9992_v6 }
 0x298   :  { %7647 = vmatpush1.bf16.msra.mxu0 %v9958_v56  ;;  %v1799_v56 = vld [vmem:[#allocation18 + $0x218] sm:$0xff] }
 0x299   :  { %7649 = vmatprep.subr.bf16.mxu0 %v9961_v58 }
 0x29c   :  { %7651 = vmatpush1.bf16.msra.mxu0 %v9964_v10  ;;  %v1750_v10 = vld [vmem:[#allocation18 + $0x90] sm:$0xff] }
 0x29d   :  { %7653 = vmatprep.subr.bf16.mxu0 %v9967_v50 }
 0x2a0   :  { %7655 = vmatpush1.bf16.msra.mxu0 %v9970_v43 }
 0x2a1   :  { %7657 = vmatprep.subr.bf16.mxu0 %v9973_v63  ;;  %v9987_v63 = vpack.c.bf16 %v1533_v52, %v1529_v46  ;;  %v1541_v52 = vld [vmem:[#allocation21 + $0x1f8] sm:$0xff]  ;;  %v1538_v46 = vld [vmem:[#allocation21 + $0x1e0] sm:$0xff] }
 0x2a3   :  { %11633 = vst [vmem:[#allocation73_spill] sm:$0xff] %v9987_v63 }
 0x2a4   :  { %7659 = vmatpush1.bf16.msra.mxu0 %v9981_v48  ;;  %v9997_v48 = vpack.c.bf16 %v1539_v22, %v1535_v3  ;;  %v10012_v3 = vld [vmem:[%s11449_s13] ss:$0 sm:$0xff] }
 0x2a5   :  { %7661 = vmatprep.subr.bf16.mxu0 %v9987_v63  ;;  %v10004_v63 = vpack.c.bf16 %v1540_v19, %v1536_v23  ;;  %11637 = vst [vmem:[#allocation77_spill] sm:$0xff] %v10012_v3  ;;  %v11638_v23 = vsub.f32 1.0, %v9918_v53  ;;  %v1740_v53 = vld [vmem:[#allocation18 + $0x40] sm:$0xff] }
 0x2a7   :  { %11636 = vst [vmem:[#allocation76_spill] sm:$0xff] %v10004_v63 }
 0x2a8   :  { %v9977_v44 = vpop.f32.mrb[26].mxu1  ;;  %7663 = vmatpush1.bf16.msra.mxu0 %v9992_v6 }
 0x2a9   :  { %v6806_v31 = vpop.f32.mrb[27].mxu1 }
 0x2aa   :  { %v1530_v31 = vld [vmem:[#allocation21 + $0x1a0] sm:$0xff] }
 0x2ab   :  { %v9989_v43 = vpack.c.bf16 %v1530_v31, %v1526_v11  ;;  %v1534_v11 = vld [vmem:[#allocation21 + $0x1c0] sm:$0xff]  ;;  %v9999_v31 = vpack.c.bf16 %v1541_v52, %v1537_v9 }
 0x2ac   :  { %v10001_v50 = vpack.c.bf16 %v1538_v46, %v1534_v11 }
 0x2ad   :  { %7631 = vmatpush1.bf16.msra.mxu1 %v9989_v43  ;;  %11635 = vst [vmem:[#allocation75_spill] sm:$0xff] %v9999_v31  ;;  %7665 = vmatprep.subr.bf16.mxu0 %v9999_v31  ;;  %v1748_v31 = vld [vmem:[#allocation18 + $0x80] sm:$0xff] }
 0x2ae   :  { %7633 = vmatprep.subr.bf16.mxu1 %v9997_v48  ;;  %7667 = vmatpush1.bf16.msra.mxu0 %v10004_v63 }
 0x2b1   :  { %7635 = vmatpush1.bf16.msra.mxu1 %v10001_v50 }
 0x362   :  { %v1467_v22 = vpop.f32.mrb[34].mxu0 }
 0x363   :  { %v1468_v9 = vadd.f32 %v10012_v3, %v1467_v22  ;;  %v6841_v52 = vpop.f32.mrb[35].mxu0  ;;  %v1733_v22 = vld [vmem:[#allocation18 + $0x8] sm:$0xff] }
 0x364   :  { %v1738_v52 = vld [vmem:[#allocation18 + $0x30] sm:$0xff] }
 0x365   :  { %v1472_v11 = vmul.f32 %v1468_v9, %v9922_v2  ;;  %1721 = vst [vmem:[#allocation22 + $0x10] sm:$0xff] %v1468_v9  ;;  %v10022_v3 = vpack.c.bf16 %v1738_v52, %v1733_v22  ;;  %v1732_v2 = vld [vmem:[#allocation18] sm:$0xff]  ;;  %v1737_v9 = vld [vmem:[#allocation18 + $0x28] sm:$0xff]  ;;  %v1742_v52 = vld [vmem:[#allocation18 + $0x50] sm:$0xff] }
 0x367   :  { %v1475_v46 = vadd.f32 %v9943_v39, %v1472_v11  ;;  %v1735_v39 = vld [vmem:[#allocation18 + $0x18] sm:$0xff]  ;;  %v10024_v11 = vpack.c.bf16 %v1737_v9, %v1732_v2  ;;  %7669 = vmatprep.subr.bf16.mxu1 %v10022_v3  ;;  %v1745_v9 = vld [vmem:[#allocation18 + $0x68] sm:$0xff] }
 0x368   :  { %v1747_v2 = vld [vmem:[#allocation18 + $0x78] sm:$0xff] }
 0x369   :  { %v1476_v19 = vmul.f32 %v1475_v46, %v11638_v23  ;;  %1722 = vst [vmem:[#allocation22 + $0x18] sm:$0xff] %v1475_v46  ;;  %11639 = vst [vmem:[#allocation78_spill] sm:$0xff] %v10024_v11  ;;  %v1734_v46 = vld [vmem:[#allocation18 + $0x10] sm:$0xff]  ;;  %v1739_v23 = vld [vmem:[#allocation18 + $0x38] sm:$0xff]  ;;  %v10036_v6 = vpack.c.bf16 %v1747_v2, %v1742_v52 }
 0x36a   :  { %v1757_v52 = vld [vmem:[#allocation18 + $0xc8] sm:$0xff]  ;;  %v1755_v2 = vld [vmem:[#allocation18 + $0xb8] sm:$0xff] }
 0x36b   :  { %v1477_v63 = vadd.f32 %v1476_v19, %v9935_v62  ;;  %v10027_v62 = vpack.c.bf16 %v1740_v53, %v1735_v39  ;;  %v1743_v19 = vld [vmem:[#allocation18 + $0x58] sm:$0xff]  ;;  %11643 = vst [vmem:[#allocation82_spill] sm:$0xff] %v10036_v6  ;;  %v1744_v39 = vld [vmem:[#allocation18 + $0x60] sm:$0xff]  ;;  %v1749_v53 = vld [vmem:[#allocation18 + $0x88] sm:$0xff] }
 0x36c   :  { %v10033_v22 = vpack.c.bf16 %v1748_v31, %v1743_v19  ;;  %v1753_v31 = vld [vmem:[#allocation18 + $0xa8] sm:$0xff]  ;;  %v1758_v19 = vld [vmem:[#allocation18 + $0xd0] sm:$0xff] }
 0x36d   :  { %1607 = vmatmul.mubr.f32.vlgmr.msra.gmra.mrb[28].mxu1 %v1477_v63  ;;  %1719 = vst [vmem:[#allocation22] sm:$0xff] %v1477_v63  ;;  %1678 = vmatmul.mubr.f32.vlgmr.msra.gmra.mrb[36].mxu0 %v1477_v63  ;;  %11640 = vst [vmem:[#allocation79_spill] sm:$0xff] %v10027_v62  ;;  %v10029_v63 = vpack.c.bf16 %v1739_v23, %v1734_v46  ;;  %v10039_v46 = vpack.c.bf16 %v1750_v10, %v1745_v9  ;;  %v1754_v10 = vld [vmem:[#allocation18 + $0xb0] sm:$0xff]  ;;  %v1759_v9 = vld [vmem:[#allocation18 + $0xd8] sm:$0xff] }
 0x36e   :  { %1876 = vmatprep.mubr.f32.mxu1 %v11624_v21  ;;  %1947 = vmatprep.mubr.f32.mxu0 %v11624_v21  ;;  %11642 = vst [vmem:[#allocation81_spill] sm:$0xff] %v10033_v22  ;;  %v10041_v23 = vpack.c.bf16 %v1749_v53, %v1744_v39  ;;  %v10053_v53 = vpack.c.bf16 %v1759_v9, %v1754_v10 }
 0x36f   :  { %11641 = vst [vmem:[#allocation80_spill] sm:$0xff] %v10029_v63  ;;  %7671 = vmatpush1.bf16.msra.mxu1 %v10024_v11  ;;  %7701 = vmatprep.subr.bf16.mxu0 %v10027_v62  ;;  %11644 = vst [vmem:[#allocation83_spill] sm:$0xff] %v10039_v46  ;;  %v10045_v11 = vpack.c.bf16 %v1758_v19, %v1753_v31  ;;  %v1763_v31 = vld [vmem:[#allocation18 + $0xf8] sm:$0xff]  ;;  %v1768_v19 = vld [vmem:[#allocation18 + $0x120] sm:$0xff] }
 0x370   :  { %7703 = vmatpush1.bf16.msra.mxu0 %v10029_v63  ;;  %7673 = vmatprep.subr.bf16.mxu1 %v10033_v22  ;;  %11645 = vst [vmem:[#allocation84_spill] sm:$0xff] %v10041_v23  ;;  %v1752_v63 = vld [vmem:[#allocation18 + $0xa0] sm:$0xff]  ;;  %11649 = vst [vmem:[#allocation88_spill] sm:$0xff] %v10053_v53 }
 0x371   :  { %7705 = vmatprep.subr.bf16.mxu0 %v10039_v46  ;;  %11646 = vst [vmem:[#allocation85_spill] sm:$0xff] %v10045_v11  ;;  %v10048_v62 = vpack.c.bf16 %v1757_v52, %v1752_v63  ;;  %v1760_v22 = vld [vmem:[#allocation18 + $0xe0] sm:$0xff]  ;;  %v1767_v63 = vld [vmem:[#allocation18 + $0x118] sm:$0xff]  ;;  %v1765_v52 = vld [vmem:[#allocation18 + $0x108] sm:$0xff] }
 0x372   :  { %v10051_v39 = vpack.c.bf16 %v1760_v22, %v1755_v2  ;;  %v1764_v22 = vld [vmem:[#allocation18 + $0x100] sm:$0xff]  ;;  %v1769_v2 = vld [vmem:[#allocation18 + $0x128] sm:$0xff] }
 0x373   :  { %7675 = vmatpush1.bf16.msra.mxu1 %v10036_v6  ;;  %11647 = vst [vmem:[#allocation86_spill] sm:$0xff] %v10048_v62  ;;  %v10057_v6 = vpack.c.bf16 %v1768_v19, %v1763_v31  ;;  %v10065_v9 = vpack.c.bf16 %v1769_v2, %v1764_v22  ;;  %v1773_v31 = vld [vmem:[#allocation18 + $0x148] sm:$0xff]  ;;  %v1778_v19 = vld [vmem:[#allocation18 + $0x170] sm:$0xff] }
 0x374   :  { %7707 = vmatpush1.bf16.msra.mxu0 %v10041_v23  ;;  %7677 = vmatprep.subr.bf16.mxu1 %v10045_v11  ;;  %11648 = vst [vmem:[#allocation87_spill] sm:$0xff] %v10051_v39  ;;  %v1762_v23 = vld [vmem:[#allocation18 + $0xf0] sm:$0xff] }
 0x375   :  { %7709 = vmatprep.subr.bf16.mxu0 %v10051_v39  ;;  %11650 = vst [vmem:[#allocation89_spill] sm:$0xff] %v10057_v6  ;;  %v10060_v46 = vpack.c.bf16 %v1767_v63, %v1762_v23  ;;  %v1770_v11 = vld [vmem:[#allocation18 + $0x130] sm:$0xff]  ;;  %11653 = vst [vmem:[#allocation92_spill] sm:$0xff] %v10065_v9  ;;  %v1777_v23 = vld [vmem:[#allocation18 + $0x168] sm:$0xff] }
 0x376   :  { %v10063_v10 = vpack.c.bf16 %v1770_v11, %v1765_v52  ;;  %v1775_v63 = vld [vmem:[#allocation18 + $0x158] sm:$0xff]  ;;  %v1774_v11 = vld [vmem:[#allocation18 + $0x150] sm:$0xff] }
 0x377   :  { %7679 = vmatpush1.bf16.msra.mxu1 %v10048_v62  ;;  %11651 = vst [vmem:[#allocation90_spill] sm:$0xff] %v10060_v46  ;;  %v10069_v62 = vpack.c.bf16 %v1778_v19, %v1773_v31  ;;  %v1779_v52 = vld [vmem:[#allocation18 + $0x178] sm:$0xff]  ;;  %v1788_v19 = vld [vmem:[#allocation18 + $0x1c0] sm:$0xff] }
 0x378   :  { %7711 = vmatpush1.bf16.msra.mxu0 %v10053_v53  ;;  %7681 = vmatprep.subr.bf16.mxu1 %v10057_v6  ;;  %11652 = vst [vmem:[#allocation91_spill] sm:$0xff] %v10063_v10  ;;  %v1772_v53 = vld [vmem:[#allocation18 + $0x140] sm:$0xff]  ;;  %v10077_v2 = vpack.c.bf16 %v1779_v52, %v1774_v11  ;;  %v1783_v31 = vld [vmem:[#allocation18 + $0x198] sm:$0xff]  ;;  %v1789_v11 = vld [vmem:[#allocation18 + $0x1c8] sm:$0xff] }
 0x379   :  { %7713 = vmatprep.subr.bf16.mxu0 %v10063_v10  ;;  %11654 = vst [vmem:[#allocation93_spill] sm:$0xff] %v10069_v62  ;;  %v10072_v39 = vpack.c.bf16 %v1777_v23, %v1772_v53  ;;  %v1780_v6 = vld [vmem:[#allocation18 + $0x180] sm:$0xff]  ;;  %v10081_v10 = vpack.c.bf16 %v1788_v19, %v1783_v31  ;;  %v1787_v53 = vld [vmem:[#allocation18 + $0x1b8] sm:$0xff]  ;;  %v1785_v23 = vld [vmem:[#allocation18 + $0x1a8] sm:$0xff] }
 0x37a   :  { %v10075_v22 = vpack.c.bf16 %v1780_v6, %v1775_v63  ;;  %11657 = vst [vmem:[#allocation96_spill] sm:$0xff] %v10077_v2  ;;  %v1784_v63 = vld [vmem:[#allocation18 + $0x1a0] sm:$0xff]  ;;  %v1793_v52 = vld [vmem:[#allocation18 + $0x1e8] sm:$0xff] }
 0x37b   :  { %7683 = vmatpush1.bf16.msra.mxu1 %v10060_v46  ;;  %11655 = vst [vmem:[#allocation94_spill] sm:$0xff] %v10072_v39  ;;  %v1782_v46 = vld [vmem:[#allocation18 + $0x190] sm:$0xff]  ;;  %11658 = vst [vmem:[#allocation97_spill] sm:$0xff] %v10081_v10  ;;  %v1797_v31 = vld [vmem:[#allocation18 + $0x208] sm:$0xff] }
 0x37c   :  { %7715 = vmatpush1.bf16.msra.mxu0 %v10065_v9  ;;  %7685 = vmatprep.subr.bf16.mxu1 %v10069_v62  ;;  %11656 = vst [vmem:[#allocation95_spill] sm:$0xff] %v10075_v22  ;;  %v1790_v9 = vld [vmem:[#allocation18 + $0x1d0] sm:$0xff]  ;;  %v10084_v58 = vpack.c.bf16 %v1787_v53, %v1782_v46  ;;  %v1800_v53 = vld [vmem:[#allocation18 + $0x220] sm:$0xff] }
 0x37d   :  { %7717 = vmatprep.subr.bf16.mxu0 %v10075_v22  ;;  %v10086_v6 = vpack.c.bf16 %v1790_v9, %v1785_v23  ;;  %v1798_v62 = vld [vmem:[#allocation18 + $0x210] sm:$0xff]  ;;  %v1792_v22 = vld [vmem:[#allocation18 + $0x1e0] sm:$0xff]  ;;  %v1795_v9 = vld [vmem:[#allocation18 + $0x1f8] sm:$0xff] }
 0x37e   :  { %11659 = vst [vmem:[#allocation98_spill] sm:$0xff] %v10084_v58  ;;  %v10093_v19 = vpack.c.bf16 %v1798_v62, %v1793_v52  ;;  %v10095_v46 = vpack.c.bf16 %v1797_v31, %v1792_v22  ;;  %v1794_v23 = vld [vmem:[#allocation18 + $0x1f0] sm:$0xff]  ;;  %v1807_v52 = vld [vmem:[#allocation18 + $0x258] sm:$0xff]  ;;  %v1805_v22 = vld [vmem:[#allocation18 + $0x248] sm:$0xff] }
 0x37f   :  { %7687 = vmatpush1.bf16.msra.mxu1 %v10072_v39  ;;  %11660 = vst [vmem:[#allocation99_spill] sm:$0xff] %v10086_v6  ;;  %v10089_v39 = vpack.c.bf16 %v1789_v11, %v1784_v63  ;;  %v1808_v63 = vld [vmem:[#allocation18 + $0x260] sm:$0xff]  ;;  %v10101_v11 = vpack.c.bf16 %v1799_v56, %v1794_v23  ;;  %v1802_v62 = vld [vmem:[#allocation18 + $0x230] sm:$0xff] }
 0x380   :  { %7719 = vmatpush1.bf16.msra.mxu0 %v10077_v2  ;;  %7689 = vmatprep.subr.bf16.mxu1 %v10081_v10  ;;  %v10097_v2 = vpack.c.bf16 %v1800_v53, %v1795_v9  ;;  %v1803_v10 = vld [vmem:[#allocation18 + $0x238] sm:$0xff]  ;;  %v1810_v31 = vld [vmem:[#allocation18 + $0x270] sm:$0xff]  ;;  %v1809_v9 = vld [vmem:[#allocation18 + $0x268] sm:$0xff]  ;;  %v10107_v53 = vpack.c.bf16 %v1807_v52, %v1802_v62  ;;  %v1005_v62 = vadd.f32 %v9704_v26, %v9696_v61 }
 0x381   :  { %7721 = vmatprep.subr.bf16.mxu0 %v10086_v6  ;;  %11661 = vst [vmem:[#allocation100_spill] sm:$0xff] %v10101_v11  ;;  %v1804_v6 = vld [vmem:[#allocation18 + $0x240] sm:$0xff]  ;;  %v10109_v32 = vpack.c.bf16 %v1810_v31, %v1805_v22 }
 0x382   :  { %11663 = vst [vmem:[#allocation102_spill] sm:$0xff] %v10107_v53  ;;  %v10113_v56 = vpack.c.bf16 %v1809_v9, %v1804_v6  ;;  %v1006_v9 = vadd.f32 %v9741_v36, %v9728_v4  ;;  %v327_v36 = vmax.f32 %v9668_v28, 0.0 }
 0x383   :  { %7691 = vmatpush1.bf16.msra.mxu1 %v10084_v58  ;;  %v10103_v58 = vpack.c.bf16 %v1808_v63, %v1803_v10  ;;  %11664 = vst [vmem:[#allocation103_spill] sm:$0xff] %v10109_v32  ;;  %v1007_v63 = vadd.f32 %v9744_v41, %v9732_v27 }
 0x384   :  { %7723 = vmatpush1.bf16.msra.mxu0 %v10089_v39  ;;  %7693 = vmatprep.subr.bf16.mxu1 %v10093_v19  ;;  %11665 = vst [vmem:[#allocation104_spill] sm:$0xff] %v10113_v56 }
 0x385   :  { %11662 = vst [vmem:[#allocation101_spill] sm:$0xff] %v10103_v58  ;;  %7725 = vmatprep.subr.bf16.mxu0 %v10097_v2 }
 0x387   :  { %7695 = vmatpush1.bf16.msra.mxu1 %v10095_v46 }
 0x388   :  { %7697 = vmatprep.subr.bf16.mxu1 %v10103_v58  ;;  %7727 = vmatpush1.bf16.msra.mxu0 %v10101_v11 }
 0x389   :  { %7729 = vmatprep.subr.bf16.mxu0 %v10109_v32 }
 0x38b   :  { %7699 = vmatpush1.bf16.msra.mxu1 %v10107_v53 }
 0x38c   :  { %7732 = vmatprep.subr.bf16.mxu1 %v11623_v12  ;;  %7731 = vmatpush1.bf16.msra.mxu0 %v10113_v56  ;;  %v1008_v56 = vadd.f32 %v9804_v7, %v9816_v13 }
 0x38d   :  { %7756 = vmatprep.subr.bf16.mxu0 %v11623_v12 }
 0x440   :  { %v1608_v10 = vpop.f32.mrb[28].mxu1  ;;  %v1679_v23 = vpop.f32.mrb[36].mxu0 }
 0x441   :  { %v1609_v6 = vadd.f32 %v1608_v10, %v9937_v18  ;;  %v1680_v52 = vadd.f32 %v1679_v23, %v9939_v20  ;;  %v1610_v22 = vpop.f32.mrb[29].mxu1  ;;  %v1681_v31 = vpop.f32.mrb[37].mxu0 }
 0x442   :  { %v1611_v53 = vadd.f32 %v1610_v22, %v9930_v37  ;;  %v1682_v32 = vadd.f32 %v1681_v31, %v9977_v44  ;;  %v335_v44 = vsub.f32 0.0, %v327_v36  ;;  %v1776_v36 = vld [vmem:[#allocation18 + $0x160] sm:$0xff] }
 0x443   :  { %v1688_v27 = vadd.f32 %v1609_v6, %v1005_v62  ;;  %v1690_v41 = vadd.f32 %v1680_v52, %v1007_v63  ;;  %v1741_v52 = vld [vmem:[#allocation18 + $0x48] sm:$0xff] }
 0x444   :  { %v1689_v58 = vadd.f32 %v1611_v53, %v1006_v9  ;;  %v1691_v61 = vadd.f32 %v1682_v32, %v1008_v56  ;;  %v344_v63 = vmul.f32 1.442695, %v335_v44 }
 0x445   :  { %v6272_v26 = vmul.f32 -1.442695, %v1688_v27 }
 0x446   :  { %v6273_v18 = vmul.f32 -1.442695, %v1689_v58  ;;  %v6274_v20 = vmul.f32 -1.442695, %v1691_v61  ;;  %v1751_v61 = vld [vmem:[#allocation18 + $0x98] sm:$0xff] }
 0x447   :  { %8937 = vpow2.f32 %v6272_v26 }
 0x448   :  { %8939 = vpow2.f32 %v6273_v18  ;;  %v1756_v18 = vld [vmem:[#allocation18 + $0xc0] sm:$0xff] }
 0x449   :  { %8941 = vpow2.f32 %v6274_v20  ;;  %v1761_v20 = vld [vmem:[#allocation18 + $0xe8] sm:$0xff] }
 0x44a   :  { %8943 = vtanh.f32 %v1690_v41  ;;  %v1746_v41 = vld [vmem:[#allocation18 + $0x70] sm:$0xff] }
 0x44b   :  { %v10139_v26 = vpack.c.bf16 %v1751_v61, %v1746_v41 }
 0x451   :  { %v8938_v10 = vpop.eup %8937 }
 0x452   :  { %v8940_v23 = vpop.eup %8939  ;;  %v1695_v11 = vadd.f32 1.0, %v8938_v10  ;;  %v10149_v10 = vpack.c.bf16 %v1761_v20, %v1756_v18  ;;  %v11680_v18 = vld [vmem:[#allocation78_spill] sm:$0xff]  ;;  %v11681_v20 = vld [vmem:[#allocation80_spill] sm:$0xff] }
 0x453   :  { %v1701_v4 = vadd.f32 1.0, %v8940_v23  ;;  %v8942_v7 = vpop.eup %8941  ;;  %v1766_v23 = vld [vmem:[#allocation18 + $0x110] sm:$0xff] }
 0x454   :  { %8945 = vrcp.f32 %v1695_v11  ;;  %v8944_v13 = vpop.eup %8943  ;;  %v1708_v58 = vadd.f32 1.0, %v8942_v7  ;;  %v1736_v11 = vld [vmem:[#allocation18 + $0x20] sm:$0xff]  ;;  %v1781_v7 = vld [vmem:[#allocation18 + $0x188] sm:$0xff] }
 0x455   :  { %8947 = vrcp.f32 %v1701_v4  ;;  %v10136_v9 = vpack.c.bf16 %v1741_v52, %v1736_v11  ;;  %v1771_v4 = vld [vmem:[#allocation18 + $0x138] sm:$0xff]  ;;  %v11679_v52 = vld [vmem:[#allocation77_spill] sm:$0xff] }
 0x456   :  { %8949 = vrcp.f32 %v1708_v58  ;;  %v1811_v58 = vld [vmem:[#allocation18 + $0x278] sm:$0xff] }
 0x45e   :  { %v8946_v37 = vpop.eup %8945 }
 0x45f   :  { %v8948_v32 = vpop.eup %8947  ;;  %v1713_v53 = vmul.f32 %v8946_v37, %v8944_v13  ;;  %v10161_v13 = vpack.c.bf16 %v1781_v7, %v1776_v36  ;;  %v1791_v37 = vld [vmem:[#allocation18 + $0x1d8] sm:$0xff]  ;;  %v11686_v7 = vld [vmem:[#allocation85_spill] sm:$0xff] }
 0x460   :  { %v1712_v56 = vmul.f32 0.0, %v8948_v32  ;;  %v8950_v6 = vpop.eup %8949  ;;  %v1801_v32 = vld [vmem:[#allocation18 + $0x228] sm:$0xff]  ;;  %v11685_v36 = vld [vmem:[#allocation84_spill] sm:$0xff] }
 0x462   :  { %v10133_v62 = vadd.f32 %v1713_v53, %v1712_v56 }
 0x464   :  { %8951 = vtanh.f32 %v10133_v62 }
 0x465   :  { %8953 = vpow2.f32 %v344_v63  ;;  %v11677_v63 = vld [vmem:[#allocation76_spill] sm:$0xff] }
 0x46e   :  { %v8952_v22 = vpop.eup %8951 }
 0x46f   :  { %v1716_v28 = vmul.f32 %v8952_v22, %v8950_v6  ;;  %v8954_v31 = vpop.eup %8953  ;;  %v11678_v6 = vld [vmem:[#allocation79_spill] sm:$0xff] }
 0x471   :  { %v1731_v27 = vmul.f32 %v8954_v31, %v1716_v28 }
 0x473   :  { %1877 = vmatmul.mubr.f32.vlgmr.msra.gmra.mrb[30].mxu1 %v1731_v27  ;;  %1948 = vmatmul.mubr.f32.vlgmr.msra.gmra.mrb[38].mxu0 %v1731_v27 }
 0x474   :  { %7734 = vmatpush3.bf16.msra.mxu1 %v10136_v9  ;;  %6874 = vmatprep.mubr.msk.f32.mxu1 %vm9318_vm0, %v11624_v21 }
 0x475   :  { %7735 = vmatprep.subr.bf16.mxu1 %v11623_v12  ;;  %7758 = vmatpush3.bf16.msra.mxu0 %v9689_v16  ;;  %v10155_v16 = vpack.c.bf16 %v1771_v4, %v1766_v23  ;;  %v11682_v23 = vld [vmem:[#allocation81_spill] sm:$0xff]  ;;  %v11683_v4 = vld [vmem:[#allocation83_spill] sm:$0xff] }
 0x476   :  { %7759 = vmatprep.subr.bf16.mxu0 %v11623_v12  ;;  %6909 = vmatprep.mubr.msk.f32.mxu0 %vm9318_vm0, %v11624_v21 }
 0x478   :  { %7737 = vmatpush3.bf16.msra.mxu1 %v10139_v26 }
 0x479   :  { %7738 = vmatprep.subr.bf16.mxu1 %v11623_v12  ;;  %7761 = vmatpush3.bf16.msra.mxu0 %v9709_v33  ;;  %v1786_v33 = vld [vmem:[#allocation18 + $0x1b0] sm:$0xff] }
 0x47a   :  { %7762 = vmatprep.subr.bf16.mxu0 %v11623_v12  ;;  %v10167_v44 = vpack.c.bf16 %v1791_v37, %v1786_v33  ;;  %v11687_v33 = vld [vmem:[#allocation87_spill] sm:$0xff]  ;;  %v11688_v37 = vld [vmem:[#allocation86_spill] sm:$0xff] }
 0x47c   :  { %7740 = vmatpush3.bf16.msra.mxu1 %v10149_v10 }
 0x47d   :  { %7741 = vmatprep.subr.bf16.mxu1 %v11623_v12  ;;  %7764 = vmatpush3.bf16.msra.mxu0 %v9721_v15  ;;  %v1796_v15 = vld [vmem:[#allocation18 + $0x200] sm:$0xff] }
 0x47e   :  { %7765 = vmatprep.subr.bf16.mxu0 %v11623_v12  ;;  %v10173_v53 = vpack.c.bf16 %v1801_v32, %v1796_v15  ;;  %v11689_v15 = vld [vmem:[#allocation88_spill] sm:$0xff]  ;;  %v11690_v32 = vld [vmem:[#allocation89_spill] sm:$0xff] }
 0x480   :  { %7743 = vmatpush3.bf16.msra.mxu1 %v10155_v16 }
 0x481   :  { %7744 = vmatprep.subr.bf16.mxu1 %v11623_v12  ;;  %7767 = vmatpush3.bf16.msra.mxu0 %v9735_v29  ;;  %v1806_v29 = vld [vmem:[#allocation18 + $0x250] sm:$0xff] }
 0x482   :  { %7768 = vmatprep.subr.bf16.mxu0 %v11623_v12  ;;  %v10179_v56 = vpack.c.bf16 %v1811_v58, %v1806_v29  ;;  %v11691_v29 = vld [vmem:[#allocation91_spill] sm:$0xff]  ;;  %v11692_v58 = vld [vmem:[#allocation90_spill] sm:$0xff] }
 0x484   :  { %7746 = vmatpush3.bf16.msra.mxu1 %v10161_v13 }
 0x485   :  { %7747 = vmatprep.subr.bf16.mxu1 %v11623_v12  ;;  %7770 = vmatpush3.bf16.msra.mxu0 %v9754_v51  ;;  %v1726_v51 = vld [vmem:[#allocation10 + $0x8] sm:$0xff] }
 0x486   :  { %7771 = vmatprep.subr.bf16.mxu0 %v11623_v12 }
 0x488   :  { %7749 = vmatpush3.bf16.msra.mxu1 %v10167_v44 }
 0x489   :  { %7750 = vmatprep.subr.bf16.mxu1 %v11623_v12  ;;  %7773 = vmatpush3.bf16.msra.mxu0 %v9770_v8  ;;  %v1724_v8 = vld [vmem:[#allocation7 + $0x8] sm:$0xff] }
 0x48a   :  { %7774 = vmatprep.subr.bf16.mxu0 %v11623_v12 }
 0x48c   :  { %7752 = vmatpush3.bf16.msra.mxu1 %v10173_v53 }
 0x48d   :  { %7753 = vmatprep.subr.bf16.mxu1 %v11623_v12  ;;  %7776 = vmatpush3.bf16.msra.mxu0 %v9875_v17 }
 0x48e   :  { %7777 = vmatprep.subr.bf16.mxu0 %v11623_v12 }
 0x490   :  { %7755 = vmatpush3.bf16.msra.mxu1 %v10179_v56 }
 0x491   :  { %7779 = vmatpush3.bf16.msra.mxu0 %v9879_v60  ;;  %7781 = vmatprep.subr.bf16.mxu1 %v9882_v0  ;;  %v1727_v60 = vsub.f32 1.0, %v1726_v51 }
 0x492   :  { %7813 = vmatprep.subr.bf16.mxu0 %v9884_v30  ;;  %v2117_v30 = vsub.f32 1.0, %v9847_v34 }
 0x493   :  { %6875 = vmatmul.mubr.f32.vlgmr.msra.gmra.mrb[32].mxu1 %v1731_v27 }
 0x494   :  { %7783 = vmatpush1.bf16.msra.mxu1 %v9886_v55  ;;  %2250 = vmatprep.mubr.f32.mxu1 %v11624_v21  ;;  %v2025_v55 = vmul.f32 %v1726_v51, %v1724_v8  ;;  %v11693_v51 = vld [vmem:[#allocation92_spill] sm:$0xff]  ;;  %v11694_v8 = vld [vmem:[#allocation93_spill] sm:$0xff] }
 0x495   :  { %7785 = vmatprep.subr.bf16.mxu1 %v9891_v45 }
 0x498   :  { %7787 = vmatpush1.bf16.msra.mxu1 %v9893_v54 }
 0x499   :  { %7789 = vmatprep.subr.bf16.mxu1 %v9896_v5 }
 0x49c   :  { %7791 = vmatpush1.bf16.msra.mxu1 %v9899_v40 }
 0x49d   :  { %7793 = vmatprep.subr.bf16.mxu1 %v9902_v42  ;;  %v11666_v42 = vld [vmem:[#allocation65_spill] sm:$0xff] }
 0x4a0   :  { %7795 = vmatpush1.bf16.msra.mxu1 %v9905_v1  ;;  %v11667_v1 = vld [vmem:[#allocation66_spill] sm:$0xff] }
 0x4a1   :  { %7797 = vmatprep.subr.bf16.mxu1 %v9908_v57  ;;  %v11668_v57 = vld [vmem:[#allocation67_spill] sm:$0xff] }
 0x4a4   :  { %7799 = vmatpush1.bf16.msra.mxu1 %v9911_v59  ;;  %v11669_v59 = vld [vmem:[#allocation68_spill] sm:$0xff] }
 0x4a5   :  { %7801 = vmatprep.subr.bf16.mxu1 %v9914_v47  ;;  %v11670_v47 = vld [vmem:[#allocation69_spill] sm:$0xff] }
 0x4a8   :  { %7803 = vmatpush1.bf16.msra.mxu1 %v9979_v38 }
 0x4a9   :  { %7805 = vmatprep.subr.bf16.mxu1 %v9985_v49 }
 0x4ac   :  { %7807 = vmatpush1.bf16.msra.mxu1 %v9989_v43  ;;  %v11674_v43 = vld [vmem:[#allocation73_spill] sm:$0xff] }
 0x4ad   :  { %7809 = vmatprep.subr.bf16.mxu1 %v9997_v48 }
 0x4b0   :  { %7811 = vmatpush1.bf16.msra.mxu1 %v10001_v50  ;;  %v11672_v50 = vld [vmem:[#allocation71_spill] sm:$0xff] }
 0x4b1   :  { %7845 = vmatprep.subr.bf16.mxu1 %v10022_v3  ;;  %v11676_v3 = vld [vmem:[#allocation75_spill] sm:$0xff] }
 0x546   :  { %v1878_v17 = vpop.f32.mrb[30].mxu1  ;;  %v10205_v0 = vpop.f32.mrb[38].mxu0 }
 0x547   :  { %v2024_v38 = vadd.f32 %v9927_v14, %v1878_v17  ;;  %v10209_v45 = vpop.f32.mrb[31].mxu1  ;;  %v10211_v54 = vpop.f32.mrb[39].mxu0  ;;  %v11671_v14 = vld [vmem:[#allocation70_spill] sm:$0xff] }
 0x548   :  { %v11696_v17 = vld [vmem:[#allocation94_spill] sm:$0xff] }
 0x549   :  { %v2026_v48 = vmul.f32 %v2024_v38, %v1727_v60  ;;  %v2118_v5 = vmul.f32 %v2117_v30, %v2024_v38  ;;  %2366 = vst [vmem:[#allocation22 + $0x28] sm:$0xff] %v2024_v38  ;;  %v11697_v30 = vld [vmem:[#allocation96_spill] sm:$0xff]  ;;  %v11698_v38 = vld [vmem:[#allocation97_spill] sm:$0xff] }
 0x54b   :  { %v2027_v40 = vadd.f32 %v2026_v48, %v2025_v55  ;;  %v11700_v48 = vld [vmem:[#allocation98_spill] sm:$0xff] }
 0x54d   :  { %6910 = vmatmul.mubr.f32.vlgmr.msra.gmra.mrb[40].mxu0 %v2027_v40  ;;  %v11702_v40 = vld [vmem:[#allocation101_spill] sm:$0xff] }
 0x54e   :  { %7815 = vmatpush1.bf16.msra.mxu0 %v9945_v24  ;;  %2321 = vmatprep.mubr.f32.mxu0 %v11624_v21  ;;  %v11673_v24 = vld [vmem:[#allocation72_spill] sm:$0xff] }
 0x54f   :  { %7817 = vmatprep.subr.bf16.mxu0 %v9948_v25 }
 0x552   :  { %7819 = vmatpush1.bf16.msra.mxu0 %v9951_v35  ;;  %v11675_v35 = vld [vmem:[#allocation74_spill] sm:$0xff] }
 0x553   :  { %7821 = vmatprep.subr.bf16.mxu0 %v11666_v42  ;;  %v11703_v42 = vld [vmem:[#allocation103_spill] sm:$0xff] }
 0x556   :  { %7823 = vmatpush1.bf16.msra.mxu0 %v11667_v1  ;;  %v11704_v1 = vld [vmem:[#allocation102_spill] sm:$0xff] }
 0x557   :  { %7825 = vmatprep.subr.bf16.mxu0 %v11668_v57  ;;  %v11705_v57 = vld [vmem:[#allocation104_spill] sm:$0xff] }
 0x55a   :  { %7827 = vmatpush1.bf16.msra.mxu0 %v11669_v59 }
 0x55b   :  { %7829 = vmatprep.subr.bf16.mxu0 %v11670_v47 }
 0x55e   :  { %7831 = vmatpush1.bf16.msra.mxu0 %v11671_v14 }
 0x55f   :  { %7833 = vmatprep.subr.bf16.mxu0 %v11672_v50 }
 0x562   :  { %7835 = vmatpush1.bf16.msra.mxu0 %v11673_v24  ;;  %v11706_v24 = vld [vmem:[#allocation35_spill] sm:$0xff] }
 0x563   :  { %7837 = vmatprep.subr.bf16.mxu0 %v11674_v43 }
 0x566   :  { %v2020_v25 = vpop.f32.mrb[32].mxu1  ;;  %7839 = vmatpush1.bf16.msra.mxu0 %v11675_v35  ;;  %v11707_v35 = vld [vmem:[#allocation39_spill] sm:$0xff] }
 0x567   :  { %v6876_v49 = vpop.f32.mrb[33].mxu1  ;;  %7841 = vmatprep.subr.bf16.mxu0 %v11676_v3  ;;  %v11708_v3 = vld [vmem:[#allocation38_spill] sm:$0xff] }
 0x56a   :  { %7843 = vmatpush1.bf16.msra.mxu0 %v11677_v63 }
 0x56b   :  { %7877 = vmatprep.subr.bf16.mxu0 %v11678_v6  ;;  %v11709_v6 = vld [vmem:[#allocation51_spill] sm:$0xff] }
 0x620   :  { %v2110_v11 = vpop.f32.mrb[40].mxu0 }
 0x621   :  { %v2111_v22 = vadd.f32 %v11679_v52, %v2110_v11  ;;  %v6911_v28 = vpop.f32.mrb[41].mxu0 }
 0x623   :  { %v2116_v31 = vmul.f32 %v2111_v22, %v9847_v34  ;;  %2367 = vst [vmem:[#allocation22 + $0x30] sm:$0xff] %v2111_v22  ;;  %v11684_v34 = vld [vmem:[#allocation82_spill] sm:$0xff] }
 0x625   :  { %v2119_v27 = vadd.f32 %v2118_v5, %v2116_v31  ;;  %v11701_v5 = vld [vmem:[#allocation100_spill] sm:$0xff] }
 0x627   :  { %v2120_v41 = vmul.f32 %v2119_v27, %v1727_v60  ;;  %2368 = vst [vmem:[#allocation22 + $0x38] sm:$0xff] %v2119_v27  ;;  %v11695_v60 = vld [vmem:[#allocation95_spill] sm:$0xff] }
 0x629   :  { %v2121_v61 = vadd.f32 %v2120_v41, %v2025_v55  ;;  %v11699_v55 = vld [vmem:[#allocation99_spill] sm:$0xff] }
 0x62b   :  { %2251 = vmatmul.mubr.f32.vlgmr.msra.gmra.mrb[34].mxu1 %v2121_v61  ;;  %2365 = vst [vmem:[#allocation22 + $0x20] sm:$0xff] %v2121_v61  ;;  %2322 = vmatmul.mubr.f32.vlgmr.msra.gmra.mrb[42].mxu0 %v2121_v61 }
 0x62c   :  { %7847 = vmatpush1.bf16.msra.mxu1 %v11680_v18  ;;  %7879 = vmatpush1.bf16.msra.mxu0 %v11681_v20 }
 0x62d   :  { %7849 = vmatprep.subr.bf16.mxu1 %v11682_v23  ;;  %7881 = vmatprep.subr.bf16.mxu0 %v11683_v4 }
 0x62e   :  { %2522 = vmatprep.mubr.f32.mxu1 %v11624_v21  ;;  %2593 = vmatprep.mubr.f32.mxu0 %v11624_v21 }
 0x630   :  { %7851 = vmatpush1.bf16.msra.mxu1 %v11684_v34  ;;  %7883 = vmatpush1.bf16.msra.mxu0 %v11685_v36 }
 0x631   :  { %7853 = vmatprep.subr.bf16.mxu1 %v11686_v7  ;;  %7885 = vmatprep.subr.bf16.mxu0 %v11687_v33 }
 0x634   :  { %7855 = vmatpush1.bf16.msra.mxu1 %v11688_v37  ;;  %7887 = vmatpush1.bf16.msra.mxu0 %v11689_v15 }
 0x635   :  { %7857 = vmatprep.subr.bf16.mxu1 %v11690_v32  ;;  %7889 = vmatprep.subr.bf16.mxu0 %v11691_v29  ;;  %v2674_v32 = vld [vmem:[#allocation19] sm:$0xff]  ;;  %v2675_v29 = vld [vmem:[#allocation19 + $0x8] sm:$0xff] }
 0x638   :  { %7859 = vmatpush1.bf16.msra.mxu1 %v11692_v58  ;;  %7891 = vmatpush1.bf16.msra.mxu0 %v11693_v51 }
 0x639   :  { %7861 = vmatprep.subr.bf16.mxu1 %v11694_v8  ;;  %7893 = vmatprep.subr.bf16.mxu0 %v11695_v60  ;;  %v10278_v60 = vpack.c.bf16 %v2675_v29, %v2674_v32 }
 0x63c   :  { %7863 = vmatpush1.bf16.msra.mxu1 %v11696_v17  ;;  %7895 = vmatpush1.bf16.msra.mxu0 %v11697_v30  ;;  %v2676_v17 = vld [vmem:[#allocation19 + $0x10] sm:$0xff]  ;;  %v2677_v30 = vld [vmem:[#allocation19 + $0x18] sm:$0xff] }
 0x63d   :  { %7865 = vmatprep.subr.bf16.mxu1 %v11698_v38  ;;  %7897 = vmatprep.subr.bf16.mxu0 %v11699_v55  ;;  %v2678_v38 = vld [vmem:[#allocation19 + $0x20] sm:$0xff]  ;;  %v2679_v55 = vld [vmem:[#allocation19 + $0x28] sm:$0xff] }
 0x640   :  { %7867 = vmatpush1.bf16.msra.mxu1 %v11700_v48  ;;  %7899 = vmatpush1.bf16.msra.mxu0 %v10089_v39  ;;  %v2680_v48 = vld [vmem:[#allocation19 + $0x30] sm:$0xff] }
 0x641   :  { %7869 = vmatprep.subr.bf16.mxu1 %v10093_v19  ;;  %7901 = vmatprep.subr.bf16.mxu0 %v10097_v2 }
 0x644   :  { %7871 = vmatpush1.bf16.msra.mxu1 %v10095_v46  ;;  %7903 = vmatpush1.bf16.msra.mxu0 %v11701_v5  ;;  %v2681_v5 = vld [vmem:[#allocation19 + $0x38] sm:$0xff] }
 0x645   :  { %7873 = vmatprep.subr.bf16.mxu1 %v11702_v40  ;;  %7905 = vmatprep.subr.bf16.mxu0 %v11703_v42  ;;  %v10299_v40 = vpack.c.bf16 %v2681_v5, %v2680_v48  ;;  %v2683_v42 = vld [vmem:[#allocation19 + $0x48] sm:$0xff]  ;;  %v10374_v48 = vld [vmem:[%s11447_s11] ss:$0 sm:$0xff] }
 0x648   :  { %7875 = vmatpush1.bf16.msra.mxu1 %v11704_v1  ;;  %7907 = vmatpush1.bf16.msra.mxu0 %v11705_v57  ;;  %v2685_v57 = vld [vmem:[#allocation19 + $0x58] sm:$0xff] }
 0x649   :  { %7908 = vmatprep.subr.bf16.mxu1 %v11623_v12  ;;  %7932 = vmatprep.subr.bf16.mxu0 %v11623_v12 }
 0x6fe   :  { %v2252_v39 = vpop.f32.mrb[34].mxu1  ;;  %v2323_v19 = vpop.f32.mrb[42].mxu0 }
 0x6ff   :  { %v2253_v2 = vadd.f32 %v2252_v39, %v10209_v45  ;;  %v2324_v46 = vadd.f32 %v2323_v19, %v10211_v54  ;;  %v2254_v59 = vpop.f32.mrb[35].mxu1  ;;  %v2325_v47 = vpop.f32.mrb[43].mxu0 }
 0x700   :  { %v2255_v14 = vadd.f32 %v2254_v59, %v10205_v0  ;;  %v2326_v50 = vadd.f32 %v2325_v47, %v2020_v25  ;;  %v11710_v25 = vld [vmem:[#allocation30_spill] sm:$0xff] }
 0x701   :  { %v2333_v43 = vadd.f32 %v2253_v2, %v11706_v24  ;;  %v2335_v49 = vadd.f32 %v2324_v46, %v11707_v35  ;;  %v328_v27 = vmax.f32 %v11710_v25, 0.0  ;;  %v2689_v2 = vld [vmem:[#allocation19 + $0x78] sm:$0xff]  ;;  %v2773_v59 = vld [vmem:[#allocation21 + $0x28] sm:$0xff]  ;;  %v2772_v24 = vld [vmem:[#allocation21 + $0x20] sm:$0xff] }
 0x702   :  { %v2334_v63 = vadd.f32 %v2255_v14, %v11708_v3  ;;  %v2336_v11 = vadd.f32 %v2326_v50, %v11709_v6  ;;  %v2775_v14 = vld [vmem:[#allocation21 + $0x38] sm:$0xff]  ;;  %v2768_v50 = vld [vmem:[#allocation21] sm:$0xff]  ;;  %v2781_v3 = vld [vmem:[#allocation21 + $0x68] sm:$0xff] }
 0x703   :  { %v6275_v52 = vmul.f32 -1.442695, %v2333_v43  ;;  %v336_v20 = vsub.f32 0.0, %v328_v27  ;;  %v10333_v35 = vpack.c.bf16 %v2772_v24, %v2768_v50  ;;  %v2776_v6 = vld [vmem:[#allocation21 + $0x40] sm:$0xff]  ;;  %v2793_v25 = vld [vmem:[#allocation21 + $0xc8] sm:$0xff]  ;;  %v2778_v50 = vld [vmem:[#allocation21 + $0x50] sm:$0xff] }
 0x704   :  { %v6276_v22 = vmul.f32 -1.442695, %v2334_v63  ;;  %v6277_v45 = vmul.f32 -1.442695, %v2336_v11  ;;  %v2780_v11 = vld [vmem:[#allocation21 + $0x60] sm:$0xff]  ;;  %v2797_v27 = vld [vmem:[#allocation21 + $0xe8] sm:$0xff] }
 0x705   :  { %8955 = vpow2.f32 %v6275_v52  ;;  %v346_v7 = vmul.f32 1.442695, %v336_v20  ;;  %v10340_v52 = vpack.c.bf16 %v2780_v11, %v2776_v6  ;;  %v2801_v20 = vld [vmem:[#allocation21 + $0x108] sm:$0xff]  ;;  %v2782_v24 = vld [vmem:[#allocation21 + $0x70] sm:$0xff] }
 0x706   :  { %8957 = vpow2.f32 %v6276_v22  ;;  %v2785_v22 = vld [vmem:[#allocation21 + $0x88] sm:$0xff]  ;;  %v10394_v6 = vpack.c.bf16 %v2782_v24, %v2778_v50  ;;  %v2814_v50 = vld [vmem:[#allocation21 + $0x170] sm:$0xff] }
 0x707   :  { %8959 = vpow2.f32 %v6277_v45  ;;  %v2789_v45 = vld [vmem:[#allocation21 + $0xa8] sm:$0xff] }
 0x708   :  { %8961 = vtanh.f32 %v2335_v49  ;;  %v2777_v49 = vld [vmem:[#allocation21 + $0x48] sm:$0xff] }
 0x709   :  { %v10338_v63 = vpack.c.bf16 %v2781_v3, %v2777_v49  ;;  %v2787_v49 = vld [vmem:[#allocation21 + $0x98] sm:$0xff] }
 0x70a   :  { %v2791_v3 = vld [vmem:[#allocation21 + $0xb8] sm:$0xff] }
 0x70b   :  { %v10398_v11 = vpack.c.bf16 %v2791_v3, %v2787_v49  ;;  %v2817_v49 = vld [vmem:[#allocation21 + $0x188] sm:$0xff] }
 0x70c   :  { %v2821_v3 = vld [vmem:[#allocation21 + $0x1a8] sm:$0xff] }
 0x70f   :  { %v8956_v28 = vpop.eup %8955 }
 0x710   :  { %v8958_v54 = vpop.eup %8957  ;;  %v2340_v31 = vadd.f32 1.0, %v8956_v28  ;;  %v10343_v28 = vpack.c.bf16 %v2789_v45, %v2785_v22  ;;  %v2786_v22 = vld [vmem:[#allocation21 + $0x90] sm:$0xff] }
 0x711   :  { %v2346_v0 = vadd.f32 1.0, %v8958_v54  ;;  %v8960_v41 = vpop.eup %8959  ;;  %v2784_v54 = vld [vmem:[#allocation21 + $0x80] sm:$0xff]  ;;  %v2790_v45 = vld [vmem:[#allocation21 + $0xb0] sm:$0xff] }
 0x712   :  { %8963 = vrcp.f32 %v2340_v31  ;;  %v8962_v61 = vpop.eup %8961  ;;  %v2353_v34 = vadd.f32 1.0, %v8960_v41  ;;  %v2788_v31 = vld [vmem:[#allocation21 + $0xa0] sm:$0xff]  ;;  %v10349_v41 = vpack.c.bf16 %v2797_v27, %v2793_v25  ;;  %v10401_v25 = vpack.c.bf16 %v2790_v45, %v2786_v22  ;;  %v2819_v22 = vld [vmem:[#allocation21 + $0x198] sm:$0xff] }
 0x713   :  { %8965 = vrcp.f32 %v2346_v0  ;;  %v10346_v0 = vpack.c.bf16 %v2788_v31, %v2784_v54  ;;  %v2795_v54 = vld [vmem:[#allocation21 + $0xd8] sm:$0xff]  ;;  %v10428_v45 = vpack.c.bf16 %v2821_v3, %v2817_v49 }
 0x714   :  { %8967 = vrcp.f32 %v2353_v34  ;;  %v2799_v31 = vld [vmem:[#allocation21 + $0xf8] sm:$0xff] }
 0x715   :  { %v10404_v27 = vpack.c.bf16 %v2799_v31, %v2795_v54  ;;  %v2823_v54 = vld [vmem:[#allocation21 + $0x1b8] sm:$0xff]  ;;  %v2816_v31 = vld [vmem:[#allocation21 + $0x180] sm:$0xff] }
 0x71c   :  { %v8964_v18 = vpop.eup %8963 }
 0x71d   :  { %v8966_v23 = vpop.eup %8965  ;;  %v2358_v4 = vmul.f32 %v8964_v18, %v8962_v61  ;;  %v2792_v61 = vld [vmem:[#allocation21 + $0xc0] sm:$0xff] }
 0x71e   :  { %v2357_v36 = vmul.f32 %v8966_v23, %v10133_v62  ;;  %v8968_v37 = vpop.eup %8967  ;;  %v10285_v62 = vpack.c.bf16 %v2677_v30, %v2676_v17  ;;  %v2796_v18 = vld [vmem:[#allocation21 + $0xe0] sm:$0xff]  ;;  %v2805_v23 = vld [vmem:[#allocation21 + $0x128] sm:$0xff] }
 0x71f   :  { %v10355_v34 = vpack.c.bf16 %v2805_v23, %v2801_v20  ;;  %v2803_v20 = vld [vmem:[#allocation21 + $0x118] sm:$0xff] }
 0x720   :  { %v10275_v33 = vadd.f32 %v2358_v4, %v2357_v36  ;;  %v10352_v4 = vpack.c.bf16 %v2796_v18, %v2792_v61  ;;  %v2800_v36 = vld [vmem:[#allocation21 + $0x100] sm:$0xff]  ;;  %v2794_v61 = vld [vmem:[#allocation21 + $0xd0] sm:$0xff]  ;;  %v2807_v23 = vld [vmem:[#allocation21 + $0x138] sm:$0xff] }
 0x721   :  { %v2798_v18 = vld [vmem:[#allocation21 + $0xf0] sm:$0xff] }
 0x722   :  { %8969 = vtanh.f32 %v10275_v33 }
 0x723   :  { %8971 = vpow2.f32 %v346_v7  ;;  %v2804_v7 = vld [vmem:[#allocation21 + $0x120] sm:$0xff] }
 0x724   :  { %v10358_v32 = vpack.c.bf16 %v2804_v7, %v2800_v36  ;;  %v10407_v36 = vpack.c.bf16 %v2798_v18, %v2794_v61  ;;  %v10410_v7 = vpack.c.bf16 %v2807_v23, %v2803_v20  ;;  %v2820_v61 = vld [vmem:[#allocation21 + $0x1a0] sm:$0xff]  ;;  %v10430_v18 = vpack.c.bf16 %v2823_v54, %v2819_v22  ;;  %v2818_v23 = vld [vmem:[#allocation21 + $0x190] sm:$0xff] }
 0x725   :  { %v10432_v20 = vpack.c.bf16 %v2820_v61, %v2816_v31  ;;  %v2826_v22 = vld [vmem:[#allocation21 + $0x1d0] sm:$0xff] }
 0x726   :  { %11712 = vst [vmem:[#allocation65_spill] sm:$0xff] %v10430_v18  ;;  %v2830_v54 = vld [vmem:[#allocation21 + $0x1f0] sm:$0xff] }
 0x727   :  { %v10447_v31 = vpack.c.bf16 %v2830_v54, %v2826_v22  ;;  %v3030_v22 = vld [vmem:[#allocation18 + $0x30] sm:$0xff] }
 0x729   :  { %11715 = vst [vmem:[#allocation68_spill] sm:$0xff] %v10447_v31 }
 0x72c   :  { %v8970_v15 = vpop.eup %8969 }
 0x72d   :  { %v2361_v58 = vmul.f32 %v8970_v15, %v8968_v37  ;;  %v8972_v51 = vpop.eup %8971  ;;  %v2809_v37 = vld [vmem:[#allocation21 + $0x148] sm:$0xff] }
 0x72e   :  { %v2813_v15 = vld [vmem:[#allocation21 + $0x168] sm:$0xff] }
 0x72f   :  { %v2377_v8 = vmul.f32 %v8972_v51, %v2361_v58  ;;  %v10361_v29 = vpack.c.bf16 %v2813_v15, %v2809_v37  ;;  %v10365_v58 = vld [vmem:[#allocation10 + $0x10] sm:$0xff] }
 0x730   :  { %v2370_v51 = vld [vmem:[#allocation7 + $0x10] sm:$0xff] }
 0x731   :  { %2523 = vmatmul.mubr.f32.vlgmr.msra.gmra.mrb[36].mxu1 %v2377_v8  ;;  %2594 = vmatmul.mubr.f32.vlgmr.msra.gmra.mrb[44].mxu0 %v2377_v8  ;;  %v2802_v37 = vld [vmem:[#allocation21 + $0x110] sm:$0xff] }
 0x732   :  { %7910 = vmatpush3.bf16.msra.mxu1 %v10136_v9  ;;  %6944 = vmatprep.mubr.msk.f32.mxu1 %vm9318_vm0, %v11624_v21  ;;  %v10293_v9 = vpack.c.bf16 %v2679_v55, %v2678_v38  ;;  %v11711_v38 = vld [vmem:[#allocation60_spill] sm:$0xff]  ;;  %v2806_v15 = vld [vmem:[#allocation21 + $0x130] sm:$0xff] }
 0x733   :  { %7911 = vmatprep.subr.bf16.mxu1 %v11623_v12  ;;  %7934 = vmatpush3.bf16.msra.mxu0 %v10278_v60  ;;  %v2763_v55 = vsub.f32 1.0, %v11711_v38 }
 0x734   :  { %7935 = vmatprep.subr.bf16.mxu0 %v11623_v12  ;;  %6979 = vmatprep.mubr.msk.f32.mxu0 %vm9318_vm0, %v11624_v21 }
 0x736   :  { %7913 = vmatpush3.bf16.msra.mxu1 %v10139_v26  ;;  %v2682_v26 = vld [vmem:[#allocation19 + $0x40] sm:$0xff] }
 0x737   :  { %7914 = vmatprep.subr.bf16.mxu1 %v11623_v12  ;;  %7937 = vmatpush3.bf16.msra.mxu0 %v10285_v62  ;;  %v10305_v1 = vpack.c.bf16 %v2683_v42, %v2682_v26  ;;  %v10378_v26 = vmul.f32 %v10365_v58, %v2370_v51  ;;  %v2811_v51 = vld [vmem:[#allocation21 + $0x158] sm:$0xff] }
 0x738   :  { %7938 = vmatprep.subr.bf16.mxu0 %v11623_v12 }
 0x73a   :  { %7916 = vmatpush3.bf16.msra.mxu1 %v10149_v10  ;;  %v2684_v10 = vld [vmem:[#allocation19 + $0x50] sm:$0xff] }
 0x73b   :  { %7917 = vmatprep.subr.bf16.mxu1 %v11623_v12  ;;  %7940 = vmatpush3.bf16.msra.mxu0 %v10293_v9  ;;  %v10311_v39 = vpack.c.bf16 %v2685_v57, %v2684_v10  ;;  %v2770_v57 = vld [vmem:[#allocation21 + $0x10] sm:$0xff] }
 0x73c   :  { %7941 = vmatprep.subr.bf16.mxu0 %v11623_v12 }
 0x73e   :  { %7919 = vmatpush3.bf16.msra.mxu1 %v10155_v16  ;;  %v2686_v16 = vld [vmem:[#allocation19 + $0x60] sm:$0xff] }
 0x73f   :  { %7920 = vmatprep.subr.bf16.mxu1 %v11623_v12  ;;  %7943 = vmatpush3.bf16.msra.mxu0 %v10299_v40 }
 0x740   :  { %7944 = vmatprep.subr.bf16.mxu0 %v11623_v12 }
 0x742   :  { %7922 = vmatpush3.bf16.msra.mxu1 %v10161_v13  ;;  %v2687_v13 = vld [vmem:[#allocation19 + $0x68] sm:$0xff] }
 0x743   :  { %7923 = vmatprep.subr.bf16.mxu1 %v11623_v12  ;;  %7946 = vmatpush3.bf16.msra.mxu0 %v10305_v1  ;;  %v10322_v19 = vpack.c.bf16 %v2687_v13, %v2686_v16  ;;  %v2774_v16 = vld [vmem:[#allocation21 + $0x30] sm:$0xff]  ;;  %v2779_v13 = vld [vmem:[#allocation21 + $0x58] sm:$0xff] }
 0x744   :  { %7947 = vmatprep.subr.bf16.mxu0 %v11623_v12 }
 0x746   :  { %7925 = vmatpush3.bf16.msra.mxu1 %v10167_v44  ;;  %v2688_v44 = vld [vmem:[#allocation19 + $0x70] sm:$0xff] }
 0x747   :  { %7926 = vmatprep.subr.bf16.mxu1 %v11623_v12  ;;  %7949 = vmatpush3.bf16.msra.mxu0 %v10311_v39  ;;  %v10326_v46 = vpack.c.bf16 %v2689_v2, %v2688_v44  ;;  %v2783_v44 = vld [vmem:[#allocation21 + $0x78] sm:$0xff] }
 0x748   :  { %7950 = vmatprep.subr.bf16.mxu0 %v11623_v12 }
 0x74a   :  { %7928 = vmatpush3.bf16.msra.mxu1 %v10173_v53  ;;  %v2769_v53 = vld [vmem:[#allocation21 + $0x8] sm:$0xff] }
 0x74b   :  { %7929 = vmatprep.subr.bf16.mxu1 %v11623_v12  ;;  %7952 = vmatpush3.bf16.msra.mxu0 %v10322_v19  ;;  %v10329_v47 = vpack.c.bf16 %v2773_v59, %v2769_v53  ;;  %v10388_v59 = vpack.c.bf16 %v2774_v16, %v2770_v57 }
 0x74c   :  { %7953 = vmatprep.subr.bf16.mxu0 %v11623_v12 }
 0x74e   :  { %7931 = vmatpush3.bf16.msra.mxu1 %v10179_v56  ;;  %v2771_v56 = vld [vmem:[#allocation21 + $0x18] sm:$0xff] }
 0x74f   :  { %7955 = vmatpush3.bf16.msra.mxu0 %v10326_v46  ;;  %v10331_v43 = vpack.c.bf16 %v2775_v14, %v2771_v56  ;;  %7957 = vmatprep.subr.bf16.mxu1 %v10329_v47  ;;  %v10391_v14 = vpack.c.bf16 %v2783_v44, %v2779_v13  ;;  %v2808_v13 = vld [vmem:[#allocation21 + $0x140] sm:$0xff] }
 0x750   :  { %v2812_v44 = vld [vmem:[#allocation21 + $0x160] sm:$0xff] }
 0x751   :  { %6945 = vmatmul.mubr.f32.vlgmr.msra.gmra.mrb[38].mxu1 %v2377_v8  ;;  %7989 = vmatprep.subr.bf16.mxu0 %v10331_v43  ;;  %v2373_v8 = vsub.f32 1.0, %v10365_v58  ;;  %v3032_v58 = vld [vmem:[#allocation18 + $0x40] sm:$0xff] }
 0x752   :  { %2896 = vmatprep.mubr.f32.mxu1 %v11624_v21  ;;  %7959 = vmatpush1.bf16.msra.mxu1 %v10333_v35 }
 0x753   :  { %7961 = vmatprep.subr.bf16.mxu1 %v10338_v63 }
 0x756   :  { %7963 = vmatpush1.bf16.msra.mxu1 %v10340_v52 }
 0x757   :  { %7965 = vmatprep.subr.bf16.mxu1 %v10343_v28 }
 0x75a   :  { %7967 = vmatpush1.bf16.msra.mxu1 %v10346_v0 }
 0x75b   :  { %7969 = vmatprep.subr.bf16.mxu1 %v10349_v41 }
 0x75e   :  { %7971 = vmatpush1.bf16.msra.mxu1 %v10352_v4 }
 0x75f   :  { %7973 = vmatprep.subr.bf16.mxu1 %v10355_v34 }
 0x762   :  { %7975 = vmatpush1.bf16.msra.mxu1 %v10358_v32 }
 0x763   :  { %7977 = vmatprep.subr.bf16.mxu1 %v10361_v29 }
 0x804   :  { %v2524_v17 = vpop.f32.mrb[36].mxu1  ;;  %v10368_v30 = vpop.f32.mrb[44].mxu0 }
 0x805   :  { %v2670_v5 = vadd.f32 %v10374_v48, %v2524_v17  ;;  %v10380_v42 = vpop.f32.mrb[37].mxu1  ;;  %v10382_v10 = vpop.f32.mrb[45].mxu0  ;;  %v2815_v17 = vld [vmem:[#allocation21 + $0x178] sm:$0xff] }
 0x807   :  { %v2672_v2 = vmul.f32 %v2670_v5, %v2373_v8  ;;  %v10386_v53 = vmul.f32 %v2763_v55, %v2670_v5  ;;  %3012 = vst [vmem:[#allocation22 + $0x48] sm:$0xff] %v2670_v5  ;;  %v10413_v55 = vpack.c.bf16 %v2806_v15, %v2802_v37  ;;  %v10416_v5 = vpack.c.bf16 %v2815_v17, %v2811_v51  ;;  %v2822_v37 = vld [vmem:[#allocation21 + $0x1b0] sm:$0xff]  ;;  %v2825_v51 = vld [vmem:[#allocation21 + $0x1c8] sm:$0xff] }
 0x808   :  { %v10435_v15 = vpack.c.bf16 %v2822_v37, %v2818_v23  ;;  %v2829_v17 = vld [vmem:[#allocation21 + $0x1e8] sm:$0xff]  ;;  %v10455_v23 = vld [vmem:[%s11449_s13] ss:$0 sm:$0xff] }
 0x809   :  { %v2673_v56 = vadd.f32 %v2672_v2, %v10378_v26  ;;  %v2810_v2 = vld [vmem:[#allocation21 + $0x150] sm:$0xff]  ;;  %11716 = vst [vmem:[#allocation69_spill] sm:$0xff] %v10455_v23 }
 0x80a   :  { %v10424_v24 = vpack.c.bf16 %v2814_v50, %v2810_v2  ;;  %11713 = vst [vmem:[#allocation66_spill] sm:$0xff] %v10435_v15  ;;  %v2824_v2 = vld [vmem:[#allocation21 + $0x1c0] sm:$0xff] }
 0x80b   :  { %6980 = vmatmul.mubr.f32.vlgmr.msra.gmra.mrb[46].mxu0 %v2673_v56  ;;  %v10422_v56 = vpack.c.bf16 %v2812_v44, %v2808_v13  ;;  %v10440_v13 = vpack.c.bf16 %v2829_v17, %v2825_v51  ;;  %v2831_v44 = vld [vmem:[#allocation21 + $0x1f8] sm:$0xff]  ;;  %v2828_v50 = vld [vmem:[#allocation21 + $0x1e0] sm:$0xff] }
 0x80c   :  { %7991 = vmatpush1.bf16.msra.mxu0 %v10388_v59  ;;  %2967 = vmatprep.mubr.f32.mxu0 %v11624_v21  ;;  %v10444_v3 = vpack.c.bf16 %v2828_v50, %v2824_v2  ;;  %v3025_v50 = vld [vmem:[#allocation18 + $0x8] sm:$0xff] }
 0x80d   :  { %7993 = vmatprep.subr.bf16.mxu0 %v10391_v14  ;;  %7979 = vmatpush1.bf16.msra.mxu1 %v10422_v56  ;;  %v10465_v54 = vpack.c.bf16 %v3030_v22, %v3025_v50  ;;  %v3034_v50 = vld [vmem:[#allocation18 + $0x50] sm:$0xff]  ;;  %v3039_v22 = vld [vmem:[#allocation18 + $0x78] sm:$0xff] }
 0x80e   :  { %7981 = vmatprep.subr.bf16.mxu1 %v10428_v45 }
 0x810   :  { %7995 = vmatpush1.bf16.msra.mxu0 %v10394_v6 }
 0x811   :  { %7997 = vmatprep.subr.bf16.mxu0 %v10398_v11  ;;  %7983 = vmatpush1.bf16.msra.mxu1 %v10432_v20 }
 0x812   :  { %7985 = vmatprep.subr.bf16.mxu1 %v10440_v13 }
 0x814   :  { %7999 = vmatpush1.bf16.msra.mxu0 %v10401_v25 }
 0x815   :  { %8001 = vmatprep.subr.bf16.mxu0 %v10404_v27  ;;  %7987 = vmatpush1.bf16.msra.mxu1 %v10444_v3 }
 0x816   :  { %8021 = vmatprep.subr.bf16.mxu1 %v10465_v54 }
 0x818   :  { %8003 = vmatpush1.bf16.msra.mxu0 %v10407_v36 }
 0x819   :  { %8005 = vmatprep.subr.bf16.mxu0 %v10410_v7 }
 0x81c   :  { %8007 = vmatpush1.bf16.msra.mxu0 %v10413_v55 }
 0x81d   :  { %8009 = vmatprep.subr.bf16.mxu0 %v10416_v5 }
 0x820   :  { %8011 = vmatpush1.bf16.msra.mxu0 %v10424_v24 }
 0x821   :  { %8013 = vmatprep.subr.bf16.mxu0 %v10430_v18  ;;  %v3102_v18 = vld [vmem:[#allocation18 + $0x270] sm:$0xff] }
 0x824   :  { %v10420_v57 = vpop.f32.mrb[38].mxu1  ;;  %8015 = vmatpush1.bf16.msra.mxu0 %v10435_v15  ;;  %v3094_v15 = vld [vmem:[#allocation18 + $0x230] sm:$0xff] }
 0x825   :  { %v6946_v16 = vpop.f32.mrb[39].mxu1 }
 0x826   :  { %v2827_v16 = vld [vmem:[#allocation21 + $0x1d8] sm:$0xff] }
 0x827   :  { %v10442_v49 = vpack.c.bf16 %v2831_v44, %v2827_v16 }
 0x829   :  { %11714 = vst [vmem:[#allocation67_spill] sm:$0xff] %v10442_v49  ;;  %8017 = vmatprep.subr.bf16.mxu0 %v10442_v49 }
 0x82a   :  { %8019 = vmatpush1.bf16.msra.mxu0 %v10447_v31  ;;  %v3079_v31 = vld [vmem:[#allocation18 + $0x1b8] sm:$0xff] }
 0x8de   :  { %v2756_v61 = vpop.f32.mrb[46].mxu0 }
 0x8df   :  { %v2757_v37 = vadd.f32 %v10455_v23, %v2756_v61  ;;  %v6981_v51 = vpop.f32.mrb[47].mxu0  ;;  %v3029_v61 = vld [vmem:[#allocation18 + $0x28] sm:$0xff]  ;;  %v3042_v23 = vld [vmem:[#allocation18 + $0x90] sm:$0xff] }
 0x8e0   :  { %v3031_v51 = vld [vmem:[#allocation18 + $0x38] sm:$0xff] }
 0x8e1   :  { %v2762_v17 = vmul.f32 %v2757_v37, %v11711_v38  ;;  %3013 = vst [vmem:[#allocation22 + $0x50] sm:$0xff] %v2757_v37  ;;  %v3024_v38 = vld [vmem:[#allocation18] sm:$0xff] }
 0x8e2   :  { %v10467_v37 = vpack.c.bf16 %v3029_v61, %v3024_v38  ;;  %v3037_v38 = vld [vmem:[#allocation18 + $0x68] sm:$0xff]  ;;  %v10479_v61 = vpack.c.bf16 %v3039_v22, %v3034_v50  ;;  %v3047_v22 = vld [vmem:[#allocation18 + $0xb8] sm:$0xff] }
 0x8e3   :  { %v2765_v16 = vadd.f32 %v10386_v53, %v2762_v17  ;;  %v3027_v53 = vld [vmem:[#allocation18 + $0x18] sm:$0xff]  ;;  %v3049_v50 = vld [vmem:[#allocation18 + $0xc8] sm:$0xff] }
 0x8e4   :  { %11717 = vst [vmem:[#allocation70_spill] sm:$0xff] %v10467_v37  ;;  %11721 = vst [vmem:[#allocation74_spill] sm:$0xff] %v10479_v61 }
 0x8e5   :  { %v2766_v44 = vmul.f32 %v2765_v16, %v2373_v8  ;;  %3014 = vst [vmem:[#allocation22 + $0x58] sm:$0xff] %v2765_v16  ;;  %v3026_v8 = vld [vmem:[#allocation18 + $0x10] sm:$0xff]  ;;  %v3035_v16 = vld [vmem:[#allocation18 + $0x58] sm:$0xff] }
 0x8e6   :  { %v10472_v17 = vpack.c.bf16 %v3031_v51, %v3026_v8  ;;  %v10482_v8 = vpack.c.bf16 %v3042_v23, %v3037_v38  ;;  %v3046_v23 = vld [vmem:[#allocation18 + $0xb0] sm:$0xff]  ;;  %v3051_v38 = vld [vmem:[#allocation18 + $0xd8] sm:$0xff] }
 0x8e7   :  { %v2767_v2 = vadd.f32 %v2766_v44, %v10378_v26  ;;  %v10470_v26 = vpack.c.bf16 %v3032_v58, %v3027_v53  ;;  %v3040_v44 = vld [vmem:[#allocation18 + $0x80] sm:$0xff]  ;;  %v3041_v58 = vld [vmem:[#allocation18 + $0x88] sm:$0xff] }
 0x8e8   :  { %11719 = vst [vmem:[#allocation72_spill] sm:$0xff] %v10472_v17  ;;  %v3036_v53 = vld [vmem:[#allocation18 + $0x60] sm:$0xff]  ;;  %11722 = vst [vmem:[#allocation75_spill] sm:$0xff] %v10482_v8 }
 0x8e9   :  { %2897 = vmatmul.mubr.f32.vlgmr.msra.gmra.mrb[40].mxu1 %v2767_v2  ;;  %3011 = vst [vmem:[#allocation22 + $0x40] sm:$0xff] %v2767_v2  ;;  %2968 = vmatmul.mubr.f32.vlgmr.msra.gmra.mrb[48].mxu0 %v2767_v2  ;;  %11718 = vst [vmem:[#allocation71_spill] sm:$0xff] %v10470_v26  ;;  %v10476_v2 = vpack.c.bf16 %v3040_v44, %v3035_v16  ;;  %v10484_v51 = vpack.c.bf16 %v3041_v58, %v3036_v53  ;;  %v3045_v16 = vld [vmem:[#allocation18 + $0xa8] sm:$0xff]  ;;  %v3050_v44 = vld [vmem:[#allocation18 + $0xd0] sm:$0xff] }
 0x8ea   :  { %3168 = vmatprep.mubr.f32.mxu1 %v11624_v21  ;;  %3239 = vmatprep.mubr.f32.mxu0 %v11624_v21  ;;  %v10496_v58 = vpack.c.bf16 %v3051_v38, %v3046_v23 }
 0x8eb   :  { %8023 = vmatpush1.bf16.msra.mxu1 %v10467_v37  ;;  %8053 = vmatprep.subr.bf16.mxu0 %v10470_v26  ;;  %11720 = vst [vmem:[#allocation73_spill] sm:$0xff] %v10476_v2  ;;  %11723 = vst [vmem:[#allocation76_spill] sm:$0xff] %v10484_v51  ;;  %v10488_v37 = vpack.c.bf16 %v3050_v44, %v3045_v16  ;;  %v3055_v16 = vld [vmem:[#allocation18 + $0xf8] sm:$0xff]  ;;  %v3060_v44 = vld [vmem:[#allocation18 + $0x120] sm:$0xff] }
 0x8ec   :  { %8055 = vmatpush1.bf16.msra.mxu0 %v10472_v17  ;;  %8025 = vmatprep.subr.bf16.mxu1 %v10476_v2  ;;  %v3044_v17 = vld [vmem:[#allocation18 + $0xa0] sm:$0xff]  ;;  %11727 = vst [vmem:[#allocation80_spill] sm:$0xff] %v10496_v58 }
 0x8ed   :  { %8057 = vmatprep.subr.bf16.mxu0 %v10482_v8  ;;  %11724 = vst [vmem:[#allocation79_spill] sm:$0xff] %v10488_v37  ;;  %v10491_v26 = vpack.c.bf16 %v3049_v50, %v3044_v17  ;;  %v3052_v2 = vld [vmem:[#allocation18 + $0xe0] sm:$0xff]  ;;  %v3059_v17 = vld [vmem:[#allocation18 + $0x118] sm:$0xff]  ;;  %v3057_v50 = vld [vmem:[#allocation18 + $0x108] sm:$0xff] }
 0x8ee   :  { %v10494_v53 = vpack.c.bf16 %v3052_v2, %v3047_v22  ;;  %v3056_v2 = vld [vmem:[#allocation18 + $0x100] sm:$0xff]  ;;  %v3061_v22 = vld [vmem:[#allocation18 + $0x128] sm:$0xff] }
 0x8ef   :  { %8027 = vmatpush1.bf16.msra.mxu1 %v10479_v61  ;;  %11725 = vst [vmem:[#allocation77_spill] sm:$0xff] %v10491_v26  ;;  %v10500_v61 = vpack.c.bf16 %v3060_v44, %v3055_v16  ;;  %v10508_v38 = vpack.c.bf16 %v3061_v22, %v3056_v2  ;;  %v3065_v16 = vld [vmem:[#allocation18 + $0x148] sm:$0xff]  ;;  %v3070_v44 = vld [vmem:[#allocation18 + $0x170] sm:$0xff] }
 0x8f0   :  { %8059 = vmatpush1.bf16.msra.mxu0 %v10484_v51  ;;  %8029 = vmatprep.subr.bf16.mxu1 %v10488_v37  ;;  %11726 = vst [vmem:[#allocation78_spill] sm:$0xff] %v10494_v53  ;;  %v3054_v51 = vld [vmem:[#allocation18 + $0xf0] sm:$0xff] }
 0x8f1   :  { %8061 = vmatprep.subr.bf16.mxu0 %v10494_v53  ;;  %11728 = vst [vmem:[#allocation81_spill] sm:$0xff] %v10500_v61  ;;  %v10503_v8 = vpack.c.bf16 %v3059_v17, %v3054_v51  ;;  %v3062_v37 = vld [vmem:[#allocation18 + $0x130] sm:$0xff]  ;;  %11731 = vst [vmem:[#allocation84_spill] sm:$0xff] %v10508_v38  ;;  %v3069_v51 = vld [vmem:[#allocation18 + $0x168] sm:$0xff] }
 0x8f2   :  { %v10506_v23 = vpack.c.bf16 %v3062_v37, %v3057_v50  ;;  %v3067_v17 = vld [vmem:[#allocation18 + $0x158] sm:$0xff]  ;;  %v3066_v37 = vld [vmem:[#allocation18 + $0x150] sm:$0xff] }
 0x8f3   :  { %8031 = vmatpush1.bf16.msra.mxu1 %v10491_v26  ;;  %11729 = vst [vmem:[#allocation83_spill] sm:$0xff] %v10503_v8  ;;  %v10512_v26 = vpack.c.bf16 %v3070_v44, %v3065_v16  ;;  %v3071_v50 = vld [vmem:[#allocation18 + $0x178] sm:$0xff]  ;;  %v3074_v16 = vld [vmem:[#allocation18 + $0x190] sm:$0xff] }
 0x8f4   :  { %8063 = vmatpush1.bf16.msra.mxu0 %v10496_v58  ;;  %8033 = vmatprep.subr.bf16.mxu1 %v10500_v61  ;;  %11730 = vst [vmem:[#allocation82_spill] sm:$0xff] %v10506_v23  ;;  %v3064_v58 = vld [vmem:[#allocation18 + $0x140] sm:$0xff]  ;;  %v10520_v22 = vpack.c.bf16 %v3071_v50, %v3066_v37  ;;  %v3085_v37 = vld [vmem:[#allocation18 + $0x1e8] sm:$0xff] }
 0x8f5   :  { %8065 = vmatprep.subr.bf16.mxu0 %v10506_v23  ;;  %11732 = vst [vmem:[#allocation85_spill] sm:$0xff] %v10512_v26  ;;  %v10515_v53 = vpack.c.bf16 %v3069_v51, %v3064_v58  ;;  %v3072_v61 = vld [vmem:[#allocation18 + $0x180] sm:$0xff]  ;;  %v3082_v58 = vld [vmem:[#allocation18 + $0x1d0] sm:$0xff]  ;;  %v10526_v51 = vpack.c.bf16 %v3079_v31, %v3074_v16  ;;  %v3087_v31 = vld [vmem:[#allocation18 + $0x1f8] sm:$0xff] }
 0x8f6   :  { %v10518_v2 = vpack.c.bf16 %v3072_v61, %v3067_v17  ;;  %11735 = vst [vmem:[#allocation88_spill] sm:$0xff] %v10520_v22  ;;  %v3080_v23 = vld [vmem:[#allocation18 + $0x1c0] sm:$0xff]  ;;  %v3081_v17 = vld [vmem:[#allocation18 + $0x1c8] sm:$0xff] }
 0x8f7   :  { %8035 = vmatpush1.bf16.msra.mxu1 %v10503_v8  ;;  %11733 = vst [vmem:[#allocation87_spill] sm:$0xff] %v10515_v53  ;;  %v3075_v8 = vld [vmem:[#allocation18 + $0x198] sm:$0xff]  ;;  %v3076_v61 = vld [vmem:[#allocation18 + $0x1a0] sm:$0xff] }
 0x8f8   :  { %8067 = vmatpush1.bf16.msra.mxu0 %v10508_v38  ;;  %8037 = vmatprep.subr.bf16.mxu1 %v10512_v26  ;;  %11734 = vst [vmem:[#allocation86_spill] sm:$0xff] %v10518_v2  ;;  %v10523_v44 = vpack.c.bf16 %v3080_v23, %v3075_v8  ;;  %v3077_v38 = vld [vmem:[#allocation18 + $0x1a8] sm:$0xff]  ;;  %v10532_v50 = vpack.c.bf16 %v3081_v17, %v3076_v61  ;;  %v3090_v8 = vld [vmem:[#allocation18 + $0x210] sm:$0xff]  ;;  %v3084_v23 = vld [vmem:[#allocation18 + $0x1e0] sm:$0xff] }
 0x8f9   :  { %8069 = vmatprep.subr.bf16.mxu0 %v10518_v2  ;;  %v10528_v49 = vpack.c.bf16 %v3082_v58, %v3077_v38  ;;  %v10535_v26 = vpack.c.bf16 %v3090_v8, %v3085_v37  ;;  %v3092_v16 = vld [vmem:[#allocation18 + $0x220] sm:$0xff]  ;;  %v3086_v38 = vld [vmem:[#allocation18 + $0x1f0] sm:$0xff]  ;;  %v3097_v37 = vld [vmem:[#allocation18 + $0x248] sm:$0xff] }
 0x8fa   :  { %11736 = vst [vmem:[#allocation89_spill] sm:$0xff] %v10523_v44  ;;  %11738 = vst [vmem:[#allocation90_spill] sm:$0xff] %v10532_v50  ;;  %v10540_v2 = vpack.c.bf16 %v3092_v16, %v3087_v31  ;;  %v3100_v61 = vld [vmem:[#allocation18 + $0x260] sm:$0xff]  ;;  %v3101_v31 = vld [vmem:[#allocation18 + $0x268] sm:$0xff] }
 0x8fb   :  { %8039 = vmatpush1.bf16.msra.mxu1 %v10515_v53  ;;  %11737 = vst [vmem:[#allocation91_spill] sm:$0xff] %v10528_v49  ;;  %v3089_v53 = vld [vmem:[#allocation18 + $0x208] sm:$0xff]  ;;  %11739 = vst [vmem:[#allocation92_spill] sm:$0xff] %v10535_v26 }
 0x8fc   :  { %8071 = vmatpush1.bf16.msra.mxu0 %v10520_v22  ;;  %8041 = vmatprep.subr.bf16.mxu1 %v10523_v44  ;;  %v10538_v58 = vpack.c.bf16 %v3089_v53, %v3084_v23  ;;  %11741 = vst [vmem:[#allocation95_spill] sm:$0xff] %v10540_v2  ;;  %v3091_v22 = vld [vmem:[#allocation18 + $0x218] sm:$0xff]  ;;  %v10549_v53 = vpack.c.bf16 %v3102_v18, %v3097_v37  ;;  %v3096_v23 = vld [vmem:[#allocation18 + $0x240] sm:$0xff] }
 0x8fd   :  { %8073 = vmatprep.subr.bf16.mxu0 %v10528_v49  ;;  %v3095_v44 = vld [vmem:[#allocation18 + $0x238] sm:$0xff]  ;;  %v10546_v8 = vpack.c.bf16 %v3091_v22, %v3086_v38 }
 0x8fe   :  { %11740 = vst [vmem:[#allocation93_spill] sm:$0xff] %v10538_v58  ;;  %v10543_v17 = vpack.c.bf16 %v3100_v61, %v3095_v44  ;;  %v3099_v49 = vld [vmem:[#allocation18 + $0x258] sm:$0xff]  ;;  %11744 = vst [vmem:[#allocation97_spill] sm:$0xff] %v10549_v53  ;;  %v10556_v44 = vpack.c.bf16 %v3101_v31, %v3096_v23 }
 0x8ff   :  { %8043 = vmatpush1.bf16.msra.mxu1 %v10526_v51  ;;  %11743 = vst [vmem:[#allocation96_spill] sm:$0xff] %v10546_v8  ;;  %v10552_v16 = vpack.c.bf16 %v3099_v49, %v3094_v15  ;;  %v11747_v31 = vld [vmem:[#allocation36_spill] sm:$0xff] }
 0x900   :  { %8045 = vmatprep.subr.bf16.mxu1 %v10535_v26  ;;  %11742 = vst [vmem:[#allocation94_spill] sm:$0xff] %v10543_v17  ;;  %8075 = vmatpush1.bf16.msra.mxu0 %v10532_v50  ;;  %11746 = vst [vmem:[#allocation98_spill] sm:$0xff] %v10556_v44 }
 0x901   :  { %8077 = vmatprep.subr.bf16.mxu0 %v10540_v2  ;;  %11745 = vst [vmem:[#allocation99_spill] sm:$0xff] %v10552_v16 }
 0x903   :  { %8047 = vmatpush1.bf16.msra.mxu1 %v10538_v58  ;;  %v11750_v58 = vld [vmem:[#allocation55_spill] sm:$0xff] }
 0x904   :  { %8049 = vmatprep.subr.bf16.mxu1 %v10543_v17  ;;  %8079 = vmatpush1.bf16.msra.mxu0 %v10546_v8  ;;  %v11749_v8 = vld [vmem:[#allocation41_spill] sm:$0xff] }
 0x905   :  { %8081 = vmatprep.subr.bf16.mxu0 %v10549_v53  ;;  %v11748_v53 = vld [vmem:[#allocation42_spill] sm:$0xff] }
 0x907   :  { %8051 = vmatpush1.bf16.msra.mxu1 %v10552_v16 }
 0x908   :  { %8084 = vmatprep.subr.bf16.mxu1 %v11623_v12  ;;  %8083 = vmatpush1.bf16.msra.mxu0 %v10556_v44 }
 0x909   :  { %8108 = vmatprep.subr.bf16.mxu0 %v11623_v12 }
 0x9bc   :  { %v2898_v18 = vpop.f32.mrb[40].mxu1  ;;  %v2969_v22 = vpop.f32.mrb[48].mxu0 }
 0x9bd   :  { %v2899_v15 = vadd.f32 %v2898_v18, %v10380_v42  ;;  %v2970_v49 = vadd.f32 %v2969_v22, %v10382_v10  ;;  %v2900_v38 = vpop.f32.mrb[41].mxu1  ;;  %v2971_v61 = vpop.f32.mrb[49].mxu0 }
 0x9be   :  { %v2901_v37 = vadd.f32 %v2900_v38, %v10368_v30  ;;  %v2972_v23 = vadd.f32 %v2971_v61, %v10420_v57  ;;  %v11751_v57 = vld [vmem:[#allocation29_spill] sm:$0xff] }
 0x9bf   :  { %v2979_v16 = vadd.f32 %v2899_v15, %v11747_v31  ;;  %v2981_v17 = vadd.f32 %v2970_v49, %v11748_v53  ;;  %v329_v15 = vmax.f32 %v11751_v57, 0.0  ;;  %v3028_v61 = vld [vmem:[#allocation18 + $0x20] sm:$0xff] }
 0x9c0   :  { %v2980_v44 = vadd.f32 %v2901_v37, %v11749_v8  ;;  %v2982_v2 = vadd.f32 %v2972_v23, %v11750_v58  ;;  %v3033_v37 = vld [vmem:[#allocation18 + $0x48] sm:$0xff]  ;;  %v3048_v57 = vld [vmem:[#allocation18 + $0xc0] sm:$0xff] }
 0x9c1   :  { %v6278_v26 = vmul.f32 -1.442695, %v2979_v16  ;;  %v337_v38 = vsub.f32 0.0, %v329_v15  ;;  %v3053_v15 = vld [vmem:[#allocation18 + $0xe8] sm:$0xff] }
 0x9c2   :  { %v6279_v50 = vmul.f32 -1.442695, %v2980_v44  ;;  %v6280_v42 = vmul.f32 -1.442695, %v2982_v2 }
 0x9c3   :  { %8973 = vpow2.f32 %v6278_v26  ;;  %v348_v2 = vmul.f32 1.442695, %v337_v38  ;;  %v3068_v38 = vld [vmem:[#allocation18 + $0x160] sm:$0xff] }
 0x9c4   :  { %8975 = vpow2.f32 %v6279_v50 }
 0x9c5   :  { %8977 = vpow2.f32 %v6280_v42 }
 0x9c6   :  { %8979 = vtanh.f32 %v2981_v17 }
 0x9cd   :  { %v8974_v10 = vpop.eup %8973 }
 0x9ce   :  { %v8976_v18 = vpop.eup %8975  ;;  %v2986_v22 = vadd.f32 1.0, %v8974_v10  ;;  %v10576_v10 = vpack.c.bf16 %v3033_v37, %v3028_v61  ;;  %v3103_v61 = vld [vmem:[#allocation18 + $0x278] sm:$0xff] }
 0x9cf   :  { %v2992_v30 = vadd.f32 1.0, %v8976_v18  ;;  %v8978_v53 = vpop.eup %8977 }
 0x9d0   :  { %8981 = vrcp.f32 %v2986_v22  ;;  %v8980_v49 = vpop.eup %8979  ;;  %v2999_v44 = vadd.f32 1.0, %v8978_v53  ;;  %v3038_v22 = vld [vmem:[#allocation18 + $0x70] sm:$0xff]  ;;  %v10589_v53 = vpack.c.bf16 %v3053_v15, %v3048_v57  ;;  %v11770_v57 = vld [vmem:[#allocation82_spill] sm:$0xff] }
 0x9d1   :  { %8983 = vrcp.f32 %v2992_v30  ;;  %v3043_v30 = vld [vmem:[#allocation18 + $0x98] sm:$0xff]  ;;  %v11771_v15 = vld [vmem:[#allocation83_spill] sm:$0xff] }
 0x9d2   :  { %8985 = vrcp.f32 %v2999_v44  ;;  %v3083_v44 = vld [vmem:[#allocation18 + $0x1d8] sm:$0xff] }
 0x9da   :  { %v8982_v8 = vpop.eup %8981 }
 0x9db   :  { %v8984_v58 = vpop.eup %8983  ;;  %v3004_v16 = vmul.f32 %v8982_v8, %v8980_v49  ;;  %v3058_v49 = vld [vmem:[#allocation18 + $0x110] sm:$0xff]  ;;  %v3063_v8 = vld [vmem:[#allocation18 + $0x138] sm:$0xff] }
 0x9dc   :  { %v3003_v26 = vmul.f32 %v8984_v58, %v10275_v33  ;;  %v8986_v17 = vpop.eup %8985  ;;  %v10579_v33 = vpack.c.bf16 %v3043_v30, %v3038_v22  ;;  %v3073_v58 = vld [vmem:[#allocation18 + $0x188] sm:$0xff]  ;;  %v11768_v22 = vld [vmem:[#allocation80_spill] sm:$0xff]  ;;  %v11769_v30 = vld [vmem:[#allocation81_spill] sm:$0xff] }
 0x9de   :  { %v10573_v50 = vadd.f32 %v3004_v16, %v3003_v26  ;;  %v10601_v16 = vpack.c.bf16 %v3073_v58, %v3068_v38  ;;  %v11774_v38 = vld [vmem:[#allocation86_spill] sm:$0xff]  ;;  %v11775_v58 = vld [vmem:[#allocation87_spill] sm:$0xff] }
 0x9e0   :  { %8987 = vtanh.f32 %v10573_v50 }
 0x9e1   :  { %8989 = vpow2.f32 %v348_v2  ;;  %v3093_v2 = vld [vmem:[#allocation18 + $0x228] sm:$0xff] }
 0x9ea   :  { %v8988_v23 = vpop.eup %8987 }
 0x9eb   :  { %v3007_v31 = vmul.f32 %v8988_v23, %v8986_v17  ;;  %v8990_v42 = vpop.eup %8989  ;;  %v11764_v23 = vld [vmem:[#allocation76_spill] sm:$0xff] }
 0x9ed   :  { %v3023_v18 = vmul.f32 %v8990_v42, %v3007_v31  ;;  %v11765_v31 = vld [vmem:[#allocation79_spill] sm:$0xff]  ;;  %v11766_v42 = vld [vmem:[#allocation78_spill] sm:$0xff] }
 0x9ef   :  { %3169 = vmatmul.mubr.f32.vlgmr.msra.gmra.mrb[42].mxu1 %v3023_v18  ;;  %3240 = vmatmul.mubr.f32.vlgmr.msra.gmra.mrb[50].mxu0 %v3023_v18 }
 0x9f0   :  { %8086 = vmatpush3.bf16.msra.mxu1 %v10576_v10  ;;  %7014 = vmatprep.mubr.msk.f32.mxu1 %vm9318_vm0, %v11624_v21 }
 0x9f1   :  { %8087 = vmatprep.subr.bf16.mxu1 %v11623_v12  ;;  %8110 = vmatpush3.bf16.msra.mxu0 %v10278_v60  ;;  %v10595_v60 = vpack.c.bf16 %v3063_v8, %v3058_v49  ;;  %v11772_v49 = vld [vmem:[#allocation84_spill] sm:$0xff]  ;;  %v11773_v8 = vld [vmem:[#allocation85_spill] sm:$0xff] }
 0x9f2   :  { %8111 = vmatprep.subr.bf16.mxu0 %v11623_v12  ;;  %7049 = vmatprep.mubr.msk.f32.mxu0 %vm9318_vm0, %v11624_v21 }
 0x9f4   :  { %8089 = vmatpush3.bf16.msra.mxu1 %v10579_v33 }
 0x9f5   :  { %8090 = vmatprep.subr.bf16.mxu1 %v11623_v12  ;;  %8113 = vmatpush3.bf16.msra.mxu0 %v10285_v62  ;;  %v3078_v62 = vld [vmem:[#allocation18 + $0x1b0] sm:$0xff] }
 0x9f6   :  { %8114 = vmatprep.subr.bf16.mxu0 %v11623_v12  ;;  %v10607_v26 = vpack.c.bf16 %v3083_v44, %v3078_v62  ;;  %v11776_v62 = vld [vmem:[#allocation88_spill] sm:$0xff]  ;;  %v11777_v44 = vld [vmem:[#allocation89_spill] sm:$0xff] }
 0x9f8   :  { %8092 = vmatpush3.bf16.msra.mxu1 %v10589_v53 }
 0x9f9   :  { %8093 = vmatprep.subr.bf16.mxu1 %v11623_v12  ;;  %8116 = vmatpush3.bf16.msra.mxu0 %v10293_v9  ;;  %v3088_v9 = vld [vmem:[#allocation18 + $0x200] sm:$0xff] }
 0x9fa   :  { %8117 = vmatprep.subr.bf16.mxu0 %v11623_v12  ;;  %v10613_v17 = vpack.c.bf16 %v3093_v2, %v3088_v9  ;;  %v11778_v9 = vld [vmem:[#allocation91_spill] sm:$0xff]  ;;  %v11779_v2 = vld [vmem:[#allocation90_spill] sm:$0xff] }
 0x9fc   :  { %8095 = vmatpush3.bf16.msra.mxu1 %v10595_v60 }
 0x9fd   :  { %8096 = vmatprep.subr.bf16.mxu1 %v11623_v12  ;;  %8119 = vmatpush3.bf16.msra.mxu0 %v10299_v40  ;;  %v3098_v40 = vld [vmem:[#allocation18 + $0x250] sm:$0xff] }
 0x9fe   :  { %8120 = vmatprep.subr.bf16.mxu0 %v11623_v12  ;;  %v10619_v37 = vpack.c.bf16 %v3103_v61, %v3098_v40  ;;  %v11780_v40 = vld [vmem:[#allocation92_spill] sm:$0xff]  ;;  %v11781_v61 = vld [vmem:[#allocation95_spill] sm:$0xff] }
 0xa00   :  { %8098 = vmatpush3.bf16.msra.mxu1 %v10601_v16 }
 0xa01   :  { %8099 = vmatprep.subr.bf16.mxu1 %v11623_v12  ;;  %8122 = vmatpush3.bf16.msra.mxu0 %v10305_v1  ;;  %v3018_v1 = vld [vmem:[#allocation10 + $0x18] sm:$0xff] }
 0xa02   :  { %8123 = vmatprep.subr.bf16.mxu0 %v11623_v12 }
 0xa04   :  { %8101 = vmatpush3.bf16.msra.mxu1 %v10607_v26 }
 0xa05   :  { %8102 = vmatprep.subr.bf16.mxu1 %v11623_v12  ;;  %8125 = vmatpush3.bf16.msra.mxu0 %v10311_v39  ;;  %v3016_v39 = vld [vmem:[#allocation7 + $0x18] sm:$0xff] }
 0xa06   :  { %8126 = vmatprep.subr.bf16.mxu0 %v11623_v12 }
 0xa08   :  { %8104 = vmatpush3.bf16.msra.mxu1 %v10613_v17 }
 0xa09   :  { %8105 = vmatprep.subr.bf16.mxu1 %v11623_v12  ;;  %8128 = vmatpush3.bf16.msra.mxu0 %v10322_v19  ;;  %v3019_v19 = vsub.f32 1.0, %v3018_v1 }
 0xa0a   :  { %8129 = vmatprep.subr.bf16.mxu0 %v11623_v12 }
 0xa0c   :  { %8107 = vmatpush3.bf16.msra.mxu1 %v10619_v37 }
 0xa0d   :  { %8131 = vmatpush3.bf16.msra.mxu0 %v10326_v46  ;;  %8133 = vmatprep.subr.bf16.mxu1 %v10329_v47 }
 0xa0e   :  { %8165 = vmatprep.subr.bf16.mxu0 %v10331_v43  ;;  %v11752_v43 = vld [vmem:[#allocation59_spill] sm:$0xff] }
 0xa0f   :  { %7015 = vmatmul.mubr.f32.vlgmr.msra.gmra.mrb[44].mxu1 %v3023_v18  ;;  %v11767_v18 = vld [vmem:[#allocation77_spill] sm:$0xff] }
 0xa10   :  { %8135 = vmatpush1.bf16.msra.mxu1 %v10333_v35  ;;  %3542 = vmatprep.mubr.f32.mxu1 %v11624_v21  ;;  %v3409_v35 = vsub.f32 1.0, %v11752_v43 }
 0xa11   :  { %8137 = vmatprep.subr.bf16.mxu1 %v10338_v63 }
 0xa14   :  { %8139 = vmatpush1.bf16.msra.mxu1 %v10340_v52  ;;  %v3317_v52 = vmul.f32 %v3018_v1, %v3016_v39  ;;  %v11782_v1 = vld [vmem:[#allocation93_spill] sm:$0xff]  ;;  %v11783_v39 = vld [vmem:[#allocation96_spill] sm:$0xff] }
 0xa15   :  { %8141 = vmatprep.subr.bf16.mxu1 %v10343_v28 }
 0xa18   :  { %8143 = vmatpush1.bf16.msra.mxu1 %v10346_v0 }
 0xa19   :  { %8145 = vmatprep.subr.bf16.mxu1 %v10349_v41 }
 0xa1c   :  { %8147 = vmatpush1.bf16.msra.mxu1 %v10352_v4 }
 0xa1d   :  { %8149 = vmatprep.subr.bf16.mxu1 %v10355_v34 }
 0xa20   :  { %8151 = vmatpush1.bf16.msra.mxu1 %v10358_v32  ;;  %v11753_v32 = vld [vmem:[#allocation65_spill] sm:$0xff] }
 0xa21   :  { %8153 = vmatprep.subr.bf16.mxu1 %v10361_v29 }
 0xa24   :  { %8155 = vmatpush1.bf16.msra.mxu1 %v10422_v56 }
 0xa25   :  { %8157 = vmatprep.subr.bf16.mxu1 %v10428_v45  ;;  %v11759_v45 = vld [vmem:[#allocation70_spill] sm:$0xff] }
 0xa28   :  { %8159 = vmatpush1.bf16.msra.mxu1 %v10432_v20  ;;  %v11760_v20 = vld [vmem:[#allocation72_spill] sm:$0xff] }
 0xa29   :  { %8161 = vmatprep.subr.bf16.mxu1 %v10440_v13  ;;  %v11761_v13 = vld [vmem:[#allocation73_spill] sm:$0xff] }
 0xa2c   :  { %8163 = vmatpush1.bf16.msra.mxu1 %v10444_v3  ;;  %v11762_v3 = vld [vmem:[#allocation75_spill] sm:$0xff] }
 0xa2d   :  { %8197 = vmatprep.subr.bf16.mxu1 %v10465_v54  ;;  %v11763_v54 = vld [vmem:[#allocation74_spill] sm:$0xff] }
 0xac2   :  { %v3170_v46 = vpop.f32.mrb[42].mxu1  ;;  %v10645_v47 = vpop.f32.mrb[50].mxu0 }
 0xac3   :  { %v3316_v63 = vadd.f32 %v10374_v48, %v3170_v46  ;;  %v10649_v28 = vpop.f32.mrb[43].mxu1  ;;  %v10651_v0 = vpop.f32.mrb[51].mxu0  ;;  %v11754_v48 = vld [vmem:[#allocation66_spill] sm:$0xff]  ;;  %v11785_v46 = vld [vmem:[#allocation97_spill] sm:$0xff] }
 0xac5   :  { %v3318_v41 = vmul.f32 %v3316_v63, %v3019_v19  ;;  %v3410_v4 = vmul.f32 %v3409_v35, %v3316_v63  ;;  %3658 = vst [vmem:[#allocation22 + $0x68] sm:$0xff] %v3316_v63  ;;  %v11787_v35 = vld [vmem:[#allocation98_spill] sm:$0xff] }
 0xac7   :  { %v3319_v34 = vadd.f32 %v3318_v41, %v3317_v52 }
 0xac9   :  { %7050 = vmatmul.mubr.f32.vlgmr.msra.gmra.mrb[52].mxu0 %v3319_v34 }
 0xaca   :  { %8167 = vmatpush1.bf16.msra.mxu0 %v10388_v59  ;;  %3613 = vmatprep.mubr.f32.mxu0 %v11624_v21 }
 0xacb   :  { %8169 = vmatprep.subr.bf16.mxu0 %v10391_v14  ;;  %v11755_v14 = vld [vmem:[#allocation67_spill] sm:$0xff] }
 0xace   :  { %8171 = vmatpush1.bf16.msra.mxu0 %v10394_v6  ;;  %v11756_v6 = vld [vmem:[#allocation68_spill] sm:$0xff] }
 0xacf   :  { %8173 = vmatprep.subr.bf16.mxu0 %v10398_v11  ;;  %v11757_v11 = vld [vmem:[#allocation71_spill] sm:$0xff] }
 0xad2   :  { %8175 = vmatpush1.bf16.msra.mxu0 %v10401_v25 }
 0xad3   :  { %8177 = vmatprep.subr.bf16.mxu0 %v10404_v27  ;;  %v11758_v27 = vld [vmem:[#allocation69_spill] sm:$0xff] }
 0xad6   :  { %8179 = vmatpush1.bf16.msra.mxu0 %v10407_v36 }
 0xad7   :  { %8181 = vmatprep.subr.bf16.mxu0 %v10410_v7 }
 0xada   :  { %8183 = vmatpush1.bf16.msra.mxu0 %v10413_v55 }
 0xadb   :  { %8185 = vmatprep.subr.bf16.mxu0 %v10416_v5 }
 0xade   :  { %8187 = vmatpush1.bf16.msra.mxu0 %v10424_v24 }
 0xadf   :  { %8189 = vmatprep.subr.bf16.mxu0 %v11753_v32 }
 0xae2   :  { %v3312_v29 = vpop.f32.mrb[44].mxu1  ;;  %8191 = vmatpush1.bf16.msra.mxu0 %v11754_v48 }
 0xae3   :  { %v7016_v59 = vpop.f32.mrb[45].mxu1  ;;  %8193 = vmatprep.subr.bf16.mxu0 %v11755_v14 }
 0xae4   :  { %v11788_v59 = vld [vmem:[#allocation37_spill] sm:$0xff] }
 0xae6   :  { %8195 = vmatpush1.bf16.msra.mxu0 %v11756_v6  ;;  %v11789_v6 = vld [vmem:[#allocation45_spill] sm:$0xff] }
 0xae7   :  { %8229 = vmatprep.subr.bf16.mxu0 %v11757_v11 }
 0xb9c   :  { %v3402_v25 = vpop.f32.mrb[52].mxu0 }
 0xb9d   :  { %v3403_v36 = vadd.f32 %v11758_v27, %v3402_v25  ;;  %v7051_v7 = vpop.f32.mrb[53].mxu0  ;;  %v11790_v25 = vld [vmem:[#allocation44_spill] sm:$0xff] }
 0xb9f   :  { %v3408_v55 = vmul.f32 %v3403_v36, %v11752_v43  ;;  %3659 = vst [vmem:[#allocation22 + $0x70] sm:$0xff] %v3403_v36  ;;  %v11786_v43 = vld [vmem:[#allocation99_spill] sm:$0xff]  ;;  %v11791_v36 = vld [vmem:[#allocation54_spill] sm:$0xff] }
 0xba1   :  { %v3411_v5 = vadd.f32 %v3410_v4, %v3408_v55 }
 0xba3   :  { %v3412_v56 = vmul.f32 %v3411_v5, %v3019_v19  ;;  %3660 = vst [vmem:[#allocation22 + $0x78] sm:$0xff] %v3411_v5  ;;  %v11784_v19 = vld [vmem:[#allocation94_spill] sm:$0xff] }
 0xba5   :  { %v3413_v24 = vadd.f32 %v3412_v56, %v3317_v52 }
 0xba7   :  { %3543 = vmatmul.mubr.f32.vlgmr.msra.gmra.mrb[46].mxu1 %v3413_v24  ;;  %3657 = vst [vmem:[#allocation22 + $0x60] sm:$0xff] %v3413_v24  ;;  %3614 = vmatmul.mubr.f32.vlgmr.msra.gmra.mrb[54].mxu0 %v3413_v24 }
 0xba8   :  { %8199 = vmatpush1.bf16.msra.mxu1 %v11759_v45  ;;  %8231 = vmatpush1.bf16.msra.mxu0 %v11760_v20 }
 0xba9   :  { %8201 = vmatprep.subr.bf16.mxu1 %v11761_v13  ;;  %8233 = vmatprep.subr.bf16.mxu0 %v11762_v3 }
 0xbaa   :  { %3814 = vmatprep.mubr.f32.mxu1 %v11624_v21  ;;  %3885 = vmatprep.mubr.f32.mxu0 %v11624_v21 }
 0xbac   :  { %8203 = vmatpush1.bf16.msra.mxu1 %v11763_v54  ;;  %8235 = vmatpush1.bf16.msra.mxu0 %v11764_v23 }
 0xbad   :  { %8205 = vmatprep.subr.bf16.mxu1 %v11765_v31  ;;  %8237 = vmatprep.subr.bf16.mxu0 %v11766_v42 }
 0xbb0   :  { %8207 = vmatpush1.bf16.msra.mxu1 %v11767_v18  ;;  %8239 = vmatpush1.bf16.msra.mxu0 %v11768_v22 }
 0xbb1   :  { %8209 = vmatprep.subr.bf16.mxu1 %v11769_v30  ;;  %8241 = vmatprep.subr.bf16.mxu0 %v11770_v57 }
 0xbb4   :  { %8211 = vmatpush1.bf16.msra.mxu1 %v11771_v15  ;;  %8243 = vmatpush1.bf16.msra.mxu0 %v11772_v49  ;;  %v3966_v49 = vld [vmem:[#allocation19] sm:$0xff] }
 0xbb5   :  { %8213 = vmatprep.subr.bf16.mxu1 %v11773_v8  ;;  %8245 = vmatprep.subr.bf16.mxu0 %v11774_v38  ;;  %v3967_v8 = vld [vmem:[#allocation19 + $0x8] sm:$0xff] }
 0xbb8   :  { %8215 = vmatpush1.bf16.msra.mxu1 %v11775_v58  ;;  %8247 = vmatpush1.bf16.msra.mxu0 %v11776_v62 }
 0xbb9   :  { %8217 = vmatprep.subr.bf16.mxu1 %v11777_v44  ;;  %8249 = vmatprep.subr.bf16.mxu0 %v11778_v9  ;;  %v10718_v44 = vpack.c.bf16 %v3967_v8, %v3966_v49  ;;  %v3968_v9 = vld [vmem:[#allocation19 + $0x10] sm:$0xff] }
 0xbbc   :  { %8219 = vmatpush1.bf16.msra.mxu1 %v10526_v51  ;;  %8251 = vmatpush1.bf16.msra.mxu0 %v11779_v2  ;;  %v3969_v2 = vld [vmem:[#allocation19 + $0x18] sm:$0xff] }
 0xbbd   :  { %8221 = vmatprep.subr.bf16.mxu1 %v11780_v40  ;;  %8253 = vmatprep.subr.bf16.mxu0 %v11781_v61  ;;  %v3970_v40 = vld [vmem:[#allocation19 + $0x20] sm:$0xff]  ;;  %v3971_v61 = vld [vmem:[#allocation19 + $0x28] sm:$0xff] }
 0xbc0   :  { %8223 = vmatpush1.bf16.msra.mxu1 %v11782_v1  ;;  %8255 = vmatpush1.bf16.msra.mxu0 %v11783_v39  ;;  %v3972_v1 = vld [vmem:[#allocation19 + $0x30] sm:$0xff]  ;;  %v3973_v39 = vld [vmem:[#allocation19 + $0x38] sm:$0xff] }
 0xbc1   :  { %8225 = vmatprep.subr.bf16.mxu1 %v11784_v19  ;;  %8257 = vmatprep.subr.bf16.mxu0 %v11785_v46  ;;  %v10739_v19 = vpack.c.bf16 %v3973_v39, %v3972_v1  ;;  %v3975_v46 = vld [vmem:[#allocation19 + $0x48] sm:$0xff]  ;;  %v10814_v1 = vld [vmem:[%s11447_s11] ss:$0 sm:$0xff] }
 0xbc4   :  { %8227 = vmatpush1.bf16.msra.mxu1 %v11786_v43  ;;  %8259 = vmatpush1.bf16.msra.mxu0 %v11787_v35  ;;  %v3977_v35 = vld [vmem:[#allocation19 + $0x58] sm:$0xff] }
 0xbc5   :  { %8260 = vmatprep.subr.bf16.mxu1 %v11623_v12  ;;  %8284 = vmatprep.subr.bf16.mxu0 %v11623_v12 }
 0xc7a   :  { %v3544_v51 = vpop.f32.mrb[46].mxu1  ;;  %v3615_v63 = vpop.f32.mrb[54].mxu0 }
 0xc7b   :  { %v3545_v52 = vadd.f32 %v3544_v51, %v10649_v28  ;;  %v3616_v41 = vadd.f32 %v3615_v63, %v10651_v0  ;;  %v3546_v4 = vpop.f32.mrb[47].mxu1  ;;  %v3617_v34 = vpop.f32.mrb[55].mxu0 }
 0xc7c   :  { %v3547_v32 = vadd.f32 %v3546_v4, %v10645_v47  ;;  %v3618_v48 = vadd.f32 %v3617_v34, %v3312_v29  ;;  %v11792_v29 = vld [vmem:[#allocation32_spill] sm:$0xff]  ;;  %v4065_v4 = vld [vmem:[#allocation21 + $0x28] sm:$0xff] }
 0xc7d   :  { %v3625_v14 = vadd.f32 %v3545_v52, %v11788_v59  ;;  %v3627_v11 = vadd.f32 %v3616_v41, %v11789_v6  ;;  %v330_v45 = vmax.f32 %v11792_v29, 0.0  ;;  %v3981_v52 = vld [vmem:[#allocation19 + $0x78] sm:$0xff]  ;;  %v4064_v59 = vld [vmem:[#allocation21 + $0x20] sm:$0xff]  ;;  %v4085_v29 = vld [vmem:[#allocation21 + $0xc8] sm:$0xff] }
 0xc7e   :  { %v3626_v27 = vadd.f32 %v3547_v32, %v11790_v25  ;;  %v3628_v7 = vadd.f32 %v3618_v48, %v11791_v36  ;;  %v4067_v32 = vld [vmem:[#allocation21 + $0x38] sm:$0xff]  ;;  %v4060_v48 = vld [vmem:[#allocation21] sm:$0xff]  ;;  %v4073_v25 = vld [vmem:[#allocation21 + $0x68] sm:$0xff] }
 0xc7f   :  { %v6281_v55 = vmul.f32 -1.442695, %v3625_v14  ;;  %v338_v54 = vsub.f32 0.0, %v330_v45  ;;  %v10773_v6 = vpack.c.bf16 %v4064_v59, %v4060_v48  ;;  %v4068_v36 = vld [vmem:[#allocation21 + $0x40] sm:$0xff]  ;;  %v4089_v45 = vld [vmem:[#allocation21 + $0xe8] sm:$0xff]  ;;  %v4070_v48 = vld [vmem:[#allocation21 + $0x50] sm:$0xff] }
 0xc80   :  { %v6282_v5 = vmul.f32 -1.442695, %v3626_v27  ;;  %v6283_v28 = vmul.f32 -1.442695, %v3628_v7  ;;  %v4072_v7 = vld [vmem:[#allocation21 + $0x60] sm:$0xff]  ;;  %v4074_v59 = vld [vmem:[#allocation21 + $0x70] sm:$0xff] }
 0xc81   :  { %8991 = vpow2.f32 %v6281_v55  ;;  %v350_v22 = vmul.f32 1.442695, %v338_v54  ;;  %v10780_v55 = vpack.c.bf16 %v4072_v7, %v4068_v36  ;;  %v4093_v54 = vld [vmem:[#allocation21 + $0x108] sm:$0xff]  ;;  %v10834_v36 = vpack.c.bf16 %v4074_v59, %v4070_v48  ;;  %v4106_v48 = vld [vmem:[#allocation21 + $0x170] sm:$0xff] }
 0xc82   :  { %8993 = vpow2.f32 %v6282_v5  ;;  %v4077_v5 = vld [vmem:[#allocation21 + $0x88] sm:$0xff] }
 0xc83   :  { %8995 = vpow2.f32 %v6283_v28  ;;  %v4081_v28 = vld [vmem:[#allocation21 + $0xa8] sm:$0xff] }
 0xc84   :  { %8997 = vtanh.f32 %v3627_v11  ;;  %v4069_v11 = vld [vmem:[#allocation21 + $0x48] sm:$0xff] }
 0xc85   :  { %v10778_v27 = vpack.c.bf16 %v4073_v25, %v4069_v11  ;;  %v4079_v11 = vld [vmem:[#allocation21 + $0x98] sm:$0xff] }
 0xc86   :  { %v4083_v25 = vld [vmem:[#allocation21 + $0xb8] sm:$0xff] }
 0xc87   :  { %v10838_v7 = vpack.c.bf16 %v4083_v25, %v4079_v11  ;;  %v4109_v11 = vld [vmem:[#allocation21 + $0x188] sm:$0xff] }
 0xc88   :  { %v4113_v25 = vld [vmem:[#allocation21 + $0x1a8] sm:$0xff] }
 0xc8b   :  { %v8992_v56 = vpop.eup %8991 }
 0xc8c   :  { %v8994_v0 = vpop.eup %8993  ;;  %v3632_v24 = vadd.f32 1.0, %v8992_v56  ;;  %v10783_v56 = vpack.c.bf16 %v4081_v28, %v4077_v5  ;;  %v4078_v5 = vld [vmem:[#allocation21 + $0x90] sm:$0xff] }
 0xc8d   :  { %v3638_v47 = vadd.f32 1.0, %v8994_v0  ;;  %v8996_v20 = vpop.eup %8995  ;;  %v4076_v0 = vld [vmem:[#allocation21 + $0x80] sm:$0xff]  ;;  %v4082_v28 = vld [vmem:[#allocation21 + $0xb0] sm:$0xff] }
 0xc8e   :  { %8999 = vrcp.f32 %v3632_v24  ;;  %v8998_v13 = vpop.eup %8997  ;;  %v3645_v42 = vadd.f32 1.0, %v8996_v20  ;;  %v4080_v24 = vld [vmem:[#allocation21 + $0xa0] sm:$0xff]  ;;  %v10789_v20 = vpack.c.bf16 %v4089_v45, %v4085_v29  ;;  %v10841_v29 = vpack.c.bf16 %v4082_v28, %v4078_v5  ;;  %v4111_v5 = vld [vmem:[#allocation21 + $0x198] sm:$0xff] }
 0xc8f   :  { %9001 = vrcp.f32 %v3638_v47  ;;  %v10786_v47 = vpack.c.bf16 %v4080_v24, %v4076_v0  ;;  %v4087_v0 = vld [vmem:[#allocation21 + $0xd8] sm:$0xff]  ;;  %v10868_v28 = vpack.c.bf16 %v4113_v25, %v4109_v11 }
 0xc90   :  { %9003 = vrcp.f32 %v3645_v42  ;;  %v4091_v24 = vld [vmem:[#allocation21 + $0xf8] sm:$0xff] }
 0xc91   :  { %v10844_v45 = vpack.c.bf16 %v4091_v24, %v4087_v0  ;;  %v4115_v0 = vld [vmem:[#allocation21 + $0x1b8] sm:$0xff]  ;;  %v4108_v24 = vld [vmem:[#allocation21 + $0x180] sm:$0xff] }
 0xc98   :  { %v9000_v3 = vpop.eup %8999 }
 0xc99   :  { %v9002_v23 = vpop.eup %9001  ;;  %v3650_v31 = vmul.f32 %v9000_v3, %v8998_v13  ;;  %v4084_v13 = vld [vmem:[#allocation21 + $0xc0] sm:$0xff] }
 0xc9a   :  { %v3649_v18 = vmul.f32 %v9002_v23, %v10573_v50  ;;  %v9004_v57 = vpop.eup %9003  ;;  %v10725_v50 = vpack.c.bf16 %v3969_v2, %v3968_v9  ;;  %v4088_v3 = vld [vmem:[#allocation21 + $0xe0] sm:$0xff]  ;;  %v4097_v23 = vld [vmem:[#allocation21 + $0x128] sm:$0xff] }
 0xc9b   :  { %v10795_v42 = vpack.c.bf16 %v4097_v23, %v4093_v54  ;;  %v4095_v54 = vld [vmem:[#allocation21 + $0x118] sm:$0xff] }
 0xc9c   :  { %v10715_v30 = vadd.f32 %v3650_v31, %v3649_v18  ;;  %v10792_v31 = vpack.c.bf16 %v4088_v3, %v4084_v13  ;;  %v4092_v18 = vld [vmem:[#allocation21 + $0x100] sm:$0xff]  ;;  %v4086_v13 = vld [vmem:[#allocation21 + $0xd0] sm:$0xff]  ;;  %v4099_v23 = vld [vmem:[#allocation21 + $0x138] sm:$0xff] }
 0xc9d   :  { %v4090_v3 = vld [vmem:[#allocation21 + $0xf0] sm:$0xff] }
 0xc9e   :  { %9005 = vtanh.f32 %v10715_v30 }
 0xc9f   :  { %9007 = vpow2.f32 %v350_v22  ;;  %v4096_v22 = vld [vmem:[#allocation21 + $0x120] sm:$0xff] }
 0xca0   :  { %v10798_v49 = vpack.c.bf16 %v4096_v22, %v4092_v18  ;;  %v10847_v18 = vpack.c.bf16 %v4090_v3, %v4086_v13  ;;  %v10850_v22 = vpack.c.bf16 %v4099_v23, %v4095_v54  ;;  %v4112_v13 = vld [vmem:[#allocation21 + $0x1a0] sm:$0xff]  ;;  %v10870_v3 = vpack.c.bf16 %v4115_v0, %v4111_v5  ;;  %v4110_v23 = vld [vmem:[#allocation21 + $0x190] sm:$0xff] }
 0xca1   :  { %v10872_v54 = vpack.c.bf16 %v4112_v13, %v4108_v24  ;;  %v4118_v5 = vld [vmem:[#allocation21 + $0x1d0] sm:$0xff] }
 0xca2   :  { %11794 = vst [vmem:[#allocation100_spill] sm:$0xff] %v10870_v3  ;;  %v4122_v0 = vld [vmem:[#allocation21 + $0x1f0] sm:$0xff] }
 0xca3   :  { %v10887_v24 = vpack.c.bf16 %v4122_v0, %v4118_v5  ;;  %v4322_v5 = vld [vmem:[#allocation18 + $0x30] sm:$0xff] }
 0xca5   :  { %11797 = vst [vmem:[#allocation102_spill] sm:$0xff] %v10887_v24 }
 0xca8   :  { %v9006_v15 = vpop.eup %9005 }
 0xca9   :  { %v3653_v38 = vmul.f32 %v9006_v15, %v9004_v57  ;;  %v9008_v58 = vpop.eup %9007  ;;  %v4101_v57 = vld [vmem:[#allocation21 + $0x148] sm:$0xff] }
 0xcaa   :  { %v4105_v15 = vld [vmem:[#allocation21 + $0x168] sm:$0xff] }
 0xcab   :  { %v3669_v62 = vmul.f32 %v9008_v58, %v3653_v38  ;;  %v10801_v8 = vpack.c.bf16 %v4105_v15, %v4101_v57  ;;  %v10805_v38 = vld [vmem:[#allocation10 + $0x20] sm:$0xff]  ;;  %v4094_v57 = vld [vmem:[#allocation21 + $0x110] sm:$0xff] }
 0xcac   :  { %v3662_v58 = vld [vmem:[#allocation7 + $0x20] sm:$0xff]  ;;  %v4098_v15 = vld [vmem:[#allocation21 + $0x130] sm:$0xff] }
 0xcad   :  { %3815 = vmatmul.mubr.f32.vlgmr.msra.gmra.mrb[48].mxu1 %v3669_v62  ;;  %3886 = vmatmul.mubr.f32.vlgmr.msra.gmra.mrb[56].mxu0 %v3669_v62 }
 0xcae   :  { %8262 = vmatpush3.bf16.msra.mxu1 %v10576_v10  ;;  %7084 = vmatprep.mubr.msk.f32.mxu1 %vm9318_vm0, %v11624_v21  ;;  %v10733_v10 = vpack.c.bf16 %v3971_v61, %v3970_v40  ;;  %v11793_v40 = vld [vmem:[#allocation62_spill] sm:$0xff] }
 0xcaf   :  { %8263 = vmatprep.subr.bf16.mxu1 %v11623_v12  ;;  %8286 = vmatpush3.bf16.msra.mxu0 %v10718_v44  ;;  %v4055_v61 = vsub.f32 1.0, %v11793_v40 }
 0xcb0   :  { %8287 = vmatprep.subr.bf16.mxu0 %v11623_v12  ;;  %7119 = vmatprep.mubr.msk.f32.mxu0 %vm9318_vm0, %v11624_v21 }
 0xcb2   :  { %8265 = vmatpush3.bf16.msra.mxu1 %v10579_v33  ;;  %v3974_v33 = vld [vmem:[#allocation19 + $0x40] sm:$0xff] }
 0xcb3   :  { %8266 = vmatprep.subr.bf16.mxu1 %v11623_v12  ;;  %8289 = vmatpush3.bf16.msra.mxu0 %v10725_v50  ;;  %v10745_v43 = vpack.c.bf16 %v3975_v46, %v3974_v33  ;;  %v10818_v33 = vmul.f32 %v10805_v38, %v3662_v58  ;;  %v4103_v58 = vld [vmem:[#allocation21 + $0x158] sm:$0xff] }
 0xcb4   :  { %8290 = vmatprep.subr.bf16.mxu0 %v11623_v12 }
 0xcb6   :  { %8268 = vmatpush3.bf16.msra.mxu1 %v10589_v53  ;;  %v3976_v53 = vld [vmem:[#allocation19 + $0x50] sm:$0xff] }
 0xcb7   :  { %8269 = vmatprep.subr.bf16.mxu1 %v11623_v12  ;;  %8292 = vmatpush3.bf16.msra.mxu0 %v10733_v10  ;;  %v10751_v51 = vpack.c.bf16 %v3977_v35, %v3976_v53  ;;  %v4062_v35 = vld [vmem:[#allocation21 + $0x10] sm:$0xff] }
 0xcb8   :  { %8293 = vmatprep.subr.bf16.mxu0 %v11623_v12 }
 0xcba   :  { %8271 = vmatpush3.bf16.msra.mxu1 %v10595_v60  ;;  %v3978_v60 = vld [vmem:[#allocation19 + $0x60] sm:$0xff] }
 0xcbb   :  { %8272 = vmatprep.subr.bf16.mxu1 %v11623_v12  ;;  %8295 = vmatpush3.bf16.msra.mxu0 %v10739_v19 }
 0xcbc   :  { %8296 = vmatprep.subr.bf16.mxu0 %v11623_v12 }
 0xcbe   :  { %8274 = vmatpush3.bf16.msra.mxu1 %v10601_v16  ;;  %v3979_v16 = vld [vmem:[#allocation19 + $0x68] sm:$0xff] }
 0xcbf   :  { %8275 = vmatprep.subr.bf16.mxu1 %v11623_v12  ;;  %8298 = vmatpush3.bf16.msra.mxu0 %v10745_v43  ;;  %v10762_v63 = vpack.c.bf16 %v3979_v16, %v3978_v60  ;;  %v4066_v60 = vld [vmem:[#allocation21 + $0x30] sm:$0xff]  ;;  %v4071_v16 = vld [vmem:[#allocation21 + $0x58] sm:$0xff] }
 0xcc0   :  { %8299 = vmatprep.subr.bf16.mxu0 %v11623_v12 }
 0xcc2   :  { %8277 = vmatpush3.bf16.msra.mxu1 %v10607_v26  ;;  %v3980_v26 = vld [vmem:[#allocation19 + $0x70] sm:$0xff] }
 0xcc3   :  { %8278 = vmatprep.subr.bf16.mxu1 %v11623_v12  ;;  %8301 = vmatpush3.bf16.msra.mxu0 %v10751_v51  ;;  %v10766_v41 = vpack.c.bf16 %v3981_v52, %v3980_v26  ;;  %v4075_v26 = vld [vmem:[#allocation21 + $0x78] sm:$0xff] }
 0xcc4   :  { %8302 = vmatprep.subr.bf16.mxu0 %v11623_v12 }
 0xcc6   :  { %8280 = vmatpush3.bf16.msra.mxu1 %v10613_v17  ;;  %v4061_v17 = vld [vmem:[#allocation21 + $0x8] sm:$0xff] }
 0xcc7   :  { %8281 = vmatprep.subr.bf16.mxu1 %v11623_v12  ;;  %8304 = vmatpush3.bf16.msra.mxu0 %v10762_v63  ;;  %v10769_v34 = vpack.c.bf16 %v4065_v4, %v4061_v17  ;;  %v10828_v4 = vpack.c.bf16 %v4066_v60, %v4062_v35 }
 0xcc8   :  { %8305 = vmatprep.subr.bf16.mxu0 %v11623_v12 }
 0xcca   :  { %8283 = vmatpush3.bf16.msra.mxu1 %v10619_v37  ;;  %v4063_v37 = vld [vmem:[#allocation21 + $0x18] sm:$0xff] }
 0xccb   :  { %8307 = vmatpush3.bf16.msra.mxu0 %v10766_v41  ;;  %v10771_v14 = vpack.c.bf16 %v4067_v32, %v4063_v37  ;;  %8309 = vmatprep.subr.bf16.mxu1 %v10769_v34  ;;  %v10831_v32 = vpack.c.bf16 %v4075_v26, %v4071_v16  ;;  %v4100_v16 = vld [vmem:[#allocation21 + $0x140] sm:$0xff] }
 0xccc   :  { %v4104_v26 = vld [vmem:[#allocation21 + $0x160] sm:$0xff] }
 0xccd   :  { %7085 = vmatmul.mubr.f32.vlgmr.msra.gmra.mrb[50].mxu1 %v3669_v62  ;;  %8341 = vmatprep.subr.bf16.mxu0 %v10771_v14  ;;  %v3665_v62 = vsub.f32 1.0, %v10805_v38  ;;  %v4324_v38 = vld [vmem:[#allocation18 + $0x40] sm:$0xff] }
 0xcce   :  { %4188 = vmatprep.mubr.f32.mxu1 %v11624_v21  ;;  %8311 = vmatpush1.bf16.msra.mxu1 %v10773_v6 }
 0xccf   :  { %8313 = vmatprep.subr.bf16.mxu1 %v10778_v27 }
 0xcd2   :  { %8315 = vmatpush1.bf16.msra.mxu1 %v10780_v55 }
 0xcd3   :  { %8317 = vmatprep.subr.bf16.mxu1 %v10783_v56 }
 0xcd6   :  { %8319 = vmatpush1.bf16.msra.mxu1 %v10786_v47 }
 0xcd7   :  { %8321 = vmatprep.subr.bf16.mxu1 %v10789_v20 }
 0xcda   :  { %8323 = vmatpush1.bf16.msra.mxu1 %v10792_v31 }
 0xcdb   :  { %8325 = vmatprep.subr.bf16.mxu1 %v10795_v42 }
 0xcde   :  { %8327 = vmatpush1.bf16.msra.mxu1 %v10798_v49 }
 0xcdf   :  { %8329 = vmatprep.subr.bf16.mxu1 %v10801_v8 }
 0xd80   :  { %v3816_v9 = vpop.f32.mrb[48].mxu1  ;;  %v10808_v2 = vpop.f32.mrb[56].mxu0 }
 0xd81   :  { %v3962_v39 = vadd.f32 %v10814_v1, %v3816_v9  ;;  %v10820_v46 = vpop.f32.mrb[49].mxu1  ;;  %v10822_v53 = vpop.f32.mrb[57].mxu0  ;;  %v4107_v9 = vld [vmem:[#allocation21 + $0x178] sm:$0xff] }
 0xd83   :  { %v3964_v52 = vmul.f32 %v3962_v39, %v3665_v62  ;;  %v10826_v17 = vmul.f32 %v4055_v61, %v3962_v39  ;;  %4304 = vst [vmem:[#allocation22 + $0x88] sm:$0xff] %v3962_v39  ;;  %v10853_v61 = vpack.c.bf16 %v4098_v15, %v4094_v57  ;;  %v10856_v39 = vpack.c.bf16 %v4107_v9, %v4103_v58  ;;  %v4114_v57 = vld [vmem:[#allocation21 + $0x1b0] sm:$0xff]  ;;  %v4117_v58 = vld [vmem:[#allocation21 + $0x1c8] sm:$0xff] }
 0xd84   :  { %v10875_v15 = vpack.c.bf16 %v4114_v57, %v4110_v23  ;;  %v4121_v9 = vld [vmem:[#allocation21 + $0x1e8] sm:$0xff]  ;;  %v10895_v23 = vld [vmem:[%s11449_s13] ss:$0 sm:$0xff] }
 0xd85   :  { %v3965_v37 = vadd.f32 %v3964_v52, %v10818_v33  ;;  %v4102_v52 = vld [vmem:[#allocation21 + $0x150] sm:$0xff]  ;;  %11798 = vst [vmem:[#allocation104_spill] sm:$0xff] %v10895_v23 }
 0xd86   :  { %v10864_v59 = vpack.c.bf16 %v4106_v48, %v4102_v52  ;;  %11795 = vst [vmem:[#allocation101_spill] sm:$0xff] %v10875_v15  ;;  %v4116_v52 = vld [vmem:[#allocation21 + $0x1c0] sm:$0xff] }
 0xd87   :  { %7120 = vmatmul.mubr.f32.vlgmr.msra.gmra.mrb[58].mxu0 %v3965_v37  ;;  %v10862_v37 = vpack.c.bf16 %v4104_v26, %v4100_v16  ;;  %v10880_v16 = vpack.c.bf16 %v4121_v9, %v4117_v58  ;;  %v4123_v26 = vld [vmem:[#allocation21 + $0x1f8] sm:$0xff]  ;;  %v4120_v48 = vld [vmem:[#allocation21 + $0x1e0] sm:$0xff] }
 0xd88   :  { %8343 = vmatpush1.bf16.msra.mxu0 %v10828_v4  ;;  %4259 = vmatprep.mubr.f32.mxu0 %v11624_v21  ;;  %v10884_v25 = vpack.c.bf16 %v4120_v48, %v4116_v52  ;;  %v4317_v48 = vld [vmem:[#allocation18 + $0x8] sm:$0xff] }
 0xd89   :  { %8345 = vmatprep.subr.bf16.mxu0 %v10831_v32  ;;  %8331 = vmatpush1.bf16.msra.mxu1 %v10862_v37  ;;  %v10905_v0 = vpack.c.bf16 %v4322_v5, %v4317_v48  ;;  %v4326_v48 = vld [vmem:[#allocation18 + $0x50] sm:$0xff]  ;;  %v4331_v5 = vld [vmem:[#allocation18 + $0x78] sm:$0xff] }
 0xd8a   :  { %8333 = vmatprep.subr.bf16.mxu1 %v10868_v28 }
 0xd8c   :  { %8347 = vmatpush1.bf16.msra.mxu0 %v10834_v36 }
 0xd8d   :  { %8349 = vmatprep.subr.bf16.mxu0 %v10838_v7  ;;  %8335 = vmatpush1.bf16.msra.mxu1 %v10872_v54 }
 0xd8e   :  { %8337 = vmatprep.subr.bf16.mxu1 %v10880_v16 }
 0xd90   :  { %8351 = vmatpush1.bf16.msra.mxu0 %v10841_v29 }
 0xd91   :  { %8353 = vmatprep.subr.bf16.mxu0 %v10844_v45  ;;  %8339 = vmatpush1.bf16.msra.mxu1 %v10884_v25 }
 0xd92   :  { %8373 = vmatprep.subr.bf16.mxu1 %v10905_v0 }
 0xd94   :  { %8355 = vmatpush1.bf16.msra.mxu0 %v10847_v18 }
 0xd95   :  { %8357 = vmatprep.subr.bf16.mxu0 %v10850_v22 }
 0xd98   :  { %8359 = vmatpush1.bf16.msra.mxu0 %v10853_v61 }
 0xd99   :  { %8361 = vmatprep.subr.bf16.mxu0 %v10856_v39 }
 0xd9c   :  { %8363 = vmatpush1.bf16.msra.mxu0 %v10864_v59 }
 0xd9d   :  { %8365 = vmatprep.subr.bf16.mxu0 %v10870_v3  ;;  %v4394_v3 = vld [vmem:[#allocation18 + $0x270] sm:$0xff] }
 0xda0   :  { %v10860_v35 = vpop.f32.mrb[50].mxu1  ;;  %8367 = vmatpush1.bf16.msra.mxu0 %v10875_v15  ;;  %v4386_v15 = vld [vmem:[#allocation18 + $0x230] sm:$0xff] }
 0xda1   :  { %v7086_v60 = vpop.f32.mrb[51].mxu1 }
 0xda2   :  { %v4119_v60 = vld [vmem:[#allocation21 + $0x1d8] sm:$0xff] }
 0xda3   :  { %v10882_v11 = vpack.c.bf16 %v4123_v26, %v4119_v60 }
 0xda5   :  { %11796 = vst [vmem:[#allocation103_spill] sm:$0xff] %v10882_v11  ;;  %8369 = vmatprep.subr.bf16.mxu0 %v10882_v11 }
 0xda6   :  { %8371 = vmatpush1.bf16.msra.mxu0 %v10887_v24  ;;  %v4371_v24 = vld [vmem:[#allocation18 + $0x1b8] sm:$0xff] }
 0xe5a   :  { %v4048_v13 = vpop.f32.mrb[58].mxu0 }
 0xe5b   :  { %v4049_v57 = vadd.f32 %v10895_v23, %v4048_v13  ;;  %v7121_v58 = vpop.f32.mrb[59].mxu0  ;;  %v4321_v13 = vld [vmem:[#allocation18 + $0x28] sm:$0xff]  ;;  %v4334_v23 = vld [vmem:[#allocation18 + $0x90] sm:$0xff] }
 0xe5c   :  { %v4323_v58 = vld [vmem:[#allocation18 + $0x38] sm:$0xff] }
 0xe5d   :  { %v4054_v9 = vmul.f32 %v4049_v57, %v11793_v40  ;;  %4305 = vst [vmem:[#allocation22 + $0x90] sm:$0xff] %v4049_v57  ;;  %v4316_v40 = vld [vmem:[#allocation18] sm:$0xff] }
 0xe5e   :  { %v10907_v57 = vpack.c.bf16 %v4321_v13, %v4316_v40  ;;  %v4329_v40 = vld [vmem:[#allocation18 + $0x68] sm:$0xff]  ;;  %v10919_v13 = vpack.c.bf16 %v4331_v5, %v4326_v48  ;;  %v4339_v5 = vld [vmem:[#allocation18 + $0xb8] sm:$0xff] }
 0xe5f   :  { %v4057_v60 = vadd.f32 %v10826_v17, %v4054_v9  ;;  %v4319_v17 = vld [vmem:[#allocation18 + $0x18] sm:$0xff]  ;;  %v4341_v48 = vld [vmem:[#allocation18 + $0xc8] sm:$0xff] }
 0xe60   :  { %11799 = vst [vmem:[#allocation35_spill] sm:$0xff] %v10907_v57  ;;  %11803 = vst [vmem:[#allocation30_spill] sm:$0xff] %v10919_v13 }
 0xe61   :  { %v4058_v26 = vmul.f32 %v4057_v60, %v3665_v62  ;;  %4306 = vst [vmem:[#allocation22 + $0x98] sm:$0xff] %v4057_v60  ;;  %v4318_v62 = vld [vmem:[#allocation18 + $0x10] sm:$0xff]  ;;  %v4327_v60 = vld [vmem:[#allocation18 + $0x58] sm:$0xff] }
 0xe62   :  { %v10912_v9 = vpack.c.bf16 %v4323_v58, %v4318_v62  ;;  %v10922_v62 = vpack.c.bf16 %v4334_v23, %v4329_v40  ;;  %v4338_v23 = vld [vmem:[#allocation18 + $0xb0] sm:$0xff]  ;;  %v4343_v40 = vld [vmem:[#allocation18 + $0xd8] sm:$0xff] }
 0xe63   :  { %v4059_v52 = vadd.f32 %v4058_v26, %v10818_v33  ;;  %v10910_v33 = vpack.c.bf16 %v4324_v38, %v4319_v17  ;;  %v4332_v26 = vld [vmem:[#allocation18 + $0x80] sm:$0xff]  ;;  %v4333_v38 = vld [vmem:[#allocation18 + $0x88] sm:$0xff] }
 0xe64   :  { %11801 = vst [vmem:[#allocation38_spill] sm:$0xff] %v10912_v9  ;;  %v4328_v17 = vld [vmem:[#allocation18 + $0x60] sm:$0xff]  ;;  %11804 = vst [vmem:[#allocation60_spill] sm:$0xff] %v10922_v62 }
 0xe65   :  { %4189 = vmatmul.mubr.f32.vlgmr.msra.gmra.mrb[52].mxu1 %v4059_v52  ;;  %4303 = vst [vmem:[#allocation22 + $0x80] sm:$0xff] %v4059_v52  ;;  %4260 = vmatmul.mubr.f32.vlgmr.msra.gmra.mrb[60].mxu0 %v4059_v52  ;;  %11800 = vst [vmem:[#allocation39_spill] sm:$0xff] %v10910_v33  ;;  %v10916_v52 = vpack.c.bf16 %v4332_v26, %v4327_v60  ;;  %v10924_v58 = vpack.c.bf16 %v4333_v38, %v4328_v17  ;;  %v4337_v60 = vld [vmem:[#allocation18 + $0xa8] sm:$0xff]  ;;  %v4342_v26 = vld [vmem:[#allocation18 + $0xd0] sm:$0xff] }
 0xe66   :  { %4460 = vmatprep.mubr.f32.mxu1 %v11624_v21  ;;  %4531 = vmatprep.mubr.f32.mxu0 %v11624_v21  ;;  %v10936_v38 = vpack.c.bf16 %v4343_v40, %v4338_v23 }
 0xe67   :  { %8375 = vmatpush1.bf16.msra.mxu1 %v10907_v57  ;;  %8405 = vmatprep.subr.bf16.mxu0 %v10910_v33  ;;  %11802 = vst [vmem:[#allocation51_spill] sm:$0xff] %v10916_v52  ;;  %11805 = vst [vmem:[#allocation36_spill] sm:$0xff] %v10924_v58  ;;  %v10928_v57 = vpack.c.bf16 %v4342_v26, %v4337_v60  ;;  %v4347_v60 = vld [vmem:[#allocation18 + $0xf8] sm:$0xff]  ;;  %v4352_v26 = vld [vmem:[#allocation18 + $0x120] sm:$0xff] }
 0xe68   :  { %8407 = vmatpush1.bf16.msra.mxu0 %v10912_v9  ;;  %8377 = vmatprep.subr.bf16.mxu1 %v10916_v52  ;;  %v4336_v9 = vld [vmem:[#allocation18 + $0xa0] sm:$0xff]  ;;  %11809 = vst [vmem:[#allocation29_spill] sm:$0xff] %v10936_v38 }
 0xe69   :  { %8409 = vmatprep.subr.bf16.mxu0 %v10922_v62  ;;  %11806 = vst [vmem:[#allocation42_spill] sm:$0xff] %v10928_v57  ;;  %v10931_v33 = vpack.c.bf16 %v4341_v48, %v4336_v9  ;;  %v4344_v52 = vld [vmem:[#allocation18 + $0xe0] sm:$0xff]  ;;  %v4351_v9 = vld [vmem:[#allocation18 + $0x118] sm:$0xff]  ;;  %v4349_v48 = vld [vmem:[#allocation18 + $0x108] sm:$0xff] }
 0xe6a   :  { %v10934_v17 = vpack.c.bf16 %v4344_v52, %v4339_v5  ;;  %v4348_v52 = vld [vmem:[#allocation18 + $0x100] sm:$0xff]  ;;  %v4353_v5 = vld [vmem:[#allocation18 + $0x128] sm:$0xff] }
 0xe6b   :  { %8379 = vmatpush1.bf16.msra.mxu1 %v10919_v13  ;;  %11807 = vst [vmem:[#allocation41_spill] sm:$0xff] %v10931_v33  ;;  %v10940_v13 = vpack.c.bf16 %v4352_v26, %v4347_v60  ;;  %v10948_v40 = vpack.c.bf16 %v4353_v5, %v4348_v52  ;;  %v4357_v60 = vld [vmem:[#allocation18 + $0x148] sm:$0xff]  ;;  %v4362_v26 = vld [vmem:[#allocation18 + $0x170] sm:$0xff] }
 0xe6c   :  { %8411 = vmatpush1.bf16.msra.mxu0 %v10924_v58  ;;  %8381 = vmatprep.subr.bf16.mxu1 %v10928_v57  ;;  %11808 = vst [vmem:[#allocation55_spill] sm:$0xff] %v10934_v17  ;;  %v4346_v58 = vld [vmem:[#allocation18 + $0xf0] sm:$0xff] }
 0xe6d   :  { %8413 = vmatprep.subr.bf16.mxu0 %v10934_v17  ;;  %11810 = vst [vmem:[#allocation59_spill] sm:$0xff] %v10940_v13  ;;  %v10943_v62 = vpack.c.bf16 %v4351_v9, %v4346_v58  ;;  %v4354_v57 = vld [vmem:[#allocation18 + $0x130] sm:$0xff]  ;;  %11813 = vst [vmem:[#allocation67_spill] sm:$0xff] %v10948_v40  ;;  %v4361_v58 = vld [vmem:[#allocation18 + $0x168] sm:$0xff] }
 0xe6e   :  { %v10946_v23 = vpack.c.bf16 %v4354_v57, %v4349_v48  ;;  %v4359_v9 = vld [vmem:[#allocation18 + $0x158] sm:$0xff]  ;;  %v4358_v57 = vld [vmem:[#allocation18 + $0x150] sm:$0xff] }
 0xe6f   :  { %8383 = vmatpush1.bf16.msra.mxu1 %v10931_v33  ;;  %11811 = vst [vmem:[#allocation65_spill] sm:$0xff] %v10943_v62  ;;  %v10952_v33 = vpack.c.bf16 %v4362_v26, %v4357_v60  ;;  %v4363_v48 = vld [vmem:[#allocation18 + $0x178] sm:$0xff]  ;;  %v4366_v60 = vld [vmem:[#allocation18 + $0x190] sm:$0xff] }
 0xe70   :  { %8415 = vmatpush1.bf16.msra.mxu0 %v10936_v38  ;;  %8385 = vmatprep.subr.bf16.mxu1 %v10940_v13  ;;  %11812 = vst [vmem:[#allocation66_spill] sm:$0xff] %v10946_v23  ;;  %v4356_v38 = vld [vmem:[#allocation18 + $0x140] sm:$0xff]  ;;  %v10960_v5 = vpack.c.bf16 %v4363_v48, %v4358_v57  ;;  %v4377_v57 = vld [vmem:[#allocation18 + $0x1e8] sm:$0xff] }
 0xe71   :  { %8417 = vmatprep.subr.bf16.mxu0 %v10946_v23  ;;  %11814 = vst [vmem:[#allocation68_spill] sm:$0xff] %v10952_v33  ;;  %v10955_v17 = vpack.c.bf16 %v4361_v58, %v4356_v38  ;;  %v4364_v13 = vld [vmem:[#allocation18 + $0x180] sm:$0xff]  ;;  %v4374_v38 = vld [vmem:[#allocation18 + $0x1d0] sm:$0xff]  ;;  %v10966_v58 = vpack.c.bf16 %v4371_v24, %v4366_v60  ;;  %v4379_v24 = vld [vmem:[#allocation18 + $0x1f8] sm:$0xff] }
 0xe72   :  { %v10958_v52 = vpack.c.bf16 %v4364_v13, %v4359_v9  ;;  %11817 = vst [vmem:[#allocation70_spill] sm:$0xff] %v10960_v5  ;;  %v4372_v23 = vld [vmem:[#allocation18 + $0x1c0] sm:$0xff]  ;;  %v4373_v9 = vld [vmem:[#allocation18 + $0x1c8] sm:$0xff] }
 0xe73   :  { %8387 = vmatpush1.bf16.msra.mxu1 %v10943_v62  ;;  %11815 = vst [vmem:[#allocation71_spill] sm:$0xff] %v10955_v17  ;;  %v4367_v62 = vld [vmem:[#allocation18 + $0x198] sm:$0xff]  ;;  %v4368_v13 = vld [vmem:[#allocation18 + $0x1a0] sm:$0xff] }
 0xe74   :  { %8419 = vmatpush1.bf16.msra.mxu0 %v10948_v40  ;;  %8389 = vmatprep.subr.bf16.mxu1 %v10952_v33  ;;  %11816 = vst [vmem:[#allocation69_spill] sm:$0xff] %v10958_v52  ;;  %v10963_v26 = vpack.c.bf16 %v4372_v23, %v4367_v62  ;;  %v4369_v40 = vld [vmem:[#allocation18 + $0x1a8] sm:$0xff]  ;;  %v10972_v48 = vpack.c.bf16 %v4373_v9, %v4368_v13  ;;  %v4382_v62 = vld [vmem:[#allocation18 + $0x210] sm:$0xff]  ;;  %v4376_v23 = vld [vmem:[#allocation18 + $0x1e0] sm:$0xff] }
 0xe75   :  { %8421 = vmatprep.subr.bf16.mxu0 %v10958_v52  ;;  %v10968_v11 = vpack.c.bf16 %v4374_v38, %v4369_v40  ;;  %v10975_v33 = vpack.c.bf16 %v4382_v62, %v4377_v57  ;;  %v4384_v60 = vld [vmem:[#allocation18 + $0x220] sm:$0xff]  ;;  %v4378_v40 = vld [vmem:[#allocation18 + $0x1f0] sm:$0xff]  ;;  %v4389_v57 = vld [vmem:[#allocation18 + $0x248] sm:$0xff] }
 0xe76   :  { %11818 = vst [vmem:[#allocation72_spill] sm:$0xff] %v10963_v26  ;;  %11820 = vst [vmem:[#allocation75_spill] sm:$0xff] %v10972_v48  ;;  %v10980_v52 = vpack.c.bf16 %v4384_v60, %v4379_v24  ;;  %v4392_v13 = vld [vmem:[#allocation18 + $0x260] sm:$0xff]  ;;  %v4393_v24 = vld [vmem:[#allocation18 + $0x268] sm:$0xff] }
 0xe77   :  { %8391 = vmatpush1.bf16.msra.mxu1 %v10955_v17  ;;  %11819 = vst [vmem:[#allocation73_spill] sm:$0xff] %v10968_v11  ;;  %v4381_v17 = vld [vmem:[#allocation18 + $0x208] sm:$0xff]  ;;  %11821 = vst [vmem:[#allocation74_spill] sm:$0xff] %v10975_v33 }
 0xe78   :  { %8423 = vmatpush1.bf16.msra.mxu0 %v10960_v5  ;;  %8393 = vmatprep.subr.bf16.mxu1 %v10963_v26  ;;  %v10978_v38 = vpack.c.bf16 %v4381_v17, %v4376_v23  ;;  %11823 = vst [vmem:[#allocation79_spill] sm:$0xff] %v10980_v52  ;;  %v4383_v5 = vld [vmem:[#allocation18 + $0x218] sm:$0xff]  ;;  %v10989_v17 = vpack.c.bf16 %v4394_v3, %v4389_v57  ;;  %v4388_v23 = vld [vmem:[#allocation18 + $0x240] sm:$0xff] }
 0xe79   :  { %8425 = vmatprep.subr.bf16.mxu0 %v10968_v11  ;;  %v4387_v26 = vld [vmem:[#allocation18 + $0x238] sm:$0xff]  ;;  %v10986_v62 = vpack.c.bf16 %v4383_v5, %v4378_v40 }
 0xe7a   :  { %11822 = vst [vmem:[#allocation76_spill] sm:$0xff] %v10978_v38  ;;  %v10983_v9 = vpack.c.bf16 %v4392_v13, %v4387_v26  ;;  %v4391_v11 = vld [vmem:[#allocation18 + $0x258] sm:$0xff]  ;;  %11826 = vst [vmem:[#allocation80_spill] sm:$0xff] %v10989_v17  ;;  %v10996_v26 = vpack.c.bf16 %v4393_v24, %v4388_v23 }
 0xe7b   :  { %8395 = vmatpush1.bf16.msra.mxu1 %v10966_v58  ;;  %11825 = vst [vmem:[#allocation77_spill] sm:$0xff] %v10986_v62  ;;  %v10992_v60 = vpack.c.bf16 %v4391_v11, %v4386_v15  ;;  %v11829_v24 = vld [vmem:[#allocation40_spill] sm:$0xff] }
 0xe7c   :  { %8397 = vmatprep.subr.bf16.mxu1 %v10975_v33  ;;  %11824 = vst [vmem:[#allocation78_spill] sm:$0xff] %v10983_v9  ;;  %8427 = vmatpush1.bf16.msra.mxu0 %v10972_v48  ;;  %11828 = vst [vmem:[#allocation82_spill] sm:$0xff] %v10996_v26 }
 0xe7d   :  { %8429 = vmatprep.subr.bf16.mxu0 %v10980_v52  ;;  %11827 = vst [vmem:[#allocation81_spill] sm:$0xff] %v10992_v60 }
 0xe7f   :  { %8399 = vmatpush1.bf16.msra.mxu1 %v10978_v38  ;;  %v11832_v38 = vld [vmem:[#allocation57_spill] sm:$0xff] }
 0xe80   :  { %8401 = vmatprep.subr.bf16.mxu1 %v10983_v9  ;;  %8431 = vmatpush1.bf16.msra.mxu0 %v10986_v62  ;;  %v11831_v62 = vld [vmem:[#allocation47_spill] sm:$0xff] }
 0xe81   :  { %8433 = vmatprep.subr.bf16.mxu0 %v10989_v17  ;;  %v11830_v17 = vld [vmem:[#allocation48_spill] sm:$0xff] }
 0xe83   :  { %8403 = vmatpush1.bf16.msra.mxu1 %v10992_v60 }
 0xe84   :  { %8436 = vmatprep.subr.bf16.mxu1 %v11623_v12  ;;  %8435 = vmatpush1.bf16.msra.mxu0 %v10996_v26 }
 0xe85   :  { %8460 = vmatprep.subr.bf16.mxu0 %v11623_v12 }
 0xf38   :  { %v4190_v3 = vpop.f32.mrb[52].mxu1  ;;  %v4261_v5 = vpop.f32.mrb[60].mxu0 }
 0xf39   :  { %v4191_v15 = vadd.f32 %v4190_v3, %v10820_v46  ;;  %v4262_v11 = vadd.f32 %v4261_v5, %v10822_v53  ;;  %v4192_v40 = vpop.f32.mrb[53].mxu1  ;;  %v4263_v13 = vpop.f32.mrb[61].mxu0 }
 0xf3a   :  { %v4193_v57 = vadd.f32 %v4192_v40, %v10808_v2  ;;  %v4264_v23 = vadd.f32 %v4263_v13, %v10860_v35  ;;  %v11833_v35 = vld [vmem:[#allocation31_spill] sm:$0xff]  ;;  %v4320_v13 = vld [vmem:[#allocation18 + $0x20] sm:$0xff] }
 0xf3b   :  { %v4271_v60 = vadd.f32 %v4191_v15, %v11829_v24  ;;  %v4273_v9 = vadd.f32 %v4262_v11, %v11830_v17  ;;  %v331_v15 = vmax.f32 %v11833_v35, 0.0  ;;  %v4340_v35 = vld [vmem:[#allocation18 + $0xc0] sm:$0xff] }
 0xf3c   :  { %v4272_v26 = vadd.f32 %v4193_v57, %v11831_v62  ;;  %v4274_v52 = vadd.f32 %v4264_v23, %v11832_v38  ;;  %v4325_v57 = vld [vmem:[#allocation18 + $0x48] sm:$0xff] }
 0xf3d   :  { %v6284_v33 = vmul.f32 -1.442695, %v4271_v60  ;;  %v339_v40 = vsub.f32 0.0, %v331_v15  ;;  %v4345_v15 = vld [vmem:[#allocation18 + $0xe8] sm:$0xff] }
 0xf3e   :  { %v6285_v48 = vmul.f32 -1.442695, %v4272_v26  ;;  %v6286_v46 = vmul.f32 -1.442695, %v4274_v52 }
 0xf3f   :  { %9009 = vpow2.f32 %v6284_v33  ;;  %v352_v52 = vmul.f32 1.442695, %v339_v40  ;;  %v4360_v40 = vld [vmem:[#allocation18 + $0x160] sm:$0xff] }
 0xf40   :  { %9011 = vpow2.f32 %v6285_v48 }
 0xf41   :  { %9013 = vpow2.f32 %v6286_v46 }
 0xf42   :  { %9015 = vtanh.f32 %v4273_v9 }
 0xf49   :  { %v9010_v53 = vpop.eup %9009 }
 0xf4a   :  { %v9012_v3 = vpop.eup %9011  ;;  %v4278_v5 = vadd.f32 1.0, %v9010_v53  ;;  %v11016_v53 = vpack.c.bf16 %v4325_v57, %v4320_v13  ;;  %v4395_v13 = vld [vmem:[#allocation18 + $0x278] sm:$0xff] }
 0xf4b   :  { %v4284_v2 = vadd.f32 1.0, %v9012_v3  ;;  %v9014_v17 = vpop.eup %9013 }
 0xf4c   :  { %9017 = vrcp.f32 %v4278_v5  ;;  %v9016_v11 = vpop.eup %9015  ;;  %v4291_v26 = vadd.f32 1.0, %v9014_v17  ;;  %v4330_v5 = vld [vmem:[#allocation18 + $0x70] sm:$0xff]  ;;  %v11029_v17 = vpack.c.bf16 %v4345_v15, %v4340_v35  ;;  %v11852_v35 = vld [vmem:[#allocation66_spill] sm:$0xff]  ;;  %v11853_v15 = vld [vmem:[#allocation65_spill] sm:$0xff] }
 0xf4d   :  { %9019 = vrcp.f32 %v4284_v2  ;;  %v4335_v2 = vld [vmem:[#allocation18 + $0x98] sm:$0xff] }
 0xf4e   :  { %9021 = vrcp.f32 %v4291_v26  ;;  %v4375_v26 = vld [vmem:[#allocation18 + $0x1d8] sm:$0xff] }
 0xf56   :  { %v9018_v62 = vpop.eup %9017 }
 0xf57   :  { %v9020_v38 = vpop.eup %9019  ;;  %v4296_v60 = vmul.f32 %v9018_v62, %v9016_v11  ;;  %v4350_v11 = vld [vmem:[#allocation18 + $0x110] sm:$0xff]  ;;  %v4355_v62 = vld [vmem:[#allocation18 + $0x138] sm:$0xff] }
 0xf58   :  { %v4295_v33 = vmul.f32 %v9020_v38, %v10715_v30  ;;  %v9022_v9 = vpop.eup %9021  ;;  %v11019_v30 = vpack.c.bf16 %v4335_v2, %v4330_v5  ;;  %v4365_v38 = vld [vmem:[#allocation18 + $0x188] sm:$0xff]  ;;  %v11850_v5 = vld [vmem:[#allocation29_spill] sm:$0xff]  ;;  %v11851_v2 = vld [vmem:[#allocation59_spill] sm:$0xff] }
 0xf5a   :  { %v11013_v48 = vadd.f32 %v4296_v60, %v4295_v33  ;;  %v11041_v60 = vpack.c.bf16 %v4365_v38, %v4360_v40  ;;  %v11856_v40 = vld [vmem:[#allocation69_spill] sm:$0xff]  ;;  %v11857_v38 = vld [vmem:[#allocation71_spill] sm:$0xff] }
 0xf5c   :  { %9023 = vtanh.f32 %v11013_v48 }
 0xf5d   :  { %9025 = vpow2.f32 %v352_v52  ;;  %v4385_v52 = vld [vmem:[#allocation18 + $0x228] sm:$0xff] }
 0xf66   :  { %v9024_v23 = vpop.eup %9023 }
 0xf67   :  { %v4299_v24 = vmul.f32 %v9024_v23, %v9022_v9  ;;  %v9026_v46 = vpop.eup %9025  ;;  %v11846_v23 = vld [vmem:[#allocation36_spill] sm:$0xff] }
 0xf69   :  { %v4315_v3 = vmul.f32 %v9026_v46, %v4299_v24  ;;  %v11847_v24 = vld [vmem:[#allocation42_spill] sm:$0xff]  ;;  %v11848_v46 = vld [vmem:[#allocation55_spill] sm:$0xff] }
 0xf6b   :  { %4461 = vmatmul.mubr.f32.vlgmr.msra.gmra.mrb[54].mxu1 %v4315_v3  ;;  %4532 = vmatmul.mubr.f32.vlgmr.msra.gmra.mrb[62].mxu0 %v4315_v3 }
 0xf6c   :  { %8438 = vmatpush3.bf16.msra.mxu1 %v11016_v53  ;;  %7154 = vmatprep.mubr.msk.f32.mxu1 %vm9318_vm0, %v11624_v21 }
 0xf6d   :  { %8439 = vmatprep.subr.bf16.mxu1 %v11623_v12  ;;  %8462 = vmatpush3.bf16.msra.mxu0 %v10718_v44  ;;  %v11035_v44 = vpack.c.bf16 %v4355_v62, %v4350_v11  ;;  %v11854_v11 = vld [vmem:[#allocation67_spill] sm:$0xff]  ;;  %v11855_v62 = vld [vmem:[#allocation68_spill] sm:$0xff] }
 0xf6e   :  { %8463 = vmatprep.subr.bf16.mxu0 %v11623_v12  ;;  %7189 = vmatprep.mubr.msk.f32.mxu0 %vm9318_vm0, %v11624_v21 }
 0xf70   :  { %8441 = vmatpush3.bf16.msra.mxu1 %v11019_v30 }
 0xf71   :  { %8442 = vmatprep.subr.bf16.mxu1 %v11623_v12  ;;  %8465 = vmatpush3.bf16.msra.mxu0 %v10725_v50  ;;  %v4370_v50 = vld [vmem:[#allocation18 + $0x1b0] sm:$0xff] }
 0xf72   :  { %8466 = vmatprep.subr.bf16.mxu0 %v11623_v12  ;;  %v11047_v33 = vpack.c.bf16 %v4375_v26, %v4370_v50  ;;  %v11858_v50 = vld [vmem:[#allocation70_spill] sm:$0xff]  ;;  %v11859_v26 = vld [vmem:[#allocation72_spill] sm:$0xff] }
 0xf74   :  { %8444 = vmatpush3.bf16.msra.mxu1 %v11029_v17 }
 0xf75   :  { %8445 = vmatprep.subr.bf16.mxu1 %v11623_v12  ;;  %8468 = vmatpush3.bf16.msra.mxu0 %v10733_v10  ;;  %v4380_v10 = vld [vmem:[#allocation18 + $0x200] sm:$0xff] }
 0xf76   :  { %8469 = vmatprep.subr.bf16.mxu0 %v11623_v12  ;;  %v11053_v9 = vpack.c.bf16 %v4385_v52, %v4380_v10  ;;  %v11860_v10 = vld [vmem:[#allocation73_spill] sm:$0xff]  ;;  %v11861_v52 = vld [vmem:[#allocation75_spill] sm:$0xff] }
 0xf78   :  { %8447 = vmatpush3.bf16.msra.mxu1 %v11035_v44 }
 0xf79   :  { %8448 = vmatprep.subr.bf16.mxu1 %v11623_v12  ;;  %8471 = vmatpush3.bf16.msra.mxu0 %v10739_v19  ;;  %v4390_v19 = vld [vmem:[#allocation18 + $0x250] sm:$0xff] }
 0xf7a   :  { %8472 = vmatprep.subr.bf16.mxu0 %v11623_v12  ;;  %v11059_v57 = vpack.c.bf16 %v4395_v13, %v4390_v19  ;;  %v11862_v19 = vld [vmem:[#allocation74_spill] sm:$0xff]  ;;  %v11863_v13 = vld [vmem:[#allocation79_spill] sm:$0xff] }
 0xf7c   :  { %8450 = vmatpush3.bf16.msra.mxu1 %v11041_v60 }
 0xf7d   :  { %8451 = vmatprep.subr.bf16.mxu1 %v11623_v12  ;;  %8474 = vmatpush3.bf16.msra.mxu0 %v10745_v43  ;;  %v4310_v43 = vld [vmem:[#allocation10 + $0x28] sm:$0xff] }
 0xf7e   :  { %8475 = vmatprep.subr.bf16.mxu0 %v11623_v12 }
 0xf80   :  { %8453 = vmatpush3.bf16.msra.mxu1 %v11047_v33 }
 0xf81   :  { %8454 = vmatprep.subr.bf16.mxu1 %v11623_v12  ;;  %8477 = vmatpush3.bf16.msra.mxu0 %v10751_v51  ;;  %v4308_v51 = vld [vmem:[#allocation7 + $0x28] sm:$0xff] }
 0xf82   :  { %8478 = vmatprep.subr.bf16.mxu0 %v11623_v12 }
 0xf84   :  { %8456 = vmatpush3.bf16.msra.mxu1 %v11053_v9 }
 0xf85   :  { %8457 = vmatprep.subr.bf16.mxu1 %v11623_v12  ;;  %8480 = vmatpush3.bf16.msra.mxu0 %v10762_v63  ;;  %v4311_v63 = vsub.f32 1.0, %v4310_v43 }
 0xf86   :  { %8481 = vmatprep.subr.bf16.mxu0 %v11623_v12 }
 0xf88   :  { %8459 = vmatpush3.bf16.msra.mxu1 %v11059_v57 }
 0xf89   :  { %8483 = vmatpush3.bf16.msra.mxu0 %v10766_v41  ;;  %8485 = vmatprep.subr.bf16.mxu1 %v10769_v34 }
 0xf8a   :  { %8517 = vmatprep.subr.bf16.mxu0 %v10771_v14  ;;  %v11834_v14 = vld [vmem:[#allocation61_spill] sm:$0xff] }
 0xf8b   :  { %7155 = vmatmul.mubr.f32.vlgmr.msra.gmra.mrb[56].mxu1 %v4315_v3  ;;  %v11849_v3 = vld [vmem:[#allocation41_spill] sm:$0xff] }
 0xf8c   :  { %8487 = vmatpush1.bf16.msra.mxu1 %v10773_v6  ;;  %4834 = vmatprep.mubr.f32.mxu1 %v11624_v21  ;;  %v4701_v6 = vsub.f32 1.0, %v11834_v14 }
 0xf8d   :  { %8489 = vmatprep.subr.bf16.mxu1 %v10778_v27 }
 0xf90   :  { %8491 = vmatpush1.bf16.msra.mxu1 %v10780_v55  ;;  %v4609_v55 = vmul.f32 %v4310_v43, %v4308_v51  ;;  %v11864_v43 = vld [vmem:[#allocation76_spill] sm:$0xff]  ;;  %v11865_v51 = vld [vmem:[#allocation77_spill] sm:$0xff] }
 0xf91   :  { %8493 = vmatprep.subr.bf16.mxu1 %v10783_v56 }
 0xf94   :  { %8495 = vmatpush1.bf16.msra.mxu1 %v10786_v47 }
 0xf95   :  { %8497 = vmatprep.subr.bf16.mxu1 %v10789_v20 }
 0xf98   :  { %8499 = vmatpush1.bf16.msra.mxu1 %v10792_v31 }
 0xf99   :  { %8501 = vmatprep.subr.bf16.mxu1 %v10795_v42 }
 0xf9c   :  { %8503 = vmatpush1.bf16.msra.mxu1 %v10798_v49  ;;  %v11835_v49 = vld [vmem:[#allocation100_spill] sm:$0xff] }
 0xf9d   :  { %8505 = vmatprep.subr.bf16.mxu1 %v10801_v8 }
 0xfa0   :  { %8507 = vmatpush1.bf16.msra.mxu1 %v10862_v37 }
 0xfa1   :  { %8509 = vmatprep.subr.bf16.mxu1 %v10868_v28  ;;  %v11841_v28 = vld [vmem:[#allocation35_spill] sm:$0xff] }
 0xfa4   :  { %8511 = vmatpush1.bf16.msra.mxu1 %v10872_v54  ;;  %v11842_v54 = vld [vmem:[#allocation38_spill] sm:$0xff] }
 0xfa5   :  { %8513 = vmatprep.subr.bf16.mxu1 %v10880_v16  ;;  %v11843_v16 = vld [vmem:[#allocation51_spill] sm:$0xff] }
 0xfa8   :  { %8515 = vmatpush1.bf16.msra.mxu1 %v10884_v25  ;;  %v11844_v25 = vld [vmem:[#allocation60_spill] sm:$0xff] }
 0xfa9   :  { %8549 = vmatprep.subr.bf16.mxu1 %v10905_v0  ;;  %v11845_v0 = vld [vmem:[#allocation30_spill] sm:$0xff] }
0x103e   :  { %v4462_v41 = vpop.f32.mrb[54].mxu1  ;;  %v11085_v34 = vpop.f32.mrb[62].mxu0 }
0x103f   :  { %v4608_v27 = vadd.f32 %v10814_v1, %v4462_v41  ;;  %v11089_v56 = vpop.f32.mrb[55].mxu1  ;;  %v11091_v47 = vpop.f32.mrb[63].mxu0  ;;  %v11836_v1 = vld [vmem:[#allocation101_spill] sm:$0xff]  ;;  %v11867_v41 = vld [vmem:[#allocation80_spill] sm:$0xff] }
0x1041   :  { %v4610_v20 = vmul.f32 %v4608_v27, %v4311_v63  ;;  %v4702_v31 = vmul.f32 %v4701_v6, %v4608_v27  ;;  %4950 = vst [vmem:[#allocation22 + $0xa8] sm:$0xff] %v4608_v27  ;;  %v11869_v6 = vld [vmem:[#allocation82_spill] sm:$0xff] }
0x1043   :  { %v4611_v42 = vadd.f32 %v4610_v20, %v4609_v55 }
0x1045   :  { %7190 = vmatmul.mubr.f32.vlgmr.msra.gmra.mrb[64].mxu0 %v4611_v42 }
0x1046   :  { %8519 = vmatpush1.bf16.msra.mxu0 %v10828_v4  ;;  %4905 = vmatprep.mubr.f32.mxu0 %v11624_v21 }
0x1047   :  { %8521 = vmatprep.subr.bf16.mxu0 %v10831_v32  ;;  %v11837_v32 = vld [vmem:[#allocation103_spill] sm:$0xff] }
0x104a   :  { %8523 = vmatpush1.bf16.msra.mxu0 %v10834_v36  ;;  %v11838_v36 = vld [vmem:[#allocation102_spill] sm:$0xff] }
0x104b   :  { %8525 = vmatprep.subr.bf16.mxu0 %v10838_v7  ;;  %v11839_v7 = vld [vmem:[#allocation39_spill] sm:$0xff] }
0x104e   :  { %8527 = vmatpush1.bf16.msra.mxu0 %v10841_v29 }
0x104f   :  { %8529 = vmatprep.subr.bf16.mxu0 %v10844_v45  ;;  %v11840_v45 = vld [vmem:[#allocation104_spill] sm:$0xff] }
0x1052   :  { %8531 = vmatpush1.bf16.msra.mxu0 %v10847_v18 }
0x1053   :  { %8533 = vmatprep.subr.bf16.mxu0 %v10850_v22 }
0x1056   :  { %8535 = vmatpush1.bf16.msra.mxu0 %v10853_v61 }
0x1057   :  { %8537 = vmatprep.subr.bf16.mxu0 %v10856_v39 }
0x105a   :  { %8539 = vmatpush1.bf16.msra.mxu0 %v10864_v59 }
0x105b   :  { %8541 = vmatprep.subr.bf16.mxu0 %v11835_v49 }
0x105e   :  { %v4604_v8 = vpop.f32.mrb[56].mxu1  ;;  %8543 = vmatpush1.bf16.msra.mxu0 %v11836_v1 }
0x105f   :  { %v7156_v4 = vpop.f32.mrb[57].mxu1  ;;  %8545 = vmatprep.subr.bf16.mxu0 %v11837_v32 }
0x1060   :  { %v11870_v4 = vld [vmem:[#allocation43_spill] sm:$0xff] }
0x1062   :  { %8547 = vmatpush1.bf16.msra.mxu0 %v11838_v36  ;;  %v11871_v36 = vld [vmem:[#allocation50_spill] sm:$0xff] }
0x1063   :  { %8581 = vmatprep.subr.bf16.mxu0 %v11839_v7 }
0x1118   :  { %v4694_v29 = vpop.f32.mrb[64].mxu0 }
0x1119   :  { %v4695_v18 = vadd.f32 %v11840_v45, %v4694_v29  ;;  %v7191_v22 = vpop.f32.mrb[65].mxu0  ;;  %v11872_v29 = vld [vmem:[#allocation49_spill] sm:$0xff] }
0x111b   :  { %v4700_v61 = vmul.f32 %v4695_v18, %v11834_v14  ;;  %4951 = vst [vmem:[#allocation22 + $0xb0] sm:$0xff] %v4695_v18  ;;  %v11868_v14 = vld [vmem:[#allocation81_spill] sm:$0xff]  ;;  %v11873_v18 = vld [vmem:[#allocation56_spill] sm:$0xff] }
0x111d   :  { %v4703_v39 = vadd.f32 %v4702_v31, %v4700_v61 }
0x111f   :  { %v4704_v37 = vmul.f32 %v4703_v39, %v4311_v63  ;;  %4952 = vst [vmem:[#allocation22 + $0xb8] sm:$0xff] %v4703_v39  ;;  %v11866_v63 = vld [vmem:[#allocation78_spill] sm:$0xff] }
0x1121   :  { %v4705_v59 = vadd.f32 %v4704_v37, %v4609_v55 }
0x1123   :  { %4835 = vmatmul.mubr.f32.vlgmr.msra.gmra.mrb[58].mxu1 %v4705_v59  ;;  %4949 = vst [vmem:[#allocation22 + $0xa0] sm:$0xff] %v4705_v59  ;;  %4906 = vmatmul.mubr.f32.vlgmr.msra.gmra.mrb[66].mxu0 %v4705_v59 }
0x1124   :  { %8551 = vmatpush1.bf16.msra.mxu1 %v11841_v28  ;;  %8583 = vmatpush1.bf16.msra.mxu0 %v11842_v54 }
0x1125   :  { %8553 = vmatprep.subr.bf16.mxu1 %v11843_v16  ;;  %8585 = vmatprep.subr.bf16.mxu0 %v11844_v25 }
0x1126   :  { %5106 = vmatprep.mubr.f32.mxu1 %v11624_v21  ;;  %5177 = vmatprep.mubr.f32.mxu0 %v11624_v21 }
0x1128   :  { %8555 = vmatpush1.bf16.msra.mxu1 %v11845_v0  ;;  %8587 = vmatpush1.bf16.msra.mxu0 %v11846_v23 }
0x1129   :  { %8557 = vmatprep.subr.bf16.mxu1 %v11847_v24  ;;  %8589 = vmatprep.subr.bf16.mxu0 %v11848_v46 }
0x112c   :  { %8559 = vmatpush1.bf16.msra.mxu1 %v11849_v3  ;;  %8591 = vmatpush1.bf16.msra.mxu0 %v11850_v5 }
0x112d   :  { %8561 = vmatprep.subr.bf16.mxu1 %v11851_v2  ;;  %8593 = vmatprep.subr.bf16.mxu0 %v11852_v35 }
0x1130   :  { %8563 = vmatpush1.bf16.msra.mxu1 %v11853_v15  ;;  %8595 = vmatpush1.bf16.msra.mxu0 %v11854_v11  ;;  %v5258_v11 = vld [vmem:[#allocation19] sm:$0xff] }
0x1131   :  { %8565 = vmatprep.subr.bf16.mxu1 %v11855_v62  ;;  %8597 = vmatprep.subr.bf16.mxu0 %v11856_v40  ;;  %v5259_v62 = vld [vmem:[#allocation19 + $0x8] sm:$0xff] }
0x1134   :  { %8567 = vmatpush1.bf16.msra.mxu1 %v11857_v38  ;;  %8599 = vmatpush1.bf16.msra.mxu0 %v11858_v50 }
0x1135   :  { %8569 = vmatprep.subr.bf16.mxu1 %v11859_v26  ;;  %8601 = vmatprep.subr.bf16.mxu0 %v11860_v10  ;;  %v11158_v26 = vpack.c.bf16 %v5259_v62, %v5258_v11  ;;  %v5260_v10 = vld [vmem:[#allocation19 + $0x10] sm:$0xff] }
0x1138   :  { %8571 = vmatpush1.bf16.msra.mxu1 %v10966_v58  ;;  %8603 = vmatpush1.bf16.msra.mxu0 %v11861_v52  ;;  %v5261_v52 = vld [vmem:[#allocation19 + $0x18] sm:$0xff] }
0x1139   :  { %8573 = vmatprep.subr.bf16.mxu1 %v11862_v19  ;;  %8605 = vmatprep.subr.bf16.mxu0 %v11863_v13  ;;  %v5262_v19 = vld [vmem:[#allocation19 + $0x20] sm:$0xff]  ;;  %v5263_v13 = vld [vmem:[#allocation19 + $0x28] sm:$0xff] }
0x113c   :  { %8575 = vmatpush1.bf16.msra.mxu1 %v11864_v43  ;;  %8607 = vmatpush1.bf16.msra.mxu0 %v11865_v51  ;;  %v5264_v43 = vld [vmem:[#allocation19 + $0x30] sm:$0xff]  ;;  %v5265_v51 = vld [vmem:[#allocation19 + $0x38] sm:$0xff] }
0x113d   :  { %8577 = vmatprep.subr.bf16.mxu1 %v11866_v63  ;;  %8609 = vmatprep.subr.bf16.mxu0 %v11867_v41  ;;  %v11179_v63 = vpack.c.bf16 %v5265_v51, %v5264_v43  ;;  %v5267_v41 = vld [vmem:[#allocation19 + $0x48] sm:$0xff]  ;;  %v11254_v43 = vld [vmem:[%s11447_s11] ss:$0 sm:$0xff] }
0x1140   :  { %8579 = vmatpush1.bf16.msra.mxu1 %v11868_v14  ;;  %8611 = vmatpush1.bf16.msra.mxu0 %v11869_v6  ;;  %v5269_v6 = vld [vmem:[#allocation19 + $0x58] sm:$0xff] }
0x1141   :  { %8612 = vmatprep.subr.bf16.mxu1 %v11623_v12  ;;  %8636 = vmatprep.subr.bf16.mxu0 %v11623_v12 }
0x11f6   :  { %v4836_v58 = vpop.f32.mrb[58].mxu1  ;;  %v4907_v27 = vpop.f32.mrb[66].mxu0 }
0x11f7   :  { %v4837_v55 = vadd.f32 %v4836_v58, %v11089_v56  ;;  %v4908_v20 = vadd.f32 %v4907_v27, %v11091_v47  ;;  %v4838_v31 = vpop.f32.mrb[59].mxu1  ;;  %v4909_v42 = vpop.f32.mrb[67].mxu0 }
0x11f8   :  { %v4839_v49 = vadd.f32 %v4838_v31, %v11085_v34  ;;  %v4910_v1 = vadd.f32 %v4909_v42, %v4604_v8  ;;  %v11874_v8 = vld [vmem:[#allocation34_spill] sm:$0xff] }
0x11f9   :  { %v4917_v32 = vadd.f32 %v4837_v55, %v11870_v4  ;;  %v4919_v7 = vadd.f32 %v4908_v20, %v11871_v36  ;;  %v332_v28 = vmax.f32 %v11874_v8, 0.0  ;;  %v5273_v55 = vld [vmem:[#allocation19 + $0x78] sm:$0xff]  ;;  %v5357_v31 = vld [vmem:[#allocation21 + $0x28] sm:$0xff]  ;;  %v5356_v4 = vld [vmem:[#allocation21 + $0x20] sm:$0xff] }
0x11fa   :  { %v4918_v45 = vadd.f32 %v4839_v49, %v11872_v29  ;;  %v4920_v22 = vadd.f32 %v4910_v1, %v11873_v18  ;;  %v5359_v49 = vld [vmem:[#allocation21 + $0x38] sm:$0xff]  ;;  %v5352_v1 = vld [vmem:[#allocation21] sm:$0xff]  ;;  %v5365_v29 = vld [vmem:[#allocation21 + $0x68] sm:$0xff] }
0x11fb   :  { %v6287_v61 = vmul.f32 -1.442695, %v4917_v32  ;;  %v340_v0 = vsub.f32 0.0, %v332_v28  ;;  %v11213_v36 = vpack.c.bf16 %v5356_v4, %v5352_v1  ;;  %v5360_v18 = vld [vmem:[#allocation21 + $0x40] sm:$0xff]  ;;  %v5377_v8 = vld [vmem:[#allocation21 + $0xc8] sm:$0xff]  ;;  %v5362_v1 = vld [vmem:[#allocation21 + $0x50] sm:$0xff] }
0x11fc   :  { %v6288_v39 = vmul.f32 -1.442695, %v4918_v45  ;;  %v6289_v56 = vmul.f32 -1.442695, %v4920_v22  ;;  %v5364_v22 = vld [vmem:[#allocation21 + $0x60] sm:$0xff]  ;;  %v5381_v28 = vld [vmem:[#allocation21 + $0xe8] sm:$0xff] }
0x11fd   :  { %9027 = vpow2.f32 %v6287_v61  ;;  %v354_v5 = vmul.f32 1.442695, %v340_v0  ;;  %v11220_v61 = vpack.c.bf16 %v5364_v22, %v5360_v18  ;;  %v5385_v0 = vld [vmem:[#allocation21 + $0x108] sm:$0xff]  ;;  %v5366_v4 = vld [vmem:[#allocation21 + $0x70] sm:$0xff] }
0x11fe   :  { %9029 = vpow2.f32 %v6288_v39  ;;  %v5369_v39 = vld [vmem:[#allocation21 + $0x88] sm:$0xff]  ;;  %v11274_v18 = vpack.c.bf16 %v5366_v4, %v5362_v1  ;;  %v5398_v1 = vld [vmem:[#allocation21 + $0x170] sm:$0xff] }
0x11ff   :  { %9031 = vpow2.f32 %v6289_v56  ;;  %v5373_v56 = vld [vmem:[#allocation21 + $0xa8] sm:$0xff] }
0x1200   :  { %9033 = vtanh.f32 %v4919_v7  ;;  %v5361_v7 = vld [vmem:[#allocation21 + $0x48] sm:$0xff] }
0x1201   :  { %v11218_v45 = vpack.c.bf16 %v5365_v29, %v5361_v7  ;;  %v5371_v7 = vld [vmem:[#allocation21 + $0x98] sm:$0xff] }
0x1202   :  { %v5375_v29 = vld [vmem:[#allocation21 + $0xb8] sm:$0xff] }
0x1203   :  { %v11278_v22 = vpack.c.bf16 %v5375_v29, %v5371_v7  ;;  %v5401_v7 = vld [vmem:[#allocation21 + $0x188] sm:$0xff] }
0x1204   :  { %v5405_v29 = vld [vmem:[#allocation21 + $0x1a8] sm:$0xff] }
0x1207   :  { %v9028_v37 = vpop.eup %9027 }
0x1208   :  { %v9030_v47 = vpop.eup %9029  ;;  %v4924_v59 = vadd.f32 1.0, %v9028_v37  ;;  %v11223_v37 = vpack.c.bf16 %v5373_v56, %v5369_v39  ;;  %v5370_v39 = vld [vmem:[#allocation21 + $0x90] sm:$0xff] }
0x1209   :  { %v4930_v34 = vadd.f32 1.0, %v9030_v47  ;;  %v9032_v54 = vpop.eup %9031  ;;  %v5368_v47 = vld [vmem:[#allocation21 + $0x80] sm:$0xff]  ;;  %v5374_v56 = vld [vmem:[#allocation21 + $0xb0] sm:$0xff] }
0x120a   :  { %9035 = vrcp.f32 %v4924_v59  ;;  %v9034_v16 = vpop.eup %9033  ;;  %v4937_v46 = vadd.f32 1.0, %v9032_v54  ;;  %v5372_v59 = vld [vmem:[#allocation21 + $0xa0] sm:$0xff]  ;;  %v11229_v54 = vpack.c.bf16 %v5381_v28, %v5377_v8  ;;  %v11281_v8 = vpack.c.bf16 %v5374_v56, %v5370_v39  ;;  %v5403_v39 = vld [vmem:[#allocation21 + $0x198] sm:$0xff] }
0x120b   :  { %9037 = vrcp.f32 %v4930_v34  ;;  %v11226_v34 = vpack.c.bf16 %v5372_v59, %v5368_v47  ;;  %v5379_v47 = vld [vmem:[#allocation21 + $0xd8] sm:$0xff]  ;;  %v11308_v56 = vpack.c.bf16 %v5405_v29, %v5401_v7 }
0x120c   :  { %9039 = vrcp.f32 %v4937_v46  ;;  %v5383_v59 = vld [vmem:[#allocation21 + $0xf8] sm:$0xff] }
0x120d   :  { %v11284_v28 = vpack.c.bf16 %v5383_v59, %v5379_v47  ;;  %v5407_v47 = vld [vmem:[#allocation21 + $0x1b8] sm:$0xff]  ;;  %v5400_v59 = vld [vmem:[#allocation21 + $0x180] sm:$0xff] }
0x1214   :  { %v9036_v25 = vpop.eup %9035 }
0x1215   :  { %v9038_v23 = vpop.eup %9037  ;;  %v4942_v24 = vmul.f32 %v9036_v25, %v9034_v16  ;;  %v5376_v16 = vld [vmem:[#allocation21 + $0xc0] sm:$0xff] }
0x1216   :  { %v4941_v3 = vmul.f32 %v9038_v23, %v11013_v48  ;;  %v9040_v35 = vpop.eup %9039  ;;  %v11165_v48 = vpack.c.bf16 %v5261_v52, %v5260_v10  ;;  %v5380_v25 = vld [vmem:[#allocation21 + $0xe0] sm:$0xff]  ;;  %v5389_v23 = vld [vmem:[#allocation21 + $0x128] sm:$0xff] }
0x1217   :  { %v11235_v46 = vpack.c.bf16 %v5389_v23, %v5385_v0  ;;  %v5387_v0 = vld [vmem:[#allocation21 + $0x118] sm:$0xff] }
0x1218   :  { %v11155_v2 = vadd.f32 %v4942_v24, %v4941_v3  ;;  %v11232_v24 = vpack.c.bf16 %v5380_v25, %v5376_v16  ;;  %v5384_v3 = vld [vmem:[#allocation21 + $0x100] sm:$0xff]  ;;  %v5378_v16 = vld [vmem:[#allocation21 + $0xd0] sm:$0xff]  ;;  %v5391_v23 = vld [vmem:[#allocation21 + $0x138] sm:$0xff] }
0x1219   :  { %v5382_v25 = vld [vmem:[#allocation21 + $0xf0] sm:$0xff] }
0x121a   :  { %9041 = vtanh.f32 %v11155_v2 }
0x121b   :  { %9043 = vpow2.f32 %v354_v5  ;;  %v5388_v5 = vld [vmem:[#allocation21 + $0x120] sm:$0xff] }
0x121c   :  { %v11238_v11 = vpack.c.bf16 %v5388_v5, %v5384_v3  ;;  %v11287_v3 = vpack.c.bf16 %v5382_v25, %v5378_v16  ;;  %v11290_v5 = vpack.c.bf16 %v5391_v23, %v5387_v0  ;;  %v5404_v16 = vld [vmem:[#allocation21 + $0x1a0] sm:$0xff]  ;;  %v11310_v25 = vpack.c.bf16 %v5407_v47, %v5403_v39  ;;  %v5402_v23 = vld [vmem:[#allocation21 + $0x190] sm:$0xff] }
0x121d   :  { %v11312_v0 = vpack.c.bf16 %v5404_v16, %v5400_v59  ;;  %v5410_v39 = vld [vmem:[#allocation21 + $0x1d0] sm:$0xff] }
0x121e   :  { %11878 = vst [vmem:[#allocation85_spill] sm:$0xff] %v11310_v25  ;;  %v5414_v47 = vld [vmem:[#allocation21 + $0x1f0] sm:$0xff] }
0x121f   :  { %v11327_v59 = vpack.c.bf16 %v5414_v47, %v5410_v39  ;;  %v5614_v39 = vld [vmem:[#allocation18 + $0x30] sm:$0xff] }
0x1221   :  { %11881 = vst [vmem:[#allocation88_spill] sm:$0xff] %v11327_v59 }
0x1224   :  { %v9042_v15 = vpop.eup %9041 }
0x1225   :  { %v4945_v40 = vmul.f32 %v9042_v15, %v9040_v35  ;;  %v9044_v38 = vpop.eup %9043  ;;  %v5393_v35 = vld [vmem:[#allocation21 + $0x148] sm:$0xff] }
0x1226   :  { %v5397_v15 = vld [vmem:[#allocation21 + $0x168] sm:$0xff] }
0x1227   :  { %v4961_v50 = vmul.f32 %v9044_v38, %v4945_v40  ;;  %v11241_v62 = vpack.c.bf16 %v5397_v15, %v5393_v35  ;;  %v11245_v40 = vld [vmem:[#allocation10 + $0x30] sm:$0xff] }
0x1228   :  { %v4954_v38 = vld [vmem:[#allocation7 + $0x30] sm:$0xff] }
0x1229   :  { %5107 = vmatmul.mubr.f32.vlgmr.msra.gmra.mrb[60].mxu1 %v4961_v50  ;;  %5178 = vmatmul.mubr.f32.vlgmr.msra.gmra.mrb[68].mxu0 %v4961_v50  ;;  %v5386_v35 = vld [vmem:[#allocation21 + $0x110] sm:$0xff] }
0x122a   :  { %8614 = vmatpush3.bf16.msra.mxu1 %v11016_v53  ;;  %7224 = vmatprep.mubr.msk.f32.mxu1 %vm9318_vm0, %v11624_v21  ;;  %v11173_v53 = vpack.c.bf16 %v5263_v13, %v5262_v19  ;;  %v11875_v19 = vld [vmem:[#allocation64_spill] sm:$0xff]  ;;  %v5390_v15 = vld [vmem:[#allocation21 + $0x130] sm:$0xff] }
0x122b   :  { %8615 = vmatprep.subr.bf16.mxu1 %v11623_v12  ;;  %8638 = vmatpush3.bf16.msra.mxu0 %v11158_v26  ;;  %v5347_v13 = vsub.f32 1.0, %v11875_v19 }
0x122c   :  { %8639 = vmatprep.subr.bf16.mxu0 %v11623_v12  ;;  %7259 = vmatprep.mubr.msk.f32.mxu0 %vm9318_vm0, %v11624_v21 }
0x122e   :  { %8617 = vmatpush3.bf16.msra.mxu1 %v11019_v30  ;;  %v5266_v30 = vld [vmem:[#allocation19 + $0x40] sm:$0xff] }
0x122f   :  { %8618 = vmatprep.subr.bf16.mxu1 %v11623_v12  ;;  %8641 = vmatpush3.bf16.msra.mxu0 %v11165_v48  ;;  %v11185_v14 = vpack.c.bf16 %v5267_v41, %v5266_v30  ;;  %v11258_v30 = vmul.f32 %v11245_v40, %v4954_v38  ;;  %v5395_v38 = vld [vmem:[#allocation21 + $0x158] sm:$0xff] }
0x1230   :  { %8642 = vmatprep.subr.bf16.mxu0 %v11623_v12 }
0x1232   :  { %8620 = vmatpush3.bf16.msra.mxu1 %v11029_v17  ;;  %v5268_v17 = vld [vmem:[#allocation19 + $0x50] sm:$0xff] }
0x1233   :  { %8621 = vmatprep.subr.bf16.mxu1 %v11623_v12  ;;  %8644 = vmatpush3.bf16.msra.mxu0 %v11173_v53  ;;  %v11191_v58 = vpack.c.bf16 %v5269_v6, %v5268_v17  ;;  %v5354_v6 = vld [vmem:[#allocation21 + $0x10] sm:$0xff] }
0x1234   :  { %8645 = vmatprep.subr.bf16.mxu0 %v11623_v12 }
0x1236   :  { %8623 = vmatpush3.bf16.msra.mxu1 %v11035_v44  ;;  %v5270_v44 = vld [vmem:[#allocation19 + $0x60] sm:$0xff] }
0x1237   :  { %8624 = vmatprep.subr.bf16.mxu1 %v11623_v12  ;;  %8647 = vmatpush3.bf16.msra.mxu0 %v11179_v63 }
0x1238   :  { %8648 = vmatprep.subr.bf16.mxu0 %v11623_v12 }
0x123a   :  { %8626 = vmatpush3.bf16.msra.mxu1 %v11041_v60  ;;  %v5271_v60 = vld [vmem:[#allocation19 + $0x68] sm:$0xff] }
0x123b   :  { %8627 = vmatprep.subr.bf16.mxu1 %v11623_v12  ;;  %8650 = vmatpush3.bf16.msra.mxu0 %v11185_v14  ;;  %v11202_v27 = vpack.c.bf16 %v5271_v60, %v5270_v44  ;;  %v5358_v44 = vld [vmem:[#allocation21 + $0x30] sm:$0xff]  ;;  %v5363_v60 = vld [vmem:[#allocation21 + $0x58] sm:$0xff] }
0x123c   :  { %8651 = vmatprep.subr.bf16.mxu0 %v11623_v12 }
0x123e   :  { %8629 = vmatpush3.bf16.msra.mxu1 %v11047_v33  ;;  %v5272_v33 = vld [vmem:[#allocation19 + $0x70] sm:$0xff] }
0x123f   :  { %8630 = vmatprep.subr.bf16.mxu1 %v11623_v12  ;;  %8653 = vmatpush3.bf16.msra.mxu0 %v11191_v58  ;;  %v11206_v20 = vpack.c.bf16 %v5273_v55, %v5272_v33  ;;  %v5367_v33 = vld [vmem:[#allocation21 + $0x78] sm:$0xff] }
0x1240   :  { %8654 = vmatprep.subr.bf16.mxu0 %v11623_v12 }
0x1242   :  { %8632 = vmatpush3.bf16.msra.mxu1 %v11053_v9  ;;  %v5353_v9 = vld [vmem:[#allocation21 + $0x8] sm:$0xff] }
0x1243   :  { %8633 = vmatprep.subr.bf16.mxu1 %v11623_v12  ;;  %8656 = vmatpush3.bf16.msra.mxu0 %v11202_v27  ;;  %v11209_v42 = vpack.c.bf16 %v5357_v31, %v5353_v9  ;;  %v11268_v31 = vpack.c.bf16 %v5358_v44, %v5354_v6 }
0x1244   :  { %8657 = vmatprep.subr.bf16.mxu0 %v11623_v12 }
0x1246   :  { %8635 = vmatpush3.bf16.msra.mxu1 %v11059_v57  ;;  %v5355_v57 = vld [vmem:[#allocation21 + $0x18] sm:$0xff] }
0x1247   :  { %8659 = vmatpush3.bf16.msra.mxu0 %v11206_v20  ;;  %v11211_v32 = vpack.c.bf16 %v5359_v49, %v5355_v57  ;;  %8661 = vmatprep.subr.bf16.mxu1 %v11209_v42  ;;  %v11271_v49 = vpack.c.bf16 %v5367_v33, %v5363_v60  ;;  %v5392_v60 = vld [vmem:[#allocation21 + $0x140] sm:$0xff] }
0x1248   :  { %v5396_v33 = vld [vmem:[#allocation21 + $0x160] sm:$0xff] }
0x1249   :  { %7225 = vmatmul.mubr.f32.vlgmr.msra.gmra.mrb[62].mxu1 %v4961_v50  ;;  %8693 = vmatprep.subr.bf16.mxu0 %v11211_v32  ;;  %v4957_v50 = vsub.f32 1.0, %v11245_v40  ;;  %v5610_v40 = vld [vmem:[#allocation18 + $0x10] sm:$0xff] }
0x124a   :  { %5480 = vmatprep.mubr.f32.mxu1 %v11624_v21  ;;  %8663 = vmatpush1.bf16.msra.mxu1 %v11213_v36 }
0x124b   :  { %8665 = vmatprep.subr.bf16.mxu1 %v11218_v45 }
0x124e   :  { %8667 = vmatpush1.bf16.msra.mxu1 %v11220_v61 }
0x124f   :  { %8669 = vmatprep.subr.bf16.mxu1 %v11223_v37 }
0x1252   :  { %8671 = vmatpush1.bf16.msra.mxu1 %v11226_v34 }
0x1253   :  { %8673 = vmatprep.subr.bf16.mxu1 %v11229_v54 }
0x1256   :  { %8675 = vmatpush1.bf16.msra.mxu1 %v11232_v24 }
0x1257   :  { %8677 = vmatprep.subr.bf16.mxu1 %v11235_v46 }
0x125a   :  { %8679 = vmatpush1.bf16.msra.mxu1 %v11238_v11 }
0x125b   :  { %8681 = vmatprep.subr.bf16.mxu1 %v11241_v62 }
0x12fc   :  { %v5108_v10 = vpop.f32.mrb[60].mxu1  ;;  %v11248_v52 = vpop.f32.mrb[68].mxu0 }
0x12fd   :  { %v5254_v51 = vadd.f32 %v11254_v43, %v5108_v10  ;;  %v11260_v41 = vpop.f32.mrb[61].mxu1  ;;  %v11262_v17 = vpop.f32.mrb[69].mxu0  ;;  %v5399_v10 = vld [vmem:[#allocation21 + $0x178] sm:$0xff] }
0x12ff   :  { %v5256_v55 = vmul.f32 %v5254_v51, %v4957_v50  ;;  %v11266_v9 = vmul.f32 %v5347_v13, %v5254_v51  ;;  %5596 = vst [vmem:[#allocation22 + $0xc8] sm:$0xff] %v5254_v51  ;;  %v11293_v13 = vpack.c.bf16 %v5390_v15, %v5386_v35  ;;  %v11296_v51 = vpack.c.bf16 %v5399_v10, %v5395_v38  ;;  %v5406_v35 = vld [vmem:[#allocation21 + $0x1b0] sm:$0xff]  ;;  %v5409_v38 = vld [vmem:[#allocation21 + $0x1c8] sm:$0xff] }
0x1300   :  { %v11315_v15 = vpack.c.bf16 %v5406_v35, %v5402_v23  ;;  %v5413_v10 = vld [vmem:[#allocation21 + $0x1e8] sm:$0xff]  ;;  %v11335_v23 = vld [vmem:[%s11449_s13] ss:$0 sm:$0xff]  ;;  %s9319_s13 = smov [#allocation22]  }
0x1301   :  { %v5257_v57 = vadd.f32 %v5256_v55, %v11258_v30  ;;  %11876 = vst [vmem:[#allocation83_spill] sm:$0xff] %v11296_v51  ;;  %v5394_v55 = vld [vmem:[#allocation21 + $0x150] sm:$0xff]  ;;  %11882 = vst [vmem:[#allocation89_spill] sm:$0xff] %v11335_v23  ;;  %s6250_s30 = sshll.u32 %s9319_s13, 4  ;;  %s6251_s30 = int_to_ptr.vmem [resolvable:$true] %s6250_s30 }
0x1302   :  { %v11304_v4 = vpack.c.bf16 %v5398_v1, %v5394_v55  ;;  %11879 = vst [vmem:[#allocation86_spill] sm:$0xff] %v11315_v15  ;;  %v5408_v55 = vld [vmem:[#allocation21 + $0x1c0] sm:$0xff]  ;;  %s9267_s14 = scalar_lea.vmem %s6251_s30, 4096  ;;  %p9272_p3 = scmp.lt.s32.totalorder %s6251_s30, %s6251_s30 }
0x1303   :  { %7260 = vmatmul.mubr.f32.vlgmr.msra.gmra.mrb[70].mxu0 %v5257_v57  ;;  %v11302_v57 = vpack.c.bf16 %v5396_v33, %v5392_v60  ;;  %v11320_v60 = vpack.c.bf16 %v5413_v10, %v5409_v38  ;;  %v5415_v33 = vld [vmem:[#allocation21 + $0x1f8] sm:$0xff]  ;;  %v5412_v1 = vld [vmem:[#allocation21 + $0x1e0] sm:$0xff]  ;;  %p9268_p2 = scmp.ne.s32.totalorder %s6251_s30, %s9267_s14  ;;  %p9273_p4 = scmp.lt.s32.totalorder %s9267_s14, %s9267_s14 }
0x1304   :  { %8695 = vmatpush1.bf16.msra.mxu0 %v11268_v31  ;;  %5551 = vmatprep.mubr.f32.mxu0 %v11624_v21  ;;  %11877 = vst [vmem:[#allocation84_spill] sm:$0xff] %v11304_v4  ;;  %v11324_v29 = vpack.c.bf16 %v5412_v1, %v5408_v55  ;;  %v5609_v1 = vld [vmem:[#allocation18 + $0x8] sm:$0xff] }
0x1305   :  { %8697 = vmatprep.subr.bf16.mxu0 %v11271_v49  ;;  %8683 = vmatpush1.bf16.msra.mxu1 %v11302_v57  ;;  %v8724_v47 = vpack.c.bf16 %v5614_v39, %v5609_v1  ;;  %v5626_v39 = vld [vmem:[#allocation18 + $0x90] sm:$0xff]  ;;  %p9274_p5 = por %p9273_p4, %p9272_p3 }
0x1306   :  { %8685 = vmatprep.subr.bf16.mxu1 %v11308_v56 }
0x1307   :  { %p9275_p6 = pnand %p9274_p5, %p9268_p2 }
0x1308   :  { %8699 = vmatpush1.bf16.msra.mxu0 %v11274_v18 }
0x1309   :  { %8701 = vmatprep.subr.bf16.mxu0 %v11278_v22  ;;  %8687 = vmatpush1.bf16.msra.mxu1 %v11312_v0 }
0x130a   :  { %8689 = vmatprep.subr.bf16.mxu1 %v11320_v60 }
0x130c   :  { %8703 = vmatpush1.bf16.msra.mxu0 %v11281_v8 }
0x130d   :  { %8705 = vmatprep.subr.bf16.mxu0 %v11284_v28  ;;  %8691 = vmatpush1.bf16.msra.mxu1 %v11324_v29 }
0x130e   :  { %8725 = vmatprep.subr.bf16.mxu1 %v8724_v47  ;;  %v5629_v47 = vld [vmem:[#allocation18 + $0xa8] sm:$0xff] }
0x1310   :  { %8707 = vmatpush1.bf16.msra.mxu0 %v11287_v3 }
0x1311   :  { %8709 = vmatprep.subr.bf16.mxu0 %v11290_v5 }
0x1314   :  { %8711 = vmatpush1.bf16.msra.mxu0 %v11293_v13 }
0x1315   :  { %8713 = vmatprep.subr.bf16.mxu0 %v11296_v51  ;;  %v5675_v51 = vld [vmem:[#allocation18 + $0x218] sm:$0xff] }
0x1318   :  { %8715 = vmatpush1.bf16.msra.mxu0 %v11304_v4 }
0x1319   :  { %8717 = vmatprep.subr.bf16.mxu0 %v11310_v25  ;;  %v5625_v25 = vld [vmem:[#allocation18 + $0x88] sm:$0xff] }
0x131c   :  { %v11300_v6 = vpop.f32.mrb[62].mxu1  ;;  %8719 = vmatpush1.bf16.msra.mxu0 %v11315_v15  ;;  %v5620_v15 = vld [vmem:[#allocation18 + $0x60] sm:$0xff] }
0x131d   :  { %v7226_v44 = vpop.f32.mrb[63].mxu1 }
0x131e   :  { %v5411_v44 = vld [vmem:[#allocation21 + $0x1d8] sm:$0xff] }
0x131f   :  { %v11322_v7 = vpack.c.bf16 %v5415_v33, %v5411_v44 }
0x1321   :  { %11880 = vst [vmem:[#allocation87_spill] sm:$0xff] %v11322_v7  ;;  %8721 = vmatprep.subr.bf16.mxu0 %v11322_v7  ;;  %v5621_v7 = vld [vmem:[#allocation18 + $0x68] sm:$0xff] }
0x1322   :  { %8723 = vmatpush1.bf16.msra.mxu0 %v11327_v59  ;;  %v5623_v59 = vld [vmem:[#allocation18 + $0x78] sm:$0xff] }
0x13d6   :  { %v5340_v16 = vpop.f32.mrb[70].mxu0 }
0x13d7   :  { %v5341_v35 = vadd.f32 %v11335_v23, %v5340_v16  ;;  %v7261_v38 = vpop.f32.mrb[71].mxu0  ;;  %v5613_v16 = vld [vmem:[#allocation18 + $0x28] sm:$0xff]  ;;  %v5618_v23 = vld [vmem:[#allocation18 + $0x50] sm:$0xff] }
0x13d8   :  { %v5616_v38 = vld [vmem:[#allocation18 + $0x40] sm:$0xff]  ;;  %v8730_v1 = vpack.c.bf16 %v5623_v59, %v5618_v23 }
0x13d9   :  { %v5346_v10 = vmul.f32 %v5341_v35, %v11875_v19  ;;  %5597 = vst [vmem:[#allocation22 + $0xd0] sm:$0xff] %v5341_v35  ;;  %v5608_v19 = vld [vmem:[#allocation18] sm:$0xff]  ;;  %v5611_v35 = vld [vmem:[#allocation18 + $0x18] sm:$0xff] }
0x13db   :  { %v5349_v44 = vadd.f32 %v11266_v9, %v5346_v10  ;;  %v8726_v9 = vpack.c.bf16 %v5613_v16, %v5608_v19  ;;  %v8756_v10 = vpack.c.bf16 %v5616_v38, %v5611_v35  ;;  %v8760_v19 = vpack.c.bf16 %v5626_v39, %v5621_v7  ;;  %v5634_v35 = vld [vmem:[#allocation18 + $0xd0] sm:$0xff]  ;;  %v5628_v38 = vld [vmem:[#allocation18 + $0xa0] sm:$0xff]  ;;  %v5641_v39 = vld [vmem:[#allocation18 + $0x108] sm:$0xff] }
0x13dc   :  { %v8762_v16 = vpack.c.bf16 %v5625_v25, %v5620_v15  ;;  %v5644_v7 = vld [vmem:[#allocation18 + $0x120] sm:$0xff]  ;;  %v5638_v15 = vld [vmem:[#allocation18 + $0xf0] sm:$0xff] }
0x13dd   :  { %v5350_v33 = vmul.f32 %v5349_v44, %v4957_v50  ;;  %5598 = vst [vmem:[#allocation22 + $0xd8] sm:$0xff] %v5349_v44  ;;  %v5615_v50 = vld [vmem:[#allocation18 + $0x38] sm:$0xff]  ;;  %8757 = vmatprep.subr.bf16.mxu0 %v8756_v10 }
0x13de   :  { %v5619_v44 = vld [vmem:[#allocation18 + $0x58] sm:$0xff] }
0x13df   :  { %v5351_v55 = vadd.f32 %v5350_v33, %v11258_v30  ;;  %v8758_v30 = vpack.c.bf16 %v5615_v50, %v5610_v40  ;;  %v5624_v33 = vld [vmem:[#allocation18 + $0x80] sm:$0xff]  ;;  %v5633_v40 = vld [vmem:[#allocation18 + $0xc8] sm:$0xff]  ;;  %v5631_v50 = vld [vmem:[#allocation18 + $0xb8] sm:$0xff] }
0x13e0   :  { %v8734_v10 = vpack.c.bf16 %v5633_v40, %v5628_v38 }
0x13e1   :  { %5481 = vmatmul.mubr.f32.vlgmr.msra.gmra.mrb[64].mxu1 %v5351_v55  ;;  %5595 = vst [vmem:[#allocation22 + $0xc0] sm:$0xff] %v5351_v55  ;;  %5552 = vmatmul.mubr.f32.vlgmr.msra.gmra.mrb[72].mxu0 %v5351_v55  ;;  %v8728_v55 = vpack.c.bf16 %v5624_v33, %v5619_v44  ;;  %v5636_v44 = vld [vmem:[#allocation18 + $0xe0] sm:$0xff]  ;;  %v5630_v33 = vld [vmem:[#allocation18 + $0xb0] sm:$0xff] }
0x13e2   :  { %5752 = vmatprep.mubr.f32.mxu1 %v11624_v21  ;;  %5823 = vmatprep.mubr.f32.mxu0 %v11624_v21  ;;  %v8764_v59 = vpack.c.bf16 %v5636_v44, %v5631_v50  ;;  %v5654_v50 = vld [vmem:[#allocation18 + $0x170] sm:$0xff]  ;;  %v5648_v44 = vld [vmem:[#allocation18 + $0x140] sm:$0xff] }
0x13e3   :  { %8727 = vmatpush1.bf16.msra.mxu1 %v8726_v9  ;;  %8759 = vmatpush1.bf16.msra.mxu0 %v8758_v30  ;;  %v8732_v9 = vpack.c.bf16 %v5634_v35, %v5629_v47  ;;  %v5635_v30 = vld [vmem:[#allocation18 + $0xd8] sm:$0xff]  ;;  %v5646_v47 = vld [vmem:[#allocation18 + $0x130] sm:$0xff]  ;;  %v5640_v35 = vld [vmem:[#allocation18 + $0x100] sm:$0xff] }
0x13e4   :  { %8729 = vmatprep.subr.bf16.mxu1 %v8728_v55  ;;  %8761 = vmatprep.subr.bf16.mxu0 %v8760_v19  ;;  %v8766_v23 = vpack.c.bf16 %v5635_v30, %v5630_v33  ;;  %v5639_v55 = vld [vmem:[#allocation18 + $0xf8] sm:$0xff]  ;;  %v8768_v38 = vpack.c.bf16 %v5646_v47, %v5641_v39  ;;  %v5653_v33 = vld [vmem:[#allocation18 + $0x168] sm:$0xff]  ;;  %v5664_v39 = vld [vmem:[#allocation18 + $0x1c0] sm:$0xff] }
0x13e5   :  { %v8736_v25 = vpack.c.bf16 %v5644_v7, %v5639_v55  ;;  %v5651_v30 = vld [vmem:[#allocation18 + $0x158] sm:$0xff]  ;;  %v5656_v55 = vld [vmem:[#allocation18 + $0x180] sm:$0xff]  ;;  %v5650_v7 = vld [vmem:[#allocation18 + $0x150] sm:$0xff] }
0x13e6   :  { %v5658_v47 = vld [vmem:[#allocation18 + $0x190] sm:$0xff] }
0x13e7   :  { %8731 = vmatpush1.bf16.msra.mxu1 %v8730_v1  ;;  %8763 = vmatpush1.bf16.msra.mxu0 %v8762_v16  ;;  %v5643_v1 = vld [vmem:[#allocation18 + $0x118] sm:$0xff]  ;;  %v5645_v16 = vld [vmem:[#allocation18 + $0x128] sm:$0xff] }
0x13e8   :  { %8733 = vmatprep.subr.bf16.mxu1 %v8732_v9  ;;  %8765 = vmatprep.subr.bf16.mxu0 %v8764_v59  ;;  %v8738_v19 = vpack.c.bf16 %v5643_v1, %v5638_v15  ;;  %v8770_v40 = vpack.c.bf16 %v5645_v16, %v5640_v35  ;;  %v5649_v9 = vld [vmem:[#allocation18 + $0x148] sm:$0xff]  ;;  %v8742_v59 = vpack.c.bf16 %v5653_v33, %v5648_v44  ;;  %v5663_v35 = vld [vmem:[#allocation18 + $0x1b8] sm:$0xff] }
0x13e9   :  { %v8772_v15 = vpack.c.bf16 %v5656_v55, %v5651_v30  ;;  %v5661_v16 = vld [vmem:[#allocation18 + $0x1a8] sm:$0xff]  ;;  %v5668_v30 = vld [vmem:[#allocation18 + $0x1e0] sm:$0xff] }
0x13ea   :  { %v5665_v44 = vld [vmem:[#allocation18 + $0x1c8] sm:$0xff] }
0x13eb   :  { %8735 = vmatpush1.bf16.msra.mxu1 %v8734_v10  ;;  %8767 = vmatpush1.bf16.msra.mxu0 %v8766_v23  ;;  %v8740_v10 = vpack.c.bf16 %v5654_v50, %v5649_v9  ;;  %v5655_v23 = vld [vmem:[#allocation18 + $0x178] sm:$0xff]  ;;  %v8746_v9 = vpack.c.bf16 %v5663_v35, %v5658_v47  ;;  %v5669_v33 = vld [vmem:[#allocation18 + $0x1e8] sm:$0xff]  ;;  %v5684_v47 = vld [vmem:[#allocation18 + $0x260] sm:$0xff] }
0x13ec   :  { %8737 = vmatprep.subr.bf16.mxu1 %v8736_v25  ;;  %8769 = vmatprep.subr.bf16.mxu0 %v8768_v38  ;;  %v8774_v1 = vpack.c.bf16 %v5655_v23, %v5650_v7  ;;  %v5659_v25 = vld [vmem:[#allocation18 + $0x198] sm:$0xff]  ;;  %v5666_v38 = vld [vmem:[#allocation18 + $0x1d0] sm:$0xff]  ;;  %v5673_v55 = vld [vmem:[#allocation18 + $0x208] sm:$0xff] }
0x13ed   :  { %v8776_v50 = vpack.c.bf16 %v5666_v38, %v5661_v16  ;;  %v8750_v7 = vpack.c.bf16 %v5673_v55, %v5668_v30  ;;  %v5671_v23 = vld [vmem:[#allocation18 + $0x1f8] sm:$0xff] }
0x13ee   :  { %v5683_v38 = vld [vmem:[#allocation18 + $0x258] sm:$0xff] }
0x13ef   :  { %8739 = vmatpush1.bf16.msra.mxu1 %v8738_v19  ;;  %8771 = vmatpush1.bf16.msra.mxu0 %v8770_v40  ;;  %v8744_v19 = vpack.c.bf16 %v5664_v39, %v5659_v25  ;;  %v5660_v40 = vld [vmem:[#allocation18 + $0x1a0] sm:$0xff]  ;;  %v5670_v25 = vld [vmem:[#allocation18 + $0x1f0] sm:$0xff] }
0x13f0   :  { %8741 = vmatprep.subr.bf16.mxu1 %v8740_v10  ;;  %8773 = vmatprep.subr.bf16.mxu0 %v8772_v15  ;;  %v8778_v4 = vpack.c.bf16 %v5665_v44, %v5660_v40  ;;  %v5674_v10 = vld [vmem:[#allocation18 + $0x210] sm:$0xff]  ;;  %v5676_v15 = vld [vmem:[#allocation18 + $0x220] sm:$0xff]  ;;  %v8782_v35 = vpack.c.bf16 %v5675_v51, %v5670_v25  ;;  %v5681_v40 = vld [vmem:[#allocation18 + $0x248] sm:$0xff] }
0x13f1   :  { %v8780_v39 = vpack.c.bf16 %v5676_v15, %v5671_v23  ;;  %v5686_v44 = vld [vmem:[#allocation18 + $0x270] sm:$0xff] }
0x13f3   :  { %8743 = vmatpush1.bf16.msra.mxu1 %v8742_v59  ;;  %8775 = vmatpush1.bf16.msra.mxu0 %v8774_v1  ;;  %v8748_v59 = vpack.c.bf16 %v5674_v10, %v5669_v33  ;;  %v5679_v1 = vld [vmem:[#allocation18 + $0x238] sm:$0xff]  ;;  %v8784_v10 = vpack.c.bf16 %v5686_v44, %v5681_v40 }
0x13f4   :  { %8745 = vmatprep.subr.bf16.mxu1 %v8744_v19  ;;  %8777 = vmatprep.subr.bf16.mxu0 %v8776_v50  ;;  %v8752_v16 = vpack.c.bf16 %v5684_v47, %v5679_v1  ;;  %v5678_v19 = vld [vmem:[#allocation18 + $0x230] sm:$0xff]  ;;  %v5685_v50 = vld [vmem:[#allocation18 + $0x268] sm:$0xff]  ;;  %v11884_v47 = vld [vmem:[#allocation53_spill] sm:$0xff] }
0x13f5   :  { %v8754_v33 = vpack.c.bf16 %v5683_v38, %v5678_v19  ;;  %v11886_v38 = vld [vmem:[#allocation58_spill] sm:$0xff] }
0x13f7   :  { %8747 = vmatpush1.bf16.msra.mxu1 %v8746_v9  ;;  %8779 = vmatpush1.bf16.msra.mxu0 %v8778_v4  ;;  %v5680_v9 = vld [vmem:[#allocation18 + $0x240] sm:$0xff] }
0x13f8   :  { %8749 = vmatprep.subr.bf16.mxu1 %v8748_v59  ;;  %8781 = vmatprep.subr.bf16.mxu0 %v8780_v39  ;;  %v8786_v30 = vpack.c.bf16 %v5685_v50, %v5680_v9  ;;  %v11883_v39 = vld [vmem:[#allocation46_spill] sm:$0xff] }
0x13fb   :  { %8751 = vmatpush1.bf16.msra.mxu1 %v8750_v7  ;;  %8783 = vmatpush1.bf16.msra.mxu0 %v8782_v35 }
0x13fc   :  { %8753 = vmatprep.subr.bf16.mxu1 %v8752_v16  ;;  %8785 = vmatprep.subr.bf16.mxu0 %v8784_v10  ;;  %v11885_v16 = vld [vmem:[#allocation52_spill] sm:$0xff] }
0x13ff   :  { %8755 = vmatpush1.bf16.msra.mxu1 %v8754_v33  ;;  %8787 = vmatpush1.bf16.msra.mxu0 %v8786_v30 }
0x1400   :  { %8788 = vmatprep.subr.bf16.mxu1 %v11623_v12  ;;  %8812 = vmatprep.subr.bf16.mxu0 %v11623_v12 }
0x14b4   :  { %v5482_v51 = vpop.f32.mrb[64].mxu1  ;;  %v5553_v4 = vpop.f32.mrb[72].mxu0 }
0x14b5   :  { %v5483_v55 = vadd.f32 %v5482_v51, %v11260_v41  ;;  %v5554_v59 = vadd.f32 %v5553_v4, %v11262_v17  ;;  %v5484_v23 = vpop.f32.mrb[65].mxu1  ;;  %v5555_v7 = vpop.f32.mrb[73].mxu0 }
0x14b6   :  { %v5485_v15 = vadd.f32 %v5484_v23, %v11248_v52  ;;  %v5556_v25 = vadd.f32 %v5555_v7, %v11300_v6  ;;  %v11887_v6 = vld [vmem:[#allocation33_spill] sm:$0xff] }
0x14b7   :  { %v5563_v1 = vadd.f32 %v5483_v55, %v11883_v39  ;;  %v5565_v35 = vadd.f32 %v5554_v59, %v11884_v47  ;;  %v333_v10 = vmax.f32 %v11887_v6, 0.0  ;;  %v5612_v47 = vld [vmem:[#allocation18 + $0x20] sm:$0xff]  ;;  %v5647_v6 = vld [vmem:[#allocation18 + $0x138] sm:$0xff] }
0x14b8   :  { %v5564_v19 = vadd.f32 %v5485_v15, %v11885_v16  ;;  %v5566_v40 = vadd.f32 %v5556_v25, %v11886_v38 }
0x14b9   :  { %v6290_v44 = vmul.f32 -1.442695, %v5563_v1  ;;  %v341_v55 = vsub.f32 0.0, %v333_v10 }
0x14ba   :  { %v6291_v9 = vmul.f32 -1.442695, %v5564_v19  ;;  %v6292_v41 = vmul.f32 -1.442695, %v5566_v40 }
0x14bb   :  { %9045 = vpow2.f32 %v6290_v44  ;;  %v356_v25 = vmul.f32 1.442695, %v341_v55  ;;  %v5667_v55 = vld [vmem:[#allocation18 + $0x1d8] sm:$0xff] }
0x14bc   :  { %9047 = vpow2.f32 %v6291_v9  ;;  %v5622_v9 = vld [vmem:[#allocation18 + $0x70] sm:$0xff] }
0x14bd   :  { %9049 = vpow2.f32 %v6292_v41  ;;  %v5627_v41 = vld [vmem:[#allocation18 + $0x98] sm:$0xff] }
0x14be   :  { %9051 = vtanh.f32 %v5565_v35  ;;  %v5617_v35 = vld [vmem:[#allocation18 + $0x48] sm:$0xff] }
0x14bf   :  { %v8789_v40 = vpack.c.bf16 %v5617_v35, %v5612_v47 }
0x14c5   :  { %v9046_v17 = vpop.eup %9045 }
0x14c6   :  { %v9048_v50 = vpop.eup %9047  ;;  %v5570_v33 = vadd.f32 1.0, %v9046_v17  ;;  %v8792_v17 = vpack.c.bf16 %v5627_v41, %v5622_v9 }
0x14c7   :  { %v5576_v52 = vadd.f32 1.0, %v9048_v50  ;;  %v9050_v30 = vpop.eup %9049  ;;  %v5637_v50 = vld [vmem:[#allocation18 + $0xe8] sm:$0xff] }
0x14c8   :  { %9053 = vrcp.f32 %v5570_v33  ;;  %v9052_v51 = vpop.eup %9051  ;;  %v5583_v7 = vadd.f32 1.0, %v9050_v30  ;;  %v5657_v30 = vld [vmem:[#allocation18 + $0x188] sm:$0xff] }
0x14c9   :  { %9055 = vrcp.f32 %v5576_v52  ;;  %v5642_v52 = vld [vmem:[#allocation18 + $0x110] sm:$0xff] }
0x14ca   :  { %9057 = vrcp.f32 %v5583_v7  ;;  %v8798_v10 = vpack.c.bf16 %v5647_v6, %v5642_v52  ;;  %v5682_v7 = vld [vmem:[#allocation18 + $0x250] sm:$0xff] }
0x14d2   :  { %v9054_v4 = vpop.eup %9053 }
0x14d3   :  { %v9056_v59 = vpop.eup %9055  ;;  %v5588_v23 = vmul.f32 %v9054_v4, %v9052_v51  ;;  %v5662_v4 = vld [vmem:[#allocation18 + $0x1b0] sm:$0xff] }
0x14d4   :  { %v5587_v15 = vmul.f32 %v9056_v59, %v11155_v2  ;;  %v9058_v1 = vpop.eup %9057  ;;  %v5632_v2 = vld [vmem:[#allocation18 + $0xc0] sm:$0xff] }
0x14d5   :  { %v8795_v33 = vpack.c.bf16 %v5637_v50, %v5632_v2  ;;  %v5672_v59 = vld [vmem:[#allocation18 + $0x200] sm:$0xff] }
0x14d6   :  { %v5589_v39 = vadd.f32 %v5588_v23, %v5587_v15  ;;  %v5677_v23 = vld [vmem:[#allocation18 + $0x228] sm:$0xff]  ;;  %v5687_v15 = vld [vmem:[#allocation18 + $0x278] sm:$0xff] }
0x14d8   :  { %9059 = vtanh.f32 %v5589_v39 }
0x14d9   :  { %9061 = vpow2.f32 %v356_v25 }
0x14e2   :  { %v9060_v16 = vpop.eup %9059 }
0x14e3   :  { %v5591_v19 = vmul.f32 %v9060_v16, %v9058_v1  ;;  %v9062_v38 = vpop.eup %9061 }
0x14e5   :  { %v5607_v44 = vmul.f32 %v9062_v38, %v5591_v19 }
0x14e7   :  { %5753 = vmatmul.mubr.f32.vlgmr.msra.gmra.mrb[66].mxu1 %v5607_v44  ;;  %5824 = vmatmul.mubr.f32.vlgmr.msra.gmra.mrb[74].mxu0 %v5607_v44 }
0x14e8   :  { %8790 = vmatpush3.bf16.msra.mxu1 %v8789_v40  ;;  %7294 = vmatprep.mubr.msk.f32.mxu1 %vm9318_vm0, %v11624_v21 }
0x14e9   :  { %8791 = vmatprep.subr.bf16.mxu1 %v11623_v12  ;;  %8814 = vmatpush3.bf16.msra.mxu0 %v11158_v26  ;;  %v5652_v26 = vld [vmem:[#allocation18 + $0x160] sm:$0xff] }
0x14ea   :  { %8815 = vmatprep.subr.bf16.mxu0 %v11623_v12  ;;  %7329 = vmatprep.mubr.msk.f32.mxu0 %vm9318_vm0, %v11624_v21  ;;  %v8801_v51 = vpack.c.bf16 %v5657_v30, %v5652_v26 }
0x14ec   :  { %8793 = vmatpush3.bf16.msra.mxu1 %v8792_v17 }
0x14ed   :  { %8794 = vmatprep.subr.bf16.mxu1 %v11623_v12  ;;  %8817 = vmatpush3.bf16.msra.mxu0 %v11165_v48  ;;  %v8804_v48 = vpack.c.bf16 %v5667_v55, %v5662_v4 }
0x14ee   :  { %8818 = vmatprep.subr.bf16.mxu0 %v11623_v12 }
0x14f0   :  { %8796 = vmatpush3.bf16.msra.mxu1 %v8795_v33 }
0x14f1   :  { %8797 = vmatprep.subr.bf16.mxu1 %v11623_v12  ;;  %8820 = vmatpush3.bf16.msra.mxu0 %v11173_v53  ;;  %v8807_v53 = vpack.c.bf16 %v5677_v23, %v5672_v59 }
0x14f2   :  { %8821 = vmatprep.subr.bf16.mxu0 %v11623_v12 }
0x14f4   :  { %8799 = vmatpush3.bf16.msra.mxu1 %v8798_v10 }
0x14f5   :  { %8800 = vmatprep.subr.bf16.mxu1 %v11623_v12  ;;  %8823 = vmatpush3.bf16.msra.mxu0 %v11179_v63  ;;  %v8810_v63 = vpack.c.bf16 %v5687_v15, %v5682_v7 }
0x14f6   :  { %8824 = vmatprep.subr.bf16.mxu0 %v11623_v12 }
0x14f8   :  { %8802 = vmatpush3.bf16.msra.mxu1 %v8801_v51 }
0x14f9   :  { %8803 = vmatprep.subr.bf16.mxu1 %v11623_v12  ;;  %8826 = vmatpush3.bf16.msra.mxu0 %v11185_v14  ;;  %v5600_v14 = vld [vmem:[#allocation7 + $0x38] sm:$0xff] }
0x14fa   :  { %8827 = vmatprep.subr.bf16.mxu0 %v11623_v12 }
0x14fc   :  { %8805 = vmatpush3.bf16.msra.mxu1 %v8804_v48 }
0x14fd   :  { %8806 = vmatprep.subr.bf16.mxu1 %v11623_v12  ;;  %8829 = vmatpush3.bf16.msra.mxu0 %v11191_v58 }
0x14fe   :  { %8830 = vmatprep.subr.bf16.mxu0 %v11623_v12 }
0x1500   :  { %8808 = vmatpush3.bf16.msra.mxu1 %v8807_v53 }
0x1501   :  { %8809 = vmatprep.subr.bf16.mxu1 %v11623_v12  ;;  %8832 = vmatpush3.bf16.msra.mxu0 %v11202_v27 }
0x1502   :  { %8833 = vmatprep.subr.bf16.mxu0 %v11623_v12  ;;  %v5602_v12 = vld [vmem:[#allocation10 + $0x38] sm:$0xff] }
0x1503   :  { %v5603_v58 = vsub.f32 1.0, %v5602_v12 }
0x1504   :  { %8811 = vmatpush3.bf16.msra.mxu1 %v8810_v63 }
0x1505   :  { %8835 = vmatpush3.bf16.msra.mxu0 %v11206_v20  ;;  %8837 = vmatprep.subr.bf16.mxu1 %v11209_v42  ;;  %v11888_v42 = vld [vmem:[#allocation63_spill] sm:$0xff] }
0x1506   :  { %8869 = vmatprep.subr.bf16.mxu0 %v11211_v32  ;;  %v5993_v32 = vsub.f32 1.0, %v11888_v42 }
0x1507   :  { %7295 = vmatmul.mubr.f32.vlgmr.msra.gmra.mrb[68].mxu1 %v5607_v44 }
0x1508   :  { %8839 = vmatpush1.bf16.msra.mxu1 %v11213_v36  ;;  %6126 = vmatprep.mubr.f32.mxu1 %v11624_v21 }
0x1509   :  { %8841 = vmatprep.subr.bf16.mxu1 %v11218_v45  ;;  %v5901_v45 = vmul.f32 %v5602_v12, %v5600_v14 }
0x150c   :  { %8843 = vmatpush1.bf16.msra.mxu1 %v11220_v61 }
0x150d   :  { %8845 = vmatprep.subr.bf16.mxu1 %v11223_v37 }
0x1510   :  { %8847 = vmatpush1.bf16.msra.mxu1 %v11226_v34 }
0x1511   :  { %8849 = vmatprep.subr.bf16.mxu1 %v11229_v54 }
0x1514   :  { %8851 = vmatpush1.bf16.msra.mxu1 %v11232_v24 }
0x1515   :  { %8853 = vmatprep.subr.bf16.mxu1 %v11235_v46  ;;  %v11889_v46 = vld [vmem:[#allocation83_spill] sm:$0xff] }
0x1518   :  { %8855 = vmatpush1.bf16.msra.mxu1 %v11238_v11  ;;  %v11890_v11 = vld [vmem:[#allocation84_spill] sm:$0xff] }
0x1519   :  { %8857 = vmatprep.subr.bf16.mxu1 %v11241_v62 }
0x151c   :  { %8859 = vmatpush1.bf16.msra.mxu1 %v11302_v57 }
0x151d   :  { %8861 = vmatprep.subr.bf16.mxu1 %v11308_v56 }
0x1520   :  { %8863 = vmatpush1.bf16.msra.mxu1 %v11312_v0 }
0x1521   :  { %8865 = vmatprep.subr.bf16.mxu1 %v11320_v60 }
0x1524   :  { %8867 = vmatpush1.bf16.msra.mxu1 %v11324_v29 }
0x15ba   :  { %v5754_v27 = vpop.f32.mrb[66].mxu1  ;;  %v5825_v20 = vpop.f32.mrb[74].mxu0 }
0x15bb   :  { %v5900_v36 = vadd.f32 %v11254_v43, %v5754_v27  ;;  %v5756_v61 = vpop.f32.mrb[67].mxu1  ;;  %v5827_v37 = vpop.f32.mrb[75].mxu0  ;;  %v11892_v43 = vld [vmem:[#allocation86_spill] sm:$0xff] }
0x15bd   :  { %v5902_v34 = vmul.f32 %v5900_v36, %v5603_v58  ;;  %v5994_v54 = vmul.f32 %v5993_v32, %v5900_v36  ;;  %6242 = vst [vmem:[#allocation22 + $0xe8] sm:$0xff] %v5900_v36 }
0x15bf   :  { %v5903_v24 = vadd.f32 %v5902_v34, %v5901_v45 }
0x15c1   :  { %7330 = vmatmul.mubr.f32.vlgmr.msra.gmra.mrb[76].mxu0 %v5903_v24 }
0x15c2   :  { %8871 = vmatpush1.bf16.msra.mxu0 %v11268_v31  ;;  %6197 = vmatprep.mubr.f32.mxu0 %v11624_v21  ;;  %v11891_v21 = vld [vmem:[#allocation85_spill] sm:$0xff] }
0x15c3   :  { %8873 = vmatprep.subr.bf16.mxu0 %v11271_v49  ;;  %v11893_v49 = vld [vmem:[#allocation87_spill] sm:$0xff] }
0x15c6   :  { %8875 = vmatpush1.bf16.msra.mxu0 %v11274_v18  ;;  %v11894_v18 = vld [vmem:[#allocation88_spill] sm:$0xff] }
0x15c7   :  { %8877 = vmatprep.subr.bf16.mxu0 %v11278_v22 }
0x15ca   :  { %8879 = vmatpush1.bf16.msra.mxu0 %v11281_v8  ;;  %v11895_v8 = vld [vmem:[#allocation89_spill] sm:$0xff] }
0x15cb   :  { %8881 = vmatprep.subr.bf16.mxu0 %v11284_v28 }
0x15ce   :  { %8883 = vmatpush1.bf16.msra.mxu0 %v11287_v3 }
0x15cf   :  { %8885 = vmatprep.subr.bf16.mxu0 %v11290_v5 }
0x15d2   :  { %8887 = vmatpush1.bf16.msra.mxu0 %v11293_v13 }
0x15d3   :  { %8889 = vmatprep.subr.bf16.mxu0 %v11889_v46 }
0x15d6   :  { %8891 = vmatpush1.bf16.msra.mxu0 %v11890_v11 }
0x15d7   :  { %8893 = vmatprep.subr.bf16.mxu0 %v11891_v21 }
0x15da   :  { %v5896_v62 = vpop.f32.mrb[68].mxu1  ;;  %8895 = vmatpush1.bf16.msra.mxu0 %v11892_v43 }
0x15db   :  { %v7296_v31 = vpop.f32.mrb[69].mxu1  ;;  %8897 = vmatprep.subr.bf16.mxu0 %v11893_v49 }
0x15de   :  { %8899 = vmatpush1.bf16.msra.mxu0 %v11894_v18 }
0x1694   :  { %v5986_v22 = vpop.f32.mrb[76].mxu0 }
0x1695   :  { %v5987_v28 = vadd.f32 %v11895_v8, %v5986_v22  ;;  %v7331_v3 = vpop.f32.mrb[77].mxu0 }
0x1697   :  { %v5992_v5 = vmul.f32 %v5987_v28, %v11888_v42  ;;  %6243 = vst [vmem:[#allocation22 + $0xf0] sm:$0xff] %v5987_v28 }
0x1699   :  { %v5995_v13 = vadd.f32 %v5994_v54, %v5992_v5 }
0x169b   :  { %v5996_v57 = vmul.f32 %v5995_v13, %v5603_v58  ;;  %6244 = vst [vmem:[#allocation22 + $0xf8] sm:$0xff] %v5995_v13 }
0x169d   :  { %v5997_v56 = vadd.f32 %v5996_v57, %v5901_v45 }
0x169f   :  { %6127 = vmatmul.mubr.f32.vlgmr.msra.gmra.mrb[70].mxu1 %v5997_v56  ;;  %6241 = vst [vmem:[#allocation22 + $0xe0] sm:$0xff] %v5997_v56  ;;  %6198 = vmatmul.mubr.f32.vlgmr.msra.gmra.mrb[78].mxu0 %v5997_v56 }
0x16a0   :  { %9278 = shalt.err (!%p9275_p6)
}
0x16a1   :  { %s9279_s17 = scalar_lea.hbm %s11452_s16, 4096 }
0x16a2   :  { %p9280_p7 = scmp.ne.s32.totalorder %s11452_s16, %s9279_s17  ;;  %p9283_p8 = scmp.lt.u32.totalorder %s9279_s17, %s11452_s16 }
0x16a4   :  { %p9285_p9 = pnand %p9283_p8, %p9280_p7 }
0x16a6   :  { %9288 = shalt.err (!%p9285_p9)
}
0x16a7   :  { %6256 = dma.vmem_to_hbm [thread:$0]  %s6251_s30, 4096, %s11452_s16, [#allocation9], %s9314_s10, %s9314_s10, %s9315_s3  }
0x1772   :  { %v6128_v0 = vpop.f32.mrb[70].mxu1  ;;  %v6199_v60 = vpop.f32.mrb[78].mxu0 }
0x1773   :  { %v6130_v29 = vpop.f32.mrb[71].mxu1  ;;  %v6201_v25 = vpop.f32.mrb[79].mxu0 }
0x1774   :  { %9299 = dma.done.wait [#allocation9], 4096  }
0x1775   :  { %9300 = vsyncadd [#allocation9], 4294963200 }
0x1776   :  { %6260 = vsyncpa [#allocation8], 1 }
0x1777   :  { %6261 = vsyncpa [#allocation11], 1 }
0x1778   :  { %6262 = vsyncpa [#allocation14], 1 }
0x1779   :  { %6263 = vsyncpa [#allocation17], 1 }
0x177a   :  { %6264 = vsyncpa [#allocation20], 1 }
0x177b   :  { %6265 = vsyncpa [#allocation9], 1 }

</bundles_post_ra>
